<compile_context>
chip_gen: v7x
topology: tpu7x:2x2x1
jax: 0.10.0
libtpu: 0.0.40
codegen_flags: <defaults>
</compile_context>

<pallas_src>
import jax
import jax.numpy as jnp
from jax import lax
from jax.experimental import pallas as pl
from jax.experimental.pallas import tpu as pltpu


# ----------------------------------------------------------------------------
# Pallas kernels
# ----------------------------------------------------------------------------
def conv_pool_kernel(p_ref, w_ref, b_ref, o_ref):
    """conv (im2col matmul) + bias + 2x2/stride-2 maxpool.

    p_ref : (4, TM, D)  im2col patches, leading dim = pool-window offset
    w_ref : (D, C)      flattened conv weight (rows ordered (c_in, dy, dx))
    b_ref : (1, C)
    o_ref : (TM, C)     pooled conv rows (bias added after the max; valid since
                        the bias is constant per channel)
    """
    k4, tm, d = p_ref.shape
    y = jnp.dot(p_ref[...].reshape(k4 * tm, d), w_ref[...],
                preferred_element_type=jnp.float32)            # one MXU pass
    y = y.reshape(k4, tm, -1)                                  # layout-preserving
    m = jnp.maximum(jnp.maximum(y[0], y[1]), jnp.maximum(y[2], y[3]))
    o_ref[...] = m + b_ref[...]


def conv2_fc_kernel(p_ref, wc_ref, bc_ref, w1_ref, b1_ref, w2_ref, b2_ref, o_ref):
    """Fused conv2 + bias + ReLU + 2x2 maxpool + Linear(320,50) + Linear(50,10).

    p_ref  : (4, NB, 4000)  per-image patches (16 pooled positions x 250),
                            leading dim = pool-window offset
    wc_ref : (4000, 320)    block-diagonal conv2 weight: block p maps patch p to
                            the 20 channels of pooled position p, so the matmul
                            emits the flattened (h, w, c) feature row directly
    bc_ref : (1, 320)       conv2 bias tiled over the 16 pooled positions
    w1_ref : (320, 50), b1_ref : (1, 50)   fc1 (columns pre-permuted)
    w2_ref : (50, 10),  b2_ref : (1, 10)   fc2
    o_ref  : (NB, 10)
    """
    k4, nb, d = p_ref.shape
    y = jnp.dot(p_ref[...].reshape(k4 * nb, d), wc_ref[...],
                preferred_element_type=jnp.float32)            # (4*NB, 320)
    y = y.reshape(k4, nb, -1)
    m = jnp.maximum(jnp.maximum(y[0], y[1]), jnp.maximum(y[2], y[3]))  # maxpool
    h = jnp.maximum(m + bc_ref[...], 0.0)                      # bias + ReLU
    h = jnp.dot(h, w1_ref[...], preferred_element_type=jnp.float32) + b1_ref[...]
    o_ref[...] = (jnp.dot(h, w2_ref[...], preferred_element_type=jnp.float32)
                  + b2_ref[...])


# ----------------------------------------------------------------------------
# Wrapper (trace-time glue: patch extraction, weight permutations, grid sizing)
# ----------------------------------------------------------------------------
def _pick_grid(total, max_block, min_steps=2):
    """Largest block (multiple of 8, <= max_block) dividing `total`, with at
    least `min_steps` grid steps so both v7x TensorCores get work."""
    if total <= 8:
        return 1, total
    g = max(min_steps, -(-total // max_block))
    while total % g != 0 or (total // g) % 8 != 0:
        g += 1
    return g, total // g


def net_forward(x, params):
    """x: (N, 1, 28, 28) float32 (NCHW); params in PyTorch layouts."""
    (w1, b1, w2, b2, wf1, bf1, wf2, bf2) = params
    N = x.shape[0]

    # ---- stage 1: conv1 (1->10, k=5) + maxpool(2)   28 -> 24 -> 12 ----------
    pat1 = lax.conv_general_dilated_patches(
        x, (5, 5), (1, 1), 'VALID',
        dimension_numbers=('NCHW', 'OIHW', 'NHWC'))             # (N, 24, 24, 25)
    m1 = N * 12 * 12
    p1 = jnp.stack([pat1[:, pi::2, pj::2, :].reshape(m1, 25)
                    for pi in (0, 1) for pj in (0, 1)], axis=0)  # (4, m1, 25)
    g1, tm1 = _pick_grid(m1, 2048)
    y1 = pl.pallas_call(
        conv_pool_kernel,
        out_shape=jax.ShapeDtypeStruct((m1, 10), jnp.float32),
        grid=(g1,),
        in_specs=[pl.BlockSpec((4, tm1, 25), lambda i: (0, i, 0)),
                  pl.BlockSpec((25, 10), lambda i: (0, 0)),
                  pl.BlockSpec((1, 10), lambda i: (0, 0))],
        out_specs=pl.BlockSpec((tm1, 10), lambda i: (i, 0)),
        compiler_params=pltpu.CompilerParams(dimension_semantics=("parallel",)),
    )(p1, w1.reshape(10, 25).T, b1.reshape(1, 10))
    # rows are already (n, h, w): channel-last activation via a pure reshape
    y1 = y1.reshape(N, 12, 12, 10)

    # ---- stage 2+3: conv2 (10->20, k=5) + ReLU + maxpool(2) + fc, fused -----
    pat2 = lax.conv_general_dilated_patches(
        y1, (5, 5), (1, 1), 'VALID',
        dimension_numbers=('NHWC', 'HWIO', 'NHWC'))             # (N, 8, 8, 250)
    # one 4000-wide row per image and pool offset: 16 pooled positions x 250
    p2 = jnp.stack([pat2[:, pi::2, pj::2, :].reshape(N, 16 * 250)
                    for pi in (0, 1) for pj in (0, 1)], axis=0)  # (4, N, 4000)
    n_pad = -(-N // 16) * 16          # batch blocks stay multiples of 8, >=2 steps
    if n_pad != N:
        p2 = jnp.pad(p2, ((0, 0), (0, n_pad - N), (0, 0)))
    g2, nb = _pick_grid(n_pad, 64)

    # block-diagonal conv2 weight: (16*250, 16*20)
    w2_mat = w2.reshape(20, 250).T                               # (250, 20)
    w2_blk = jnp.kron(jnp.eye(16, dtype=w2_mat.dtype), w2_mat)   # (4000, 320)
    b2_row = jnp.tile(b2, 16).reshape(1, 320)
    # fold torch's (c, h, w) flatten order into fc1's weight (no data transpose)
    w1_fc = wf1.reshape(50, 20, 4, 4).transpose(2, 3, 1, 0).reshape(320, 50)

    out = pl.pallas_call(
        conv2_fc_kernel,
        out_shape=jax.ShapeDtypeStruct((n_pad, 10), jnp.float32),
        grid=(g2,),
        in_specs=[pl.BlockSpec((4, nb, 4000), lambda i: (0, i, 0)),
                  pl.BlockSpec((4000, 320), lambda i: (0, 0)),
                  pl.BlockSpec((1, 320), lambda i: (0, 0)),
                  pl.BlockSpec((320, 50), lambda i: (0, 0)),
                  pl.BlockSpec((1, 50), lambda i: (0, 0)),
                  pl.BlockSpec((50, 10), lambda i: (0, 0)),
                  pl.BlockSpec((1, 10), lambda i: (0, 0))],
        out_specs=pl.BlockSpec((nb, 10), lambda i: (i, 0)),
        compiler_params=pltpu.CompilerParams(dimension_semantics=("parallel",)),
    )(p2, w2_blk, b2_row, w1_fc, bf1.reshape(1, 50), wf2.T, bf2.reshape(1, 10))
    return out[:N]


# ----------------------------------------------------------------------------
# Pure-JAX reference (sanity check of the Pallas path)
# ----------------------------------------------------------------------------
def reference_forward(x, params):
    (w1, b1, w2, b2, wf1, bf1, wf2, bf2) = params
    dn = ('NCHW', 'OIHW', 'NCHW')

    def maxpool2(y):
        return lax.reduce_window(y, -jnp.inf, lax.max,
                                 (1, 1, 2, 2), (1, 1, 2, 2), 'VALID')

    y = lax.conv_general_dilated(x, w1, (1, 1), 'VALID', dimension_numbers=dn)
    y = y + b1[None, :, None, None]
    y = maxpool2(y)
    y = lax.conv_general_dilated(y, w2, (1, 1), 'VALID', dimension_numbers=dn)
    y = y + b2[None, :, None, None]
    y = jnp.maximum(y, 0.0)
    y = maxpool2(y)
    y = y.reshape(y.shape[0], -1)
    y = y @ wf1.T + bf1
    y = y @ wf2.T + bf2
    return y


# ----------------------------------------------------------------------------
if __name__ == "__main__":
    key = jax.random.PRNGKey(0)
    ks = jax.random.split(key, 9)

    # Deterministic synthetic parameters (PyTorch shapes).
    params = (
        jax.random.normal(ks[0], (10, 1, 5, 5), jnp.float32) * 0.1,   # conv1.w
        jax.random.normal(ks[1], (10,), jnp.float32) * 0.1,           # conv1.b
        jax.random.normal(ks[2], (20, 10, 5, 5), jnp.float32) * 0.1,  # conv2.w
        jax.random.normal(ks[3], (20,), jnp.float32) * 0.1,           # conv2.b
        jax.random.normal(ks[4], (50, 320), jnp.float32) * 0.05,      # fc1.w
        jax.random.normal(ks[5], (50,), jnp.float32) * 0.05,          # fc1.b
        jax.random.normal(ks[6], (10, 50), jnp.float32) * 0.05,       # fc2.w
        jax.random.normal(ks[7], (10,), jnp.float32) * 0.05,          # fc2.b
    )

    # Small batch of MNIST-shaped inputs (NCHW).
    x = jax.random.normal(ks[8], (2, 1, 28, 28), jnp.float32)

    out = jax.block_until_ready(jax.jit(net_forward)(x, params))
    ref = jax.block_until_ready(reference_forward(x, params))

    assert out.shape == (2, 10), out.shape
    err = float(jnp.max(jnp.abs(out - ref)))
    assert jnp.allclose(out, ref, atol=2e-3, rtol=2e-3), f"max abs err {err}"

    print("KERNEL_OK")
</pallas_src>

<mosaic_0001>
module attributes {stable_mosaic.version = 11 : i64} {
  func.func @conv_pool_kernel(%arg0: i32, %arg1: memref<4x144x25xf32, #tpu.memory_space<vmem>>, %arg2: memref<25x10xf32, #tpu.memory_space<vmem>>, %arg3: memref<1x10xf32, #tpu.memory_space<vmem>>, %arg4: memref<144x10xf32, #tpu.memory_space<vmem>>) attributes {dimension_semantics = [#tpu.dimension_semantics<parallel>], iteration_bounds = array<i64: 2>, scalar_prefetch = 0 : i64, scratch_operands = 0 : i64, tpu.core_type = #tpu.core_type<tc>, window_params = [{transform_indices = @transform_0, window_bounds = array<i64: 4, 144, 25>}, {pipeline_mode = #tpu.pipeline_mode<synchronous>, transform_indices = @transform_1, window_bounds = array<i64: 25, 10>}, {pipeline_mode = #tpu.pipeline_mode<synchronous>, transform_indices = @transform_2, window_bounds = array<i64: 1, 10>}, {transform_indices = @transform_3, window_bounds = array<i64: 144, 10>}]} {
    %c0 = arith.constant 0 : index
    %c0_0 = arith.constant 0 : index
    %c0_1 = arith.constant 0 : index
    %0 = vector.load %arg1[%c0, %c0_0, %c0_1] : memref<4x144x25xf32, #tpu.memory_space<vmem>>, vector<4x144x25xf32>
    %1 = vector.shape_cast %0 : vector<4x144x25xf32> to vector<576x25xf32>
    %c0_2 = arith.constant 0 : index
    %c0_3 = arith.constant 0 : index
    %2 = vector.load %arg2[%c0_2, %c0_3] : memref<25x10xf32, #tpu.memory_space<vmem>>, vector<25x10xf32>
    %cst = arith.constant dense<0.000000e+00> : vector<576x10xf32>
    %3 = tpu.matmul %1, %2, %cst {dimension_numbers = #tpu.dot_dimension_numbers<[1], [0], [0], [1], [0, 0, 1, 1], [], []>} : vector<576x25xf32>, vector<25x10xf32>, vector<576x10xf32> -> vector<576x10xf32>
    %4 = vector.shape_cast %3 : vector<576x10xf32> to vector<4x144x10xf32>
    %5 = vector.extract_strided_slice %4 {offsets = [0, 0, 0], sizes = [1, 144, 10], strides = [1, 1, 1]} : vector<4x144x10xf32> to vector<1x144x10xf32>
    %6 = vector.shape_cast %5 : vector<1x144x10xf32> to vector<144x10xf32>
    %7 = vector.extract_strided_slice %4 {offsets = [1, 0, 0], sizes = [1, 144, 10], strides = [1, 1, 1]} : vector<4x144x10xf32> to vector<1x144x10xf32>
    %8 = vector.shape_cast %7 : vector<1x144x10xf32> to vector<144x10xf32>
    %9 = arith.maximumf %6, %8 : vector<144x10xf32>
    %10 = vector.extract_strided_slice %4 {offsets = [2, 0, 0], sizes = [1, 144, 10], strides = [1, 1, 1]} : vector<4x144x10xf32> to vector<1x144x10xf32>
    %11 = vector.shape_cast %10 : vector<1x144x10xf32> to vector<144x10xf32>
    %12 = vector.extract_strided_slice %4 {offsets = [3, 0, 0], sizes = [1, 144, 10], strides = [1, 1, 1]} : vector<4x144x10xf32> to vector<1x144x10xf32>
    %13 = vector.shape_cast %12 : vector<1x144x10xf32> to vector<144x10xf32>
    %14 = arith.maximumf %11, %13 : vector<144x10xf32>
    %15 = arith.maximumf %9, %14 : vector<144x10xf32>
    %c0_4 = arith.constant 0 : index
    %c0_5 = arith.constant 0 : index
    %16 = vector.load %arg3[%c0_4, %c0_5] : memref<1x10xf32, #tpu.memory_space<vmem>>, vector<1x10xf32>
    %17 = vector.broadcast %16 : vector<1x10xf32> to vector<144x10xf32>
    %18 = arith.addf %15, %17 : vector<144x10xf32>
    %c0_6 = arith.constant 0 : index
    %c0_7 = arith.constant 0 : index
    %19 = vector.load %arg4[%c0_6, %c0_7] : memref<144x10xf32, #tpu.memory_space<vmem>>, vector<144x10xf32>
    tpu.vector_store %arg4[%c0_6, %c0_7], %18 {strides = array<i32>} : memref<144x10xf32, #tpu.memory_space<vmem>>, vector<144x10xf32>,
    return
  }
  func.func @transform_0(%arg0: i32) -> (i32, i32, i32) {
    %c0_i32 = arith.constant 0 : i32
    %c0_i32_0 = arith.constant 0 : i32
    %c0_i32_1 = arith.constant 0 : i32
    return %c0_i32, %arg0, %c0_i32_0 : i32, i32, i32
  }
  func.func @transform_1(%arg0: i32) -> (i32, i32) {
    %c0_i32 = arith.constant 0 : i32
    %c0_i32_0 = arith.constant 0 : i32
    %c0_i32_1 = arith.constant 0 : i32
    return %c0_i32, %c0_i32_0 : i32, i32
  }
  func.func @transform_2(%arg0: i32) -> (i32, i32) {
    %c0_i32 = arith.constant 0 : i32
    %c0_i32_0 = arith.constant 0 : i32
    %c0_i32_1 = arith.constant 0 : i32
    return %c0_i32, %c0_i32_0 : i32, i32
  }
  func.func @transform_3(%arg0: i32) -> (i32, i32) {
    %c0_i32 = arith.constant 0 : i32
    %c0_i32_0 = arith.constant 0 : i32
    return %arg0, %c0_i32 : i32, i32
  }
}

module attributes {stable_mosaic.version = 11 : i64} {
  func.func @conv2_fc_kernel(%arg0: i32, %arg1: memref<4x8x4000xf32, #tpu.memory_space<vmem>>, %arg2: memref<4000x320xf32, #tpu.memory_space<vmem>>, %arg3: memref<1x320xf32, #tpu.memory_space<vmem>>, %arg4: memref<320x50xf32, #tpu.memory_space<vmem>>, %arg5: memref<1x50xf32, #tpu.memory_space<vmem>>, %arg6: memref<50x10xf32, #tpu.memory_space<vmem>>, %arg7: memref<1x10xf32, #tpu.memory_space<vmem>>, %arg8: memref<8x10xf32, #tpu.memory_space<vmem>>) attributes {dimension_semantics = [#tpu.dimension_semantics<parallel>], iteration_bounds = array<i64: 2>, scalar_prefetch = 0 : i64, scratch_operands = 0 : i64, tpu.core_type = #tpu.core_type<tc>, window_params = [{transform_indices = @transform_0, window_bounds = array<i64: 4, 8, 4000>}, {pipeline_mode = #tpu.pipeline_mode<synchronous>, transform_indices = @transform_1, window_bounds = array<i64: 4000, 320>}, {pipeline_mode = #tpu.pipeline_mode<synchronous>, transform_indices = @transform_2, window_bounds = array<i64: 1, 320>}, {pipeline_mode = #tpu.pipeline_mode<synchronous>, transform_indices = @transform_3, window_bounds = array<i64: 320, 50>}, {pipeline_mode = #tpu.pipeline_mode<synchronous>, transform_indices = @transform_4, window_bounds = array<i64: 1, 50>}, {pipeline_mode = #tpu.pipeline_mode<synchronous>, transform_indices = @transform_5, window_bounds = array<i64: 50, 10>}, {pipeline_mode = #tpu.pipeline_mode<synchronous>, transform_indices = @transform_6, window_bounds = array<i64: 1, 10>}, {transform_indices = @transform_7, window_bounds = array<i64: 8, 10>}]} {
    %c0 = arith.constant 0 : index
    %c0_0 = arith.constant 0 : index
    %c0_1 = arith.constant 0 : index
    %0 = vector.load %arg1[%c0, %c0_0, %c0_1] : memref<4x8x4000xf32, #tpu.memory_space<vmem>>, vector<4x8x4000xf32>
    %1 = vector.shape_cast %0 : vector<4x8x4000xf32> to vector<32x4000xf32>
    %c0_2 = arith.constant 0 : index
    %c0_3 = arith.constant 0 : index
    %2 = vector.load %arg2[%c0_2, %c0_3] : memref<4000x320xf32, #tpu.memory_space<vmem>>, vector<4000x320xf32>
    %cst = arith.constant dense<0.000000e+00> : vector<32x320xf32>
    %3 = tpu.matmul %1, %2, %cst {dimension_numbers = #tpu.dot_dimension_numbers<[1], [0], [0], [1], [0, 0, 1, 1], [], []>} : vector<32x4000xf32>, vector<4000x320xf32>, vector<32x320xf32> -> vector<32x320xf32>
    %4 = vector.shape_cast %3 : vector<32x320xf32> to vector<4x8x320xf32>
    %5 = vector.extract_strided_slice %4 {offsets = [0, 0, 0], sizes = [1, 8, 320], strides = [1, 1, 1]} : vector<4x8x320xf32> to vector<1x8x320xf32>
    %6 = vector.shape_cast %5 : vector<1x8x320xf32> to vector<8x320xf32>
    %7 = vector.extract_strided_slice %4 {offsets = [1, 0, 0], sizes = [1, 8, 320], strides = [1, 1, 1]} : vector<4x8x320xf32> to vector<1x8x320xf32>
    %8 = vector.shape_cast %7 : vector<1x8x320xf32> to vector<8x320xf32>
    %9 = arith.maximumf %6, %8 : vector<8x320xf32>
    %10 = vector.extract_strided_slice %4 {offsets = [2, 0, 0], sizes = [1, 8, 320], strides = [1, 1, 1]} : vector<4x8x320xf32> to vector<1x8x320xf32>
    %11 = vector.shape_cast %10 : vector<1x8x320xf32> to vector<8x320xf32>
    %12 = vector.extract_strided_slice %4 {offsets = [3, 0, 0], sizes = [1, 8, 320], strides = [1, 1, 1]} : vector<4x8x320xf32> to vector<1x8x320xf32>
    %13 = vector.shape_cast %12 : vector<1x8x320xf32> to vector<8x320xf32>
    %14 = arith.maximumf %11, %13 : vector<8x320xf32>
    %15 = arith.maximumf %9, %14 : vector<8x320xf32>
    %c0_4 = arith.constant 0 : index
    %c0_5 = arith.constant 0 : index
    %16 = vector.load %arg3[%c0_4, %c0_5] : memref<1x320xf32, #tpu.memory_space<vmem>>, vector<1x320xf32>
    %17 = vector.broadcast %16 : vector<1x320xf32> to vector<8x320xf32>
    %18 = arith.addf %15, %17 : vector<8x320xf32>
    %cst_6 = arith.constant 0.000000e+00 : f32
    %19 = vector.broadcast %cst_6 : f32 to vector<8x320xf32>
    %20 = arith.maximumf %18, %19 : vector<8x320xf32>
    %c0_7 = arith.constant 0 : index
    %c0_8 = arith.constant 0 : index
    %21 = vector.load %arg4[%c0_7, %c0_8] : memref<320x50xf32, #tpu.memory_space<vmem>>, vector<320x50xf32>
    %cst_9 = arith.constant dense<0.000000e+00> : vector<8x50xf32>
    %22 = tpu.matmul %20, %21, %cst_9 {dimension_numbers = #tpu.dot_dimension_numbers<[1], [0], [0], [1], [0, 0, 1, 1], [], []>} : vector<8x320xf32>, vector<320x50xf32>, vector<8x50xf32> -> vector<8x50xf32>
    %c0_10 = arith.constant 0 : index
    %c0_11 = arith.constant 0 : index
    %23 = vector.load %arg5[%c0_10, %c0_11] : memref<1x50xf32, #tpu.memory_space<vmem>>, vector<1x50xf32>
    %24 = vector.broadcast %23 : vector<1x50xf32> to vector<8x50xf32>
    %25 = arith.addf %22, %24 : vector<8x50xf32>
    %c0_12 = arith.constant 0 : index
    %c0_13 = arith.constant 0 : index
    %26 = vector.load %arg6[%c0_12, %c0_13] : memref<50x10xf32, #tpu.memory_space<vmem>>, vector<50x10xf32>
    %cst_14 = arith.constant dense<0.000000e+00> : vector<8x10xf32>
    %27 = tpu.matmul %25, %26, %cst_14 {dimension_numbers = #tpu.dot_dimension_numbers<[1], [0], [0], [1], [0, 0, 1, 1], [], []>} : vector<8x50xf32>, vector<50x10xf32>, vector<8x10xf32> -> vector<8x10xf32>
    %c0_15 = arith.constant 0 : index
    %c0_16 = arith.constant 0 : index
    %28 = vector.load %arg7[%c0_15, %c0_16] : memref<1x10xf32, #tpu.memory_space<vmem>>, vector<1x10xf32>
    %29 = vector.broadcast %28 : vector<1x10xf32> to vector<8x10xf32>
    %30 = arith.addf %27, %29 : vector<8x10xf32>
    %c0_17 = arith.constant 0 : index
    %c0_18 = arith.constant 0 : index
    %31 = vector.load %arg8[%c0_17, %c0_18] : memref<8x10xf32, #tpu.memory_space<vmem>>, vector<8x10xf32>
    tpu.vector_store %arg8[%c0_17, %c0_18], %30 {strides = array<i32>} : memref<8x10xf32, #tpu.memory_space<vmem>>, vector<8x10xf32>,
    return
  }
  func.func @transform_0(%arg0: i32) -> (i32, i32, i32) {
    %c0_i32 = arith.constant 0 : i32
    %c0_i32_0 = arith.constant 0 : i32
    %c0_i32_1 = arith.constant 0 : i32
    return %c0_i32, %arg0, %c0_i32_0 : i32, i32, i32
  }
  func.func @transform_1(%arg0: i32) -> (i32, i32) {
    %c0_i32 = arith.constant 0 : i32
    %c0_i32_0 = arith.constant 0 : i32
    %c0_i32_1 = arith.constant 0 : i32
    return %c0_i32, %c0_i32_0 : i32, i32
  }
  func.func @transform_2(%arg0: i32) -> (i32, i32) {
    %c0_i32 = arith.constant 0 : i32
    %c0_i32_0 = arith.constant 0 : i32
    %c0_i32_1 = arith.constant 0 : i32
    return %c0_i32, %c0_i32_0 : i32, i32
  }
  func.func @transform_3(%arg0: i32) -> (i32, i32) {
    %c0_i32 = arith.constant 0 : i32
    %c0_i32_0 = arith.constant 0 : i32
    %c0_i32_1 = arith.constant 0 : i32
    return %c0_i32, %c0_i32_0 : i32, i32
  }
  func.func @transform_4(%arg0: i32) -> (i32, i32) {
    %c0_i32 = arith.constant 0 : i32
    %c0_i32_0 = arith.constant 0 : i32
    %c0_i32_1 = arith.constant 0 : i32
    return %c0_i32, %c0_i32_0 : i32, i32
  }
  func.func @transform_5(%arg0: i32) -> (i32, i32) {
    %c0_i32 = arith.constant 0 : i32
    %c0_i32_0 = arith.constant 0 : i32
    %c0_i32_1 = arith.constant 0 : i32
    return %c0_i32, %c0_i32_0 : i32, i32
  }
  func.func @transform_6(%arg0: i32) -> (i32, i32) {
    %c0_i32 = arith.constant 0 : i32
    %c0_i32_0 = arith.constant 0 : i32
    %c0_i32_1 = arith.constant 0 : i32
    return %c0_i32, %c0_i32_0 : i32, i32
  }
  func.func @transform_7(%arg0: i32) -> (i32, i32) {
    %c0_i32 = arith.constant 0 : i32
    %c0_i32_0 = arith.constant 0 : i32
    return %arg0, %c0_i32 : i32, i32
  }
}

</mosaic_0001>

<bundles_post_ra>
// kernel: net_forward.2
= control target key start
LH: loop header
LB: loop body
LE: loop exit
PB: predicated region body
PF: predicated region fallthrough
CT: control target
= control target key end

     0   :  { %s1736_s12 = smov 0   ;;  %s1738_s13 = smov 0   ;;  %s2239_s0 = inlined_call_operand.vmem [shape: f32[4,288,25], index: 0, kind: input, shape index: {}]   ;;  %s2240_s1 = inlined_call_operand.vmem [shape: f32[25,10], index: 1, kind: input, shape index: {}]   ;;  %s2241_s2 = inlined_call_operand.vmem [shape: f32[1,10], index: 2, kind: input, shape index: {}]   ;;  %s2242_s3 = inlined_call_operand.vmem [shape: f32[288,10], index: 3, kind: output, shape index: {}]  }
   0x1   :  { %s1740_s14 = smov 0  }
   0x2 LB: > { %s1374_s15 = sadd.s32 4294967295, %s1713_s14   ;;  %s1753_s16 = sadd.s32 1, %s1713_s14   ;;  %s1713_s14 = sphi %s1740_s14, %s2245_s14   ;;  %s1709_s13 = sphi %s1738_s13, %s2244_s13   ;;  %s1705_s12 = sphi %s1736_s12, %s2243_s12  }
   0x3   : > { %s17_s17 = ssub.s32 %s1713_s14, %s1753_s16  ;;  %s20_s18 = sadd.s32 1, %s1709_s13 }
   0x4   : > { %p18_p0 = scmp.eq.s32.totalorder %s17_s17, 0  ;;  %p27_p1 = scmp.ne.s32.totalorder %s1709_s13, %s1705_s12 }
   0x5   : > { %p28_p2 = scmp.eq.s32.totalorder %s1713_s14, 0  ;;  %p1377_p4 = scmp.ge.s32.totalorder %s1713_s14, 2 }
   0x6   : > { %s1762_s19 = scalar_select %p18_p0, %s1709_s13, %s20_s18  }
   0x7   : > { %p29_p3 = por %p28_p2, %p27_p1  ;;  %127 = sbr.rel (%p1377_p4) target bundleno = 55 (0x37), region = 24 }
   0xe   : > { %130 = sbr.rel (!%p29_p3) target bundleno = 55 (0x37), region = 28  ;;  %s132_s20 = sand.u32 (%p29_p3), 1, %s1709_s13  }
   0xf   : > { %s1457_s21 = smul.u32 (%p29_p3), 144, %s1713_s14 }
  0x10   : > { %s1664_s22 = smul.u32 (%p29_p3), 576, %s132_s20 }
  0x11   : > { %s1770_s25 = scalar_lea.vmem (%p29_p3), %s2239_s0, %s1457_s21 }
  0x12   : > { %v307_v0 = vld [vmem:[%s1770_s25] sm:$0xff] (%p29_p3)  ;;  %v309_v1 = vld [vmem:[%s1770_s25 + $0x8] sm:$0xff] (%p29_p3)  ;;  %v311_v2 = vld [vmem:[%s1770_s25 + $0x10] sm:$0xff] (%p29_p3)  ;;  %s1775_s26 = scalar_lea.vmem (%p29_p3), [#allocation2], %s1664_s22 }
  0x13   : > { %308 = vst [vmem:[%s1775_s26] sm:$0xff] (%p29_p3), %v307_v0  ;;  %310 = vst [vmem:[%s1775_s26 + $0x8] sm:$0xff] (%p29_p3), %v309_v1  ;;  %v313_v3 = vld [vmem:[%s1770_s25 + $0x18] sm:$0xff] (%p29_p3)  ;;  %v315_v4 = vld [vmem:[%s1770_s25 + $0x20] sm:$0xff] (%p29_p3) }
  0x14   : > { %312 = vst [vmem:[%s1775_s26 + $0x10] sm:$0xff] (%p29_p3), %v311_v2  ;;  %v317_v5 = vld [vmem:[%s1770_s25 + $0x28] sm:$0xff] (%p29_p3)  ;;  %314 = vst [vmem:[%s1775_s26 + $0x18] sm:$0xff] (%p29_p3), %v313_v3  ;;  %v319_v6 = vld [vmem:[%s1770_s25 + $0x30] sm:$0xff] (%p29_p3) }
  0x15   : > { %316 = vst [vmem:[%s1775_s26 + $0x20] sm:$0xff] %v315_v4  ;;  %318 = vst [vmem:[%s1775_s26 + $0x28] sm:$0xff] %v317_v5  ;;  %v321_v7 = vld [vmem:[%s1770_s25 + $0x38] sm:$0xff]  ;;  %v323_v8 = vld [vmem:[%s1770_s25 + $0x40] sm:$0xff] }
  0x16   : > { %320 = vst [vmem:[%s1775_s26 + $0x30] sm:$0xff] %v319_v6  ;;  %322 = vst [vmem:[%s1775_s26 + $0x38] sm:$0xff] %v321_v7  ;;  %v325_v9 = vld [vmem:[%s1770_s25 + $0x48] sm:$0xff]  ;;  %v327_v10 = vld [vmem:[%s1770_s25 + $0x50] sm:$0xff] }
  0x17   : > { %324 = vst [vmem:[%s1775_s26 + $0x40] sm:$0xff] %v323_v8  ;;  %v329_v11 = vld [vmem:[%s1770_s25 + $0x58] sm:$0xff]  ;;  %326 = vst [vmem:[%s1775_s26 + $0x48] sm:$0xff] %v325_v9  ;;  %v331_v12 = vld [vmem:[%s1770_s25 + $0x60] sm:$0xff] }
  0x18   : > { %328 = vst [vmem:[%s1775_s26 + $0x50] sm:$0xff] %v327_v10  ;;  %330 = vst [vmem:[%s1775_s26 + $0x58] sm:$0xff] %v329_v11  ;;  %v333_v13 = vld [vmem:[%s1770_s25 + $0x68] sm:$0xff]  ;;  %v335_v14 = vld [vmem:[%s1770_s25 + $0x70] sm:$0xff] }
  0x19   : > { %332 = vst [vmem:[%s1775_s26 + $0x60] sm:$0xff] %v331_v12  ;;  %334 = vst [vmem:[%s1775_s26 + $0x68] sm:$0xff] %v333_v13  ;;  %v337_v15 = vld [vmem:[%s1770_s25 + $0x78] sm:$0xff]  ;;  %v339_v16 = vld [vmem:[%s1770_s25 + $0x80] sm:$0xff] }
  0x1a   : > { %336 = vst [vmem:[%s1775_s26 + $0x70] sm:$0xff] %v335_v14  ;;  %v341_v17 = vld [vmem:[%s1770_s25 + $0x88] sm:$0xff]  ;;  %338 = vst [vmem:[%s1775_s26 + $0x78] sm:$0xff] %v337_v15  ;;  %v343_v18 = vld [vmem:[%s1770_s25 + $0x120] sm:$0xff] }
  0x1b   : > { %340 = vst [vmem:[%s1775_s26 + $0x80] sm:$0xff] %v339_v16  ;;  %342 = vst [vmem:[%s1775_s26 + $0x88] sm:$0xff] %v341_v17  ;;  %v345_v19 = vld [vmem:[%s1770_s25 + $0x128] sm:$0xff]  ;;  %v347_v20 = vld [vmem:[%s1770_s25 + $0x130] sm:$0xff] }
  0x1c   : > { %344 = vst [vmem:[%s1775_s26 + $0x90] sm:$0xff] %v343_v18  ;;  %346 = vst [vmem:[%s1775_s26 + $0x98] sm:$0xff] %v345_v19  ;;  %v349_v21 = vld [vmem:[%s1770_s25 + $0x138] sm:$0xff]  ;;  %v351_v22 = vld [vmem:[%s1770_s25 + $0x140] sm:$0xff] }
  0x1d   : > { %348 = vst [vmem:[%s1775_s26 + $0xa0] sm:$0xff] %v347_v20  ;;  %v353_v23 = vld [vmem:[%s1770_s25 + $0x148] sm:$0xff]  ;;  %350 = vst [vmem:[%s1775_s26 + $0xa8] sm:$0xff] %v349_v21  ;;  %v355_v24 = vld [vmem:[%s1770_s25 + $0x150] sm:$0xff] }
  0x1e   : > { %352 = vst [vmem:[%s1775_s26 + $0xb0] sm:$0xff] %v351_v22  ;;  %354 = vst [vmem:[%s1775_s26 + $0xb8] sm:$0xff] %v353_v23  ;;  %v357_v25 = vld [vmem:[%s1770_s25 + $0x158] sm:$0xff]  ;;  %v359_v26 = vld [vmem:[%s1770_s25 + $0x160] sm:$0xff] }
  0x1f   : > { %356 = vst [vmem:[%s1775_s26 + $0xc0] sm:$0xff] %v355_v24  ;;  %358 = vst [vmem:[%s1775_s26 + $0xc8] sm:$0xff] %v357_v25  ;;  %v361_v27 = vld [vmem:[%s1770_s25 + $0x168] sm:$0xff]  ;;  %v363_v28 = vld [vmem:[%s1770_s25 + $0x170] sm:$0xff] }
  0x20   : > { %360 = vst [vmem:[%s1775_s26 + $0xd0] sm:$0xff] %v359_v26  ;;  %v365_v29 = vld [vmem:[%s1770_s25 + $0x178] sm:$0xff]  ;;  %362 = vst [vmem:[%s1775_s26 + $0xd8] sm:$0xff] %v361_v27  ;;  %v367_v30 = vld [vmem:[%s1770_s25 + $0x180] sm:$0xff] }
  0x21   : > { %364 = vst [vmem:[%s1775_s26 + $0xe0] sm:$0xff] %v363_v28  ;;  %366 = vst [vmem:[%s1775_s26 + $0xe8] sm:$0xff] %v365_v29  ;;  %v369_v31 = vld [vmem:[%s1770_s25 + $0x188] sm:$0xff]  ;;  %v371_v32 = vld [vmem:[%s1770_s25 + $0x190] sm:$0xff] }
  0x22   : > { %368 = vst [vmem:[%s1775_s26 + $0xf0] sm:$0xff] %v367_v30  ;;  %370 = vst [vmem:[%s1775_s26 + $0xf8] sm:$0xff] %v369_v31  ;;  %v373_v33 = vld [vmem:[%s1770_s25 + $0x198] sm:$0xff]  ;;  %v375_v34 = vld [vmem:[%s1770_s25 + $0x1a0] sm:$0xff] }
  0x23   : > { %372 = vst [vmem:[%s1775_s26 + $0x100] sm:$0xff] %v371_v32  ;;  %v377_v35 = vld [vmem:[%s1770_s25 + $0x1a8] sm:$0xff]  ;;  %374 = vst [vmem:[%s1775_s26 + $0x108] sm:$0xff] %v373_v33  ;;  %v379_v36 = vld [vmem:[%s1770_s25 + $0x240] sm:$0xff] }
  0x24   : > { %376 = vst [vmem:[%s1775_s26 + $0x110] sm:$0xff] %v375_v34  ;;  %378 = vst [vmem:[%s1775_s26 + $0x118] sm:$0xff] %v377_v35  ;;  %v381_v37 = vld [vmem:[%s1770_s25 + $0x248] sm:$0xff]  ;;  %v383_v38 = vld [vmem:[%s1770_s25 + $0x250] sm:$0xff] }
  0x25   : > { %380 = vst [vmem:[%s1775_s26 + $0x120] sm:$0xff] %v379_v36  ;;  %382 = vst [vmem:[%s1775_s26 + $0x128] sm:$0xff] %v381_v37  ;;  %v385_v39 = vld [vmem:[%s1770_s25 + $0x258] sm:$0xff]  ;;  %v387_v40 = vld [vmem:[%s1770_s25 + $0x260] sm:$0xff] }
  0x26   : > { %384 = vst [vmem:[%s1775_s26 + $0x130] sm:$0xff] %v383_v38  ;;  %v389_v41 = vld [vmem:[%s1770_s25 + $0x268] sm:$0xff]  ;;  %386 = vst [vmem:[%s1775_s26 + $0x138] sm:$0xff] %v385_v39  ;;  %v391_v42 = vld [vmem:[%s1770_s25 + $0x270] sm:$0xff] }
  0x27   : > { %388 = vst [vmem:[%s1775_s26 + $0x140] sm:$0xff] %v387_v40  ;;  %390 = vst [vmem:[%s1775_s26 + $0x148] sm:$0xff] %v389_v41  ;;  %v393_v43 = vld [vmem:[%s1770_s25 + $0x278] sm:$0xff]  ;;  %v395_v44 = vld [vmem:[%s1770_s25 + $0x280] sm:$0xff] }
  0x28   : > { %392 = vst [vmem:[%s1775_s26 + $0x150] sm:$0xff] %v391_v42  ;;  %394 = vst [vmem:[%s1775_s26 + $0x158] sm:$0xff] %v393_v43  ;;  %v397_v45 = vld [vmem:[%s1770_s25 + $0x288] sm:$0xff]  ;;  %v399_v46 = vld [vmem:[%s1770_s25 + $0x290] sm:$0xff] }
  0x29   : > { %396 = vst [vmem:[%s1775_s26 + $0x160] sm:$0xff] %v395_v44  ;;  %v401_v47 = vld [vmem:[%s1770_s25 + $0x298] sm:$0xff]  ;;  %398 = vst [vmem:[%s1775_s26 + $0x168] sm:$0xff] %v397_v45  ;;  %v403_v48 = vld [vmem:[%s1770_s25 + $0x2a0] sm:$0xff] }
  0x2a   : > { %400 = vst [vmem:[%s1775_s26 + $0x170] sm:$0xff] %v399_v46  ;;  %402 = vst [vmem:[%s1775_s26 + $0x178] sm:$0xff] %v401_v47  ;;  %v405_v49 = vld [vmem:[%s1770_s25 + $0x2a8] sm:$0xff]  ;;  %v407_v50 = vld [vmem:[%s1770_s25 + $0x2b0] sm:$0xff] }
  0x2b   : > { %404 = vst [vmem:[%s1775_s26 + $0x180] sm:$0xff] %v403_v48  ;;  %406 = vst [vmem:[%s1775_s26 + $0x188] sm:$0xff] %v405_v49  ;;  %v409_v51 = vld [vmem:[%s1770_s25 + $0x2b8] sm:$0xff]  ;;  %v411_v52 = vld [vmem:[%s1770_s25 + $0x2c0] sm:$0xff] }
  0x2c   : > { %408 = vst [vmem:[%s1775_s26 + $0x190] sm:$0xff] %v407_v50  ;;  %v413_v53 = vld [vmem:[%s1770_s25 + $0x2c8] sm:$0xff]  ;;  %410 = vst [vmem:[%s1775_s26 + $0x198] sm:$0xff] %v409_v51  ;;  %v415_v54 = vld [vmem:[%s1770_s25 + $0x360] sm:$0xff] }
  0x2d   : > { %412 = vst [vmem:[%s1775_s26 + $0x1a0] sm:$0xff] %v411_v52  ;;  %414 = vst [vmem:[%s1775_s26 + $0x1a8] sm:$0xff] %v413_v53  ;;  %v417_v55 = vld [vmem:[%s1770_s25 + $0x368] sm:$0xff]  ;;  %v419_v56 = vld [vmem:[%s1770_s25 + $0x370] sm:$0xff] }
  0x2e   : > { %416 = vst [vmem:[%s1775_s26 + $0x1b0] sm:$0xff] %v415_v54  ;;  %418 = vst [vmem:[%s1775_s26 + $0x1b8] sm:$0xff] %v417_v55  ;;  %v421_v57 = vld [vmem:[%s1770_s25 + $0x378] sm:$0xff]  ;;  %v423_v58 = vld [vmem:[%s1770_s25 + $0x380] sm:$0xff] }
  0x2f   : > { %420 = vst [vmem:[%s1775_s26 + $0x1c0] sm:$0xff] %v419_v56  ;;  %v425_v59 = vld [vmem:[%s1770_s25 + $0x388] sm:$0xff]  ;;  %422 = vst [vmem:[%s1775_s26 + $0x1c8] sm:$0xff] %v421_v57  ;;  %v427_v60 = vld [vmem:[%s1770_s25 + $0x390] sm:$0xff] }
  0x30   : > { %424 = vst [vmem:[%s1775_s26 + $0x1d0] sm:$0xff] %v423_v58  ;;  %426 = vst [vmem:[%s1775_s26 + $0x1d8] sm:$0xff] %v425_v59  ;;  %v429_v61 = vld [vmem:[%s1770_s25 + $0x398] sm:$0xff]  ;;  %v431_v62 = vld [vmem:[%s1770_s25 + $0x3a0] sm:$0xff] }
  0x31   : > { %428 = vst [vmem:[%s1775_s26 + $0x1e0] sm:$0xff] %v427_v60  ;;  %430 = vst [vmem:[%s1775_s26 + $0x1e8] sm:$0xff] %v429_v61  ;;  %v433_v63 = vld [vmem:[%s1770_s25 + $0x3a8] sm:$0xff]  ;;  %v435_v0 = vld [vmem:[%s1770_s25 + $0x3b0] sm:$0xff] }
  0x32   : > { %432 = vst [vmem:[%s1775_s26 + $0x1f0] sm:$0xff] %v431_v62  ;;  %v437_v1 = vld [vmem:[%s1770_s25 + $0x3b8] sm:$0xff]  ;;  %434 = vst [vmem:[%s1775_s26 + $0x1f8] sm:$0xff] %v433_v63  ;;  %v439_v2 = vld [vmem:[%s1770_s25 + $0x3c0] sm:$0xff] }
  0x33   : > { %436 = vst [vmem:[%s1775_s26 + $0x200] sm:$0xff] %v435_v0  ;;  %438 = vst [vmem:[%s1775_s26 + $0x208] sm:$0xff] %v437_v1  ;;  %v441_v3 = vld [vmem:[%s1770_s25 + $0x3c8] sm:$0xff]  ;;  %v443_v4 = vld [vmem:[%s1770_s25 + $0x3d0] sm:$0xff] }
  0x34   : > { %440 = vst [vmem:[%s1775_s26 + $0x210] sm:$0xff] %v439_v2  ;;  %442 = vst [vmem:[%s1775_s26 + $0x218] sm:$0xff] %v441_v3  ;;  %v445_v5 = vld [vmem:[%s1770_s25 + $0x3d8] sm:$0xff]  ;;  %v447_v6 = vld [vmem:[%s1770_s25 + $0x3e0] sm:$0xff] }
  0x35   : > { %444 = vst [vmem:[%s1775_s26 + $0x220] sm:$0xff] %v443_v4  ;;  %v449_v7 = vld [vmem:[%s1770_s25 + $0x3e8] sm:$0xff]  ;;  %446 = vst [vmem:[%s1775_s26 + $0x228] sm:$0xff] %v445_v5 }
  0x36   : > { %448 = vst [vmem:[%s1775_s26 + $0x230] sm:$0xff] %v447_v6  ;;  %450 = vst [vmem:[%s1775_s26 + $0x238] sm:$0xff] %v449_v7 }
  0x37 PF: > { %p1379_p5 = scmp.ge.s32.totalorder %s1713_s14, 1  ;;  %p455_p6 = scmp.lt.s32.totalorder %s1713_s14, 3 }
  0x39   : > { %p456_p7 = pnand %p1379_p5, %p455_p6 }
  0x3a   : > { %v564_v8 = vld [vmem:[%s2240_s1] sm:$0xff] (!%p456_p7)  ;;  %v565_v9 = vld [vmem:[%s2240_s1 + $0x8] sm:$0xff] (!%p456_p7)  ;;  %v566_v10 = vld [vmem:[%s2240_s1 + $0x10] sm:$0xff] (!%p456_p7)  ;;  %vm785_vm0 = vcmask (!%p456_p7), 1040384   ;;  %s462_s6 = sand.u32 (!%p456_p7), 1, %s1705_s12   ;;  %vm1715_vm1 = vmmov (!%p456_p7), 1  }
  0x3b   : > { %459 = sbr.rel (%p456_p7) target bundleno = 357 (0x165), region = 66  ;;  %v1650_v11 = vpack.c.bf16 (!%p456_p7), %v565_v9, %v564_v8  ;;  %v567_v12 = vld [vmem:[%s2240_s1 + $0x18] sm:$0x1] (!%p456_p7)  ;;  %vm1655_vm2 = vmpackc.low (!%p456_p7), %vm785_vm0, %vm1715_vm1  ;;  %vm568_vm3 = vcmask (!%p456_p7), 203776   ;;  %vm1293_vm4 = vcmask (!%p456_p7), 80896  }
  0x3c   : > { %s1665_s9 = smul.u32 (!%p456_p7), 576, %s462_s6  ;;  %v1654_v13 = vpack.c.bf16 (!%p456_p7), %v567_v12, %v566_v10 }
  0x3d   : > { %1651 = vmatprep.subr.bf16.mxu0 (!%p456_p7), %v1650_v11  ;;  %1660 = vmatprep.subr.bf16.mxu1 (!%p456_p7), %v1650_v11  ;;  %s486_s11 = smul.u32 (!%p456_p7), 18, %s1374_s15 }
  0x3e   : > { %1653 = vmatpush3.bf16.msra.mxu0 (!%p456_p7), %v1650_v11  ;;  %1662 = vmatpush3.bf16.msra.mxu1 (!%p456_p7), %v1650_v11  ;;  %s1933_s10 = scalar_lea.vmem (!%p456_p7), [#allocation2], %s1665_s9 }
  0x3f   : > { %v492_v14 = vld [vmem:[%s1933_s10] sm:$0xff] (!%p456_p7)  ;;  %1656 = vmatprep.subr.msk.bf16.mxu0 (!%p456_p7), %vm1655_vm2, %v1654_v13  ;;  %1661 = vmatprep.subr.msk.bf16.mxu1 (!%p456_p7), %vm1655_vm2, %v1654_v13  ;;  %v493_v16 = vld [vmem:[%s1933_s10 + $0x8] sm:$0xff] (!%p456_p7)  ;;  %v494_v18 = vld [vmem:[%s1933_s10 + $0x10] sm:$0xff] (!%p456_p7)  ;;  %p487_p8 = scmp.lt.s32.totalorder (!%p456_p7), %s486_s11, 35 }
  0x40   : > { %v528_v15 = vld [vmem:[%s1933_s10 + $0x120] sm:$0xff] (!%p456_p7)  ;;  %1542 = vmatprep.mubr.msk.f32.mxu0 (!%p456_p7), %vm568_vm3, %v492_v14  ;;  %v529_v17 = vld [vmem:[%s1933_s10 + $0x128] sm:$0xff] (!%p456_p7)  ;;  %v530_v19 = vld [vmem:[%s1933_s10 + $0x130] sm:$0xff] (!%p456_p7) }
  0x41   : > { %1596 = vmatprep.mubr.msk.f32.mxu1 (!%p456_p7), %vm568_vm3, %v528_v15  ;;  %v495_v20 = vld [vmem:[%s1933_s10 + $0x18] sm:$0xff] (!%p456_p7)  ;;  %v496_v22 = vld [vmem:[%s1933_s10 + $0x20] sm:$0xff] (!%p456_p7)  ;;  %v497_v24 = vld [vmem:[%s1933_s10 + $0x28] sm:$0xff] (!%p456_p7) }
  0x42   : > { %1659 = vmatpush3.bf16.msk.msra.mxu0 %vm1655_vm2, %v1654_v13  ;;  %1663 = vmatpush3.bf16.msk.msra.mxu1 %vm1655_vm2, %v1654_v13  ;;  %v531_v21 = vld [vmem:[%s1933_s10 + $0x138] sm:$0xff]  ;;  %v532_v23 = vld [vmem:[%s1933_s10 + $0x140] sm:$0xff]  ;;  %v533_v25 = vld [vmem:[%s1933_s10 + $0x148] sm:$0xff]  ;;  %s2247_s11 = smov (!%p487_p8, %s486_s11), 35 }
  0x43   : > { %v498_v26 = vld [vmem:[%s1933_s10 + $0x30] sm:$0xff]  ;;  %v499_v28 = vld [vmem:[%s1933_s10 + $0x38] sm:$0xff]  ;;  %v500_v30 = vld [vmem:[%s1933_s10 + $0x40] sm:$0xff]  ;;  %s1380_s12 = sshll.u32 %s2247_s11, 3 }
  0x44   : > { %v534_v27 = vld [vmem:[%s1933_s10 + $0x150] sm:$0xff]  ;;  %v535_v29 = vld [vmem:[%s1933_s10 + $0x158] sm:$0xff]  ;;  %v536_v31 = vld [vmem:[%s1933_s10 + $0x160] sm:$0xff]  ;;  %s2145_s20 = scalar_lea.vmem %s2242_s3, %s1380_s12 }
  0x45   : > { %1543 = vmatmul.mubr.msk.f32.vlgmr.msra.gmra.mrb[0].mxu0 %vm568_vm3, %v493_v16  ;;  %1597 = vmatmul.mubr.msk.f32.vlgmr.msra.gmra.mrb[0].mxu1 %vm568_vm3, %v529_v17  ;;  %v501_v32 = vld [vmem:[%s1933_s10 + $0x48] sm:$0xff]  ;;  %v502_v34 = vld [vmem:[%s1933_s10 + $0x50] sm:$0xff]  ;;  %v503_v36 = vld [vmem:[%s1933_s10 + $0x58] sm:$0xff] }
  0x46   : > { %1545 = vmatprep.mubr.msk.f32.mxu0 %vm568_vm3, %v494_v18  ;;  %1599 = vmatprep.mubr.msk.f32.mxu1 %vm568_vm3, %v530_v19  ;;  %v537_v33 = vld [vmem:[%s1933_s10 + $0x168] sm:$0xff]  ;;  %v538_v35 = vld [vmem:[%s1933_s10 + $0x170] sm:$0xff]  ;;  %v539_v37 = vld [vmem:[%s1933_s10 + $0x178] sm:$0xff] }
  0x47   : > { %v504_v38 = vld [vmem:[%s1933_s10 + $0x60] sm:$0xff]  ;;  %v505_v40 = vld [vmem:[%s1933_s10 + $0x68] sm:$0xff]  ;;  %v506_v42 = vld [vmem:[%s1933_s10 + $0x70] sm:$0xff] }
  0x48   : > { %v540_v39 = vld [vmem:[%s1933_s10 + $0x180] sm:$0xff]  ;;  %v541_v41 = vld [vmem:[%s1933_s10 + $0x188] sm:$0xff]  ;;  %v542_v43 = vld [vmem:[%s1933_s10 + $0x190] sm:$0xff] }
  0x49   : > { %1546 = vmatmul.mubr.msk.f32.gmra.mrb[2].mxu0 %vm568_vm3, %v495_v20  ;;  %1600 = vmatmul.mubr.msk.f32.gmra.mrb[2].mxu1 %vm568_vm3, %v531_v21  ;;  %v507_v44 = vld [vmem:[%s1933_s10 + $0x78] sm:$0xff]  ;;  %v508_v46 = vld [vmem:[%s1933_s10 + $0x80] sm:$0xff]  ;;  %v509_v48 = vld [vmem:[%s1933_s10 + $0x88] sm:$0xff] }
  0x4a   : > { %1548 = vmatprep.mubr.msk.f32.mxu0 %vm568_vm3, %v496_v22  ;;  %1602 = vmatprep.mubr.msk.f32.mxu1 %vm568_vm3, %v532_v23  ;;  %v543_v45 = vld [vmem:[%s1933_s10 + $0x198] sm:$0xff]  ;;  %v544_v47 = vld [vmem:[%s1933_s10 + $0x1a0] sm:$0xff]  ;;  %v545_v49 = vld [vmem:[%s1933_s10 + $0x1a8] sm:$0xff] }
  0x4b   : > { %v510_v50 = vld [vmem:[%s1933_s10 + $0x90] sm:$0xff]  ;;  %v511_v52 = vld [vmem:[%s1933_s10 + $0x98] sm:$0xff]  ;;  %v512_v54 = vld [vmem:[%s1933_s10 + $0xa0] sm:$0xff] }
  0x4c   : > { %v546_v51 = vld [vmem:[%s1933_s10 + $0x1b0] sm:$0xff]  ;;  %v547_v53 = vld [vmem:[%s1933_s10 + $0x1b8] sm:$0xff]  ;;  %v548_v55 = vld [vmem:[%s1933_s10 + $0x1c0] sm:$0xff] }
  0x4d   : > { %1549 = vmatmul.mubr.msk.f32.gmra.mrb[4].mxu0 %vm568_vm3, %v497_v24  ;;  %1603 = vmatmul.mubr.msk.f32.gmra.mrb[4].mxu1 %vm568_vm3, %v533_v25  ;;  %v513_v56 = vld [vmem:[%s1933_s10 + $0xa8] sm:$0xff]  ;;  %v514_v58 = vld [vmem:[%s1933_s10 + $0xb0] sm:$0xff]  ;;  %v515_v60 = vld [vmem:[%s1933_s10 + $0xb8] sm:$0xff] }
  0x4e   : > { %1551 = vmatprep.mubr.msk.f32.mxu0 %vm568_vm3, %v498_v26  ;;  %1605 = vmatprep.mubr.msk.f32.mxu1 %vm568_vm3, %v534_v27  ;;  %v549_v57 = vld [vmem:[%s1933_s10 + $0x1c8] sm:$0xff]  ;;  %v550_v59 = vld [vmem:[%s1933_s10 + $0x1d0] sm:$0xff]  ;;  %v551_v61 = vld [vmem:[%s1933_s10 + $0x1d8] sm:$0xff] }
  0x4f   : > { %v516_v62 = vld [vmem:[%s1933_s10 + $0xc0] sm:$0xff]  ;;  %v517_v0 = vld [vmem:[%s1933_s10 + $0xc8] sm:$0xff]  ;;  %v518_v2 = vld [vmem:[%s1933_s10 + $0xd0] sm:$0xff] }
  0x50   : > { %v552_v63 = vld [vmem:[%s1933_s10 + $0x1e0] sm:$0xff]  ;;  %v553_v1 = vld [vmem:[%s1933_s10 + $0x1e8] sm:$0xff]  ;;  %v554_v3 = vld [vmem:[%s1933_s10 + $0x1f0] sm:$0xff] }
  0x51   : > { %1552 = vmatmul.mubr.msk.f32.gmra.mrb[6].mxu0 %vm568_vm3, %v499_v28  ;;  %1606 = vmatmul.mubr.msk.f32.gmra.mrb[6].mxu1 %vm568_vm3, %v535_v29  ;;  %v519_v4 = vld [vmem:[%s1933_s10 + $0xd8] sm:$0xff]  ;;  %v520_v6 = vld [vmem:[%s1933_s10 + $0xe0] sm:$0xff]  ;;  %v521_v8 = vld [vmem:[%s1933_s10 + $0xe8] sm:$0xff] }
  0x52   : > { %1554 = vmatprep.mubr.msk.f32.mxu0 %vm568_vm3, %v500_v30  ;;  %1608 = vmatprep.mubr.msk.f32.mxu1 %vm568_vm3, %v536_v31  ;;  %v555_v5 = vld [vmem:[%s1933_s10 + $0x1f8] sm:$0xff]  ;;  %v556_v7 = vld [vmem:[%s1933_s10 + $0x200] sm:$0xff]  ;;  %v557_v9 = vld [vmem:[%s1933_s10 + $0x208] sm:$0xff] }
  0x53   : > { %v522_v10 = vld [vmem:[%s1933_s10 + $0xf0] sm:$0xff]  ;;  %v523_v12 = vld [vmem:[%s1933_s10 + $0xf8] sm:$0xff]  ;;  %v524_v14 = vld [vmem:[%s1933_s10 + $0x100] sm:$0xff] }
  0x54   : > { %v558_v11 = vld [vmem:[%s1933_s10 + $0x210] sm:$0xff]  ;;  %v559_v13 = vld [vmem:[%s1933_s10 + $0x218] sm:$0xff]  ;;  %v560_v15 = vld [vmem:[%s1933_s10 + $0x220] sm:$0xff] }
  0x55   : > { %1555 = vmatmul.mubr.msk.f32.gmra.mrb[8].mxu0 %vm568_vm3, %v501_v32  ;;  %1609 = vmatmul.mubr.msk.f32.gmra.mrb[8].mxu1 %vm568_vm3, %v537_v33  ;;  %v525_v16 = vld [vmem:[%s1933_s10 + $0x108] sm:$0xff]  ;;  %v526_v18 = vld [vmem:[%s1933_s10 + $0x110] sm:$0xff]  ;;  %v527_v20 = vld [vmem:[%s1933_s10 + $0x118] sm:$0xff] }
  0x56   : > { %1557 = vmatprep.mubr.msk.f32.mxu0 %vm568_vm3, %v502_v34  ;;  %1611 = vmatprep.mubr.msk.f32.mxu1 %vm568_vm3, %v538_v35  ;;  %v561_v17 = vld [vmem:[%s1933_s10 + $0x228] sm:$0xff]  ;;  %v562_v19 = vld [vmem:[%s1933_s10 + $0x230] sm:$0xff]  ;;  %v563_v21 = vld [vmem:[%s1933_s10 + $0x238] sm:$0xff] }
  0x59   : > { %1558 = vmatmul.mubr.msk.f32.gmra.mrb[10].mxu0 %vm568_vm3, %v503_v36  ;;  %1612 = vmatmul.mubr.msk.f32.gmra.mrb[10].mxu1 %vm568_vm3, %v539_v37 }
  0x5a   : > { %1560 = vmatprep.mubr.msk.f32.mxu0 %vm568_vm3, %v504_v38  ;;  %1614 = vmatprep.mubr.msk.f32.mxu1 %vm568_vm3, %v540_v39 }
  0x5d   : > { %1561 = vmatmul.mubr.msk.f32.gmra.mrb[12].mxu0 %vm568_vm3, %v505_v40  ;;  %1615 = vmatmul.mubr.msk.f32.gmra.mrb[12].mxu1 %vm568_vm3, %v541_v41 }
  0x5e   : > { %1563 = vmatprep.mubr.msk.f32.mxu0 %vm568_vm3, %v506_v42  ;;  %1617 = vmatprep.mubr.msk.f32.mxu1 %vm568_vm3, %v542_v43 }
  0x61   : > { %1564 = vmatmul.mubr.msk.f32.gmra.mrb[14].mxu0 %vm568_vm3, %v507_v44  ;;  %1618 = vmatmul.mubr.msk.f32.gmra.mrb[14].mxu1 %vm568_vm3, %v543_v45 }
  0x62   : > { %1566 = vmatprep.mubr.msk.f32.mxu0 %vm568_vm3, %v508_v46  ;;  %1620 = vmatprep.mubr.msk.f32.mxu1 %vm568_vm3, %v544_v47 }
  0x65   : > { %1567 = vmatmul.mubr.msk.f32.gmra.mrb[16].mxu0 %vm568_vm3, %v509_v48  ;;  %1621 = vmatmul.mubr.msk.f32.gmra.mrb[16].mxu1 %vm568_vm3, %v545_v49 }
  0x66   : > { %1569 = vmatprep.mubr.msk.f32.mxu0 %vm568_vm3, %v510_v50  ;;  %1623 = vmatprep.mubr.msk.f32.mxu1 %vm568_vm3, %v546_v51 }
  0x69   : > { %1570 = vmatmul.mubr.msk.f32.gmra.mrb[18].mxu0 %vm568_vm3, %v511_v52  ;;  %1624 = vmatmul.mubr.msk.f32.gmra.mrb[18].mxu1 %vm568_vm3, %v547_v53 }
  0x6a   : > { %1572 = vmatprep.mubr.msk.f32.mxu0 %vm568_vm3, %v512_v54  ;;  %1626 = vmatprep.mubr.msk.f32.mxu1 %vm568_vm3, %v548_v55 }
  0x6d   : > { %1573 = vmatmul.mubr.msk.f32.gmra.mrb[20].mxu0 %vm568_vm3, %v513_v56  ;;  %1627 = vmatmul.mubr.msk.f32.gmra.mrb[20].mxu1 %vm568_vm3, %v549_v57 }
  0x6e   : > { %1575 = vmatprep.mubr.msk.f32.mxu0 %vm568_vm3, %v514_v58  ;;  %1629 = vmatprep.mubr.msk.f32.mxu1 %vm568_vm3, %v550_v59 }
  0x71   : > { %1576 = vmatmul.mubr.msk.f32.gmra.mrb[22].mxu0 %vm568_vm3, %v515_v60  ;;  %1630 = vmatmul.mubr.msk.f32.gmra.mrb[22].mxu1 %vm568_vm3, %v551_v61 }
  0x72   : > { %1578 = vmatprep.mubr.msk.f32.mxu0 %vm568_vm3, %v516_v62  ;;  %1632 = vmatprep.mubr.msk.f32.mxu1 %vm568_vm3, %v552_v63 }
  0x75   : > { %1579 = vmatmul.mubr.msk.f32.gmra.mrb[24].mxu0 %vm568_vm3, %v517_v0  ;;  %1633 = vmatmul.mubr.msk.f32.gmra.mrb[24].mxu1 %vm568_vm3, %v553_v1  ;;  %v2140_v0 = vld [vmem:[%s2241_s2] ss:$0 sm:$0xff] }
  0x76   : > { %1581 = vmatprep.mubr.msk.f32.mxu0 %vm568_vm3, %v518_v2  ;;  %1635 = vmatprep.mubr.msk.f32.mxu1 %vm568_vm3, %v554_v3 }
  0x79   : > { %1582 = vmatmul.mubr.msk.f32.gmra.mrb[26].mxu0 %vm568_vm3, %v519_v4  ;;  %1636 = vmatmul.mubr.msk.f32.gmra.mrb[26].mxu1 %vm568_vm3, %v555_v5 }
  0x7a   : > { %1584 = vmatprep.mubr.msk.f32.mxu0 %vm568_vm3, %v520_v6  ;;  %1638 = vmatprep.mubr.msk.f32.mxu1 %vm568_vm3, %v556_v7 }
  0x7d   : > { %1585 = vmatmul.mubr.msk.f32.gmra.mrb[28].mxu0 %vm568_vm3, %v521_v8  ;;  %1639 = vmatmul.mubr.msk.f32.gmra.mrb[28].mxu1 %vm568_vm3, %v557_v9 }
  0x7e   : > { %1587 = vmatprep.mubr.msk.f32.mxu0 %vm568_vm3, %v522_v10  ;;  %1641 = vmatprep.mubr.msk.f32.mxu1 %vm568_vm3, %v558_v11 }
  0x81   : > { %1588 = vmatmul.mubr.msk.f32.gmra.mrb[30].mxu0 %vm568_vm3, %v523_v12  ;;  %1642 = vmatmul.mubr.msk.f32.gmra.mrb[30].mxu1 %vm568_vm3, %v559_v13 }
  0x82   : > { %1590 = vmatprep.mubr.msk.f32.mxu0 %vm568_vm3, %v524_v14  ;;  %1644 = vmatprep.mubr.msk.f32.mxu1 %vm568_vm3, %v560_v15 }
  0x85   : > { %1591 = vmatmul.mubr.msk.f32.gmra.mrb[32].mxu0 %vm568_vm3, %v525_v16  ;;  %1645 = vmatmul.mubr.msk.f32.gmra.mrb[32].mxu1 %vm568_vm3, %v561_v17 }
  0x86   : > { %1593 = vmatprep.mubr.msk.f32.mxu0 %vm568_vm3, %v526_v18  ;;  %1647 = vmatprep.mubr.msk.f32.mxu1 %vm568_vm3, %v562_v19 }
  0x89   : > { %1594 = vmatmul.mubr.msk.f32.gmra.mrb[34].mxu0 %vm568_vm3, %v527_v20  ;;  %1648 = vmatmul.mubr.msk.f32.gmra.mrb[34].mxu1 %vm568_vm3, %v563_v21 }
 0x118   : > { %v1544_v22 = vpop.f32.mrb[0].mxu0  ;;  %v1598_v23 = vpop.f32.mrb[0].mxu1 }
 0x119   : > { %v855_v24 = vpop.f32.mrb[1].mxu0  ;;  %v1035_v25 = vpop.f32.mrb[1].mxu1 }
 0x11c   : > { %v1547_v26 = vpop.f32.mrb[2].mxu0  ;;  %v1601_v27 = vpop.f32.mrb[2].mxu1 }
 0x11d   : > { %v865_v28 = vpop.f32.mrb[3].mxu0  ;;  %v1045_v29 = vpop.f32.mrb[3].mxu1 }
 0x120   : > { %v2079_v30 = vpop.f32.mrb[4].mxu0  ;;  %v2081_v31 = vpop.f32.mrb[4].mxu1 }
 0x121   : > { %v2083_v32 = vpop.f32.mrb[5].mxu0  ;;  %v2085_v33 = vpop.f32.mrb[5].mxu1 }
 0x124   : > { %v2087_v34 = vpop.f32.mrb[6].mxu0  ;;  %v2089_v35 = vpop.f32.mrb[6].mxu1 }
 0x125   : > { %v2091_v36 = vpop.f32.mrb[7].mxu0  ;;  %v2093_v37 = vpop.f32.mrb[7].mxu1 }
 0x128   : > { %v2095_v38 = vpop.f32.mrb[8].mxu0  ;;  %v2097_v39 = vpop.f32.mrb[8].mxu1 }
 0x129   : > { %v2099_v40 = vpop.f32.mrb[9].mxu0  ;;  %v2101_v41 = vpop.f32.mrb[9].mxu1 }
 0x12c   : > { %v2103_v42 = vpop.f32.mrb[10].mxu0  ;;  %v2105_v43 = vpop.f32.mrb[10].mxu1 }
 0x12d   : > { %v2107_v44 = vpop.f32.mrb[11].mxu0  ;;  %v2109_v45 = vpop.f32.mrb[11].mxu1 }
 0x130   : > { %v2111_v46 = vpop.f32.mrb[12].mxu0  ;;  %v2113_v47 = vpop.f32.mrb[12].mxu1 }
 0x131   : > { %v2115_v48 = vpop.f32.mrb[13].mxu0  ;;  %v2117_v49 = vpop.f32.mrb[13].mxu1 }
 0x134   : > { %v2121_v50 = vpop.f32.mrb[14].mxu0  ;;  %v2123_v51 = vpop.f32.mrb[14].mxu1 }
 0x135   : > { %v2125_v52 = vpop.f32.mrb[15].mxu0  ;;  %v2127_v53 = vpop.f32.mrb[15].mxu1 }
 0x138   : > { %v2129_v54 = vpop.f32.mrb[16].mxu0  ;;  %v2131_v55 = vpop.f32.mrb[16].mxu1 }
 0x139   : > { %v2133_v56 = vpop.f32.mrb[17].mxu0  ;;  %v2135_v57 = vpop.f32.mrb[17].mxu1 }
 0x13c   : > { %v1571_v58 = vpop.f32.mrb[18].mxu0  ;;  %v1625_v59 = vpop.f32.mrb[18].mxu1 }
 0x13d   : > { %v1215_v60 = vmax.f32 %v1544_v22, %v1571_v58  ;;  %v1233_v61 = vmax.f32 %v1598_v23, %v1625_v59  ;;  %v945_v62 = vpop.f32.mrb[19].mxu0  ;;  %v1125_v63 = vpop.f32.mrb[19].mxu1 }
 0x13e   : > { %v1214_v1 = vmax.f32 %v855_v24, %v945_v62  ;;  %v1232_v2 = vmax.f32 %v1035_v25, %v1125_v63 }
 0x13f   : > { %v1251_v3 = vmax.f32 %v1215_v60, %v1233_v61 }
 0x140   : > { %v1250_v4 = vmax.f32 %v1214_v1, %v1232_v2  ;;  %v1574_v5 = vpop.f32.mrb[20].mxu0  ;;  %v1628_v6 = vpop.f32.mrb[20].mxu1 }
 0x141   : > { %v1276_v7 = vadd.f32 %v2140_v0, %v1251_v3  ;;  %v1217_v8 = vmax.f32 %v1547_v26, %v1574_v5  ;;  %v1235_v9 = vmax.f32 %v1601_v27, %v1628_v6  ;;  %v955_v10 = vpop.f32.mrb[21].mxu0  ;;  %v1135_v11 = vpop.f32.mrb[21].mxu1 }
 0x142   : > { %v1275_v12 = vadd.f32 %v2140_v0, %v1250_v4  ;;  %v1216_v13 = vmax.f32 %v865_v28, %v955_v10  ;;  %v1234_v14 = vmax.f32 %v1045_v29, %v1135_v11 }
 0x143   : > { %1295 = vst.msk [vmem:[%s2145_s20 + $0x8] sm:$0xff] %vm1293_vm4, %v1276_v7  ;;  %v1253_v15 = vmax.f32 %v1217_v8, %v1235_v9 }
 0x144   : > { %1294 = vst.msk [vmem:[%s2145_s20] sm:$0xff] %vm1293_vm4, %v1275_v12  ;;  %v1252_v16 = vmax.f32 %v1216_v13, %v1234_v14  ;;  %v1577_v17 = vpop.f32.mrb[22].mxu0  ;;  %v1631_v18 = vpop.f32.mrb[22].mxu1 }
 0x145   : > { %v1278_v19 = vadd.f32 %v2140_v0, %v1253_v15  ;;  %v1219_v20 = vmax.f32 %v2079_v30, %v1577_v17  ;;  %v1237_v21 = vmax.f32 %v2081_v31, %v1631_v18  ;;  %v965_v22 = vpop.f32.mrb[23].mxu0  ;;  %v1145_v23 = vpop.f32.mrb[23].mxu1 }
 0x146   : > { %v1277_v24 = vadd.f32 %v2140_v0, %v1252_v16  ;;  %v1218_v25 = vmax.f32 %v2083_v32, %v965_v22  ;;  %v1236_v26 = vmax.f32 %v2085_v33, %v1145_v23 }
 0x147   : > { %1297 = vst.msk [vmem:[%s2145_s20 + $0x18] sm:$0xff] %vm1293_vm4, %v1278_v19  ;;  %v1255_v27 = vmax.f32 %v1219_v20, %v1237_v21 }
 0x148   : > { %1296 = vst.msk [vmem:[%s2145_s20 + $0x10] sm:$0xff] %vm1293_vm4, %v1277_v24  ;;  %v1254_v28 = vmax.f32 %v1218_v25, %v1236_v26  ;;  %v1580_v29 = vpop.f32.mrb[24].mxu0  ;;  %v1634_v30 = vpop.f32.mrb[24].mxu1 }
 0x149   : > { %v1280_v31 = vadd.f32 %v2140_v0, %v1255_v27  ;;  %v1221_v58 = vmax.f32 %v2087_v34, %v1580_v29  ;;  %v1239_v59 = vmax.f32 %v2089_v35, %v1634_v30  ;;  %v975_v60 = vpop.f32.mrb[25].mxu0  ;;  %v1155_v32 = vpop.f32.mrb[25].mxu1 }
 0x14a   : > { %v1279_v61 = vadd.f32 %v2140_v0, %v1254_v28  ;;  %v1220_v33 = vmax.f32 %v2091_v36, %v975_v60  ;;  %v1238_v62 = vmax.f32 %v2093_v37, %v1155_v32 }
 0x14b   : > { %1299 = vst.msk [vmem:[%s2145_s20 + $0x28] sm:$0xff] %vm1293_vm4, %v1280_v31  ;;  %v1257_v63 = vmax.f32 %v1221_v58, %v1239_v59 }
 0x14c   : > { %1298 = vst.msk [vmem:[%s2145_s20 + $0x20] sm:$0xff] %vm1293_vm4, %v1279_v61  ;;  %v1256_v1 = vmax.f32 %v1220_v33, %v1238_v62  ;;  %v1583_v2 = vpop.f32.mrb[26].mxu0  ;;  %v1637_v34 = vpop.f32.mrb[26].mxu1 }
 0x14d   : > { %v1282_v35 = vadd.f32 %v2140_v0, %v1257_v63  ;;  %v1223_v3 = vmax.f32 %v2095_v38, %v1583_v2  ;;  %v1241_v4 = vmax.f32 %v2097_v39, %v1637_v34  ;;  %v985_v5 = vpop.f32.mrb[27].mxu0  ;;  %v1165_v36 = vpop.f32.mrb[27].mxu1 }
 0x14e   : > { %v1281_v6 = vadd.f32 %v2140_v0, %v1256_v1  ;;  %v1222_v37 = vmax.f32 %v2099_v40, %v985_v5  ;;  %v1240_v7 = vmax.f32 %v2101_v41, %v1165_v36 }
 0x14f   : > { %1301 = vst.msk [vmem:[%s2145_s20 + $0x38] sm:$0xff] %vm1293_vm4, %v1282_v35  ;;  %v1259_v8 = vmax.f32 %v1223_v3, %v1241_v4 }
 0x150   : > { %1300 = vst.msk [vmem:[%s2145_s20 + $0x30] sm:$0xff] %vm1293_vm4, %v1281_v6  ;;  %v1258_v9 = vmax.f32 %v1222_v37, %v1240_v7  ;;  %v1586_v10 = vpop.f32.mrb[28].mxu0  ;;  %v1640_v38 = vpop.f32.mrb[28].mxu1 }
 0x151   : > { %v1284_v39 = vadd.f32 %v2140_v0, %v1259_v8  ;;  %v1225_v11 = vmax.f32 %v2103_v42, %v1586_v10  ;;  %v1243_v12 = vmax.f32 %v2105_v43, %v1640_v38  ;;  %v995_v13 = vpop.f32.mrb[29].mxu0  ;;  %v1175_v40 = vpop.f32.mrb[29].mxu1 }
 0x152   : > { %v1283_v14 = vadd.f32 %v2140_v0, %v1258_v9  ;;  %v1224_v41 = vmax.f32 %v2107_v44, %v995_v13  ;;  %v1242_v15 = vmax.f32 %v2109_v45, %v1175_v40 }
 0x153   : > { %1303 = vst.msk [vmem:[%s2145_s20 + $0x48] sm:$0xff] %vm1293_vm4, %v1284_v39  ;;  %v1261_v16 = vmax.f32 %v1225_v11, %v1243_v12 }
 0x154   : > { %1302 = vst.msk [vmem:[%s2145_s20 + $0x40] sm:$0xff] %vm1293_vm4, %v1283_v14  ;;  %v1260_v17 = vmax.f32 %v1224_v41, %v1242_v15  ;;  %v1589_v18 = vpop.f32.mrb[30].mxu0  ;;  %v1643_v42 = vpop.f32.mrb[30].mxu1 }
 0x155   : > { %v1286_v43 = vadd.f32 %v2140_v0, %v1261_v16  ;;  %v1227_v19 = vmax.f32 %v2111_v46, %v1589_v18  ;;  %v1245_v20 = vmax.f32 %v2113_v47, %v1643_v42  ;;  %v1005_v21 = vpop.f32.mrb[31].mxu0  ;;  %v1185_v44 = vpop.f32.mrb[31].mxu1 }
 0x156   : > { %v1285_v22 = vadd.f32 %v2140_v0, %v1260_v17  ;;  %v1226_v45 = vmax.f32 %v2115_v48, %v1005_v21  ;;  %v1244_v23 = vmax.f32 %v2117_v49, %v1185_v44 }
 0x157   : > { %1305 = vst.msk [vmem:[%s2145_s20 + $0x58] sm:$0xff] %vm1293_vm4, %v1286_v43  ;;  %v1263_v24 = vmax.f32 %v1227_v19, %v1245_v20 }
 0x158   : > { %1304 = vst.msk [vmem:[%s2145_s20 + $0x50] sm:$0xff] %vm1293_vm4, %v1285_v22  ;;  %v1262_v25 = vmax.f32 %v1226_v45, %v1244_v23  ;;  %v1592_v26 = vpop.f32.mrb[32].mxu0  ;;  %v1646_v46 = vpop.f32.mrb[32].mxu1 }
 0x159   : > { %v1288_v47 = vadd.f32 %v2140_v0, %v1263_v24  ;;  %v1229_v27 = vmax.f32 %v2121_v50, %v1592_v26  ;;  %v1247_v28 = vmax.f32 %v2123_v51, %v1646_v46  ;;  %v1015_v29 = vpop.f32.mrb[33].mxu0  ;;  %v1195_v48 = vpop.f32.mrb[33].mxu1 }
 0x15a   : > { %v1287_v30 = vadd.f32 %v2140_v0, %v1262_v25  ;;  %v1228_v49 = vmax.f32 %v2125_v52, %v1015_v29  ;;  %v1246_v31 = vmax.f32 %v2127_v53, %v1195_v48 }
 0x15b   : > { %1307 = vst.msk [vmem:[%s2145_s20 + $0x68] sm:$0xff] %vm1293_vm4, %v1288_v47  ;;  %v1265_v58 = vmax.f32 %v1229_v27, %v1247_v28 }
 0x15c   : > { %1306 = vst.msk [vmem:[%s2145_s20 + $0x60] sm:$0xff] %vm1293_vm4, %v1287_v30  ;;  %v1264_v59 = vmax.f32 %v1228_v49, %v1246_v31  ;;  %v1595_v60 = vpop.f32.mrb[34].mxu0  ;;  %v1649_v50 = vpop.f32.mrb[34].mxu1 }
 0x15d   : > { %v1290_v51 = vadd.f32 %v2140_v0, %v1265_v58  ;;  %v1231_v32 = vmax.f32 %v2129_v54, %v1595_v60  ;;  %v1249_v52 = vmax.f32 %v2131_v55, %v1649_v50  ;;  %v1025_v61 = vpop.f32.mrb[35].mxu0  ;;  %v1205_v33 = vpop.f32.mrb[35].mxu1 }
 0x15e   : > { %v1289_v53 = vadd.f32 %v2140_v0, %v1264_v59  ;;  %v1230_v62 = vmax.f32 %v2133_v56, %v1025_v61  ;;  %v1248_v63 = vmax.f32 %v2135_v57, %v1205_v33 }
 0x15f   : > { %1309 = vst.msk [vmem:[%s2145_s20 + $0x78] sm:$0xff] %vm1293_vm4, %v1290_v51  ;;  %v1267_v1 = vmax.f32 %v1231_v32, %v1249_v52 }
 0x160   : > { %1308 = vst.msk [vmem:[%s2145_s20 + $0x70] sm:$0xff] %vm1293_vm4, %v1289_v53  ;;  %v1266_v2 = vmax.f32 %v1230_v62, %v1248_v63 }
 0x161   : > { %v1292_v34 = vadd.f32 %v2140_v0, %v1267_v1 }
 0x162   : > { %v1291_v54 = vadd.f32 %v2140_v0, %v1266_v2 }
 0x163   : > { %1311 = vst.msk [vmem:[%s2145_s20 + $0x88] sm:$0xff] %vm1293_vm4, %v1292_v34 }
 0x164   : > { %1310 = vst.msk [vmem:[%s2145_s20 + $0x80] sm:$0xff] %vm1293_vm4, %v1291_v54 }
 0x165 PF: > { %p10_p9 = scmp.ge.s32.totalorder %s1753_s16, 4   ;;  %s2243_s12 = smov %s1709_s13 }
 0x166   : > { %s2244_s13 = smov %s1762_s19  ;;  %s2245_s14 = smov %s1753_s16 }
 0x167   :  { %12 = sbr.rel (!%p10_p9) target bundleno = 2 (0x2), region = 105 }

// kernel: tile.8
= control target key start
LH: loop header
LB: loop body
LE: loop exit
PB: predicated region body
PF: predicated region fallthrough
CT: control target
= control target key end

     0   :  { %s28_s0 = inlined_call_operand.vmem [shape: f32[20], index: 0, kind: input, shape index: {}]   ;;  %s29_s1 = inlined_call_operand.vmem [shape: f32[16,20], index: 1, kind: output, shape index: {}]  }
   0x1   :  { %v4_v0 = vld [vmem:[%s28_s0] ss:$0 sm:$0xff] }
   0x2   :  { %5 = vst [vmem:[%s29_s1] sm:$0xff] %v4_v0  ;;  %8 = vst [vmem:[%s29_s1 + $0x8] sm:$0xff] %v4_v0 }

// kernel: tile.9
= control target key start
LH: loop header
LB: loop body
LE: loop exit
PB: predicated region body
PF: predicated region fallthrough
CT: control target
= control target key end

     0   :  { %vm9_vm0 = vcmask 64512   ;;  %vm22_vm1 = vcmask 130048   ;;  %s170_s14 = smov 120   ;;  %s171_s15 = smov 100   ;;  %vm3_vm2 = vcmask 162816   ;;  %vm13_vm3 = vcmask 97280   ;;  %s258_s0 = inlined_call_operand.vmem [shape: f32[16,20], index: 0, kind: input, shape index: {}]   ;;  %s259_s1 = inlined_call_operand.vmem [shape: f32[1,320], index: 1, kind: output, shape index: {}]  }
   0x1   :  { %v136_v0 = vld [vmem:[%s258_s0 + $0x6] sm:$0x1]   ;;  %v140_v3 = vld [vmem:[%s258_s0 + $0x5] sm:$0x1]   ;;  %v138_v4 = vld [vmem:[%s258_s0 + $0xc] sm:$0x1]  }
   0x2   :  { %v137_v1 = vld [vmem:[%s258_s0 + $0x6] sm:$0x1]   ;;  %34 = vrot.lane.b32.xlu1 %v140_v3, %s171_s15  ;;  %v139_v5 = vld [vmem:[%s258_s0 + $0xc] sm:$0x1]   ;;  %v141_v7 = vld [vmem:[%s258_s0 + $0xb] sm:$0x1]  }
   0x3   :  { %v10_v2 = vsel %vm9_vm0, %v137_v1, %v136_v0  ;;  %v23_v6 = vsel %vm22_vm1, %v139_v5, %v138_v4  ;;  %s172_s20 = smov 112   ;;  %s173_s21 = smov 92   ;;  %v142_v8 = vld [vmem:[%s258_s0 + $0x4] sm:$0x1]   ;;  %v143_v9 = vld [vmem:[%s258_s0 + $0xa] sm:$0x1]  }
   0x4   :  { %11 = vrot.lane.b32.xlu0 %v10_v2, %s170_s14  ;;  %v2_v10 = vld [vmem:[%s258_s0] sm:$0x1]   ;;  %s174_s28 = smov 80   ;;  %s175_s29 = smov 72   ;;  %v144_v11 = vld [vmem:[%s258_s0 + $0x3] sm:$0x1]  }
   0x5   :  { %4 = vst.msk [vmem:[#allocation0] sm:$0x1] %vm3_vm2, %v2_v10   ;;  %v145_v12 = vld [vmem:[%s258_s0 + $0x9] sm:$0x1]   ;;  %s176_s5 = smov 60   ;;  %s177_s6 = smov 52  }
   0x6   :  { %40 = vrot.lane.b32.xlu1 %v141_v7, %s173_s21  ;;  %v146_v13 = vld [vmem:[%s258_s0 + $0xf] sm:$0x1]   ;;  %v147_v14 = vld [vmem:[%s258_s0 + $0x2] sm:$0x1]   ;;  %s178_s11 = smov 44   ;;  %s179_s12 = smov 40  }
   0x7   :  { %v148_v15 = vld [vmem:[%s258_s0 + $0x8] sm:$0x1]   ;;  %v149_v16 = vld [vmem:[%s258_s0 + $0xe] sm:$0x1]   ;;  %s180_s17 = smov 32   ;;  %s181_s18 = smov 24  }
   0x8   :  { %24 = vrot.lane.b32.xlu0 %v23_v6, %s172_s20  ;;  %v150_v17 = vld [vmem:[%s258_s0 + $0x1] sm:$0x1]   ;;  %v151_v18 = vld [vmem:[%s258_s0 + $0x7] sm:$0x1]   ;;  %s182_s23 = smov 20   ;;  %s183_s24 = smov 12  }
   0x9   :  { %v152_v19 = vld [vmem:[%s258_s0 + $0xd] sm:$0x1]   ;;  %s184_s0 = smov 4   ;;  %vm16_vm4 = vcmask 1048512   ;;  %vm36_vm5 = vcmask 982816   ;;  %vm26_vm6 = vcmask 31744  }
   0xa   :  { %53 = vrot.lane.b32.xlu1 %v143_v9, %s175_s29  ;;  %vm29_vm7 = vcmask 1048448   ;;  %vm42_vm8 = vcmask 917216   ;;  %vm49_vm9 = vcmask 818816   ;;  %vm55_vm10 = vcmask 753216  }
   0xb   :  { %vm62_vm11 = vcmask 654816   ;;  %vm68_vm12 = vcmask 589216   ;;  %vm75_vm13 = vcmask 523616   ;;  %vm82_vm14 = vcmask 490816  }
   0xc   :  { %47 = vrot.lane.b32.xlu0 %v142_v8, %s174_s28  ;;  %vm88_vm15 = vcmask 425216   ;;  %vm95_vm0 = vcmask 359616   ;;  %vm102_vm1 = vcmask 326816   ;;  %vm108_vm2 = vcmask 261216  }
   0xe   :  { %66 = vrot.lane.b32.xlu1 %v145_v12, %s177_s6 }
  0x10   :  { %60 = vrot.lane.b32.xlu0 %v144_v11, %s176_s5 }
  0x12   :  { %80 = vrot.lane.b32.xlu1 %v147_v14, %s179_s12 }
  0x14   :  { %73 = vrot.lane.b32.xlu0 %v146_v13, %s178_s11 }
  0x16   :  { %93 = vrot.lane.b32.xlu1 %v149_v16, %s181_s18 }
  0x18   :  { %86 = vrot.lane.b32.xlu0 %v148_v15, %s180_s17 }
  0x1a   :  { %106 = vrot.lane.b32.xlu1 %v151_v18, %s183_s24 }
  0x1c   :  { %100 = vrot.lane.b32.xlu0 %v150_v17, %s182_s23 }
  0x20   :  { %113 = vrot.lane.b32.xlu0 %v152_v19, %s184_s0 }
  0x74   :  { %v35_v21 = vpop.permute.xlu1 %34  }
  0x76   :  { %v12_v20 = vpop.permute.xlu0 %11  }
  0x77   :  { %15 = vst.msk [vmem:[#allocation0 + $0x8] sm:$0x1] %vm13_vm3, %v12_v20   ;;  %vm115_vm3 = vcmask 195616  }
  0x78   :  { %17 = vst.msk [vmem:[#allocation0] sm:$0x1] %vm16_vm4, %v12_v20   ;;  %v41_v23 = vpop.permute.xlu1 %40  }
  0x79   :  { %37 = vst.msk [vmem:[#allocation0] sm:$0x1] %vm36_vm5, %v35_v21  }
  0x7a   :  { %v25_v22 = vpop.permute.xlu0 %24  }
  0x7b   :  { %28 = vst.msk [vmem:[#allocation0 + $0x10] sm:$0x1] %vm26_vm6, %v25_v22  }
  0x7c   :  { %31 = vst.msk [vmem:[#allocation0 + $0x8] sm:$0x1] %vm29_vm7, %v25_v22   ;;  %v54_v25 = vpop.permute.xlu1 %53  }
  0x7d   :  { %44 = vst.msk [vmem:[#allocation0 + $0x8] sm:$0x1] %vm42_vm8, %v41_v23  }
  0x7e   :  { %v48_v24 = vpop.permute.xlu0 %47   ;;  %57 = vst.msk [vmem:[#allocation0 + $0x8] sm:$0x1] %vm55_vm10, %v54_v25  }
  0x7f   :  { %50 = vst.msk [vmem:[#allocation0] sm:$0x1] %vm49_vm9, %v48_v24  }
  0x80   :  { %v67_v27 = vpop.permute.xlu1 %66  }
  0x81   :  { %70 = vst.msk [vmem:[#allocation0 + $0x8] sm:$0x1] %vm68_vm12, %v67_v27  }
  0x82   :  { %v61_v26 = vpop.permute.xlu0 %60  }
  0x83   :  { %63 = vst.msk [vmem:[#allocation0] sm:$0x1] %vm62_vm11, %v61_v26  }
  0x84   :  { %v81_v29 = vpop.permute.xlu1 %80  }
  0x85   :  { %83 = vst.msk [vmem:[#allocation0] sm:$0x1] %vm82_vm14, %v81_v29  }
  0x86   :  { %v74_v28 = vpop.permute.xlu0 %73  }
  0x87   :  { %77 = vst.msk [vmem:[#allocation0 + $0x10] sm:$0x1] %vm75_vm13, %v74_v28  }
  0x88   :  { %v94_v31 = vpop.permute.xlu1 %93  }
  0x89   :  { %97 = vst.msk [vmem:[#allocation0 + $0x10] sm:$0x1] %vm95_vm0, %v94_v31  }
  0x8a   :  { %v87_v30 = vpop.permute.xlu0 %86  }
  0x8b   :  { %90 = vst.msk [vmem:[#allocation0 + $0x8] sm:$0x1] %vm88_vm15, %v87_v30  }
  0x8c   :  { %v107_v33 = vpop.permute.xlu1 %106  }
  0x8d   :  { %110 = vst.msk [vmem:[#allocation0 + $0x8] sm:$0x1] %vm108_vm2, %v107_v33  }
  0x8e   :  { %v101_v32 = vpop.permute.xlu0 %100  }
  0x8f   :  { %103 = vst.msk [vmem:[#allocation0] sm:$0x1] %vm102_vm1, %v101_v32  }
  0x92   :  { %v114_v34 = vpop.permute.xlu0 %113  }
  0x93   :  { %117 = vst.msk [vmem:[#allocation0 + $0x10] sm:$0x1] %vm115_vm3, %v114_v34  }
  0x94   :  { %v125_v36 = vld [vmem:[#allocation0 + $0x8] sm:$0x1] }
  0x95   :  { %153 = vst [vmem:[%s259_s1 + $0x1] sm:$0x1] %v125_v36 }
  0x96   :  { %v121_v35 = vld [vmem:[#allocation0] sm:$0x1] }
  0x97   :  { %123 = vst [vmem:[%s259_s1] sm:$0x1] %v121_v35 }
  0x9a   :  { %v130_v37 = vld [vmem:[#allocation0 + $0x10] sm:$0x1] }
  0x9b   :  { %154 = vst [vmem:[%s259_s1 + $0x2] sm:$0x1] %v130_v37 }

// kernel: net_forward.3
= control target key start
LH: loop header
LB: loop body
LE: loop exit
PB: predicated region body
PF: predicated region fallthrough
CT: control target
= control target key end

     0   :  { %s7988_s24 = smov 0   ;;  %s7990_s25 = smov 0   ;;  %s13509_s0 = inlined_call_operand.vmem [shape: f32[4,16,4000], index: 0, kind: input, shape index: {}]   ;;  %s13510_s1 = inlined_call_operand.vmem [shape: f32[4000,320], index: 1, kind: input, shape index: {}]   ;;  %s13511_s2 = inlined_call_operand.vmem [shape: f32[1,320], index: 2, kind: input, shape index: {}]   ;;  %s13512_s3 = inlined_call_operand.vmem [shape: f32[320,50], index: 3, kind: input, shape index: {}]   ;;  %s13513_s4 = inlined_call_operand.vmem [shape: f32[1,50], index: 4, kind: input, shape index: {}]   ;;  %s13514_s5 = inlined_call_operand.vmem [shape: f32[50,10], index: 5, kind: input, shape index: {}]   ;;  %s13515_s6 = inlined_call_operand.vmem [shape: f32[1,10], index: 6, kind: input, shape index: {}]   ;;  %s13516_s7 = inlined_call_operand.vmem [shape: f32[16,10], index: 7, kind: output, shape index: {}]  }
   0x1   :  { %s7992_s26 = smov 0  }
   0x2 LB: > { %s5352_s27 = sadd.s32 4294967295, %s7943_s26   ;;  %s8005_s28 = sadd.s32 1, %s7943_s26   ;;  %s7943_s26 = sphi %s7992_s26, %s13519_s26   ;;  %s7939_s25 = sphi %s7990_s25, %s13518_s25   ;;  %s7935_s24 = sphi %s7988_s24, %s13517_s24  }
   0x3   : > { %s21_s29 = ssub.s32 %s7943_s26, %s8005_s28  ;;  %s24_s30 = sadd.s32 1, %s7939_s25 }
   0x4   : > { %p22_p0 = scmp.eq.s32.totalorder %s21_s29, 0  ;;  %p31_p1 = scmp.ne.s32.totalorder %s7939_s25, %s7935_s24 }
   0x5   : > { %p32_p2 = scmp.eq.s32.totalorder %s7943_s26, 0  ;;  %p5355_p4 = scmp.ge.s32.totalorder %s7943_s26, 2 }
   0x6   : > { %s8014_s8 = scalar_select %p22_p0, %s7939_s25, %s24_s30  }
   0x7   : > { %p33_p3 = por %p32_p2, %p31_p1  ;;  %227 = sbr.rel (%p5355_p4) target bundleno = 82 (0x52), region = 40 }
   0xe   : > { %230 = sbr.rel (!%p33_p3) target bundleno = 82 (0x52), region = 44  ;;  %s232_s9 = sand.u32 (%p33_p3), 1, %s7939_s25  }
   0xf   : > { %s5377_s10 = sshll.u32 (%p33_p3), %s7943_s26, 8  ;;  %s5356_s11 = sshll.u32 (%p33_p3), %s232_s9, 10 }
  0x10   : > { %s8022_s14 = scalar_lea.vmem (%p33_p3), %s13509_s0, %s5377_s10  ;;  %s8027_s15 = scalar_lea.vmem (%p33_p3), [#allocation2], %s5356_s11 }
  0x11   : > { %v250_v0 = vld [vmem:[%s8022_s14] sm:$0xff] (%p33_p3)  ;;  %v252_v1 = vld [vmem:[%s8022_s14 + $0x8] sm:$0xff] (%p33_p3)  ;;  %v254_v2 = vld [vmem:[%s8022_s14 + $0x10] sm:$0xff] (%p33_p3) }
  0x12   : > { %251 = vst [vmem:[%s8027_s15] sm:$0xff] (%p33_p3), %v250_v0  ;;  %253 = vst [vmem:[%s8027_s15 + $0x8] sm:$0xff] (%p33_p3), %v252_v1  ;;  %v256_v3 = vld [vmem:[%s8022_s14 + $0x18] sm:$0xff] (%p33_p3)  ;;  %v258_v4 = vld [vmem:[%s8022_s14 + $0x20] sm:$0xff] (%p33_p3) }
  0x13   : > { %255 = vst [vmem:[%s8027_s15 + $0x10] sm:$0xff] (%p33_p3), %v254_v2  ;;  %v260_v5 = vld [vmem:[%s8022_s14 + $0x28] sm:$0xff] (%p33_p3)  ;;  %257 = vst [vmem:[%s8027_s15 + $0x18] sm:$0xff] (%p33_p3), %v256_v3  ;;  %v262_v6 = vld [vmem:[%s8022_s14 + $0x30] sm:$0xff] (%p33_p3) }
  0x14   : > { %259 = vst [vmem:[%s8027_s15 + $0x20] sm:$0xff] (%p33_p3), %v258_v4  ;;  %261 = vst [vmem:[%s8027_s15 + $0x28] sm:$0xff] (%p33_p3), %v260_v5  ;;  %v264_v7 = vld [vmem:[%s8022_s14 + $0x38] sm:$0xff] (%p33_p3)  ;;  %v266_v8 = vld [vmem:[%s8022_s14 + $0x40] sm:$0xff] (%p33_p3) }
  0x15   : > { %263 = vst [vmem:[%s8027_s15 + $0x30] sm:$0xff] %v262_v6  ;;  %265 = vst [vmem:[%s8027_s15 + $0x38] sm:$0xff] %v264_v7  ;;  %v268_v9 = vld [vmem:[%s8022_s14 + $0x48] sm:$0xff]  ;;  %v270_v10 = vld [vmem:[%s8022_s14 + $0x50] sm:$0xff] }
  0x16   : > { %267 = vst [vmem:[%s8027_s15 + $0x40] sm:$0xff] %v266_v8  ;;  %v272_v11 = vld [vmem:[%s8022_s14 + $0x58] sm:$0xff]  ;;  %269 = vst [vmem:[%s8027_s15 + $0x48] sm:$0xff] %v268_v9  ;;  %v274_v12 = vld [vmem:[%s8022_s14 + $0x60] sm:$0xff] }
  0x17   : > { %271 = vst [vmem:[%s8027_s15 + $0x50] sm:$0xff] %v270_v10  ;;  %273 = vst [vmem:[%s8027_s15 + $0x58] sm:$0xff] %v272_v11  ;;  %v276_v13 = vld [vmem:[%s8022_s14 + $0x68] sm:$0xff]  ;;  %v278_v14 = vld [vmem:[%s8022_s14 + $0x70] sm:$0xff] }
  0x18   : > { %275 = vst [vmem:[%s8027_s15 + $0x60] sm:$0xff] %v274_v12  ;;  %277 = vst [vmem:[%s8027_s15 + $0x68] sm:$0xff] %v276_v13  ;;  %v280_v15 = vld [vmem:[%s8022_s14 + $0x78] sm:$0xff]  ;;  %v282_v16 = vld [vmem:[%s8022_s14 + $0x80] sm:$0xff] }
  0x19   : > { %279 = vst [vmem:[%s8027_s15 + $0x70] sm:$0xff] %v278_v14  ;;  %v284_v17 = vld [vmem:[%s8022_s14 + $0x88] sm:$0xff]  ;;  %281 = vst [vmem:[%s8027_s15 + $0x78] sm:$0xff] %v280_v15  ;;  %v286_v18 = vld [vmem:[%s8022_s14 + $0x90] sm:$0xff] }
  0x1a   : > { %283 = vst [vmem:[%s8027_s15 + $0x80] sm:$0xff] %v282_v16  ;;  %285 = vst [vmem:[%s8027_s15 + $0x88] sm:$0xff] %v284_v17  ;;  %v288_v19 = vld [vmem:[%s8022_s14 + $0x98] sm:$0xff]  ;;  %v290_v20 = vld [vmem:[%s8022_s14 + $0xa0] sm:$0xff] }
  0x1b   : > { %287 = vst [vmem:[%s8027_s15 + $0x90] sm:$0xff] %v286_v18  ;;  %289 = vst [vmem:[%s8027_s15 + $0x98] sm:$0xff] %v288_v19  ;;  %v292_v21 = vld [vmem:[%s8022_s14 + $0xa8] sm:$0xff]  ;;  %v294_v22 = vld [vmem:[%s8022_s14 + $0xb0] sm:$0xff] }
  0x1c   : > { %291 = vst [vmem:[%s8027_s15 + $0xa0] sm:$0xff] %v290_v20  ;;  %v296_v23 = vld [vmem:[%s8022_s14 + $0xb8] sm:$0xff]  ;;  %293 = vst [vmem:[%s8027_s15 + $0xa8] sm:$0xff] %v292_v21  ;;  %v298_v24 = vld [vmem:[%s8022_s14 + $0xc0] sm:$0xff] }
  0x1d   : > { %295 = vst [vmem:[%s8027_s15 + $0xb0] sm:$0xff] %v294_v22  ;;  %297 = vst [vmem:[%s8027_s15 + $0xb8] sm:$0xff] %v296_v23  ;;  %v300_v25 = vld [vmem:[%s8022_s14 + $0xc8] sm:$0xff]  ;;  %v302_v26 = vld [vmem:[%s8022_s14 + $0xd0] sm:$0xff] }
  0x1e   : > { %299 = vst [vmem:[%s8027_s15 + $0xc0] sm:$0xff] %v298_v24  ;;  %301 = vst [vmem:[%s8027_s15 + $0xc8] sm:$0xff] %v300_v25  ;;  %v304_v27 = vld [vmem:[%s8022_s14 + $0xd8] sm:$0xff]  ;;  %v306_v28 = vld [vmem:[%s8022_s14 + $0xe0] sm:$0xff] }
  0x1f   : > { %303 = vst [vmem:[%s8027_s15 + $0xd0] sm:$0xff] %v302_v26  ;;  %v308_v29 = vld [vmem:[%s8022_s14 + $0xe8] sm:$0xff]  ;;  %305 = vst [vmem:[%s8027_s15 + $0xd8] sm:$0xff] %v304_v27  ;;  %v310_v30 = vld [vmem:[%s8022_s14 + $0xf0] sm:$0xff] }
  0x20   : > { %307 = vst [vmem:[%s8027_s15 + $0xe0] sm:$0xff] %v306_v28  ;;  %309 = vst [vmem:[%s8027_s15 + $0xe8] sm:$0xff] %v308_v29  ;;  %v312_v31 = vld [vmem:[%s8022_s14 + $0xf8] sm:$0xff]  ;;  %v314_v32 = vld [vmem:[%s8022_s14 + $0x200] sm:$0xff] }
  0x21   : > { %311 = vst [vmem:[%s8027_s15 + $0xf0] sm:$0xff] %v310_v30  ;;  %313 = vst [vmem:[%s8027_s15 + $0xf8] sm:$0xff] %v312_v31  ;;  %v316_v33 = vld [vmem:[%s8022_s14 + $0x208] sm:$0xff]  ;;  %v318_v34 = vld [vmem:[%s8022_s14 + $0x210] sm:$0xff] }
  0x22   : > { %315 = vst [vmem:[%s8027_s15 + $0x100] sm:$0xff] %v314_v32  ;;  %v320_v35 = vld [vmem:[%s8022_s14 + $0x218] sm:$0xff]  ;;  %317 = vst [vmem:[%s8027_s15 + $0x108] sm:$0xff] %v316_v33  ;;  %v322_v36 = vld [vmem:[%s8022_s14 + $0x220] sm:$0xff] }
  0x23   : > { %319 = vst [vmem:[%s8027_s15 + $0x110] sm:$0xff] %v318_v34  ;;  %321 = vst [vmem:[%s8027_s15 + $0x118] sm:$0xff] %v320_v35  ;;  %v324_v37 = vld [vmem:[%s8022_s14 + $0x228] sm:$0xff]  ;;  %v326_v38 = vld [vmem:[%s8022_s14 + $0x230] sm:$0xff] }
  0x24   : > { %323 = vst [vmem:[%s8027_s15 + $0x120] sm:$0xff] %v322_v36  ;;  %325 = vst [vmem:[%s8027_s15 + $0x128] sm:$0xff] %v324_v37  ;;  %v328_v39 = vld [vmem:[%s8022_s14 + $0x238] sm:$0xff]  ;;  %v330_v40 = vld [vmem:[%s8022_s14 + $0x240] sm:$0xff] }
  0x25   : > { %327 = vst [vmem:[%s8027_s15 + $0x130] sm:$0xff] %v326_v38  ;;  %v332_v41 = vld [vmem:[%s8022_s14 + $0x248] sm:$0xff]  ;;  %329 = vst [vmem:[%s8027_s15 + $0x138] sm:$0xff] %v328_v39  ;;  %v334_v42 = vld [vmem:[%s8022_s14 + $0x250] sm:$0xff] }
  0x26   : > { %331 = vst [vmem:[%s8027_s15 + $0x140] sm:$0xff] %v330_v40  ;;  %333 = vst [vmem:[%s8027_s15 + $0x148] sm:$0xff] %v332_v41  ;;  %v336_v43 = vld [vmem:[%s8022_s14 + $0x258] sm:$0xff]  ;;  %v338_v44 = vld [vmem:[%s8022_s14 + $0x260] sm:$0xff] }
  0x27   : > { %335 = vst [vmem:[%s8027_s15 + $0x150] sm:$0xff] %v334_v42  ;;  %337 = vst [vmem:[%s8027_s15 + $0x158] sm:$0xff] %v336_v43  ;;  %v340_v45 = vld [vmem:[%s8022_s14 + $0x268] sm:$0xff]  ;;  %v342_v46 = vld [vmem:[%s8022_s14 + $0x270] sm:$0xff] }
  0x28   : > { %339 = vst [vmem:[%s8027_s15 + $0x160] sm:$0xff] %v338_v44  ;;  %v344_v47 = vld [vmem:[%s8022_s14 + $0x278] sm:$0xff]  ;;  %341 = vst [vmem:[%s8027_s15 + $0x168] sm:$0xff] %v340_v45  ;;  %v346_v48 = vld [vmem:[%s8022_s14 + $0x280] sm:$0xff] }
  0x29   : > { %343 = vst [vmem:[%s8027_s15 + $0x170] sm:$0xff] %v342_v46  ;;  %345 = vst [vmem:[%s8027_s15 + $0x178] sm:$0xff] %v344_v47  ;;  %v348_v49 = vld [vmem:[%s8022_s14 + $0x288] sm:$0xff]  ;;  %v350_v50 = vld [vmem:[%s8022_s14 + $0x290] sm:$0xff] }
  0x2a   : > { %347 = vst [vmem:[%s8027_s15 + $0x180] sm:$0xff] %v346_v48  ;;  %349 = vst [vmem:[%s8027_s15 + $0x188] sm:$0xff] %v348_v49  ;;  %v352_v51 = vld [vmem:[%s8022_s14 + $0x298] sm:$0xff]  ;;  %v354_v52 = vld [vmem:[%s8022_s14 + $0x2a0] sm:$0xff] }
  0x2b   : > { %351 = vst [vmem:[%s8027_s15 + $0x190] sm:$0xff] %v350_v50  ;;  %v356_v53 = vld [vmem:[%s8022_s14 + $0x2a8] sm:$0xff]  ;;  %353 = vst [vmem:[%s8027_s15 + $0x198] sm:$0xff] %v352_v51  ;;  %v358_v54 = vld [vmem:[%s8022_s14 + $0x2b0] sm:$0xff] }
  0x2c   : > { %355 = vst [vmem:[%s8027_s15 + $0x1a0] sm:$0xff] %v354_v52  ;;  %357 = vst [vmem:[%s8027_s15 + $0x1a8] sm:$0xff] %v356_v53  ;;  %v360_v55 = vld [vmem:[%s8022_s14 + $0x2b8] sm:$0xff]  ;;  %v362_v56 = vld [vmem:[%s8022_s14 + $0x2c0] sm:$0xff] }
  0x2d   : > { %359 = vst [vmem:[%s8027_s15 + $0x1b0] sm:$0xff] %v358_v54  ;;  %361 = vst [vmem:[%s8027_s15 + $0x1b8] sm:$0xff] %v360_v55  ;;  %v364_v57 = vld [vmem:[%s8022_s14 + $0x2c8] sm:$0xff]  ;;  %v366_v58 = vld [vmem:[%s8022_s14 + $0x2d0] sm:$0xff] }
  0x2e   : > { %363 = vst [vmem:[%s8027_s15 + $0x1c0] sm:$0xff] %v362_v56  ;;  %v368_v59 = vld [vmem:[%s8022_s14 + $0x2d8] sm:$0xff]  ;;  %365 = vst [vmem:[%s8027_s15 + $0x1c8] sm:$0xff] %v364_v57  ;;  %v370_v60 = vld [vmem:[%s8022_s14 + $0x2e0] sm:$0xff] }
  0x2f   : > { %367 = vst [vmem:[%s8027_s15 + $0x1d0] sm:$0xff] %v366_v58  ;;  %369 = vst [vmem:[%s8027_s15 + $0x1d8] sm:$0xff] %v368_v59  ;;  %v372_v61 = vld [vmem:[%s8022_s14 + $0x2e8] sm:$0xff]  ;;  %v374_v62 = vld [vmem:[%s8022_s14 + $0x2f0] sm:$0xff] }
  0x30   : > { %371 = vst [vmem:[%s8027_s15 + $0x1e0] sm:$0xff] %v370_v60  ;;  %373 = vst [vmem:[%s8027_s15 + $0x1e8] sm:$0xff] %v372_v61  ;;  %v376_v63 = vld [vmem:[%s8022_s14 + $0x2f8] sm:$0xff]  ;;  %v378_v0 = vld [vmem:[%s8022_s14 + $0x400] sm:$0xff] }
  0x31   : > { %375 = vst [vmem:[%s8027_s15 + $0x1f0] sm:$0xff] %v374_v62  ;;  %v380_v1 = vld [vmem:[%s8022_s14 + $0x408] sm:$0xff]  ;;  %377 = vst [vmem:[%s8027_s15 + $0x1f8] sm:$0xff] %v376_v63  ;;  %v382_v2 = vld [vmem:[%s8022_s14 + $0x410] sm:$0xff] }
  0x32   : > { %379 = vst [vmem:[%s8027_s15 + $0x200] sm:$0xff] %v378_v0  ;;  %381 = vst [vmem:[%s8027_s15 + $0x208] sm:$0xff] %v380_v1  ;;  %v384_v3 = vld [vmem:[%s8022_s14 + $0x418] sm:$0xff]  ;;  %v386_v4 = vld [vmem:[%s8022_s14 + $0x420] sm:$0xff] }
  0x33   : > { %383 = vst [vmem:[%s8027_s15 + $0x210] sm:$0xff] %v382_v2  ;;  %385 = vst [vmem:[%s8027_s15 + $0x218] sm:$0xff] %v384_v3  ;;  %v388_v5 = vld [vmem:[%s8022_s14 + $0x428] sm:$0xff]  ;;  %v390_v6 = vld [vmem:[%s8022_s14 + $0x430] sm:$0xff] }
  0x34   : > { %387 = vst [vmem:[%s8027_s15 + $0x220] sm:$0xff] %v386_v4  ;;  %v392_v7 = vld [vmem:[%s8022_s14 + $0x438] sm:$0xff]  ;;  %389 = vst [vmem:[%s8027_s15 + $0x228] sm:$0xff] %v388_v5  ;;  %v394_v8 = vld [vmem:[%s8022_s14 + $0x440] sm:$0xff] }
  0x35   : > { %391 = vst [vmem:[%s8027_s15 + $0x230] sm:$0xff] %v390_v6  ;;  %393 = vst [vmem:[%s8027_s15 + $0x238] sm:$0xff] %v392_v7  ;;  %v396_v9 = vld [vmem:[%s8022_s14 + $0x448] sm:$0xff]  ;;  %v398_v10 = vld [vmem:[%s8022_s14 + $0x450] sm:$0xff] }
  0x36   : > { %395 = vst [vmem:[%s8027_s15 + $0x240] sm:$0xff] %v394_v8  ;;  %397 = vst [vmem:[%s8027_s15 + $0x248] sm:$0xff] %v396_v9  ;;  %v400_v11 = vld [vmem:[%s8022_s14 + $0x458] sm:$0xff]  ;;  %v402_v12 = vld [vmem:[%s8022_s14 + $0x460] sm:$0xff] }
  0x37   : > { %399 = vst [vmem:[%s8027_s15 + $0x250] sm:$0xff] %v398_v10  ;;  %v404_v13 = vld [vmem:[%s8022_s14 + $0x468] sm:$0xff]  ;;  %401 = vst [vmem:[%s8027_s15 + $0x258] sm:$0xff] %v400_v11  ;;  %v406_v14 = vld [vmem:[%s8022_s14 + $0x470] sm:$0xff] }
  0x38   : > { %403 = vst [vmem:[%s8027_s15 + $0x260] sm:$0xff] %v402_v12  ;;  %405 = vst [vmem:[%s8027_s15 + $0x268] sm:$0xff] %v404_v13  ;;  %v408_v15 = vld [vmem:[%s8022_s14 + $0x478] sm:$0xff]  ;;  %v410_v16 = vld [vmem:[%s8022_s14 + $0x480] sm:$0xff] }
  0x39   : > { %407 = vst [vmem:[%s8027_s15 + $0x270] sm:$0xff] %v406_v14  ;;  %409 = vst [vmem:[%s8027_s15 + $0x278] sm:$0xff] %v408_v15  ;;  %v412_v17 = vld [vmem:[%s8022_s14 + $0x488] sm:$0xff]  ;;  %v414_v18 = vld [vmem:[%s8022_s14 + $0x490] sm:$0xff] }
  0x3a   : > { %411 = vst [vmem:[%s8027_s15 + $0x280] sm:$0xff] %v410_v16  ;;  %v416_v19 = vld [vmem:[%s8022_s14 + $0x498] sm:$0xff]  ;;  %413 = vst [vmem:[%s8027_s15 + $0x288] sm:$0xff] %v412_v17  ;;  %v418_v20 = vld [vmem:[%s8022_s14 + $0x4a0] sm:$0xff] }
  0x3b   : > { %415 = vst [vmem:[%s8027_s15 + $0x290] sm:$0xff] %v414_v18  ;;  %417 = vst [vmem:[%s8027_s15 + $0x298] sm:$0xff] %v416_v19  ;;  %v420_v21 = vld [vmem:[%s8022_s14 + $0x4a8] sm:$0xff]  ;;  %v422_v22 = vld [vmem:[%s8022_s14 + $0x4b0] sm:$0xff] }
  0x3c   : > { %419 = vst [vmem:[%s8027_s15 + $0x2a0] sm:$0xff] %v418_v20  ;;  %421 = vst [vmem:[%s8027_s15 + $0x2a8] sm:$0xff] %v420_v21  ;;  %v424_v23 = vld [vmem:[%s8022_s14 + $0x4b8] sm:$0xff]  ;;  %v426_v24 = vld [vmem:[%s8022_s14 + $0x4c0] sm:$0xff] }
  0x3d   : > { %423 = vst [vmem:[%s8027_s15 + $0x2b0] sm:$0xff] %v422_v22  ;;  %v428_v25 = vld [vmem:[%s8022_s14 + $0x4c8] sm:$0xff]  ;;  %425 = vst [vmem:[%s8027_s15 + $0x2b8] sm:$0xff] %v424_v23  ;;  %v430_v26 = vld [vmem:[%s8022_s14 + $0x4d0] sm:$0xff] }
  0x3e   : > { %427 = vst [vmem:[%s8027_s15 + $0x2c0] sm:$0xff] %v426_v24  ;;  %429 = vst [vmem:[%s8027_s15 + $0x2c8] sm:$0xff] %v428_v25  ;;  %v432_v27 = vld [vmem:[%s8022_s14 + $0x4d8] sm:$0xff]  ;;  %v434_v28 = vld [vmem:[%s8022_s14 + $0x4e0] sm:$0xff] }
  0x3f   : > { %431 = vst [vmem:[%s8027_s15 + $0x2d0] sm:$0xff] %v430_v26  ;;  %433 = vst [vmem:[%s8027_s15 + $0x2d8] sm:$0xff] %v432_v27  ;;  %v436_v29 = vld [vmem:[%s8022_s14 + $0x4e8] sm:$0xff]  ;;  %v438_v30 = vld [vmem:[%s8022_s14 + $0x4f0] sm:$0xff] }
  0x40   : > { %435 = vst [vmem:[%s8027_s15 + $0x2e0] sm:$0xff] %v434_v28  ;;  %v440_v31 = vld [vmem:[%s8022_s14 + $0x4f8] sm:$0xff]  ;;  %437 = vst [vmem:[%s8027_s15 + $0x2e8] sm:$0xff] %v436_v29  ;;  %v442_v32 = vld [vmem:[%s8022_s14 + $0x600] sm:$0xff] }
  0x41   : > { %439 = vst [vmem:[%s8027_s15 + $0x2f0] sm:$0xff] %v438_v30  ;;  %441 = vst [vmem:[%s8027_s15 + $0x2f8] sm:$0xff] %v440_v31  ;;  %v444_v33 = vld [vmem:[%s8022_s14 + $0x608] sm:$0xff]  ;;  %v446_v34 = vld [vmem:[%s8022_s14 + $0x610] sm:$0xff] }
  0x42   : > { %443 = vst [vmem:[%s8027_s15 + $0x300] sm:$0xff] %v442_v32  ;;  %445 = vst [vmem:[%s8027_s15 + $0x308] sm:$0xff] %v444_v33  ;;  %v448_v35 = vld [vmem:[%s8022_s14 + $0x618] sm:$0xff]  ;;  %v450_v36 = vld [vmem:[%s8022_s14 + $0x620] sm:$0xff] }
  0x43   : > { %447 = vst [vmem:[%s8027_s15 + $0x310] sm:$0xff] %v446_v34  ;;  %v452_v37 = vld [vmem:[%s8022_s14 + $0x628] sm:$0xff]  ;;  %449 = vst [vmem:[%s8027_s15 + $0x318] sm:$0xff] %v448_v35  ;;  %v454_v38 = vld [vmem:[%s8022_s14 + $0x630] sm:$0xff] }
  0x44   : > { %451 = vst [vmem:[%s8027_s15 + $0x320] sm:$0xff] %v450_v36  ;;  %453 = vst [vmem:[%s8027_s15 + $0x328] sm:$0xff] %v452_v37  ;;  %v456_v39 = vld [vmem:[%s8022_s14 + $0x638] sm:$0xff]  ;;  %v458_v40 = vld [vmem:[%s8022_s14 + $0x640] sm:$0xff] }
  0x45   : > { %455 = vst [vmem:[%s8027_s15 + $0x330] sm:$0xff] %v454_v38  ;;  %457 = vst [vmem:[%s8027_s15 + $0x338] sm:$0xff] %v456_v39  ;;  %v460_v41 = vld [vmem:[%s8022_s14 + $0x648] sm:$0xff]  ;;  %v462_v42 = vld [vmem:[%s8022_s14 + $0x650] sm:$0xff] }
  0x46   : > { %459 = vst [vmem:[%s8027_s15 + $0x340] sm:$0xff] %v458_v40  ;;  %v464_v43 = vld [vmem:[%s8022_s14 + $0x658] sm:$0xff]  ;;  %461 = vst [vmem:[%s8027_s15 + $0x348] sm:$0xff] %v460_v41  ;;  %v466_v44 = vld [vmem:[%s8022_s14 + $0x660] sm:$0xff] }
  0x47   : > { %463 = vst [vmem:[%s8027_s15 + $0x350] sm:$0xff] %v462_v42  ;;  %465 = vst [vmem:[%s8027_s15 + $0x358] sm:$0xff] %v464_v43  ;;  %v468_v45 = vld [vmem:[%s8022_s14 + $0x668] sm:$0xff]  ;;  %v470_v46 = vld [vmem:[%s8022_s14 + $0x670] sm:$0xff] }
  0x48   : > { %467 = vst [vmem:[%s8027_s15 + $0x360] sm:$0xff] %v466_v44  ;;  %469 = vst [vmem:[%s8027_s15 + $0x368] sm:$0xff] %v468_v45  ;;  %v472_v47 = vld [vmem:[%s8022_s14 + $0x678] sm:$0xff]  ;;  %v474_v48 = vld [vmem:[%s8022_s14 + $0x680] sm:$0xff] }
  0x49   : > { %471 = vst [vmem:[%s8027_s15 + $0x370] sm:$0xff] %v470_v46  ;;  %v476_v49 = vld [vmem:[%s8022_s14 + $0x688] sm:$0xff]  ;;  %473 = vst [vmem:[%s8027_s15 + $0x378] sm:$0xff] %v472_v47  ;;  %v478_v50 = vld [vmem:[%s8022_s14 + $0x690] sm:$0xff] }
  0x4a   : > { %475 = vst [vmem:[%s8027_s15 + $0x380] sm:$0xff] %v474_v48  ;;  %477 = vst [vmem:[%s8027_s15 + $0x388] sm:$0xff] %v476_v49  ;;  %v480_v51 = vld [vmem:[%s8022_s14 + $0x698] sm:$0xff]  ;;  %v482_v52 = vld [vmem:[%s8022_s14 + $0x6a0] sm:$0xff] }
  0x4b   : > { %479 = vst [vmem:[%s8027_s15 + $0x390] sm:$0xff] %v478_v50  ;;  %481 = vst [vmem:[%s8027_s15 + $0x398] sm:$0xff] %v480_v51  ;;  %v484_v53 = vld [vmem:[%s8022_s14 + $0x6a8] sm:$0xff]  ;;  %v486_v54 = vld [vmem:[%s8022_s14 + $0x6b0] sm:$0xff] }
  0x4c   : > { %483 = vst [vmem:[%s8027_s15 + $0x3a0] sm:$0xff] %v482_v52  ;;  %v488_v55 = vld [vmem:[%s8022_s14 + $0x6b8] sm:$0xff]  ;;  %485 = vst [vmem:[%s8027_s15 + $0x3a8] sm:$0xff] %v484_v53  ;;  %v490_v56 = vld [vmem:[%s8022_s14 + $0x6c0] sm:$0xff] }
  0x4d   : > { %487 = vst [vmem:[%s8027_s15 + $0x3b0] sm:$0xff] %v486_v54  ;;  %489 = vst [vmem:[%s8027_s15 + $0x3b8] sm:$0xff] %v488_v55  ;;  %v492_v57 = vld [vmem:[%s8022_s14 + $0x6c8] sm:$0xff]  ;;  %v494_v58 = vld [vmem:[%s8022_s14 + $0x6d0] sm:$0xff] }
  0x4e   : > { %491 = vst [vmem:[%s8027_s15 + $0x3c0] sm:$0xff] %v490_v56  ;;  %493 = vst [vmem:[%s8027_s15 + $0x3c8] sm:$0xff] %v492_v57  ;;  %v496_v59 = vld [vmem:[%s8022_s14 + $0x6d8] sm:$0xff]  ;;  %v498_v60 = vld [vmem:[%s8022_s14 + $0x6e0] sm:$0xff] }
  0x4f   : > { %495 = vst [vmem:[%s8027_s15 + $0x3d0] sm:$0xff] %v494_v58  ;;  %v500_v61 = vld [vmem:[%s8022_s14 + $0x6e8] sm:$0xff]  ;;  %497 = vst [vmem:[%s8027_s15 + $0x3d8] sm:$0xff] %v496_v59  ;;  %v502_v62 = vld [vmem:[%s8022_s14 + $0x6f0] sm:$0xff] }
  0x50   : > { %499 = vst [vmem:[%s8027_s15 + $0x3e0] sm:$0xff] %v498_v60  ;;  %501 = vst [vmem:[%s8027_s15 + $0x3e8] sm:$0xff] %v500_v61  ;;  %v504_v63 = vld [vmem:[%s8022_s14 + $0x6f8] sm:$0xff] }
  0x51   : > { %503 = vst [vmem:[%s8027_s15 + $0x3f0] sm:$0xff] %v502_v62  ;;  %505 = vst [vmem:[%s8027_s15 + $0x3f8] sm:$0xff] %v504_v63 }
  0x52 PF: > { %p5359_p5 = scmp.ge.s32.totalorder %s7943_s26, 1  ;;  %p510_p6 = scmp.lt.s32.totalorder %s7943_s26, 3 }
  0x54   : > { %p511_p7 = pnand %p5359_p5, %p510_p6 }
  0x55   : > { %v680_v0 = vld [vmem:[%s13510_s1 + $0x8] sm:$0xff] (!%p511_p7)  ;;  %v683_v1 = vld [vmem:[%s13510_s1 + $0x20] sm:$0xff] (!%p511_p7)  ;;  %v682_v6 = vld [vmem:[%s13510_s1 + $0x18] sm:$0xff] (!%p511_p7)  ;;  %s517_s21 = sand.u32 (!%p511_p7), 1, %s7935_s24   ;;  %vm2179_vm0 = vcmask (!%p511_p7), 261120   ;;  %vm7946_vm1 = vmmov (!%p511_p7), 0  }
  0x56   : > { %514 = sbr.rel (%p511_p7) target bundleno = 1530 (0x5fa), region = 67  ;;  %v968_v2 = vld [vmem:[%s13510_s1 + $0x908] sm:$0xff] (!%p511_p7)  ;;  %v6126_v3 = vpack.c.bf16 (!%p511_p7), %v683_v1, %v680_v0  ;;  %v971_v4 = vld [vmem:[%s13510_s1 + $0x920] sm:$0xff] (!%p511_p7)  ;;  %v970_v10 = vld [vmem:[%s13510_s1 + $0x918] sm:$0xff] (!%p511_p7)  ;;  %s5360_s14 = sshll.u32 (!%p511_p7), %s517_s21, 10  ;;  %vm5055_vm2 = vcmask (!%p511_p7), 523264  }
  0x57   : > { %v679_v5 = vld [vmem:[%s13510_s1] sm:$0xff] (!%p511_p7)  ;;  %v6318_v7 = vpack.c.bf16 (!%p511_p7), %v971_v4, %v968_v2  ;;  %v686_v11 = vld [vmem:[%s13510_s1 + $0x38] sm:$0xff] (!%p511_p7)  ;;  %v689_v13 = vld [vmem:[%s13510_s1 + $0x50] sm:$0xff] (!%p511_p7)  ;;  %s8579_s9 = scalar_lea.vmem (!%p511_p7), [#allocation2], %s5360_s14  ;;  %vm5217_vm3 = vcmask (!%p511_p7), 1041408   ;;  %vm5213_vm4 = vcmask (!%p511_p7), 408576  }
  0x58   : > { %v6128_v8 = vpack.c.bf16 (!%p511_p7), %v682_v6, %v679_v5  ;;  %v967_v9 = vld [vmem:[%s13510_s1 + $0x900] sm:$0xff] (!%p511_p7)  ;;  %6127 = vmatprep.subr.bf16.mxu1 (!%p511_p7), %v6126_v3  ;;  %v974_v14 = vld [vmem:[%s13510_s1 + $0x938] sm:$0xff] (!%p511_p7)  ;;  %v977_v15 = vld [vmem:[%s13510_s1 + $0x950] sm:$0xff] (!%p511_p7)  ;;  %v6130_v16 = vpack.c.bf16 (!%p511_p7), %v689_v13, %v686_v11  ;;  %p547_p8 = scmp.lt.s32.totalorder (!%p511_p7), %s5352_s27, 1  ;;  %vm5291_vm5 = vcmask (!%p511_p7), 80896  }
  0x59   : > { %v6320_v12 = vpack.c.bf16 (!%p511_p7), %v970_v10, %v967_v9  ;;  %6319 = vmatprep.subr.bf16.mxu0 (!%p511_p7), %v6318_v7  ;;  %v6322_v17 = vpack.c.bf16 (!%p511_p7), %v977_v15, %v974_v14  ;;  %v685_v18 = vld [vmem:[%s13510_s1 + $0x30] sm:$0xff] (!%p511_p7)  ;;  %v688_v19 = vld [vmem:[%s13510_s1 + $0x48] sm:$0xff] (!%p511_p7)  ;;  %v695_v24 = vld [vmem:[%s13510_s1 + $0x80] sm:$0xff] (!%p511_p7) }
  0x5a   : > { %6129 = vmatpush1.bf16.msra.mxu1 (!%p511_p7), %v6128_v8  ;;  %v973_v20 = vld [vmem:[%s13510_s1 + $0x930] sm:$0xff] (!%p511_p7)  ;;  %v6132_v21 = vpack.c.bf16 (!%p511_p7), %v688_v19, %v685_v18  ;;  %v976_v22 = vld [vmem:[%s13510_s1 + $0x948] sm:$0xff] (!%p511_p7)  ;;  %v983_v28 = vld [vmem:[%s13510_s1 + $0x980] sm:$0xff] (!%p511_p7) }
  0x5b   : > { %6321 = vmatpush1.bf16.msra.mxu0 (!%p511_p7), %v6320_v12  ;;  %v692_v23 = vld [vmem:[%s13510_s1 + $0x68] sm:$0xff] (!%p511_p7)  ;;  %6131 = vmatprep.subr.bf16.mxu1 (!%p511_p7), %v6130_v16  ;;  %v6324_v25 = vpack.c.bf16 (!%p511_p7), %v976_v22, %v973_v20  ;;  %v691_v29 = vld [vmem:[%s13510_s1 + $0x60] sm:$0xff] (!%p511_p7)  ;;  %v694_v31 = vld [vmem:[%s13510_s1 + $0x78] sm:$0xff] (!%p511_p7) }
  0x5c   : > { %6323 = vmatprep.subr.bf16.mxu0 (!%p511_p7), %v6322_v17  ;;  %v6134_v26 = vpack.c.bf16 (!%p511_p7), %v695_v24, %v692_v23  ;;  %v980_v27 = vld [vmem:[%s13510_s1 + $0x968] sm:$0xff] (!%p511_p7)  ;;  %v979_v32 = vld [vmem:[%s13510_s1 + $0x960] sm:$0xff] (!%p511_p7)  ;;  %v982_v33 = vld [vmem:[%s13510_s1 + $0x978] sm:$0xff] (!%p511_p7)  ;;  %v6136_v34 = vpack.c.bf16 (!%p511_p7), %v694_v31, %v691_v29 }
  0x5d   : > { %v6326_v30 = vpack.c.bf16 %v983_v28, %v980_v27  ;;  %v698_v35 = vld [vmem:[%s13510_s1 + $0x98] sm:$0xff]  ;;  %v701_v36 = vld [vmem:[%s13510_s1 + $0xb0] sm:$0xff]  ;;  %v6328_v38 = vpack.c.bf16 %v982_v33, %v979_v32  ;;  %v700_v42 = vld [vmem:[%s13510_s1 + $0xa8] sm:$0xff]  ;;  %s13521_s27 = smov (!%p547_p8, %s5352_s27), 1 }
  0x5e   : > { %6133 = vmatpush1.bf16.msra.mxu1 %v6132_v21  ;;  %v986_v37 = vld [vmem:[%s13510_s1 + $0x998] sm:$0xff]  ;;  %v6138_v39 = vpack.c.bf16 %v701_v36, %v698_v35  ;;  %v989_v40 = vld [vmem:[%s13510_s1 + $0x9b0] sm:$0xff]  ;;  %v988_v45 = vld [vmem:[%s13510_s1 + $0x9a8] sm:$0xff]  ;;  %s5361_s15 = sshll.u32 %s13521_s27, 3 }
  0x5f   : > { %6325 = vmatpush1.bf16.msra.mxu0 %v6324_v25  ;;  %6135 = vmatprep.subr.bf16.mxu1 %v6134_v26  ;;  %v697_v41 = vld [vmem:[%s13510_s1 + $0x90] sm:$0xff]  ;;  %v6330_v43 = vpack.c.bf16 %v989_v40, %v986_v37  ;;  %v704_v46 = vld [vmem:[%s13510_s1 + $0xc8] sm:$0xff]  ;;  %v707_v47 = vld [vmem:[%s13510_s1 + $0xe0] sm:$0xff]  ;;  %s550_s20 = scalar_lea.vmem %s13516_s7, %s5361_s15 }
  0x60   : > { %6327 = vmatprep.subr.bf16.mxu0 %v6326_v30  ;;  %v985_v44 = vld [vmem:[%s13510_s1 + $0x990] sm:$0xff]  ;;  %v992_v48 = vld [vmem:[%s13510_s1 + $0x9c8] sm:$0xff]  ;;  %v995_v49 = vld [vmem:[%s13510_s1 + $0x9e0] sm:$0xff]  ;;  %v6140_v50 = vpack.c.bf16 %v700_v42, %v697_v41  ;;  %v6142_v52 = vpack.c.bf16 %v707_v47, %v704_v46 }
  0x61   : > { %v6332_v51 = vpack.c.bf16 %v988_v45, %v985_v44  ;;  %v703_v53 = vld [vmem:[%s13510_s1 + $0xc0] sm:$0xff]  ;;  %v706_v54 = vld [vmem:[%s13510_s1 + $0xd8] sm:$0xff]  ;;  %v6334_v56 = vpack.c.bf16 %v995_v49, %v992_v48  ;;  %v713_v59 = vld [vmem:[%s13510_s1 + $0x110] sm:$0xff] }
  0x62   : > { %6137 = vmatpush1.bf16.msra.mxu1 %v6136_v34  ;;  %v991_v55 = vld [vmem:[%s13510_s1 + $0x9c0] sm:$0xff]  ;;  %v994_v57 = vld [vmem:[%s13510_s1 + $0x9d8] sm:$0xff]  ;;  %v1001_v61 = vld [vmem:[%s13510_s1 + $0xa10] sm:$0xff]  ;;  %v6144_v62 = vpack.c.bf16 %v706_v54, %v703_v53 }
  0x63   : > { %6329 = vmatpush1.bf16.msra.mxu0 %v6328_v38  ;;  %6139 = vmatprep.subr.bf16.mxu1 %v6138_v39  ;;  %v710_v58 = vld [vmem:[%s13510_s1 + $0xf8] sm:$0xff]  ;;  %v6336_v63 = vpack.c.bf16 %v994_v57, %v991_v55  ;;  %v709_v1 = vld [vmem:[%s13510_s1 + $0xf0] sm:$0xff]  ;;  %v712_v2 = vld [vmem:[%s13510_s1 + $0x108] sm:$0xff] }
  0x64   : > { %6331 = vmatprep.subr.bf16.mxu0 %v6330_v43  ;;  %v998_v60 = vld [vmem:[%s13510_s1 + $0x9f8] sm:$0xff]  ;;  %v6146_v0 = vpack.c.bf16 %v713_v59, %v710_v58  ;;  %v997_v3 = vld [vmem:[%s13510_s1 + $0x9f0] sm:$0xff]  ;;  %v1000_v5 = vld [vmem:[%s13510_s1 + $0xa08] sm:$0xff]  ;;  %v6148_v10 = vpack.c.bf16 %v712_v2, %v709_v1 }
  0x65   : > { %v6338_v4 = vpack.c.bf16 %v1001_v61, %v998_v60  ;;  %v716_v6 = vld [vmem:[%s13510_s1 + $0x128] sm:$0xff]  ;;  %v719_v7 = vld [vmem:[%s13510_s1 + $0x140] sm:$0xff]  ;;  %v6340_v11 = vpack.c.bf16 %v1000_v5, %v997_v3  ;;  %v718_v14 = vld [vmem:[%s13510_s1 + $0x138] sm:$0xff] }
  0x66   : > { %6141 = vmatpush1.bf16.msra.mxu1 %v6140_v50  ;;  %v1004_v8 = vld [vmem:[%s13510_s1 + $0xa28] sm:$0xff]  ;;  %v1007_v9 = vld [vmem:[%s13510_s1 + $0xa40] sm:$0xff]  ;;  %v6150_v12 = vpack.c.bf16 %v719_v7, %v716_v6  ;;  %v1006_v17 = vld [vmem:[%s13510_s1 + $0xa38] sm:$0xff] }
  0x67   : > { %6333 = vmatpush1.bf16.msra.mxu0 %v6332_v51  ;;  %6143 = vmatprep.subr.bf16.mxu1 %v6142_v52  ;;  %v715_v13 = vld [vmem:[%s13510_s1 + $0x120] sm:$0xff]  ;;  %v6342_v16 = vpack.c.bf16 %v1007_v9, %v1004_v8  ;;  %v722_v18 = vld [vmem:[%s13510_s1 + $0x158] sm:$0xff]  ;;  %v725_v19 = vld [vmem:[%s13510_s1 + $0x170] sm:$0xff] }
  0x68   : > { %6335 = vmatprep.subr.bf16.mxu0 %v6334_v56  ;;  %v1003_v15 = vld [vmem:[%s13510_s1 + $0xa20] sm:$0xff]  ;;  %v1010_v20 = vld [vmem:[%s13510_s1 + $0xa58] sm:$0xff]  ;;  %v1013_v21 = vld [vmem:[%s13510_s1 + $0xa70] sm:$0xff]  ;;  %v6152_v22 = vpack.c.bf16 %v718_v14, %v715_v13  ;;  %v6154_v24 = vpack.c.bf16 %v725_v19, %v722_v18 }
  0x69   : > { %v6344_v23 = vpack.c.bf16 %v1006_v17, %v1003_v15  ;;  %v721_v25 = vld [vmem:[%s13510_s1 + $0x150] sm:$0xff]  ;;  %v724_v26 = vld [vmem:[%s13510_s1 + $0x168] sm:$0xff]  ;;  %v6346_v28 = vpack.c.bf16 %v1013_v21, %v1010_v20  ;;  %v731_v31 = vld [vmem:[%s13510_s1 + $0x1a0] sm:$0xff] }
  0x6a   : > { %6145 = vmatpush1.bf16.msra.mxu1 %v6144_v62  ;;  %v1009_v27 = vld [vmem:[%s13510_s1 + $0xa50] sm:$0xff]  ;;  %v1012_v29 = vld [vmem:[%s13510_s1 + $0xa68] sm:$0xff]  ;;  %v1019_v33 = vld [vmem:[%s13510_s1 + $0xaa0] sm:$0xff]  ;;  %v6156_v34 = vpack.c.bf16 %v724_v26, %v721_v25 }
  0x6b   : > { %6337 = vmatpush1.bf16.msra.mxu0 %v6336_v63  ;;  %6147 = vmatprep.subr.bf16.mxu1 %v6146_v0  ;;  %v728_v30 = vld [vmem:[%s13510_s1 + $0x188] sm:$0xff]  ;;  %v6348_v35 = vpack.c.bf16 %v1012_v29, %v1009_v27  ;;  %v727_v37 = vld [vmem:[%s13510_s1 + $0x180] sm:$0xff]  ;;  %v730_v38 = vld [vmem:[%s13510_s1 + $0x198] sm:$0xff] }
  0x6c   : > { %6339 = vmatprep.subr.bf16.mxu0 %v6338_v4  ;;  %v1016_v32 = vld [vmem:[%s13510_s1 + $0xa88] sm:$0xff]  ;;  %v6158_v36 = vpack.c.bf16 %v731_v31, %v728_v30  ;;  %v1015_v39 = vld [vmem:[%s13510_s1 + $0xa80] sm:$0xff]  ;;  %v1018_v41 = vld [vmem:[%s13510_s1 + $0xa98] sm:$0xff]  ;;  %v6160_v46 = vpack.c.bf16 %v730_v38, %v727_v37 }
  0x6d   : > { %v6350_v40 = vpack.c.bf16 %v1019_v33, %v1016_v32  ;;  %v734_v42 = vld [vmem:[%s13510_s1 + $0x1b8] sm:$0xff]  ;;  %v737_v43 = vld [vmem:[%s13510_s1 + $0x1d0] sm:$0xff]  ;;  %v6352_v47 = vpack.c.bf16 %v1018_v41, %v1015_v39  ;;  %v736_v50 = vld [vmem:[%s13510_s1 + $0x1c8] sm:$0xff] }
  0x6e   : > { %6149 = vmatpush1.bf16.msra.mxu1 %v6148_v10  ;;  %v1022_v44 = vld [vmem:[%s13510_s1 + $0xab8] sm:$0xff]  ;;  %v1025_v45 = vld [vmem:[%s13510_s1 + $0xad0] sm:$0xff]  ;;  %v6162_v48 = vpack.c.bf16 %v737_v43, %v734_v42  ;;  %v1024_v53 = vld [vmem:[%s13510_s1 + $0xac8] sm:$0xff] }
  0x6f   : > { %6341 = vmatpush1.bf16.msra.mxu0 %v6340_v11  ;;  %6151 = vmatprep.subr.bf16.mxu1 %v6150_v12  ;;  %v733_v49 = vld [vmem:[%s13510_s1 + $0x1b0] sm:$0xff]  ;;  %v6354_v52 = vpack.c.bf16 %v1025_v45, %v1022_v44  ;;  %v740_v54 = vld [vmem:[%s13510_s1 + $0x1e8] sm:$0xff]  ;;  %v743_v55 = vld [vmem:[%s13510_s1 + $0x200] sm:$0xff] }
  0x70   : > { %6343 = vmatprep.subr.bf16.mxu0 %v6342_v16  ;;  %v1021_v51 = vld [vmem:[%s13510_s1 + $0xab0] sm:$0xff]  ;;  %v1028_v56 = vld [vmem:[%s13510_s1 + $0xae8] sm:$0xff]  ;;  %v1031_v57 = vld [vmem:[%s13510_s1 + $0xb00] sm:$0xff]  ;;  %v6164_v58 = vpack.c.bf16 %v736_v50, %v733_v49  ;;  %v6166_v60 = vpack.c.bf16 %v743_v55, %v740_v54 }
  0x71   : > { %v6356_v59 = vpack.c.bf16 %v1024_v53, %v1021_v51  ;;  %v739_v61 = vld [vmem:[%s13510_s1 + $0x1e0] sm:$0xff]  ;;  %v742_v62 = vld [vmem:[%s13510_s1 + $0x1f8] sm:$0xff]  ;;  %v6358_v0 = vpack.c.bf16 %v1031_v57, %v1028_v56  ;;  %v749_v3 = vld [vmem:[%s13510_s1 + $0x230] sm:$0xff] }
  0x72   : > { %6153 = vmatpush1.bf16.msra.mxu1 %v6152_v22  ;;  %v1027_v63 = vld [vmem:[%s13510_s1 + $0xae0] sm:$0xff]  ;;  %v1030_v1 = vld [vmem:[%s13510_s1 + $0xaf8] sm:$0xff]  ;;  %v1037_v5 = vld [vmem:[%s13510_s1 + $0xb30] sm:$0xff]  ;;  %v6168_v6 = vpack.c.bf16 %v742_v62, %v739_v61 }
  0x73   : > { %6345 = vmatpush1.bf16.msra.mxu0 %v6344_v23  ;;  %6155 = vmatprep.subr.bf16.mxu1 %v6154_v24  ;;  %v746_v2 = vld [vmem:[%s13510_s1 + $0x218] sm:$0xff]  ;;  %v745_v7 = vld [vmem:[%s13510_s1 + $0x210] sm:$0xff]  ;;  %v6360_v8 = vpack.c.bf16 %v1030_v1, %v1027_v63  ;;  %v748_v10 = vld [vmem:[%s13510_s1 + $0x228] sm:$0xff] }
  0x74   : > { %6347 = vmatprep.subr.bf16.mxu0 %v6346_v28  ;;  %v1034_v4 = vld [vmem:[%s13510_s1 + $0xb18] sm:$0xff]  ;;  %v6170_v9 = vpack.c.bf16 %v749_v3, %v746_v2  ;;  %v1033_v11 = vld [vmem:[%s13510_s1 + $0xb10] sm:$0xff]  ;;  %v1036_v12 = vld [vmem:[%s13510_s1 + $0xb28] sm:$0xff]  ;;  %v6172_v20 = vpack.c.bf16 %v748_v10, %v745_v7 }
  0x75   : > { %v6362_v13 = vpack.c.bf16 %v1037_v5, %v1034_v4  ;;  %v752_v14 = vld [vmem:[%s13510_s1 + $0x248] sm:$0xff]  ;;  %v755_v15 = vld [vmem:[%s13510_s1 + $0x260] sm:$0xff]  ;;  %v558_v19 = vld [vmem:[%s8579_s9 + $0x38] sm:$0xff]  ;;  %v6364_v21 = vpack.c.bf16 %v1036_v12, %v1033_v11 }
  0x76   : > { %6157 = vmatpush1.bf16.msra.mxu1 %v6156_v34  ;;  %v552_v16 = vld [vmem:[%s8579_s9 + $0x8] sm:$0xff]  ;;  %v1043_v18 = vld [vmem:[%s13510_s1 + $0xb60] sm:$0xff]  ;;  %2523 = vmatprep.mubr.f32.mxu0 %v558_v19  ;;  %v6174_v22 = vpack.c.bf16 %v755_v15, %v752_v14  ;;  %v754_v24 = vld [vmem:[%s13510_s1 + $0x258] sm:$0xff] }
  0x77   : > { %6349 = vmatpush1.bf16.msra.mxu0 %v6348_v35  ;;  %6159 = vmatprep.subr.bf16.mxu1 %v6158_v36  ;;  %v1040_v17 = vld [vmem:[%s13510_s1 + $0xb48] sm:$0xff]  ;;  %v751_v23 = vld [vmem:[%s13510_s1 + $0x240] sm:$0xff]  ;;  %v1042_v27 = vld [vmem:[%s13510_s1 + $0xb58] sm:$0xff] }
  0x78   : > { %6351 = vmatprep.subr.bf16.mxu0 %v6350_v40  ;;  %2256 = vmatprep.mubr.f32.mxu1 %v552_v16  ;;  %v1039_v25 = vld [vmem:[%s13510_s1 + $0xb40] sm:$0xff]  ;;  %v6366_v26 = vpack.c.bf16 %v1043_v18, %v1040_v17  ;;  %v758_v28 = vld [vmem:[%s13510_s1 + $0x278] sm:$0xff]  ;;  %v761_v29 = vld [vmem:[%s13510_s1 + $0x290] sm:$0xff]  ;;  %v6176_v32 = vpack.c.bf16 %v754_v24, %v751_v23 }
  0x79   : > { %v1046_v30 = vld [vmem:[%s13510_s1 + $0xb78] sm:$0xff]  ;;  %v1049_v31 = vld [vmem:[%s13510_s1 + $0xb90] sm:$0xff]  ;;  %v6368_v33 = vpack.c.bf16 %v1042_v27, %v1039_v25  ;;  %v6178_v34 = vpack.c.bf16 %v761_v29, %v758_v28  ;;  %v760_v36 = vld [vmem:[%s13510_s1 + $0x288] sm:$0xff] }
  0x7a   : > { %6161 = vmatpush1.bf16.msra.mxu1 %v6160_v46  ;;  %v757_v35 = vld [vmem:[%s13510_s1 + $0x270] sm:$0xff]  ;;  %v6370_v38 = vpack.c.bf16 %v1049_v31, %v1046_v30  ;;  %v1048_v39 = vld [vmem:[%s13510_s1 + $0xb88] sm:$0xff]  ;;  %v767_v41 = vld [vmem:[%s13510_s1 + $0x2c0] sm:$0xff] }
  0x7b   : > { %6353 = vmatpush1.bf16.msra.mxu0 %v6352_v47  ;;  %6163 = vmatprep.subr.bf16.mxu1 %v6162_v48  ;;  %v1045_v37 = vld [vmem:[%s13510_s1 + $0xb70] sm:$0xff]  ;;  %v764_v40 = vld [vmem:[%s13510_s1 + $0x2a8] sm:$0xff]  ;;  %v1055_v43 = vld [vmem:[%s13510_s1 + $0xbc0] sm:$0xff]  ;;  %v6180_v44 = vpack.c.bf16 %v760_v36, %v757_v35 }
  0x7c   : > { %6355 = vmatprep.subr.bf16.mxu0 %v6354_v52  ;;  %v1052_v42 = vld [vmem:[%s13510_s1 + $0xba8] sm:$0xff]  ;;  %v6372_v45 = vpack.c.bf16 %v1048_v39, %v1045_v37  ;;  %v6182_v46 = vpack.c.bf16 %v767_v41, %v764_v40  ;;  %v763_v47 = vld [vmem:[%s13510_s1 + $0x2a0] sm:$0xff]  ;;  %v766_v48 = vld [vmem:[%s13510_s1 + $0x2b8] sm:$0xff] }
  0x7d   : > { %v1051_v49 = vld [vmem:[%s13510_s1 + $0xba0] sm:$0xff]  ;;  %v6374_v50 = vpack.c.bf16 %v1055_v43, %v1052_v42  ;;  %v1054_v51 = vld [vmem:[%s13510_s1 + $0xbb8] sm:$0xff]  ;;  %v773_v53 = vld [vmem:[%s13510_s1 + $0x2f0] sm:$0xff]  ;;  %v6184_v56 = vpack.c.bf16 %v766_v48, %v763_v47 }
  0x7e   : > { %6165 = vmatpush1.bf16.msra.mxu1 %v6164_v58  ;;  %v770_v52 = vld [vmem:[%s13510_s1 + $0x2d8] sm:$0xff]  ;;  %v1061_v55 = vld [vmem:[%s13510_s1 + $0xbf0] sm:$0xff]  ;;  %v6376_v57 = vpack.c.bf16 %v1054_v51, %v1051_v49  ;;  %v1060_v63 = vld [vmem:[%s13510_s1 + $0xbe8] sm:$0xff] }
  0x7f   : > { %6357 = vmatpush1.bf16.msra.mxu0 %v6356_v59  ;;  %6167 = vmatprep.subr.bf16.mxu1 %v6166_v60  ;;  %v1058_v54 = vld [vmem:[%s13510_s1 + $0xbd8] sm:$0xff]  ;;  %v6186_v58 = vpack.c.bf16 %v773_v53, %v770_v52  ;;  %v769_v59 = vld [vmem:[%s13510_s1 + $0x2d0] sm:$0xff]  ;;  %v772_v60 = vld [vmem:[%s13510_s1 + $0x2e8] sm:$0xff] }
  0x80   : > { %6359 = vmatprep.subr.bf16.mxu0 %v6358_v0  ;;  %v1057_v61 = vld [vmem:[%s13510_s1 + $0xbd0] sm:$0xff]  ;;  %v6378_v62 = vpack.c.bf16 %v1061_v55, %v1058_v54  ;;  %v776_v0 = vld [vmem:[%s13510_s1 + $0x308] sm:$0xff]  ;;  %v779_v1 = vld [vmem:[%s13510_s1 + $0x320] sm:$0xff]  ;;  %v6188_v4 = vpack.c.bf16 %v772_v60, %v769_v59 }
  0x81   : > { %v1064_v2 = vld [vmem:[%s13510_s1 + $0xc08] sm:$0xff]  ;;  %v1067_v3 = vld [vmem:[%s13510_s1 + $0xc20] sm:$0xff]  ;;  %v6380_v5 = vpack.c.bf16 %v1060_v63, %v1057_v61  ;;  %v1066_v11 = vld [vmem:[%s13510_s1 + $0xc18] sm:$0xff] }
  0x82   : > { %6169 = vmatpush1.bf16.msra.mxu1 %v6168_v6  ;;  %v6190_v6 = vpack.c.bf16 %v779_v1, %v776_v0  ;;  %v775_v7 = vld [vmem:[%s13510_s1 + $0x300] sm:$0xff]  ;;  %v6382_v10 = vpack.c.bf16 %v1067_v3, %v1064_v2  ;;  %v782_v12 = vld [vmem:[%s13510_s1 + $0x338] sm:$0xff]  ;;  %v1073_v15 = vld [vmem:[%s13510_s1 + $0xc50] sm:$0xff] }
  0x83   : > { %6361 = vmatpush1.bf16.msra.mxu0 %v6360_v8  ;;  %6171 = vmatprep.subr.bf16.mxu1 %v6170_v9  ;;  %v778_v8 = vld [vmem:[%s13510_s1 + $0x318] sm:$0xff]  ;;  %v1063_v9 = vld [vmem:[%s13510_s1 + $0xc00] sm:$0xff]  ;;  %v557_v18 = vld [vmem:[%s8579_s9 + $0x30] sm:$0xff] }
  0x84   : > { %6363 = vmatprep.subr.bf16.mxu0 %v6362_v13  ;;  %v785_v13 = vld [vmem:[%s13510_s1 + $0x350] sm:$0xff]  ;;  %v1070_v14 = vld [vmem:[%s13510_s1 + $0xc38] sm:$0xff]  ;;  %v551_v16 = vld [vmem:[%s8579_s9] sm:$0xff]  ;;  %v6192_v17 = vpack.c.bf16 %v778_v8, %v775_v7  ;;  %v6384_v19 = vpack.c.bf16 %v1066_v11, %v1063_v9 }
  0x85   : > { %v1069_v23 = vld [vmem:[%s13510_s1 + $0xc30] sm:$0xff]  ;;  %v6386_v24 = vpack.c.bf16 %v1073_v15, %v1070_v14  ;;  %v1072_v25 = vld [vmem:[%s13510_s1 + $0xc48] sm:$0xff]  ;;  %v791_v27 = vld [vmem:[%s13510_s1 + $0x380] sm:$0xff] }
  0x86   : > { %6173 = vmatpush1.bf16.msra.mxu1 %v6172_v20  ;;  %v6194_v20 = vpack.c.bf16 %v785_v13, %v782_v12  ;;  %v1076_v28 = vld [vmem:[%s13510_s1 + $0xc68] sm:$0xff]  ;;  %v1079_v29 = vld [vmem:[%s13510_s1 + $0xc80] sm:$0xff]  ;;  %v6388_v31 = vpack.c.bf16 %v1072_v25, %v1069_v23  ;;  %v1078_v37 = vld [vmem:[%s13510_s1 + $0xc78] sm:$0xff] }
  0x87   : > { %6365 = vmatpush1.bf16.msra.mxu0 %v6364_v21  ;;  %6175 = vmatprep.subr.bf16.mxu1 %v6174_v22  ;;  %v781_v21 = vld [vmem:[%s13510_s1 + $0x330] sm:$0xff]  ;;  %v784_v22 = vld [vmem:[%s13510_s1 + $0x348] sm:$0xff]  ;;  %v1075_v35 = vld [vmem:[%s13510_s1 + $0xc60] sm:$0xff]  ;;  %v6390_v36 = vpack.c.bf16 %v1079_v29, %v1076_v28 }
  0x88   : > { %6367 = vmatprep.subr.bf16.mxu0 %v6366_v26  ;;  %v788_v26 = vld [vmem:[%s13510_s1 + $0x368] sm:$0xff]  ;;  %v6196_v30 = vpack.c.bf16 %v784_v22, %v781_v21  ;;  %v797_v39 = vld [vmem:[%s13510_s1 + $0x3b0] sm:$0xff]  ;;  %v1082_v40 = vld [vmem:[%s13510_s1 + $0xc98] sm:$0xff]  ;;  %v6392_v43 = vpack.c.bf16 %v1078_v37, %v1075_v35 }
  0x89   : > { %v1085_v41 = vld [vmem:[%s13510_s1 + $0xcb0] sm:$0xff]  ;;  %v1084_v49 = vld [vmem:[%s13510_s1 + $0xca8] sm:$0xff]  ;;  %v803_v51 = vld [vmem:[%s13510_s1 + $0x3e0] sm:$0xff] }
  0x8a   : > { %6177 = vmatpush1.bf16.msra.mxu1 %v6176_v32  ;;  %v6198_v32 = vpack.c.bf16 %v791_v27, %v788_v26  ;;  %v1081_v47 = vld [vmem:[%s13510_s1 + $0xc90] sm:$0xff]  ;;  %v6394_v48 = vpack.c.bf16 %v1085_v41, %v1082_v40  ;;  %v1088_v52 = vld [vmem:[%s13510_s1 + $0xcc8] sm:$0xff]  ;;  %v1091_v53 = vld [vmem:[%s13510_s1 + $0xce0] sm:$0xff] }
  0x8b   : > { %6369 = vmatpush1.bf16.msra.mxu0 %v6368_v33  ;;  %6179 = vmatprep.subr.bf16.mxu1 %v6178_v34  ;;  %v787_v33 = vld [vmem:[%s13510_s1 + $0x360] sm:$0xff]  ;;  %v790_v34 = vld [vmem:[%s13510_s1 + $0x378] sm:$0xff]  ;;  %v6398_v61 = vpack.c.bf16 %v1091_v53, %v1088_v52  ;;  %v809_v63 = vld [vmem:[%s13510_s1 + $0x410] sm:$0xff] }
  0x8c   : > { %6371 = vmatprep.subr.bf16.mxu0 %v6370_v38  ;;  %v794_v38 = vld [vmem:[%s13510_s1 + $0x398] sm:$0xff]  ;;  %v6200_v42 = vpack.c.bf16 %v790_v34, %v787_v33  ;;  %v799_v55 = vld [vmem:[%s13510_s1 + $0x3c0] sm:$0xff]  ;;  %v584_v0 = vld [vmem:[%s8579_s9 + $0x108] sm:$0xff] }
  0x8d   : > { %v1087_v59 = vld [vmem:[%s13510_s1 + $0xcc0] sm:$0xff]  ;;  %v1090_v60 = vld [vmem:[%s13510_s1 + $0xcd8] sm:$0xff]  ;;  %v1097_v2 = vld [vmem:[%s13510_s1 + $0xd10] sm:$0xff] }
  0x8e   : > { %6181 = vmatpush1.bf16.msra.mxu1 %v6180_v44  ;;  %v6202_v44 = vpack.c.bf16 %v797_v39, %v794_v38  ;;  %v1094_v1 = vld [vmem:[%s13510_s1 + $0xcf8] sm:$0xff]  ;;  %v583_v7 = vld [vmem:[%s8579_s9 + $0x100] sm:$0xff]  ;;  %v6400_v8 = vpack.c.bf16 %v1090_v60, %v1087_v59  ;;  %v1096_v11 = vld [vmem:[%s13510_s1 + $0xd08] sm:$0xff] }
  0x8f   : > { %6373 = vmatpush1.bf16.msra.mxu0 %v6372_v45  ;;  %6183 = vmatprep.subr.bf16.mxu1 %v6182_v46  ;;  %v793_v45 = vld [vmem:[%s13510_s1 + $0x390] sm:$0xff]  ;;  %v796_v46 = vld [vmem:[%s13510_s1 + $0x3a8] sm:$0xff]  ;;  %v590_v3 = vld [vmem:[%s8579_s9 + $0x138] sm:$0xff]  ;;  %v6402_v13 = vpack.c.bf16 %v1097_v2, %v1094_v1 }
  0x90   : > { %6375 = vmatprep.subr.bf16.mxu0 %v6374_v50  ;;  %v800_v50 = vld [vmem:[%s13510_s1 + $0x3c8] sm:$0xff]  ;;  %v6204_v54 = vpack.c.bf16 %v796_v46, %v793_v45  ;;  %v589_v12 = vld [vmem:[%s8579_s9 + $0x130] sm:$0xff]  ;;  %v815_v15 = vld [vmem:[%s13510_s1 + $0x440] sm:$0xff] }
  0x91   : > { %v812_v14 = vld [vmem:[%s13510_s1 + $0x428] sm:$0xff]  ;;  %v811_v21 = vld [vmem:[%s13510_s1 + $0x420] sm:$0xff]  ;;  %v814_v22 = vld [vmem:[%s13510_s1 + $0x438] sm:$0xff] }
  0x92   : > { %6185 = vmatpush1.bf16.msra.mxu1 %v6184_v56  ;;  %v6396_v56 = vpack.c.bf16 %v1084_v49, %v1081_v47  ;;  %v615_v23 = vld [vmem:[%s8579_s9 + $0x200] sm:$0xff]  ;;  %v6214_v25 = vpack.c.bf16 %v815_v15, %v812_v14  ;;  %v1102_v27 = vld [vmem:[%s13510_s1 + $0xd38] sm:$0xff]  ;;  %v621_v28 = vld [vmem:[%s8579_s9 + $0x230] sm:$0xff] }
  0x93   : > { %6377 = vmatpush1.bf16.msra.mxu0 %v6376_v57  ;;  %6187 = vmatprep.subr.bf16.mxu1 %v6186_v58  ;;  %v6206_v57 = vpack.c.bf16 %v803_v51, %v800_v50  ;;  %v802_v58 = vld [vmem:[%s13510_s1 + $0x3d8] sm:$0xff]  ;;  %v1099_v26 = vld [vmem:[%s13510_s1 + $0xd20] sm:$0xff]  ;;  %v1109_v34 = vld [vmem:[%s13510_s1 + $0xd70] sm:$0xff] }
  0x94   : > { %6379 = vmatprep.subr.bf16.mxu0 %v6378_v62  ;;  %v806_v62 = vld [vmem:[%s13510_s1 + $0x3f8] sm:$0xff]  ;;  %v817_v37 = vld [vmem:[%s13510_s1 + $0x450] sm:$0xff]  ;;  %v820_v38 = vld [vmem:[%s13510_s1 + $0x468] sm:$0xff]  ;;  %v6408_v40 = vpack.c.bf16 %v1102_v27, %v1099_v26 }
  0x95   : > { %v6210_v9 = vpack.c.bf16 %v809_v63, %v806_v62  ;;  %v1106_v33 = vld [vmem:[%s13510_s1 + $0xd58] sm:$0xff]  ;;  %v647_v39 = vld [vmem:[%s8579_s9 + $0x300] sm:$0xff]  ;;  %v824_v46 = vld [vmem:[%s13510_s1 + $0x488] sm:$0xff]  ;;  %v6220_v52 = vpack.c.bf16 %v820_v38, %v817_v37 }
  0x96   : > { %6189 = vmatpush1.bf16.msra.mxu1 %v6188_v4  ;;  %v6208_v4 = vpack.c.bf16 %v802_v58, %v799_v55  ;;  %v654_v35 = vld [vmem:[%s8579_s9 + $0x338] sm:$0xff]  ;;  %v6410_v45 = vpack.c.bf16 %v1109_v34, %v1106_v33  ;;  %v827_v47 = vld [vmem:[%s13510_s1 + $0x4a0] sm:$0xff]  ;;  %v1112_v49 = vld [vmem:[%s13510_s1 + $0xd88] sm:$0xff] }
  0x97   : > { %6381 = vmatpush1.bf16.msra.mxu0 %v6380_v5  ;;  %6191 = vmatprep.subr.bf16.mxu1 %v6190_v6  ;;  %v805_v5 = vld [vmem:[%s13510_s1 + $0x3f0] sm:$0xff]  ;;  %v808_v6 = vld [vmem:[%s13510_s1 + $0x408] sm:$0xff]  ;;  %v1115_v50 = vld [vmem:[%s13510_s1 + $0xda0] sm:$0xff] }
  0x98   : > { %6383 = vmatprep.subr.bf16.mxu0 %v6382_v10  ;;  %v1093_v10 = vld [vmem:[%s13510_s1 + $0xcf0] sm:$0xff]  ;;  %v560_v51 = vld [vmem:[%s8579_s9 + $0x48] sm:$0xff]  ;;  %v823_v55 = vld [vmem:[%s13510_s1 + $0x480] sm:$0xff]  ;;  %v6414_v58 = vpack.c.bf16 %v1115_v50, %v1112_v49 }
  0x99   : > { %2257 = vmatmul.mubr.f32.vlgmr.msra.gmra.mrb[0].mxu1 %v551_v16  ;;  %v616_v16 = vld [vmem:[%s8579_s9 + $0x208] sm:$0xff]  ;;  %v1114_v59 = vld [vmem:[%s13510_s1 + $0xd98] sm:$0xff]  ;;  %v1121_v63 = vld [vmem:[%s13510_s1 + $0xdd0] sm:$0xff] }
  0x9a   : > { %6193 = vmatpush1.bf16.msra.mxu1 %v6192_v17  ;;  %2524 = vmatmul.mubr.f32.vlgmr.msra.gmra.mrb[0].mxu0 %v557_v18  ;;  %v1100_v17 = vld [vmem:[%s13510_s1 + $0xd28] sm:$0xff]  ;;  %v1103_v18 = vld [vmem:[%s13510_s1 + $0xd40] sm:$0xff]  ;;  %v830_v60 = vld [vmem:[%s13510_s1 + $0x4b8] sm:$0xff] }
  0x9b   : > { %6385 = vmatpush1.bf16.msra.mxu0 %v6384_v19  ;;  %6195 = vmatprep.subr.bf16.mxu1 %v6194_v20  ;;  %v622_v19 = vld [vmem:[%s8579_s9 + $0x238] sm:$0xff]  ;;  %v6212_v20 = vpack.c.bf16 %v808_v6, %v805_v5  ;;  %v6406_v29 = vpack.c.bf16 %v1103_v18, %v1100_v17  ;;  %v1117_v5 = vld [vmem:[%s13510_s1 + $0xdb0] sm:$0xff]  ;;  %v835_v15 = vld [vmem:[%s13510_s1 + $0x4e0] sm:$0xff] }
  0x9c   : > { %6387 = vmatprep.subr.bf16.mxu0 %v6386_v24  ;;  %2262 = vmatprep.mubr.f32.mxu1 %v584_v0  ;;  %v6404_v24 = vpack.c.bf16 %v1096_v11, %v1093_v10  ;;  %v1118_v62 = vld [vmem:[%s13510_s1 + $0xdb8] sm:$0xff]  ;;  %v1124_v10 = vld [vmem:[%s13510_s1 + $0xde8] sm:$0xff]  ;;  %v1127_v11 = vld [vmem:[%s13510_s1 + $0xe00] sm:$0xff] }
  0x9d   : > { %2529 = vmatprep.mubr.f32.mxu0 %v590_v3  ;;  %2263 = vmatmul.mubr.f32.gmra.mrb[2].mxu1 %v583_v7  ;;  %v829_v3 = vld [vmem:[%s13510_s1 + $0x4b0] sm:$0xff]  ;;  %v6418_v6 = vpack.c.bf16 %v1121_v63, %v1118_v62  ;;  %v1120_v7 = vld [vmem:[%s13510_s1 + $0xdc8] sm:$0xff]  ;;  %v1123_v17 = vld [vmem:[%s13510_s1 + $0xde0] sm:$0xff]  ;;  %v6422_v18 = vpack.c.bf16 %v1127_v11, %v1124_v10 }
  0x9e   : > { %6197 = vmatpush1.bf16.msra.mxu1 %v6196_v30  ;;  %2530 = vmatmul.mubr.f32.gmra.mrb[2].mxu0 %v589_v12  ;;  %v818_v30 = vld [vmem:[%s13510_s1 + $0x458] sm:$0xff]  ;;  %v841_v27 = vld [vmem:[%s13510_s1 + $0x510] sm:$0xff]  ;;  %v851_v33 = vld [vmem:[%s13510_s1 + $0x560] sm:$0xff] }
  0x9f   : > { %6389 = vmatpush1.bf16.msra.mxu0 %v6388_v31  ;;  %6199 = vmatprep.subr.bf16.mxu1 %v6198_v32  ;;  %v821_v31 = vld [vmem:[%s13510_s1 + $0x470] sm:$0xff]  ;;  %v648_v32 = vld [vmem:[%s8579_s9 + $0x308] sm:$0xff]  ;;  %v859_v63 = vld [vmem:[%s13510_s1 + $0x5a0] sm:$0xff] }
  0xa0   : > { %6391 = vmatprep.subr.bf16.mxu0 %v6390_v36  ;;  %2268 = vmatprep.mubr.f32.mxu1 %v616_v16  ;;  %v6216_v36 = vpack.c.bf16 %v814_v22, %v811_v21  ;;  %v6218_v41 = vpack.c.bf16 %v821_v31, %v818_v30  ;;  %v838_v16 = vld [vmem:[%s13510_s1 + $0x4f8] sm:$0xff]  ;;  %v845_v21 = vld [vmem:[%s13510_s1 + $0x530] sm:$0xff]  ;;  %v1132_v31 = vld [vmem:[%s13510_s1 + $0xe28] sm:$0xff] }
  0xa1   : > { %2535 = vmatprep.mubr.f32.mxu0 %v622_v19  ;;  %2269 = vmatmul.mubr.f32.gmra.mrb[4].mxu1 %v615_v23  ;;  %v1126_v19 = vld [vmem:[%s13510_s1 + $0xdf8] sm:$0xff]  ;;  %v1133_v23 = vld [vmem:[%s13510_s1 + $0xe30] sm:$0xff]  ;;  %v1136_v34 = vld [vmem:[%s13510_s1 + $0xe48] sm:$0xff] }
  0xa2   : > { %6201 = vmatpush1.bf16.msra.mxu1 %v6200_v42  ;;  %2536 = vmatmul.mubr.f32.gmra.mrb[4].mxu0 %v621_v28  ;;  %v1105_v42 = vld [vmem:[%s13510_s1 + $0xd50] sm:$0xff]  ;;  %v1130_v22 = vld [vmem:[%s13510_s1 + $0xe18] sm:$0xff]  ;;  %v844_v28 = vld [vmem:[%s13510_s1 + $0x528] sm:$0xff] }
  0xa3   : > { %6393 = vmatpush1.bf16.msra.mxu0 %v6392_v43  ;;  %6203 = vmatprep.subr.bf16.mxu1 %v6202_v44  ;;  %v1108_v43 = vld [vmem:[%s13510_s1 + $0xd68] sm:$0xff]  ;;  %v653_v44 = vld [vmem:[%s8579_s9 + $0x330] sm:$0xff]  ;;  %v6426_v30 = vpack.c.bf16 %v1133_v23, %v1130_v22  ;;  %v871_v23 = vld [vmem:[%s13510_s1 + $0x600] sm:$0xff] }
  0xa4   : > { %6395 = vmatprep.subr.bf16.mxu0 %v6394_v48  ;;  %2274 = vmatprep.mubr.f32.mxu1 %v648_v32  ;;  %v554_v48 = vld [vmem:[%s8579_s9 + $0x18] sm:$0xff]  ;;  %v6412_v53 = vpack.c.bf16 %v1108_v43, %v1105_v42  ;;  %v848_v32 = vld [vmem:[%s13510_s1 + $0x548] sm:$0xff]  ;;  %v865_v11 = vld [vmem:[%s13510_s1 + $0x5d0] sm:$0xff] }
  0xa5   : > { %2541 = vmatprep.mubr.f32.mxu0 %v654_v35  ;;  %2275 = vmatmul.mubr.f32.gmra.mrb[6].mxu1 %v647_v39  ;;  %v1139_v35 = vld [vmem:[%s13510_s1 + $0xe60] sm:$0xff]  ;;  %v6238_v38 = vpack.c.bf16 %v851_v33, %v848_v32  ;;  %v1138_v43 = vld [vmem:[%s13510_s1 + $0xe58] sm:$0xff]  ;;  %v553_v32 = vld [vmem:[%s8579_s9 + $0x10] sm:$0xff] }
  0xa6   : > { %6205 = vmatpush1.bf16.msra.mxu1 %v6204_v54  ;;  %2542 = vmatmul.mubr.f32.gmra.mrb[6].mxu0 %v653_v44  ;;  %v6222_v54 = vpack.c.bf16 %v827_v47, %v824_v46  ;;  %v847_v39 = vld [vmem:[%s13510_s1 + $0x540] sm:$0xff]  ;;  %v6430_v42 = vpack.c.bf16 %v1139_v35, %v1136_v34  ;;  %v854_v44 = vld [vmem:[%s13510_s1 + $0x578] sm:$0xff]  ;;  %v1145_v47 = vld [vmem:[%s13510_s1 + $0xe90] sm:$0xff] }
  0xa7   : > { %6397 = vmatpush1.bf16.msra.mxu0 %v6396_v56  ;;  %6207 = vmatprep.subr.bf16.mxu1 %v6206_v57  ;;  %v826_v56 = vld [vmem:[%s13510_s1 + $0x498] sm:$0xff]  ;;  %v1111_v57 = vld [vmem:[%s13510_s1 + $0xd80] sm:$0xff] }
  0xa8   : > { %6399 = vmatprep.subr.bf16.mxu0 %v6398_v61  ;;  %2345 = vmatprep.mubr.f32.mxu1 %v554_v48  ;;  %v833_v61 = vld [vmem:[%s13510_s1 + $0x4d0] sm:$0xff]  ;;  %v6224_v0 = vpack.c.bf16 %v826_v56, %v823_v55  ;;  %v6416_v1 = vpack.c.bf16 %v1114_v59, %v1111_v57  ;;  %v1142_v46 = vld [vmem:[%s13510_s1 + $0xe78] sm:$0xff]  ;;  %v1144_v55 = vld [vmem:[%s13510_s1 + $0xe88] sm:$0xff] }
  0xa9   : > { %2612 = vmatprep.mubr.f32.mxu0 %v560_v51  ;;  %v6226_v2 = vpack.c.bf16 %v833_v61, %v830_v60  ;;  %v853_v51 = vld [vmem:[%s13510_s1 + $0x570] sm:$0xff]  ;;  %v860_v56 = vld [vmem:[%s13510_s1 + $0x5a8] sm:$0xff]  ;;  %v863_v57 = vld [vmem:[%s13510_s1 + $0x5c0] sm:$0xff] }
  0xaa   : > { %6209 = vmatpush1.bf16.msra.mxu1 %v6208_v4  ;;  %v832_v4 = vld [vmem:[%s13510_s1 + $0x4c8] sm:$0xff]  ;;  %v1151_v59 = vld [vmem:[%s13510_s1 + $0xec0] sm:$0xff]  ;;  %v6246_v62 = vpack.c.bf16 %v863_v57, %v860_v56  ;;  %v1174_v57 = vld [vmem:[%s13510_s1 + $0xf78] sm:$0xff] }
  0xab   : > { %6401 = vmatpush1.bf16.msra.mxu0 %v6400_v8  ;;  %6211 = vmatprep.subr.bf16.mxu1 %v6210_v9  ;;  %v836_v8 = vld [vmem:[%s13510_s1 + $0x4e8] sm:$0xff]  ;;  %v839_v9 = vld [vmem:[%s13510_s1 + $0x500] sm:$0xff]  ;;  %v6228_v12 = vpack.c.bf16 %v832_v4, %v829_v3  ;;  %v1150_v3 = vld [vmem:[%s13510_s1 + $0xeb8] sm:$0xff] }
  0xac   : > { %6403 = vmatprep.subr.bf16.mxu0 %v6402_v13  ;;  %v6420_v13 = vpack.c.bf16 %v1120_v7, %v1117_v5  ;;  %v6230_v14 = vpack.c.bf16 %v839_v9, %v836_v8  ;;  %v866_v4 = vld [vmem:[%s13510_s1 + $0x5d8] sm:$0xff]  ;;  %v869_v5 = vld [vmem:[%s13510_s1 + $0x5f0] sm:$0xff]  ;;  %v559_v34 = vld [vmem:[%s8579_s9 + $0x40] sm:$0xff] }
  0xad   : > { %v1157_v7 = vld [vmem:[%s13510_s1 + $0xef0] sm:$0xff]  ;;  %v6250_v10 = vpack.c.bf16 %v869_v5, %v866_v4  ;;  %v892_v5 = vld [vmem:[%s13510_s1 + $0x6a8] sm:$0xff] }
  0xae   : > { %6213 = vmatpush1.bf16.msra.mxu1 %v6212_v20  ;;  %v842_v20 = vld [vmem:[%s13510_s1 + $0x518] sm:$0xff] }
  0xaf   : > { %6405 = vmatpush1.bf16.msra.mxu0 %v6404_v24  ;;  %6215 = vmatprep.subr.bf16.mxu1 %v6214_v25  ;;  %v6232_v24 = vpack.c.bf16 %v838_v16, %v835_v15  ;;  %v6424_v25 = vpack.c.bf16 %v1126_v19, %v1123_v17  ;;  %v6234_v26 = vpack.c.bf16 %v845_v21, %v842_v20  ;;  %v1156_v15 = vld [vmem:[%s13510_s1 + $0xee8] sm:$0xff]  ;;  %v875_v17 = vld [vmem:[%s13510_s1 + $0x620] sm:$0xff] }
  0xb0   : > { %6407 = vmatprep.subr.bf16.mxu0 %v6406_v29  ;;  %v1129_v29 = vld [vmem:[%s13510_s1 + $0xe10] sm:$0xff]  ;;  %v872_v16 = vld [vmem:[%s13510_s1 + $0x608] sm:$0xff]  ;;  %v1163_v19 = vld [vmem:[%s13510_s1 + $0xf20] sm:$0xff] }
  0xb1   : > { %v6428_v37 = vpack.c.bf16 %v1132_v31, %v1129_v29  ;;  %v6254_v22 = vpack.c.bf16 %v875_v17, %v872_v16  ;;  %v881_v29 = vld [vmem:[%s13510_s1 + $0x650] sm:$0xff]  ;;  %v895_v16 = vld [vmem:[%s13510_s1 + $0x6c0] sm:$0xff] }
  0xb2   : > { %6217 = vmatpush1.bf16.msra.mxu1 %v6216_v36  ;;  %v6236_v36 = vpack.c.bf16 %v844_v28, %v841_v27  ;;  %v1162_v27 = vld [vmem:[%s13510_s1 + $0xf18] sm:$0xff]  ;;  %v1169_v31 = vld [vmem:[%s13510_s1 + $0xf50] sm:$0xff] }
  0xb3   : > { %6409 = vmatpush1.bf16.msra.mxu0 %v6408_v40  ;;  %6219 = vmatprep.subr.bf16.mxu1 %v6218_v41  ;;  %v850_v40 = vld [vmem:[%s13510_s1 + $0x558] sm:$0xff]  ;;  %v1135_v41 = vld [vmem:[%s13510_s1 + $0xe40] sm:$0xff]  ;;  %v649_v17 = vld [vmem:[%s8579_s9 + $0x310] sm:$0xff] }
  0xb4   : > { %6411 = vmatprep.subr.bf16.mxu0 %v6410_v45  ;;  %v857_v45 = vld [vmem:[%s13510_s1 + $0x590] sm:$0xff]  ;;  %v6240_v48 = vpack.c.bf16 %v850_v40, %v847_v39  ;;  %v6432_v49 = vpack.c.bf16 %v1138_v43, %v1135_v41  ;;  %v878_v28 = vld [vmem:[%s13510_s1 + $0x638] sm:$0xff]  ;;  %v1168_v41 = vld [vmem:[%s13510_s1 + $0xf48] sm:$0xff] }
  0xb5   : > { %v6242_v50 = vpack.c.bf16 %v857_v45, %v854_v44  ;;  %v1165_v39 = vld [vmem:[%s13510_s1 + $0xf30] sm:$0xff]  ;;  %v887_v43 = vld [vmem:[%s13510_s1 + $0x680] sm:$0xff]  ;;  %v1172_v44 = vld [vmem:[%s13510_s1 + $0xf68] sm:$0xff] }
  0xb6   : > { %6221 = vmatpush1.bf16.msra.mxu1 %v6220_v52  ;;  %v856_v52 = vld [vmem:[%s13510_s1 + $0x588] sm:$0xff]  ;;  %v1175_v45 = vld [vmem:[%s13510_s1 + $0xf80] sm:$0xff] }
  0xb7   : > { %6413 = vmatpush1.bf16.msra.mxu0 %v6412_v53  ;;  %6223 = vmatprep.subr.bf16.mxu1 %v6222_v54  ;;  %v1141_v53 = vld [vmem:[%s13510_s1 + $0xe70] sm:$0xff]  ;;  %v6434_v54 = vpack.c.bf16 %v1145_v47, %v1142_v46  ;;  %v6244_v60 = vpack.c.bf16 %v856_v52, %v853_v51  ;;  %v586_v46 = vld [vmem:[%s8579_s9 + $0x118] sm:$0xff]  ;;  %v6452_v51 = vpack.c.bf16 %v1168_v41, %v1165_v39  ;;  %v1192_v39 = vld [vmem:[%s13510_s1 + $0x1008] sm:$0xff] }
  0xb8   : > { %6415 = vmatprep.subr.bf16.mxu0 %v6414_v58  ;;  %v1148_v58 = vld [vmem:[%s13510_s1 + $0xea8] sm:$0xff]  ;;  %v6436_v61 = vpack.c.bf16 %v1144_v55, %v1141_v53  ;;  %v886_v53 = vld [vmem:[%s13510_s1 + $0x678] sm:$0xff]  ;;  %v591_v55 = vld [vmem:[%s8579_s9 + $0x140] sm:$0xff]  ;;  %v6454_v56 = vpack.c.bf16 %v1175_v45, %v1172_v44 }
  0xb9   : > { %v911_v41 = vld [vmem:[%s13510_s1 + $0x740] sm:$0xff] }
  0xba   : > { %6225 = vmatpush1.bf16.msra.mxu1 %v6224_v0  ;;  %v862_v0 = vld [vmem:[%s13510_s1 + $0x5b8] sm:$0xff] }
  0xbb   : > { %6417 = vmatpush1.bf16.msra.mxu0 %v6416_v1  ;;  %6227 = vmatprep.subr.bf16.mxu1 %v6226_v2  ;;  %v1147_v1 = vld [vmem:[%s13510_s1 + $0xea0] sm:$0xff]  ;;  %v6438_v2 = vpack.c.bf16 %v1151_v59, %v1148_v58  ;;  %v6248_v8 = vpack.c.bf16 %v862_v0, %v859_v63  ;;  %v890_v58 = vld [vmem:[%s13510_s1 + $0x698] sm:$0xff]  ;;  %v893_v59 = vld [vmem:[%s13510_s1 + $0x6b0] sm:$0xff] }
  0xbc   : > { %6419 = vmatprep.subr.bf16.mxu0 %v6418_v6  ;;  %v1154_v6 = vld [vmem:[%s13510_s1 + $0xed8] sm:$0xff]  ;;  %v6440_v9 = vpack.c.bf16 %v1150_v3, %v1147_v1  ;;  %v889_v0 = vld [vmem:[%s13510_s1 + $0x690] sm:$0xff]  ;;  %v6266_v4 = vpack.c.bf16 %v893_v59, %v890_v58 }
  0xbd   : > { %v617_v1 = vld [vmem:[%s8579_s9 + $0x210] sm:$0xff] }
  0xbe   : > { %6229 = vmatpush1.bf16.msra.mxu1 %v6228_v12  ;;  %v868_v12 = vld [vmem:[%s13510_s1 + $0x5e8] sm:$0xff]  ;;  %v913_v59 = vld [vmem:[%s13510_s1 + $0x750] sm:$0xff] }
  0xbf   : > { %6421 = vmatpush1.bf16.msra.mxu0 %v6420_v13  ;;  %6231 = vmatprep.subr.bf16.mxu1 %v6230_v14  ;;  %v1153_v13 = vld [vmem:[%s13510_s1 + $0xed0] sm:$0xff]  ;;  %v6442_v14 = vpack.c.bf16 %v1157_v7, %v1154_v6  ;;  %v6252_v20 = vpack.c.bf16 %v868_v12, %v865_v11  ;;  %v623_v7 = vld [vmem:[%s8579_s9 + $0x240] sm:$0xff]  ;;  %v1184_v12 = vld [vmem:[%s13510_s1 + $0xfc8] sm:$0xff] }
  0xc0   : > { %6423 = vmatprep.subr.bf16.mxu0 %v6422_v18  ;;  %v1160_v18 = vld [vmem:[%s13510_s1 + $0xf08] sm:$0xff]  ;;  %v6444_v21 = vpack.c.bf16 %v1156_v15, %v1153_v13  ;;  %v1177_v6 = vld [vmem:[%s13510_s1 + $0xf90] sm:$0xff]  ;;  %v899_v11 = vld [vmem:[%s13510_s1 + $0x6e0] sm:$0xff]  ;;  %v6268_v15 = vpack.c.bf16 %v892_v5, %v889_v0 }
  0xc1   : > { %v1187_v13 = vld [vmem:[%s13510_s1 + $0xfe0] sm:$0xff]  ;;  %v920_v0 = vld [vmem:[%s13510_s1 + $0x788] sm:$0xff] }
  0xc2   : > { %6233 = vmatpush1.bf16.msra.mxu1 %v6232_v24  ;;  %v874_v24 = vld [vmem:[%s13510_s1 + $0x618] sm:$0xff] }
  0xc3   : > { %6425 = vmatpush1.bf16.msra.mxu0 %v6424_v25  ;;  %6235 = vmatprep.subr.bf16.mxu1 %v6234_v26  ;;  %v1159_v25 = vld [vmem:[%s13510_s1 + $0xf00] sm:$0xff]  ;;  %v6446_v26 = vpack.c.bf16 %v1163_v19, %v1160_v18  ;;  %v6256_v33 = vpack.c.bf16 %v874_v24, %v871_v23  ;;  %v656_v18 = vld [vmem:[%s8579_s9 + $0x348] sm:$0xff]  ;;  %v6462_v24 = vpack.c.bf16 %v1187_v13, %v1184_v12  ;;  %v926_v12 = vld [vmem:[%s13510_s1 + $0x7b8] sm:$0xff] }
  0xc4   : > { %6427 = vmatprep.subr.bf16.mxu0 %v6426_v30  ;;  %v1166_v30 = vld [vmem:[%s13510_s1 + $0xf38] sm:$0xff]  ;;  %v6448_v35 = vpack.c.bf16 %v1162_v27, %v1159_v25  ;;  %v655_v23 = vld [vmem:[%s8579_s9 + $0x340] sm:$0xff]  ;;  %v905_v27 = vld [vmem:[%s13510_s1 + $0x710] sm:$0xff] }
  0xc5   : > { %v6450_v40 = vpack.c.bf16 %v1169_v31, %v1166_v30  ;;  %v1186_v25 = vld [vmem:[%s13510_s1 + $0xfd8] sm:$0xff]  ;;  %v556_v30 = vld [vmem:[%s8579_s9 + $0x28] sm:$0xff]  ;;  %v929_v13 = vld [vmem:[%s13510_s1 + $0x7d0] sm:$0xff] }
  0xc6   : > { %6237 = vmatpush1.bf16.msra.mxu1 %v6236_v36  ;;  %v6258_v36 = vpack.c.bf16 %v881_v29, %v878_v28  ;;  %v1190_v28 = vld [vmem:[%s13510_s1 + $0xff8] sm:$0xff]  ;;  %v1193_v29 = vld [vmem:[%s13510_s1 + $0x1010] sm:$0xff] }
  0xc7   : > { %6429 = vmatpush1.bf16.msra.mxu0 %v6428_v37  ;;  %6239 = vmatprep.subr.bf16.mxu1 %v6238_v38  ;;  %v877_v37 = vld [vmem:[%s13510_s1 + $0x630] sm:$0xff]  ;;  %v880_v38 = vld [vmem:[%s13510_s1 + $0x648] sm:$0xff] }
  0xc8   : > { %6431 = vmatprep.subr.bf16.mxu0 %v6430_v42  ;;  %v884_v42 = vld [vmem:[%s13510_s1 + $0x668] sm:$0xff]  ;;  %v6260_v47 = vpack.c.bf16 %v880_v38, %v877_v37  ;;  %v1189_v37 = vld [vmem:[%s13510_s1 + $0xff0] sm:$0xff]  ;;  %v6466_v38 = vpack.c.bf16 %v1193_v29, %v1190_v28 }
  0xc9   : > { %v6262_v52 = vpack.c.bf16 %v887_v43, %v884_v42  ;;  %v1196_v42 = vld [vmem:[%s13510_s1 + $0x1028] sm:$0xff]  ;;  %v1199_v43 = vld [vmem:[%s13510_s1 + $0x1040] sm:$0xff]  ;;  %v6468_v45 = vpack.c.bf16 %v1192_v39, %v1189_v37  ;;  %v941_v37 = vld [vmem:[%s13510_s1 + $0x830] sm:$0xff] }
  0xca   : > { %6241 = vmatpush1.bf16.msra.mxu1 %v6240_v48  ;;  %v883_v48 = vld [vmem:[%s13510_s1 + $0x660] sm:$0xff]  ;;  %v1229_v39 = vld [vmem:[%s13510_s1 + $0x1130] sm:$0xff] }
  0xcb   : > { %6433 = vmatpush1.bf16.msra.mxu0 %v6432_v49  ;;  %6243 = vmatprep.subr.bf16.mxu1 %v6242_v50  ;;  %v585_v49 = vld [vmem:[%s8579_s9 + $0x110] sm:$0xff]  ;;  %v592_v50 = vld [vmem:[%s8579_s9 + $0x148] sm:$0xff]  ;;  %v6264_v63 = vpack.c.bf16 %v886_v53, %v883_v48  ;;  %v910_v48 = vld [vmem:[%s13510_s1 + $0x738] sm:$0xff] }
  0xcc   : > { %6435 = vmatprep.subr.bf16.mxu0 %v6434_v54  ;;  %v1171_v54 = vld [vmem:[%s13510_s1 + $0xf60] sm:$0xff]  ;;  %v917_v53 = vld [vmem:[%s13510_s1 + $0x770] sm:$0xff] }
  0xcd   : > { %v6456_v3 = vpack.c.bf16 %v1174_v57, %v1171_v54  ;;  %v1202_v54 = vld [vmem:[%s13510_s1 + $0x1058] sm:$0xff] }
  0xce   : > { %6245 = vmatpush1.bf16.msra.mxu1 %v6244_v60  ;;  %v1178_v60 = vld [vmem:[%s13510_s1 + $0xf98] sm:$0xff] }
  0xcf   : > { %6437 = vmatpush1.bf16.msra.mxu0 %v6436_v61  ;;  %6247 = vmatprep.subr.bf16.mxu1 %v6246_v62  ;;  %v1181_v61 = vld [vmem:[%s13510_s1 + $0xfb0] sm:$0xff]  ;;  %v618_v62 = vld [vmem:[%s8579_s9 + $0x218] sm:$0xff] }
  0xd0   : > { %6439 = vmatprep.subr.bf16.mxu0 %v6438_v2  ;;  %v624_v2 = vld [vmem:[%s8579_s9 + $0x248] sm:$0xff] }
  0xd2   : > { %6249 = vmatpush1.bf16.msra.mxu1 %v6248_v8  ;;  %v6458_v8 = vpack.c.bf16 %v1181_v61, %v1178_v60  ;;  %v916_v60 = vld [vmem:[%s13510_s1 + $0x768] sm:$0xff]  ;;  %v1201_v61 = vld [vmem:[%s13510_s1 + $0x1050] sm:$0xff] }
  0xd3   : > { %6441 = vmatpush1.bf16.msra.mxu0 %v6440_v9  ;;  %6251 = vmatprep.subr.bf16.mxu1 %v6250_v10  ;;  %v1180_v9 = vld [vmem:[%s13510_s1 + $0xfa8] sm:$0xff] }
  0xd4   : > { %6443 = vmatprep.subr.bf16.mxu0 %v6442_v14  ;;  %v896_v10 = vld [vmem:[%s13510_s1 + $0x6c8] sm:$0xff]  ;;  %v650_v14 = vld [vmem:[%s8579_s9 + $0x318] sm:$0xff]  ;;  %v6460_v19 = vpack.c.bf16 %v1180_v9, %v1177_v6  ;;  %v1207_v9 = vld [vmem:[%s13510_s1 + $0x1080] sm:$0xff] }
  0xd6   : > { %6253 = vmatpush1.bf16.msra.mxu1 %v6252_v20  ;;  %v6270_v20 = vpack.c.bf16 %v899_v11, %v896_v10  ;;  %v1210_v11 = vld [vmem:[%s13510_s1 + $0x1098] sm:$0xff] }
  0xd7   : > { %6445 = vmatpush1.bf16.msra.mxu0 %v6444_v21  ;;  %6255 = vmatprep.subr.bf16.mxu1 %v6254_v22  ;;  %v898_v21 = vld [vmem:[%s13510_s1 + $0x6d8] sm:$0xff]  ;;  %v1183_v22 = vld [vmem:[%s13510_s1 + $0xfc0] sm:$0xff] }
  0xd8   : > { %6447 = vmatprep.subr.bf16.mxu0 %v6446_v26  ;;  %v902_v26 = vld [vmem:[%s13510_s1 + $0x6f8] sm:$0xff]  ;;  %v6272_v31 = vpack.c.bf16 %v898_v21, %v895_v16  ;;  %v1213_v21 = vld [vmem:[%s13510_s1 + $0x10b0] sm:$0xff] }
  0xd9   : > { %2346 = vmatmul.mubr.f32.vlgmr.msra.gmra.mrb[0].mxu1 %v553_v32  ;;  %v562_v32 = vld [vmem:[%s8579_s9 + $0x58] sm:$0xff] }
  0xda   : > { %6257 = vmatpush1.bf16.msra.mxu1 %v6256_v33  ;;  %2613 = vmatmul.mubr.f32.vlgmr.msra.gmra.mrb[0].mxu0 %v559_v34  ;;  %v6464_v33 = vpack.c.bf16 %v1186_v25, %v1183_v22  ;;  %v6274_v34 = vpack.c.bf16 %v905_v27, %v902_v26  ;;  %v935_v25 = vld [vmem:[%s13510_s1 + $0x800] sm:$0xff]  ;;  %v1220_v26 = vld [vmem:[%s13510_s1 + $0x10e8] sm:$0xff] }
  0xdb   : > { %6449 = vmatpush1.bf16.msra.mxu0 %v6448_v35  ;;  %6259 = vmatprep.subr.bf16.mxu1 %v6258_v36  ;;  %v901_v35 = vld [vmem:[%s13510_s1 + $0x6f0] sm:$0xff]  ;;  %v904_v36 = vld [vmem:[%s13510_s1 + $0x708] sm:$0xff]  ;;  %v1223_v27 = vld [vmem:[%s13510_s1 + $0x1100] sm:$0xff] }
  0xdc   : > { %6451 = vmatprep.subr.bf16.mxu0 %v6450_v40  ;;  %2351 = vmatprep.mubr.f32.mxu1 %v586_v46  ;;  %v908_v40 = vld [vmem:[%s13510_s1 + $0x728] sm:$0xff]  ;;  %v6276_v44 = vpack.c.bf16 %v904_v36, %v901_v35  ;;  %v1222_v35 = vld [vmem:[%s13510_s1 + $0x10f8] sm:$0xff] }
  0xdd   : > { %2352 = vmatmul.mubr.f32.gmra.mrb[2].mxu1 %v585_v49  ;;  %2618 = vmatprep.mubr.f32.mxu0 %v592_v50  ;;  %v6278_v46 = vpack.c.bf16 %v911_v41, %v908_v40  ;;  %v1195_v49 = vld [vmem:[%s13510_s1 + $0x1020] sm:$0xff]  ;;  %v6470_v50 = vpack.c.bf16 %v1199_v43, %v1196_v42  ;;  %v938_v36 = vld [vmem:[%s13510_s1 + $0x818] sm:$0xff]  ;;  %v937_v43 = vld [vmem:[%s13510_s1 + $0x810] sm:$0xff] }
  0xde   : > { %6261 = vmatpush1.bf16.msra.mxu1 %v6260_v47  ;;  %2619 = vmatmul.mubr.f32.gmra.mrb[2].mxu0 %v591_v55  ;;  %v907_v47 = vld [vmem:[%s13510_s1 + $0x720] sm:$0xff]  ;;  %v1205_v55 = vld [vmem:[%s13510_s1 + $0x1070] sm:$0xff]  ;;  %v6298_v42 = vpack.c.bf16 %v941_v37, %v938_v36 }
  0xdf   : > { %6453 = vmatpush1.bf16.msra.mxu0 %v6452_v51  ;;  %6263 = vmatprep.subr.bf16.mxu1 %v6262_v52  ;;  %v1198_v51 = vld [vmem:[%s13510_s1 + $0x1038] sm:$0xff] }
  0xe0   : > { %6455 = vmatprep.subr.bf16.mxu0 %v6454_v56  ;;  %2357 = vmatprep.mubr.f32.mxu1 %v618_v62  ;;  %v914_v52 = vld [vmem:[%s13510_s1 + $0x758] sm:$0xff]  ;;  %v6280_v56 = vpack.c.bf16 %v910_v48, %v907_v47  ;;  %v6472_v57 = vpack.c.bf16 %v1198_v51, %v1195_v49  ;;  %v6474_v62 = vpack.c.bf16 %v1205_v55, %v1202_v54  ;;  %v1228_v47 = vld [vmem:[%s13510_s1 + $0x1128] sm:$0xff]  ;;  %v947_v49 = vld [vmem:[%s13510_s1 + $0x860] sm:$0xff] }
  0xe1   : > { %2358 = vmatmul.mubr.f32.gmra.mrb[4].mxu1 %v617_v1  ;;  %2624 = vmatprep.mubr.f32.mxu0 %v624_v2  ;;  %v6282_v58 = vpack.c.bf16 %v917_v53, %v914_v52  ;;  %v923_v1 = vld [vmem:[%s13510_s1 + $0x7a0] sm:$0xff]  ;;  %v1208_v2 = vld [vmem:[%s13510_s1 + $0x1088] sm:$0xff] }
  0xe2   : > { %6265 = vmatpush1.bf16.msra.mxu1 %v6264_v63  ;;  %2625 = vmatmul.mubr.f32.gmra.mrb[4].mxu0 %v623_v7  ;;  %v1204_v63 = vld [vmem:[%s13510_s1 + $0x1068] sm:$0xff]  ;;  %v6286_v6 = vpack.c.bf16 %v923_v1, %v920_v0  ;;  %v919_v7 = vld [vmem:[%s13510_s1 + $0x780] sm:$0xff] }
  0xe3   : > { %6457 = vmatpush1.bf16.msra.mxu0 %v6456_v3  ;;  %6267 = vmatprep.subr.bf16.mxu1 %v6266_v4  ;;  %v1211_v3 = vld [vmem:[%s13510_s1 + $0x10a0] sm:$0xff]  ;;  %v6284_v4 = vpack.c.bf16 %v916_v60, %v913_v59  ;;  %v6476_v5 = vpack.c.bf16 %v1204_v63, %v1201_v61  ;;  %v944_v48 = vld [vmem:[%s13510_s1 + $0x848] sm:$0xff]  ;;  %v1234_v59 = vld [vmem:[%s13510_s1 + $0x1158] sm:$0xff] }
  0xe4   : > { %6459 = vmatprep.subr.bf16.mxu0 %v6458_v8  ;;  %2363 = vmatprep.mubr.f32.mxu1 %v650_v14  ;;  %v922_v8 = vld [vmem:[%s13510_s1 + $0x798] sm:$0xff]  ;;  %v6478_v10 = vpack.c.bf16 %v1211_v3, %v1208_v2  ;;  %v1235_v51 = vld [vmem:[%s13510_s1 + $0x1160] sm:$0xff]  ;;  %v6302_v54 = vpack.c.bf16 %v947_v49, %v944_v48  ;;  %v953_v61 = vld [vmem:[%s13510_s1 + $0x890] sm:$0xff] }
  0xe5   : > { %2364 = vmatmul.mubr.f32.gmra.mrb[6].mxu1 %v649_v17  ;;  %2630 = vmatprep.mubr.f32.mxu0 %v656_v18  ;;  %v1214_v14 = vld [vmem:[%s13510_s1 + $0x10b8] sm:$0xff]  ;;  %v6288_v16 = vpack.c.bf16 %v922_v8, %v919_v7  ;;  %v6480_v17 = vpack.c.bf16 %v1210_v11, %v1207_v9  ;;  %v6290_v18 = vpack.c.bf16 %v929_v13, %v926_v12  ;;  %v943_v55 = vld [vmem:[%s13510_s1 + $0x840] sm:$0xff]  ;;  %v1241_v63 = vld [vmem:[%s13510_s1 + $0x1190] sm:$0xff] }
  0xe6   : > { %6269 = vmatpush1.bf16.msra.mxu1 %v6268_v15  ;;  %2631 = vmatmul.mubr.f32.gmra.mrb[6].mxu0 %v655_v23  ;;  %v1217_v15 = vld [vmem:[%s13510_s1 + $0x10d0] sm:$0xff]  ;;  %v1216_v23 = vld [vmem:[%s13510_s1 + $0x10c8] sm:$0xff]  ;;  %v950_v60 = vld [vmem:[%s13510_s1 + $0x878] sm:$0xff] }
  0xe7   : > { %6461 = vmatpush1.bf16.msra.mxu0 %v6460_v19  ;;  %6271 = vmatprep.subr.bf16.mxu1 %v6270_v20  ;;  %v925_v19 = vld [vmem:[%s13510_s1 + $0x7b0] sm:$0xff]  ;;  %v928_v20 = vld [vmem:[%s13510_s1 + $0x7c8] sm:$0xff]  ;;  %v6482_v22 = vpack.c.bf16 %v1217_v15, %v1214_v14  ;;  %v6484_v29 = vpack.c.bf16 %v1216_v23, %v1213_v21  ;;  %v6306_v2 = vpack.c.bf16 %v953_v61, %v950_v60  ;;  %v959_v9 = vld [vmem:[%s13510_s1 + $0x8c0] sm:$0xff] }
  0xe8   : > { %6463 = vmatprep.subr.bf16.mxu0 %v6462_v24  ;;  %2434 = vmatprep.mubr.f32.mxu1 %v556_v30  ;;  %v932_v24 = vld [vmem:[%s13510_s1 + $0x7e8] sm:$0xff]  ;;  %v6292_v28 = vpack.c.bf16 %v928_v20, %v925_v19  ;;  %v949_v3 = vld [vmem:[%s13510_s1 + $0x870] sm:$0xff]  ;;  %v1247_v11 = vld [vmem:[%s13510_s1 + $0x11c0] sm:$0xff] }
  0xe9   : > { %2701 = vmatprep.mubr.f32.mxu0 %v562_v32  ;;  %v6294_v30 = vpack.c.bf16 %v935_v25, %v932_v24  ;;  %v934_v32 = vld [vmem:[%s13510_s1 + $0x7f8] sm:$0xff]  ;;  %v1240_v7 = vld [vmem:[%s13510_s1 + $0x1188] sm:$0xff]  ;;  %v955_v15 = vld [vmem:[%s13510_s1 + $0x8a0] sm:$0xff] }
  0xea   : > { %6273 = vmatpush1.bf16.msra.mxu1 %v6272_v31  ;;  %v931_v31 = vld [vmem:[%s13510_s1 + $0x7e0] sm:$0xff]  ;;  %v956_v8 = vld [vmem:[%s13510_s1 + $0x8a8] sm:$0xff]  ;;  %v1246_v19 = vld [vmem:[%s13510_s1 + $0x11b8] sm:$0xff] }
  0xeb   : > { %6465 = vmatpush1.bf16.msra.mxu0 %v6464_v33  ;;  %6275 = vmatprep.subr.bf16.mxu1 %v6274_v34  ;;  %v1219_v33 = vld [vmem:[%s13510_s1 + $0x10e0] sm:$0xff]  ;;  %v6486_v34 = vpack.c.bf16 %v1223_v27, %v1220_v26  ;;  %v6296_v40 = vpack.c.bf16 %v934_v32, %v931_v31  ;;  %v6310_v14 = vpack.c.bf16 %v959_v9, %v956_v8  ;;  %v962_v20 = vld [vmem:[%s13510_s1 + $0x8d8] sm:$0xff]  ;;  %v965_v21 = vld [vmem:[%s13510_s1 + $0x8f0] sm:$0xff] }
  0xec   : > { %6467 = vmatprep.subr.bf16.mxu0 %v6466_v38  ;;  %v1226_v38 = vld [vmem:[%s13510_s1 + $0x1118] sm:$0xff]  ;;  %v6488_v41 = vpack.c.bf16 %v1222_v35, %v1219_v33  ;;  %v1253_v23 = vld [vmem:[%s13510_s1 + $0x11f0] sm:$0xff]  ;;  %v6314_v26 = vpack.c.bf16 %v965_v21, %v962_v20  ;;  %v1252_v31 = vld [vmem:[%s13510_s1 + $0x11e8] sm:$0xff] }
  0xed   : > { %v961_v27 = vld [vmem:[%s13510_s1 + $0x8d0] sm:$0xff]  ;;  %v2120_v32 = vld [vmem:[%s13510_s1 + $0x2d08] sm:$0xff]  ;;  %v2123_v33 = vld [vmem:[%s13510_s1 + $0x2d20] sm:$0xff] }
  0xee   : > { %6277 = vmatpush1.bf16.msra.mxu1 %v6276_v44  ;;  %v940_v44 = vld [vmem:[%s13510_s1 + $0x828] sm:$0xff]  ;;  %v1259_v35 = vld [vmem:[%s13510_s1 + $0x1220] sm:$0xff]  ;;  %v561_v49 = vld [vmem:[%s8579_s9 + $0x50] sm:$0xff] }
  0xef   : > { %6469 = vmatpush1.bf16.msra.mxu0 %v6468_v45  ;;  %6279 = vmatprep.subr.bf16.mxu1 %v6278_v46  ;;  %v1225_v45 = vld [vmem:[%s13510_s1 + $0x1110] sm:$0xff]  ;;  %v6490_v46 = vpack.c.bf16 %v1229_v39, %v1226_v38  ;;  %v6300_v52 = vpack.c.bf16 %v940_v44, %v937_v43  ;;  %v7086_v38 = vpack.c.bf16 %v2123_v33, %v2120_v32  ;;  %v2119_v39 = vld [vmem:[%s13510_s1 + $0x2d00] sm:$0xff]  ;;  %v1258_v43 = vld [vmem:[%s13510_s1 + $0x1218] sm:$0xff] }
  0xf0   : > { %6471 = vmatprep.subr.bf16.mxu0 %v6470_v50  ;;  %v1232_v50 = vld [vmem:[%s13510_s1 + $0x1148] sm:$0xff]  ;;  %v6492_v53 = vpack.c.bf16 %v1228_v47, %v1225_v45  ;;  %v1262_v44 = vld [vmem:[%s13510_s1 + $0x1238] sm:$0xff]  ;;  %v1265_v45 = vld [vmem:[%s13510_s1 + $0x1250] sm:$0xff] }
  0xf1   : > { %v2129_v47 = vld [vmem:[%s13510_s1 + $0x2d50] sm:$0xff]  ;;  %v555_v48 = vld [vmem:[%s8579_s9 + $0x20] sm:$0xff]  ;;  %v1268_v61 = vld [vmem:[%s13510_s1 + $0x1268] sm:$0xff] }
  0xf2   : > { %6281 = vmatpush1.bf16.msra.mxu1 %v6280_v56  ;;  %v946_v56 = vld [vmem:[%s13510_s1 + $0x858] sm:$0xff]  ;;  %v2135_v60 = vld [vmem:[%s13510_s1 + $0x2d80] sm:$0xff]  ;;  %v1273_v21 = vld [vmem:[%s13510_s1 + $0x1290] sm:$0xff] }
  0xf3   : > { %6473 = vmatpush1.bf16.msra.mxu0 %v6472_v57  ;;  %6283 = vmatprep.subr.bf16.mxu1 %v6282_v58  ;;  %v1231_v57 = vld [vmem:[%s13510_s1 + $0x1140] sm:$0xff]  ;;  %v6494_v58 = vpack.c.bf16 %v1235_v51, %v1232_v50  ;;  %v6304_v0 = vpack.c.bf16 %v946_v56, %v943_v55  ;;  %v588_v51 = vld [vmem:[%s8579_s9 + $0x128] sm:$0xff]  ;;  %v6514_v56 = vpack.c.bf16 %v1265_v45, %v1262_v44  ;;  %v1270_v9 = vld [vmem:[%s13510_s1 + $0x1278] sm:$0xff] }
  0xf4   : > { %6475 = vmatprep.subr.bf16.mxu0 %v6474_v62  ;;  %v1238_v62 = vld [vmem:[%s13510_s1 + $0x1178] sm:$0xff]  ;;  %v6496_v1 = vpack.c.bf16 %v1234_v59, %v1231_v57  ;;  %v2128_v55 = vld [vmem:[%s13510_s1 + $0x2d48] sm:$0xff]  ;;  %v1279_v33 = vld [vmem:[%s13510_s1 + $0x12c0] sm:$0xff] }
  0xf5   : > { %v2132_v59 = vld [vmem:[%s13510_s1 + $0x2d68] sm:$0xff]  ;;  %v1286_v44 = vld [vmem:[%s13510_s1 + $0x12f8] sm:$0xff]  ;;  %v1289_v45 = vld [vmem:[%s13510_s1 + $0x1310] sm:$0xff] }
  0xf6   : > { %6285 = vmatpush1.bf16.msra.mxu1 %v6284_v4  ;;  %v952_v4 = vld [vmem:[%s13510_s1 + $0x888] sm:$0xff] }
  0xf7   : > { %6477 = vmatpush1.bf16.msra.mxu0 %v6476_v5  ;;  %6287 = vmatprep.subr.bf16.mxu1 %v6286_v6  ;;  %v1237_v5 = vld [vmem:[%s13510_s1 + $0x1170] sm:$0xff]  ;;  %v6498_v6 = vpack.c.bf16 %v1241_v63, %v1238_v62  ;;  %v6308_v12 = vpack.c.bf16 %v952_v4, %v949_v3  ;;  %v1271_v62 = vld [vmem:[%s13510_s1 + $0x1280] sm:$0xff]  ;;  %v7094_v4 = vpack.c.bf16 %v2135_v60, %v2132_v59 }
  0xf8   : > { %6479 = vmatprep.subr.bf16.mxu0 %v6478_v10  ;;  %v1244_v10 = vld [vmem:[%s13510_s1 + $0x11a8] sm:$0xff]  ;;  %v6500_v13 = vpack.c.bf16 %v1240_v7, %v1237_v5  ;;  %v587_v63 = vld [vmem:[%s8579_s9 + $0x120] sm:$0xff]  ;;  %v2134_v7 = vld [vmem:[%s13510_s1 + $0x2d78] sm:$0xff]  ;;  %v6518_v8 = vpack.c.bf16 %v1271_v62, %v1268_v61 }
  0xf9   : > { %v1267_v5 = vld [vmem:[%s13510_s1 + $0x1260] sm:$0xff] }
  0xfa   : > { %6289 = vmatpush1.bf16.msra.mxu1 %v6288_v16  ;;  %v958_v16 = vld [vmem:[%s13510_s1 + $0x8b8] sm:$0xff]  ;;  %v1295_v59 = vld [vmem:[%s13510_s1 + $0x1340] sm:$0xff] }
  0xfb   : > { %6481 = vmatpush1.bf16.msra.mxu0 %v6480_v17  ;;  %6291 = vmatprep.subr.bf16.mxu1 %v6290_v18  ;;  %v1243_v17 = vld [vmem:[%s13510_s1 + $0x11a0] sm:$0xff]  ;;  %v6502_v18 = vpack.c.bf16 %v1247_v11, %v1244_v10  ;;  %v6312_v24 = vpack.c.bf16 %v958_v16, %v955_v15  ;;  %v2138_v10 = vld [vmem:[%s13510_s1 + $0x2d98] sm:$0xff]  ;;  %v2141_v11 = vld [vmem:[%s13510_s1 + $0x2db0] sm:$0xff] }
  0xfc   : > { %6483 = vmatprep.subr.bf16.mxu0 %v6482_v22  ;;  %v1250_v22 = vld [vmem:[%s13510_s1 + $0x11d8] sm:$0xff]  ;;  %v6504_v25 = vpack.c.bf16 %v1246_v19, %v1243_v17  ;;  %v619_v15 = vld [vmem:[%s8579_s9 + $0x220] sm:$0xff]  ;;  %v652_v17 = vld [vmem:[%s8579_s9 + $0x328] sm:$0xff]  ;;  %v6520_v19 = vpack.c.bf16 %v1270_v9, %v1267_v5  ;;  %v7098_v20 = vpack.c.bf16 %v2141_v11, %v2138_v10 }
  0xfd   : > { %v2165_v5 = vld [vmem:[%s13510_s1 + $0x2e70] sm:$0xff] }
  0xfe   : > { %6293 = vmatpush1.bf16.msra.mxu1 %v6292_v28  ;;  %v964_v28 = vld [vmem:[%s13510_s1 + $0x8e8] sm:$0xff]  ;;  %v1297_v11 = vld [vmem:[%s13510_s1 + $0x1350] sm:$0xff] }
  0xff   : > { %6485 = vmatpush1.bf16.msra.mxu0 %v6484_v29  ;;  %6295 = vmatprep.subr.bf16.mxu1 %v6294_v30  ;;  %v1249_v29 = vld [vmem:[%s13510_s1 + $0x11d0] sm:$0xff]  ;;  %v6506_v30 = vpack.c.bf16 %v1253_v23, %v1250_v22  ;;  %v6316_v36 = vpack.c.bf16 %v964_v28, %v961_v27  ;;  %v2140_v23 = vld [vmem:[%s13510_s1 + $0x2da8] sm:$0xff]  ;;  %v2147_v27 = vld [vmem:[%s13510_s1 + $0x2de0] sm:$0xff] }
 0x100   : > { %6487 = vmatprep.subr.bf16.mxu0 %v6486_v34  ;;  %v1256_v34 = vld [vmem:[%s13510_s1 + $0x1208] sm:$0xff]  ;;  %v6508_v37 = vpack.c.bf16 %v1252_v31, %v1249_v29  ;;  %v2137_v22 = vld [vmem:[%s13510_s1 + $0x2d90] sm:$0xff]  ;;  %v1283_v29 = vld [vmem:[%s13510_s1 + $0x12e0] sm:$0xff] }
 0x101   : > { %v1280_v28 = vld [vmem:[%s13510_s1 + $0x12c8] sm:$0xff]  ;;  %v651_v31 = vld [vmem:[%s8579_s9 + $0x320] sm:$0xff]  ;;  %v7100_v32 = vpack.c.bf16 %v2140_v23, %v2137_v22 }
 0x102   : > { %6297 = vmatpush1.bf16.msra.mxu1 %v6296_v40  ;;  %v2122_v40 = vld [vmem:[%s13510_s1 + $0x2d18] sm:$0xff]  ;;  %v1303_v23 = vld [vmem:[%s13510_s1 + $0x1380] sm:$0xff] }
 0x103   : > { %6489 = vmatpush1.bf16.msra.mxu0 %v6488_v41  ;;  %6299 = vmatprep.subr.bf16.mxu1 %v6298_v42  ;;  %v6510_v41 = vpack.c.bf16 %v1259_v35, %v1256_v34  ;;  %v1255_v42 = vld [vmem:[%s13510_s1 + $0x1200] sm:$0xff]  ;;  %v7088_v50 = vpack.c.bf16 %v2122_v40, %v2119_v39  ;;  %v658_v34 = vld [vmem:[%s8579_s9 + $0x358] sm:$0xff]  ;;  %v6526_v40 = vpack.c.bf16 %v1283_v29, %v1280_v28  ;;  %v2177_v29 = vld [vmem:[%s13510_s1 + $0x2ed0] sm:$0xff] }
 0x104   : > { %6491 = vmatprep.subr.bf16.mxu0 %v6490_v46  ;;  %v2126_v46 = vld [vmem:[%s13510_s1 + $0x2d38] sm:$0xff] }
 0x105   : > { %v7090_v57 = vpack.c.bf16 %v2129_v47, %v2126_v46  ;;  %v582_v39 = vld [vmem:[%s8579_s9 + $0xf8] sm:$0xff]  ;;  %v657_v46 = vld [vmem:[%s8579_s9 + $0x350] sm:$0xff] }
 0x106   : > { %6301 = vmatpush1.bf16.msra.mxu1 %v6300_v52  ;;  %v6512_v52 = vpack.c.bf16 %v1258_v43, %v1255_v42  ;;  %v2150_v42 = vld [vmem:[%s13510_s1 + $0x2df8] sm:$0xff]  ;;  %v2153_v43 = vld [vmem:[%s13510_s1 + $0x2e10] sm:$0xff] }
 0x107   : > { %6493 = vmatpush1.bf16.msra.mxu0 %v6492_v53  ;;  %6303 = vmatprep.subr.bf16.mxu1 %v6302_v54  ;;  %v1261_v53 = vld [vmem:[%s13510_s1 + $0x1230] sm:$0xff]  ;;  %v2174_v28 = vld [vmem:[%s13510_s1 + $0x2eb8] sm:$0xff] }
 0x108   : > { %6495 = vmatprep.subr.bf16.mxu0 %v6494_v58  ;;  %v2125_v54 = vld [vmem:[%s13510_s1 + $0x2d30] sm:$0xff]  ;;  %v1264_v58 = vld [vmem:[%s13510_s1 + $0x1248] sm:$0xff] }
 0x109   : > { %v6516_v3 = vpack.c.bf16 %v1264_v58, %v1261_v53  ;;  %v2152_v53 = vld [vmem:[%s13510_s1 + $0x2e08] sm:$0xff] }
 0x10a   : > { %6305 = vmatpush1.bf16.msra.mxu1 %v6304_v0  ;;  %v7092_v0 = vpack.c.bf16 %v2128_v55, %v2125_v54  ;;  %v6530_v54 = vpack.c.bf16 %v1289_v45, %v1286_v44  ;;  %v1288_v55 = vld [vmem:[%s13510_s1 + $0x1308] sm:$0xff] }
 0x10b   : > { %6497 = vmatpush1.bf16.msra.mxu0 %v6496_v1  ;;  %6307 = vmatprep.subr.bf16.mxu1 %v6306_v2  ;;  %v620_v1 = vld [vmem:[%s8579_s9 + $0x228] sm:$0xff]  ;;  %v594_v2 = vld [vmem:[%s8579_s9 + $0x158] sm:$0xff] }
 0x10c   : > { %6499 = vmatprep.subr.bf16.mxu0 %v6498_v6  ;;  %v2131_v6 = vld [vmem:[%s13510_s1 + $0x2d60] sm:$0xff]  ;;  %v1292_v58 = vld [vmem:[%s13510_s1 + $0x1328] sm:$0xff] }
 0x10d   : > { %v7096_v16 = vpack.c.bf16 %v2134_v7, %v2131_v6  ;;  %v1298_v6 = vld [vmem:[%s13510_s1 + $0x1358] sm:$0xff]  ;;  %v1301_v7 = vld [vmem:[%s13510_s1 + $0x1370] sm:$0xff] }
 0x10e   : > { %6309 = vmatpush1.bf16.msra.mxu1 %v6308_v12  ;;  %v1274_v12 = vld [vmem:[%s13510_s1 + $0x1298] sm:$0xff] }
 0x10f   : > { %6501 = vmatpush1.bf16.msra.mxu0 %v6500_v13  ;;  %6311 = vmatprep.subr.bf16.mxu1 %v6310_v14  ;;  %v1277_v13 = vld [vmem:[%s13510_s1 + $0x12b0] sm:$0xff] }
 0x110   : > { %6503 = vmatprep.subr.bf16.mxu0 %v6502_v18  ;;  %v593_v14 = vld [vmem:[%s8579_s9 + $0x150] sm:$0xff]  ;;  %v626_v18 = vld [vmem:[%s8579_s9 + $0x258] sm:$0xff] }
 0x112   : > { %6313 = vmatpush1.bf16.msra.mxu1 %v6312_v24  ;;  %v6522_v24 = vpack.c.bf16 %v1277_v13, %v1274_v12  ;;  %v2161_v12 = vld [vmem:[%s13510_s1 + $0x2e50] sm:$0xff]  ;;  %v2164_v13 = vld [vmem:[%s13510_s1 + $0x2e68] sm:$0xff] }
 0x113   : > { %6505 = vmatpush1.bf16.msra.mxu0 %v6504_v25  ;;  %6315 = vmatprep.subr.bf16.mxu1 %v6314_v26  ;;  %v1276_v25 = vld [vmem:[%s13510_s1 + $0x12a8] sm:$0xff] }
 0x114   : > { %6507 = vmatprep.subr.bf16.mxu0 %v6506_v30  ;;  %v2144_v26 = vld [vmem:[%s13510_s1 + $0x2dc8] sm:$0xff]  ;;  %v625_v30 = vld [vmem:[%s8579_s9 + $0x250] sm:$0xff]  ;;  %v6524_v35 = vpack.c.bf16 %v1276_v25, %v1273_v21  ;;  %v2170_v25 = vld [vmem:[%s13510_s1 + $0x2e98] sm:$0xff] }
 0x116   : > { %6317 = vmatpush1.bf16.msra.mxu1 %v6316_v36  ;;  %v7102_v36 = vpack.c.bf16 %v2147_v27, %v2144_v26  ;;  %v1306_v27 = vld [vmem:[%s13510_s1 + $0x1398] sm:$0xff] }
 0x117   : > { %6509 = vmatpush1.bf16.msra.mxu0 %v6508_v37  ;;  %7087 = vmatprep.subr.bf16.mxu1 %v7086_v38  ;;  %v2143_v37 = vld [vmem:[%s13510_s1 + $0x2dc0] sm:$0xff]  ;;  %v2146_v38 = vld [vmem:[%s13510_s1 + $0x2dd8] sm:$0xff] }
 0x118   : > { %6511 = vmatprep.subr.bf16.mxu0 %v6510_v41  ;;  %v1282_v41 = vld [vmem:[%s13510_s1 + $0x12d8] sm:$0xff]  ;;  %v7104_v47 = vpack.c.bf16 %v2146_v38, %v2143_v37  ;;  %v2176_v37 = vld [vmem:[%s13510_s1 + $0x2ec8] sm:$0xff] }
 0x119   : > { %2435 = vmatmul.mubr.f32.vlgmr.msra.gmra.mrb[0].mxu1 %v555_v48  ;;  %v564_v48 = vld [vmem:[%s8579_s9 + $0x68] sm:$0xff] }
 0x11a   : > { %2702 = vmatmul.mubr.f32.vlgmr.msra.gmra.mrb[0].mxu0 %v561_v49  ;;  %7089 = vmatpush1.bf16.msra.mxu1 %v7088_v50  ;;  %v6528_v49 = vpack.c.bf16 %v1282_v41, %v1279_v33  ;;  %v7106_v50 = vpack.c.bf16 %v2153_v43, %v2150_v42  ;;  %v6544_v33 = vpack.c.bf16 %v1306_v27, %v1303_v23  ;;  %v732_v41 = vld [vmem:[%s13510_s1 + $0x1a8] sm:$0xff]  ;;  %v1319_v43 = vld [vmem:[%s13510_s1 + $0x1400] sm:$0xff]  ;;  %v678_v27 = vld [vmem:[%s8579_s9 + $0x3f8] sm:$0xff] }
 0x11b   : > { %6513 = vmatpush1.bf16.msra.mxu0 %v6512_v52  ;;  %2440 = vmatprep.mubr.f32.mxu1 %v588_v51  ;;  %v1285_v51 = vld [vmem:[%s13510_s1 + $0x12f0] sm:$0xff]  ;;  %v1316_v42 = vld [vmem:[%s13510_s1 + $0x13e8] sm:$0xff] }
 0x11c   : > { %6515 = vmatprep.subr.bf16.mxu0 %v6514_v56  ;;  %7091 = vmatprep.subr.bf16.mxu1 %v7090_v57  ;;  %v2149_v52 = vld [vmem:[%s13510_s1 + $0x2df0] sm:$0xff]  ;;  %v2156_v56 = vld [vmem:[%s13510_s1 + $0x2e28] sm:$0xff]  ;;  %v2159_v57 = vld [vmem:[%s13510_s1 + $0x2e40] sm:$0xff]  ;;  %v6532_v61 = vpack.c.bf16 %v1288_v55, %v1285_v51 }
 0x11d   : > { %2441 = vmatmul.mubr.f32.gmra.mrb[2].mxu1 %v587_v63  ;;  %2707 = vmatprep.mubr.f32.mxu0 %v594_v2  ;;  %v7108_v60 = vpack.c.bf16 %v2152_v53, %v2149_v52  ;;  %v7110_v62 = vpack.c.bf16 %v2159_v57, %v2156_v56  ;;  %v1291_v63 = vld [vmem:[%s13510_s1 + $0x1320] sm:$0xff]  ;;  %v6534_v2 = vpack.c.bf16 %v1295_v59, %v1292_v58  ;;  %v1318_v51 = vld [vmem:[%s13510_s1 + $0x13f8] sm:$0xff]  ;;  %v1325_v55 = vld [vmem:[%s13510_s1 + $0x1430] sm:$0xff] }
 0x11e   : > { %7093 = vmatpush1.bf16.msra.mxu1 %v7092_v0  ;;  %2446 = vmatprep.mubr.f32.mxu1 %v620_v1  ;;  %v2155_v0 = vld [vmem:[%s13510_s1 + $0x2e20] sm:$0xff]  ;;  %v2158_v1 = vld [vmem:[%s13510_s1 + $0x2e38] sm:$0xff]  ;;  %v581_v56 = vld [vmem:[%s8579_s9 + $0xf0] sm:$0xff] }
 0x11f   : > { %6517 = vmatpush1.bf16.msra.mxu0 %v6516_v3  ;;  %7095 = vmatprep.subr.bf16.mxu1 %v7094_v4  ;;  %v1294_v3 = vld [vmem:[%s13510_s1 + $0x1338] sm:$0xff]  ;;  %v735_v52 = vld [vmem:[%s13510_s1 + $0x1c0] sm:$0xff]  ;;  %v1321_v58 = vld [vmem:[%s13510_s1 + $0x1410] sm:$0xff] }
 0x120   : > { %6519 = vmatprep.subr.bf16.mxu0 %v6518_v8  ;;  %2708 = vmatmul.mubr.f32.gmra.mrb[2].mxu0 %v593_v14  ;;  %v2162_v4 = vld [vmem:[%s13510_s1 + $0x2e58] sm:$0xff]  ;;  %v7112_v8 = vpack.c.bf16 %v2158_v1, %v2155_v0  ;;  %v6536_v9 = vpack.c.bf16 %v1294_v3, %v1291_v63  ;;  %v6538_v14 = vpack.c.bf16 %v1301_v7, %v1298_v6  ;;  %v1324_v1 = vld [vmem:[%s13510_s1 + $0x1428] sm:$0xff]  ;;  %v1327_v7 = vld [vmem:[%s13510_s1 + $0x1440] sm:$0xff] }
 0x121   : > { %2447 = vmatmul.mubr.f32.gmra.mrb[4].mxu1 %v619_v15  ;;  %2713 = vmatprep.mubr.f32.mxu0 %v626_v18  ;;  %v7114_v10 = vpack.c.bf16 %v2165_v5, %v2162_v4  ;;  %v1300_v15 = vld [vmem:[%s13510_s1 + $0x1368] sm:$0xff]  ;;  %v738_v53 = vld [vmem:[%s13510_s1 + $0x1d8] sm:$0xff]  ;;  %v1331_v5 = vld [vmem:[%s13510_s1 + $0x1460] sm:$0xff] }
 0x122   : > { %7097 = vmatpush1.bf16.msra.mxu1 %v7096_v16  ;;  %2452 = vmatprep.mubr.f32.mxu1 %v652_v17  ;;  %v2168_v16 = vld [vmem:[%s13510_s1 + $0x2e88] sm:$0xff]  ;;  %v2171_v17 = vld [vmem:[%s13510_s1 + $0x2ea0] sm:$0xff]  ;;  %v6540_v21 = vpack.c.bf16 %v1300_v15, %v1297_v11  ;;  %v614_v63 = vld [vmem:[%s8579_s9 + $0x1f8] sm:$0xff] }
 0x123   : > { %6521 = vmatpush1.bf16.msra.mxu0 %v6520_v19  ;;  %7099 = vmatprep.subr.bf16.mxu1 %v7098_v20  ;;  %v1304_v18 = vld [vmem:[%s13510_s1 + $0x1388] sm:$0xff]  ;;  %v1307_v19 = vld [vmem:[%s13510_s1 + $0x13a0] sm:$0xff]  ;;  %v7116_v20 = vpack.c.bf16 %v2164_v13, %v2161_v12  ;;  %v7118_v22 = vpack.c.bf16 %v2171_v17, %v2168_v16  ;;  %v693_v11 = vld [vmem:[%s13510_s1 + $0x70] sm:$0xff] }
 0x124   : > { %6523 = vmatprep.subr.bf16.mxu0 %v6522_v24  ;;  %2714 = vmatmul.mubr.f32.gmra.mrb[4].mxu0 %v625_v30  ;;  %v2167_v24 = vld [vmem:[%s13510_s1 + $0x2e80] sm:$0xff]  ;;  %v6542_v26 = vpack.c.bf16 %v1307_v19, %v1304_v18  ;;  %v1310_v30 = vld [vmem:[%s13510_s1 + $0x13b8] sm:$0xff]  ;;  %v744_v3 = vld [vmem:[%s13510_s1 + $0x208] sm:$0xff] }
 0x125   : > { %2453 = vmatmul.mubr.f32.gmra.mrb[6].mxu1 %v651_v31  ;;  %2719 = vmatprep.mubr.f32.mxu0 %v658_v34  ;;  %v1313_v31 = vld [vmem:[%s13510_s1 + $0x13d0] sm:$0xff]  ;;  %v7122_v34 = vpack.c.bf16 %v2177_v29, %v2174_v28  ;;  %v1328_v4 = vld [vmem:[%s13510_s1 + $0x1448] sm:$0xff]  ;;  %v646_v13 = vld [vmem:[%s8579_s9 + $0x2f8] sm:$0xff] }
 0x126   : > { %7101 = vmatpush1.bf16.msra.mxu1 %v7100_v32  ;;  %5362 = vmatprep.mubr.msk.f32.mxu1 %vm2179_vm0, %v582_v39  ;;  %v7120_v32 = vpack.c.bf16 %v2170_v25, %v2167_v24  ;;  %v6546_v38 = vpack.c.bf16 %v1313_v31, %v1310_v30  ;;  %v1312_v39 = vld [vmem:[%s13510_s1 + $0x13c8] sm:$0xff]  ;;  %v1330_v15 = vld [vmem:[%s13510_s1 + $0x1458] sm:$0xff]  ;;  %v747_v16 = vld [vmem:[%s13510_s1 + $0x220] sm:$0xff] }
 0x127   : > { %6525 = vmatpush1.bf16.msra.mxu0 %v6524_v35  ;;  %7103 = vmatprep.subr.bf16.mxu1 %v7102_v36  ;;  %v1309_v35 = vld [vmem:[%s13510_s1 + $0x13b0] sm:$0xff]  ;;  %v696_v12 = vld [vmem:[%s13510_s1 + $0x88] sm:$0xff]  ;;  %v750_v17 = vld [vmem:[%s13510_s1 + $0x238] sm:$0xff]  ;;  %v6560_v23 = vpack.c.bf16 %v1330_v15, %v1327_v7 }
 0x128   : > { %6527 = vmatprep.subr.bf16.mxu0 %v6526_v40  ;;  %2720 = vmatmul.mubr.f32.gmra.mrb[6].mxu0 %v657_v46  ;;  %v2173_v36 = vld [vmem:[%s13510_s1 + $0x2eb0] sm:$0xff]  ;;  %v6548_v45 = vpack.c.bf16 %v1312_v39, %v1309_v35  ;;  %v1334_v18 = vld [vmem:[%s13510_s1 + $0x1478] sm:$0xff]  ;;  %v7138_v24 = vpack.c.bf16 %v750_v17, %v747_v16  ;;  %v699_v25 = vld [vmem:[%s13510_s1 + $0xa0] sm:$0xff] }
 0x129   : > { %2790 = vmatprep.mubr.f32.mxu0 %v564_v48  ;;  %v729_v40 = vld [vmem:[%s13510_s1 + $0x190] sm:$0xff]  ;;  %v7124_v44 = vpack.c.bf16 %v2176_v37, %v2173_v36  ;;  %v1336_v29 = vld [vmem:[%s13510_s1 + $0x1488] sm:$0xff] }
 0x12a   : > { %7105 = vmatpush1.bf16.msra.mxu1 %v7104_v47  ;;  %v7126_v46 = vpack.c.bf16 %v732_v41, %v729_v40  ;;  %v1315_v47 = vld [vmem:[%s13510_s1 + $0x13e0] sm:$0xff]  ;;  %v681_v48 = vld [vmem:[%s13510_s1 + $0x10] sm:$0xff]  ;;  %v756_v31 = vld [vmem:[%s13510_s1 + $0x268] sm:$0xff] }
 0x12b   : > { %6529 = vmatpush1.bf16.msra.mxu0 %v6528_v49  ;;  %7107 = vmatprep.subr.bf16.mxu1 %v7106_v50  ;;  %v684_v49 = vld [vmem:[%s13510_s1 + $0x28] sm:$0xff]  ;;  %v6550_v50 = vpack.c.bf16 %v1319_v43, %v1316_v42  ;;  %v6552_v59 = vpack.c.bf16 %v1318_v51, %v1315_v47  ;;  %v1337_v19 = vld [vmem:[%s13510_s1 + $0x1490] sm:$0xff]  ;;  %v1342_v42 = vld [vmem:[%s13510_s1 + $0x14b8] sm:$0xff] }
 0x12c   : > { %6531 = vmatprep.subr.bf16.mxu0 %v6530_v54  ;;  %v1322_v54 = vld [vmem:[%s13510_s1 + $0x1418] sm:$0xff]  ;;  %v7128_v57 = vpack.c.bf16 %v684_v49, %v681_v48  ;;  %v6562_v28 = vpack.c.bf16 %v1337_v19, %v1334_v18  ;;  %v753_v30 = vld [vmem:[%s13510_s1 + $0x250] sm:$0xff]  ;;  %v708_v40 = vld [vmem:[%s13510_s1 + $0xe8] sm:$0xff] }
 0x12d   : > { %v6554_v0 = vpack.c.bf16 %v1325_v55, %v1322_v54  ;;  %v677_v35 = vld [vmem:[%s8579_s9 + $0x3f0] sm:$0xff]  ;;  %v7142_v37 = vpack.c.bf16 %v756_v31, %v753_v30  ;;  %v759_v43 = vld [vmem:[%s13510_s1 + $0x280] sm:$0xff]  ;;  %v7836_v48 = vld [vmem:[%s8579_s9 + $0x8] sm:$0xff] }
 0x12e   : > { %7109 = vmatpush1.bf16.msra.mxu1 %v7108_v60  ;;  %v7130_v60 = vpack.c.bf16 %v738_v53, %v735_v52  ;;  %v705_v39 = vld [vmem:[%s13510_s1 + $0xd0] sm:$0xff]  ;;  %v711_v52 = vld [vmem:[%s13510_s1 + $0x100] sm:$0xff]  ;;  %v714_v53 = vld [vmem:[%s13510_s1 + $0x118] sm:$0xff] }
 0x12f   : > { %6533 = vmatpush1.bf16.msra.mxu0 %v6532_v61  ;;  %7111 = vmatprep.subr.bf16.mxu1 %v7110_v62  ;;  %v687_v61 = vld [vmem:[%s13510_s1 + $0x40] sm:$0xff]  ;;  %v690_v62 = vld [vmem:[%s13510_s1 + $0x58] sm:$0xff]  ;;  %v7144_v47 = vpack.c.bf16 %v708_v40, %v705_v39  ;;  %v1345_v51 = vld [vmem:[%s13510_s1 + $0x14d0] sm:$0xff] }
 0x130   : > { %6535 = vmatprep.subr.bf16.mxu0 %v6534_v2  ;;  %v741_v2 = vld [vmem:[%s13510_s1 + $0x1f0] sm:$0xff]  ;;  %v7132_v6 = vpack.c.bf16 %v690_v62, %v687_v61  ;;  %v1348_v55 = vld [vmem:[%s13510_s1 + $0x14e8] sm:$0xff]  ;;  %v1366_v30 = vld [vmem:[%s13510_s1 + $0x1578] sm:$0xff] }
 0x131   : > { %v6572_v61 = vpack.c.bf16 %v1348_v55, %v1345_v51  ;;  %v1361_v7 = vld [vmem:[%s13510_s1 + $0x1550] sm:$0xff]  ;;  %v1360_v16 = vld [vmem:[%s13510_s1 + $0x1548] sm:$0xff]  ;;  %v831_v31 = vld [vmem:[%s13510_s1 + $0x4c0] sm:$0xff] }
 0x132   : > { %7113 = vmatpush1.bf16.msra.mxu1 %v7112_v8  ;;  %v613_v8 = vld [vmem:[%s8579_s9 + $0x1f0] sm:$0xff]  ;;  %v828_v18 = vld [vmem:[%s13510_s1 + $0x4a8] sm:$0xff]  ;;  %v783_v40 = vld [vmem:[%s13510_s1 + $0x340] sm:$0xff] }
 0x133   : > { %6537 = vmatpush1.bf16.msra.mxu0 %v6536_v9  ;;  %7115 = vmatprep.subr.bf16.mxu1 %v7114_v10  ;;  %v6556_v9 = vpack.c.bf16 %v1324_v1, %v1321_v58  ;;  %v7134_v10 = vpack.c.bf16 %v744_v3, %v741_v2  ;;  %v1352_v58 = vld [vmem:[%s13510_s1 + $0x1508] sm:$0xff]  ;;  %v1354_v3 = vld [vmem:[%s13510_s1 + $0x1518] sm:$0xff]  ;;  %v825_v17 = vld [vmem:[%s13510_s1 + $0x490] sm:$0xff] }
 0x134   : > { %6539 = vmatprep.subr.bf16.mxu0 %v6538_v14  ;;  %v6558_v14 = vpack.c.bf16 %v1331_v5, %v1328_v4  ;;  %v720_v1 = vld [vmem:[%s13510_s1 + $0x148] sm:$0xff]  ;;  %v771_v4 = vld [vmem:[%s13510_s1 + $0x2e0] sm:$0xff]  ;;  %v774_v5 = vld [vmem:[%s13510_s1 + $0x2f8] sm:$0xff] }
 0x135   : > { %v1364_v19 = vld [vmem:[%s13510_s1 + $0x1568] sm:$0xff]  ;;  %v1369_v39 = vld [vmem:[%s13510_s1 + $0x1590] sm:$0xff]  ;;  %v1375_v55 = vld [vmem:[%s13510_s1 + $0x15c0] sm:$0xff] }
 0x136   : > { %7117 = vmatpush1.bf16.msra.mxu1 %v7116_v20  ;;  %v7136_v20 = vpack.c.bf16 %v696_v12, %v693_v11  ;;  %v7154_v11 = vpack.c.bf16 %v774_v5, %v771_v4  ;;  %v1357_v12 = vld [vmem:[%s13510_s1 + $0x1530] sm:$0xff]  ;;  %v7838_v51 = vld [vmem:[%s8579_s9 + $0x108] sm:$0xff]  ;;  %v566_v4 = vld [vmem:[%s8579_s9 + $0x78] sm:$0xff] }
 0x137   : > { %6541 = vmatpush1.bf16.msra.mxu0 %v6540_v21  ;;  %7119 = vmatprep.subr.bf16.mxu1 %v7118_v22  ;;  %v1333_v21 = vld [vmem:[%s13510_s1 + $0x1470] sm:$0xff] }
 0x138   : > { %6543 = vmatprep.subr.bf16.mxu0 %v6542_v26  ;;  %v645_v22 = vld [vmem:[%s8579_s9 + $0x2f0] sm:$0xff]  ;;  %v702_v26 = vld [vmem:[%s13510_s1 + $0xb8] sm:$0xff]  ;;  %v6564_v36 = vpack.c.bf16 %v1336_v29, %v1333_v21  ;;  %v596_v21 = vld [vmem:[%s8579_s9 + $0x168] sm:$0xff] }
 0x13a   : > { %7121 = vmatpush1.bf16.msra.mxu1 %v7120_v32  ;;  %v1340_v32 = vld [vmem:[%s13510_s1 + $0x14a8] sm:$0xff] }
 0x13b   : > { %6545 = vmatpush1.bf16.msra.mxu0 %v6544_v33  ;;  %7123 = vmatprep.subr.bf16.mxu1 %v7122_v34  ;;  %v1343_v33 = vld [vmem:[%s13510_s1 + $0x14c0] sm:$0xff]  ;;  %v7140_v34 = vpack.c.bf16 %v702_v26, %v699_v25  ;;  %v7158_v25 = vpack.c.bf16 %v828_v18, %v825_v17  ;;  %v777_v26 = vld [vmem:[%s13510_s1 + $0x310] sm:$0xff]  ;;  %v7842_v18 = vld [vmem:[%s8579_s9 + $0x308] sm:$0xff] }
 0x13c   : > { %6547 = vmatprep.subr.bf16.mxu0 %v6546_v38  ;;  %v1339_v38 = vld [vmem:[%s13510_s1 + $0x14a0] sm:$0xff]  ;;  %v6566_v41 = vpack.c.bf16 %v1343_v33, %v1340_v32  ;;  %v834_v32 = vld [vmem:[%s13510_s1 + $0x4d8] sm:$0xff] }
 0x13d   : > { %v6568_v49 = vpack.c.bf16 %v1342_v42, %v1339_v38  ;;  %v1370_v33 = vld [vmem:[%s13510_s1 + $0x1598] sm:$0xff]  ;;  %v7162_v38 = vpack.c.bf16 %v834_v32, %v831_v31 }
 0x13e   : > { %7125 = vmatpush1.bf16.msra.mxu1 %v7124_v44  ;;  %v762_v44 = vld [vmem:[%s13510_s1 + $0x298] sm:$0xff] }
 0x13f   : > { %6549 = vmatpush1.bf16.msra.mxu0 %v6548_v45  ;;  %7127 = vmatprep.subr.bf16.mxu1 %v7126_v46  ;;  %v1346_v45 = vld [vmem:[%s13510_s1 + $0x14d8] sm:$0xff]  ;;  %v1349_v46 = vld [vmem:[%s13510_s1 + $0x14f0] sm:$0xff] }
 0x140   : > { %6551 = vmatprep.subr.bf16.mxu0 %v6550_v50  ;;  %v7146_v50 = vpack.c.bf16 %v762_v44, %v759_v43  ;;  %v6570_v54 = vpack.c.bf16 %v1349_v46, %v1346_v45  ;;  %v1372_v43 = vld [vmem:[%s13510_s1 + $0x15a8] sm:$0xff]  ;;  %v837_v44 = vld [vmem:[%s13510_s1 + $0x4f0] sm:$0xff]  ;;  %v7837_v46 = vld [vmem:[%s8579_s9] sm:$0xff] }
 0x141   : > { %3592 = vmatmul.mubr.f32.vlgmr.msra.gmra.mrb[8].mxu1 %v581_v56  ;;  %v765_v56 = vld [vmem:[%s13510_s1 + $0x2b0] sm:$0xff]  ;;  %v840_v45 = vld [vmem:[%s13510_s1 + $0x508] sm:$0xff]  ;;  %v7844_v32 = vld [vmem:[%s8579_s9 + $0x18] sm:$0xff] }
 0x142   : > { %7129 = vmatpush3.bf16.msra.mxu1 %v7128_v57  ;;  %5363 = vmatprep.mubr.msk.f32.mxu1 %vm2179_vm0, %v614_v63  ;;  %v768_v57 = vld [vmem:[%s13510_s1 + $0x2c8] sm:$0xff]  ;;  %v1351_v63 = vld [vmem:[%s13510_s1 + $0x1500] sm:$0xff] }
 0x143   : > { %6553 = vmatpush1.bf16.msra.mxu0 %v6552_v59  ;;  %7131 = vmatprep.subr.bf16.mxu1 %v7130_v60  ;;  %v1355_v59 = vld [vmem:[%s13510_s1 + $0x1520] sm:$0xff]  ;;  %v7148_v60 = vpack.c.bf16 %v714_v53, %v711_v52  ;;  %v7150_v62 = vpack.c.bf16 %v768_v57, %v765_v56  ;;  %v660_v52 = vld [vmem:[%s8579_s9 + $0x368] sm:$0xff]  ;;  %v6588_v53 = vpack.c.bf16 %v1372_v43, %v1369_v39  ;;  %v789_v56 = vld [vmem:[%s13510_s1 + $0x370] sm:$0xff] }
 0x144   : > { %6555 = vmatprep.subr.bf16.mxu0 %v6554_v0  ;;  %v717_v0 = vld [vmem:[%s13510_s1 + $0x130] sm:$0xff]  ;;  %v6574_v2 = vpack.c.bf16 %v1355_v59, %v1352_v58  ;;  %v792_v57 = vld [vmem:[%s13510_s1 + $0x388] sm:$0xff]  ;;  %v1378_v59 = vld [vmem:[%s13510_s1 + $0x15d8] sm:$0xff] }
 0x145   : > { %3598 = vmatmul.mubr.f32.gmra.mrb[10].mxu1 %v613_v8  ;;  %v563_v8 = vld [vmem:[%s8579_s9 + $0x60] sm:$0xff]  ;;  %v6592_v5 = vpack.c.bf16 %v1378_v59, %v1375_v55  ;;  %v1396_v39 = vld [vmem:[%s13510_s1 + $0x1668] sm:$0xff]  ;;  %v1409_v55 = vld [vmem:[%s13510_s1 + $0x16d0] sm:$0xff] }
 0x146   : > { %7133 = vmatpush3.bf16.msra.mxu1 %v7132_v6  ;;  %5364 = vmatprep.mubr.msk.f32.mxu1 %vm2179_vm0, %v646_v13  ;;  %v1358_v6 = vld [vmem:[%s13510_s1 + $0x1538] sm:$0xff]  ;;  %v723_v13 = vld [vmem:[%s13510_s1 + $0x160] sm:$0xff]  ;;  %v1405_v59 = vld [vmem:[%s13510_s1 + $0x16b0] sm:$0xff] }
 0x147   : > { %6557 = vmatpush1.bf16.msra.mxu0 %v6556_v9  ;;  %7135 = vmatprep.subr.bf16.mxu1 %v7134_v10  ;;  %v7152_v9 = vpack.c.bf16 %v720_v1, %v717_v0  ;;  %v6576_v10 = vpack.c.bf16 %v1354_v3, %v1351_v63  ;;  %v6578_v15 = vpack.c.bf16 %v1361_v7, %v1358_v6  ;;  %v1385_v63 = vld [vmem:[%s13510_s1 + $0x1610] sm:$0xff]  ;;  %v7839_v0 = vld [vmem:[%s8579_s9 + $0x100] sm:$0xff]  ;;  %v7840_v3 = vld [vmem:[%s8579_s9 + $0x208] sm:$0xff] }
 0x148   : > { %6559 = vmatprep.subr.bf16.mxu0 %v6558_v14  ;;  %v726_v14 = vld [vmem:[%s13510_s1 + $0x178] sm:$0xff]  ;;  %v659_v1 = vld [vmem:[%s8579_s9 + $0x360] sm:$0xff]  ;;  %v1381_v7 = vld [vmem:[%s13510_s1 + $0x15f0] sm:$0xff] }
 0x149   : > { %3604 = vmatmul.mubr.f32.gmra.mrb[12].mxu1 %v645_v22  ;;  %v7156_v22 = vpack.c.bf16 %v726_v14, %v723_v13  ;;  %v852_v13 = vld [vmem:[%s13510_s1 + $0x568] sm:$0xff]  ;;  %v1403_v43 = vld [vmem:[%s13510_s1 + $0x16a0] sm:$0xff] }
 0x14a   : > { %7137 = vmatpush3.bf16.msra.mxu1 %v7136_v20  ;;  %5365 = vmatprep.mubr.msk.f32.mxu1 %vm2179_vm0, %v678_v27  ;;  %v1367_v20 = vld [vmem:[%s13510_s1 + $0x1580] sm:$0xff]  ;;  %v780_v27 = vld [vmem:[%s13510_s1 + $0x328] sm:$0xff] }
 0x14b   : > { %6561 = vmatpush1.bf16.msra.mxu0 %v6560_v23  ;;  %7139 = vmatprep.subr.bf16.mxu1 %v7138_v24  ;;  %v1363_v23 = vld [vmem:[%s13510_s1 + $0x1560] sm:$0xff]  ;;  %v6580_v24 = vpack.c.bf16 %v1360_v16, %v1357_v12  ;;  %v6582_v29 = vpack.c.bf16 %v1367_v20, %v1364_v19  ;;  %v849_v12 = vld [vmem:[%s13510_s1 + $0x550] sm:$0xff]  ;;  %v1388_v14 = vld [vmem:[%s13510_s1 + $0x1628] sm:$0xff] }
 0x14c   : > { %6563 = vmatprep.subr.bf16.mxu0 %v6562_v28  ;;  %v595_v28 = vld [vmem:[%s8579_s9 + $0x160] sm:$0xff]  ;;  %v7174_v20 = vpack.c.bf16 %v852_v13, %v849_v12  ;;  %v930_v13 = vld [vmem:[%s13510_s1 + $0x7d8] sm:$0xff] }
 0x14d   : > { %3610 = vmatmul.mubr.f32.gmra.mrb[14].mxu1 %v677_v35  ;;  %v628_v35 = vld [vmem:[%s8579_s9 + $0x268] sm:$0xff]  ;;  %v7841_v16 = vld [vmem:[%s8579_s9 + $0x200] sm:$0xff] }
 0x14e   : > { %7141 = vmatpush3.bf16.msra.mxu1 %v7140_v34  ;;  %3680 = vmatprep.mubr.f32.mxu1 %v7836_v48  ;;  %v1373_v34 = vld [vmem:[%s13510_s1 + $0x15b0] sm:$0xff]  ;;  %v1379_v48 = vld [vmem:[%s13510_s1 + $0x15e0] sm:$0xff] }
 0x14f   : > { %6565 = vmatpush1.bf16.msra.mxu0 %v6564_v36  ;;  %7143 = vmatprep.subr.bf16.mxu1 %v7142_v37  ;;  %v7160_v36 = vpack.c.bf16 %v780_v27, %v777_v26  ;;  %v6584_v37 = vpack.c.bf16 %v1366_v30, %v1363_v23  ;;  %v6586_v42 = vpack.c.bf16 %v1373_v34, %v1370_v33  ;;  %v804_v23 = vld [vmem:[%s13510_s1 + $0x3e8] sm:$0xff]  ;;  %v855_v26 = vld [vmem:[%s13510_s1 + $0x580] sm:$0xff]  ;;  %v858_v27 = vld [vmem:[%s13510_s1 + $0x598] sm:$0xff] }
 0x150   : > { %6567 = vmatprep.subr.bf16.mxu0 %v6566_v41  ;;  %v786_v41 = vld [vmem:[%s13510_s1 + $0x358] sm:$0xff]  ;;  %v7843_v30 = vld [vmem:[%s8579_s9 + $0x300] sm:$0xff]  ;;  %v7178_v34 = vpack.c.bf16 %v858_v27, %v855_v26  ;;  %v7845_v26 = vld [vmem:[%s8579_s9 + $0x10] sm:$0xff] }
 0x151   : > { %v927_v12 = vld [vmem:[%s13510_s1 + $0x7c0] sm:$0xff]  ;;  %v1424_v27 = vld [vmem:[%s13510_s1 + $0x1748] sm:$0xff] }
 0x152   : > { %7145 = vmatpush3.bf16.msra.mxu1 %v7144_v47  ;;  %v1376_v47 = vld [vmem:[%s13510_s1 + $0x15c8] sm:$0xff] }
 0x153   : > { %6569 = vmatpush1.bf16.msra.mxu0 %v6568_v49  ;;  %7147 = vmatprep.subr.bf16.mxu1 %v7146_v50  ;;  %v627_v49 = vld [vmem:[%s8579_s9 + $0x260] sm:$0xff]  ;;  %v7164_v50 = vpack.c.bf16 %v786_v41, %v783_v40  ;;  %v6590_v58 = vpack.c.bf16 %v1379_v48, %v1376_v47  ;;  %v861_v40 = vld [vmem:[%s13510_s1 + $0x5b0] sm:$0xff]  ;;  %v864_v41 = vld [vmem:[%s13510_s1 + $0x5c8] sm:$0xff] }
 0x154   : > { %6571 = vmatprep.subr.bf16.mxu0 %v6570_v54  ;;  %v7166_v54 = vpack.c.bf16 %v840_v45, %v837_v44  ;;  %v1399_v47 = vld [vmem:[%s13510_s1 + $0x1680] sm:$0xff]  ;;  %v813_v48 = vld [vmem:[%s13510_s1 + $0x430] sm:$0xff] }
 0x156   : > { %7149 = vmatpush3.bf16.msra.mxu1 %v7148_v60  ;;  %v843_v60 = vld [vmem:[%s13510_s1 + $0x520] sm:$0xff] }
 0x157   : > { %6573 = vmatpush1.bf16.msra.mxu0 %v6572_v61  ;;  %7151 = vmatprep.subr.bf16.mxu1 %v7150_v62  ;;  %v846_v61 = vld [vmem:[%s13510_s1 + $0x538] sm:$0xff] }
 0x158   : > { %6575 = vmatprep.subr.bf16.mxu0 %v6574_v2  ;;  %v1382_v62 = vld [vmem:[%s13510_s1 + $0x15f8] sm:$0xff]  ;;  %v7168_v2 = vpack.c.bf16 %v792_v57, %v789_v56  ;;  %v7170_v6 = vpack.c.bf16 %v846_v61, %v843_v60  ;;  %v819_v60 = vld [vmem:[%s13510_s1 + $0x460] sm:$0xff] }
 0x159   : > { %v822_v61 = vld [vmem:[%s13510_s1 + $0x478] sm:$0xff] }
 0x15a   : > { %2791 = vmatmul.mubr.f32.vlgmr.msra.gmra.mrb[0].mxu0 %v563_v8  ;;  %7153 = vmatpush3.bf16.msra.mxu1 %v7152_v9  ;;  %v795_v8 = vld [vmem:[%s13510_s1 + $0x3a0] sm:$0xff]  ;;  %v798_v9 = vld [vmem:[%s13510_s1 + $0x3b8] sm:$0xff] }
 0x15b   : > { %6577 = vmatpush1.bf16.msra.mxu0 %v6576_v10  ;;  %7155 = vmatprep.subr.bf16.mxu1 %v7154_v11  ;;  %v6594_v10 = vpack.c.bf16 %v1385_v63, %v1382_v62  ;;  %v1384_v11 = vld [vmem:[%s13510_s1 + $0x1608] sm:$0xff]  ;;  %v7172_v17 = vpack.c.bf16 %v798_v9, %v795_v8  ;;  %v873_v8 = vld [vmem:[%s13510_s1 + $0x610] sm:$0xff] }
 0x15c   : > { %6579 = vmatprep.subr.bf16.mxu0 %v6578_v15  ;;  %2796 = vmatprep.mubr.f32.mxu0 %v596_v21  ;;  %v1391_v15 = vld [vmem:[%s13510_s1 + $0x1640] sm:$0xff]  ;;  %v6596_v19 = vpack.c.bf16 %v1384_v11, %v1381_v7  ;;  %v1408_v63 = vld [vmem:[%s13510_s1 + $0x16c8] sm:$0xff]  ;;  %v1414_v11 = vld [vmem:[%s13510_s1 + $0x16f8] sm:$0xff] }
 0x15d   : > { %v1387_v21 = vld [vmem:[%s13510_s1 + $0x1620] sm:$0xff]  ;;  %v876_v9 = vld [vmem:[%s13510_s1 + $0x628] sm:$0xff] }
 0x15e   : > { %7157 = vmatpush3.bf16.msra.mxu1 %v7156_v22  ;;  %2797 = vmatmul.mubr.f32.gmra.mrb[2].mxu0 %v595_v28  ;;  %v801_v22 = vld [vmem:[%s13510_s1 + $0x3d0] sm:$0xff]  ;;  %v1394_v28 = vld [vmem:[%s13510_s1 + $0x1658] sm:$0xff]  ;;  %v1411_v7 = vld [vmem:[%s13510_s1 + $0x16e0] sm:$0xff] }
 0x15f   : > { %6581 = vmatpush1.bf16.msra.mxu0 %v6580_v24  ;;  %7159 = vmatprep.subr.bf16.mxu1 %v7158_v25  ;;  %v6598_v24 = vpack.c.bf16 %v1391_v15, %v1388_v14  ;;  %v1390_v25 = vld [vmem:[%s13510_s1 + $0x1638] sm:$0xff]  ;;  %v7176_v31 = vpack.c.bf16 %v804_v23, %v801_v22  ;;  %v1421_v15 = vld [vmem:[%s13510_s1 + $0x1730] sm:$0xff]  ;;  %v1420_v23 = vld [vmem:[%s13510_s1 + $0x1728] sm:$0xff] }
 0x160   : > { %6583 = vmatprep.subr.bf16.mxu0 %v6582_v29  ;;  %2802 = vmatprep.mubr.f32.mxu0 %v628_v35  ;;  %v1397_v29 = vld [vmem:[%s13510_s1 + $0x1670] sm:$0xff]  ;;  %v6600_v33 = vpack.c.bf16 %v1390_v25, %v1387_v21  ;;  %v1418_v14 = vld [vmem:[%s13510_s1 + $0x1718] sm:$0xff]  ;;  %v936_v25 = vld [vmem:[%s13510_s1 + $0x808] sm:$0xff] }
 0x161   : > { %3681 = vmatmul.mubr.f32.vlgmr.msra.gmra.mrb[16].mxu1 %v7837_v46  ;;  %v1393_v35 = vld [vmem:[%s13510_s1 + $0x1650] sm:$0xff]  ;;  %v7182_v46 = vpack.c.bf16 %v864_v41, %v861_v40  ;;  %v882_v21 = vld [vmem:[%s13510_s1 + $0x658] sm:$0xff]  ;;  %v6618_v22 = vpack.c.bf16 %v1421_v15, %v1418_v14  ;;  %v1444_v15 = vld [vmem:[%s13510_s1 + $0x17e8] sm:$0xff] }
 0x162   : > { %7161 = vmatpush3.bf16.msra.mxu1 %v7160_v36  ;;  %3685 = vmatprep.mubr.f32.mxu1 %v7838_v51  ;;  %v807_v36 = vld [vmem:[%s13510_s1 + $0x400] sm:$0xff]  ;;  %v6604_v45 = vpack.c.bf16 %v1396_v39, %v1393_v35  ;;  %v1402_v51 = vld [vmem:[%s13510_s1 + $0x1698] sm:$0xff]  ;;  %v888_v35 = vld [vmem:[%s13510_s1 + $0x688] sm:$0xff] }
 0x163   : > { %6585 = vmatpush1.bf16.msra.mxu0 %v6584_v37  ;;  %7163 = vmatprep.subr.bf16.mxu1 %v7162_v38  ;;  %v810_v37 = vld [vmem:[%s13510_s1 + $0x418] sm:$0xff]  ;;  %v6602_v38 = vpack.c.bf16 %v1397_v29, %v1394_v28  ;;  %v6608_v57 = vpack.c.bf16 %v1402_v51, %v1399_v47  ;;  %v1427_v28 = vld [vmem:[%s13510_s1 + $0x1760] sm:$0xff]  ;;  %v1433_v41 = vld [vmem:[%s13510_s1 + $0x1790] sm:$0xff] }
 0x164   : > { %6587 = vmatprep.subr.bf16.mxu0 %v6586_v42  ;;  %2803 = vmatmul.mubr.f32.gmra.mrb[4].mxu0 %v627_v49  ;;  %v1400_v42 = vld [vmem:[%s13510_s1 + $0x1688] sm:$0xff]  ;;  %v7180_v44 = vpack.c.bf16 %v810_v37, %v807_v36  ;;  %v6622_v36 = vpack.c.bf16 %v1427_v28, %v1424_v27  ;;  %v1426_v37 = vld [vmem:[%s13510_s1 + $0x1758] sm:$0xff]  ;;  %v1429_v47 = vld [vmem:[%s13510_s1 + $0x1770] sm:$0xff] }
 0x165   : > { %3686 = vmatmul.mubr.f32.gmra.mrb[18].mxu1 %v7839_v0  ;;  %2808 = vmatprep.mubr.f32.mxu0 %v660_v52  ;;  %v816_v49 = vld [vmem:[%s13510_s1 + $0x448] sm:$0xff]  ;;  %v867_v52 = vld [vmem:[%s13510_s1 + $0x5e0] sm:$0xff]  ;;  %v921_v0 = vld [vmem:[%s13510_s1 + $0x790] sm:$0xff] }
 0x166   : > { %7165 = vmatpush3.bf16.msra.mxu1 %v7164_v50  ;;  %3690 = vmatprep.mubr.f32.mxu1 %v7840_v3  ;;  %v6606_v50 = vpack.c.bf16 %v1403_v43, %v1400_v42  ;;  %v7184_v56 = vpack.c.bf16 %v816_v49, %v813_v48  ;;  %v1415_v3 = vld [vmem:[%s13510_s1 + $0x1700] sm:$0xff]  ;;  %v942_v39 = vld [vmem:[%s13510_s1 + $0x838] sm:$0xff]  ;;  %v7847_v42 = vld [vmem:[%s8579_s9 + $0x110] sm:$0xff] }
 0x167   : > { %6589 = vmatpush1.bf16.msra.mxu0 %v6588_v53  ;;  %7167 = vmatprep.subr.bf16.mxu1 %v7166_v54  ;;  %v870_v53 = vld [vmem:[%s13510_s1 + $0x5f8] sm:$0xff]  ;;  %v891_v48 = vld [vmem:[%s13510_s1 + $0x6a0] sm:$0xff]  ;;  %v1432_v51 = vld [vmem:[%s13510_s1 + $0x1788] sm:$0xff] }
 0x168   : > { %6591 = vmatprep.subr.bf16.mxu0 %v6590_v58  ;;  %2809 = vmatmul.mubr.f32.gmra.mrb[6].mxu0 %v659_v1  ;;  %v1406_v54 = vld [vmem:[%s13510_s1 + $0x16b8] sm:$0xff]  ;;  %v7186_v58 = vpack.c.bf16 %v870_v53, %v867_v52  ;;  %v924_v1 = vld [vmem:[%s13510_s1 + $0x7a8] sm:$0xff]  ;;  %v945_v52 = vld [vmem:[%s13510_s1 + $0x850] sm:$0xff] }
 0x169   : > { %3691 = vmatmul.mubr.f32.gmra.mrb[20].mxu1 %v7841_v16  ;;  %2879 = vmatprep.mubr.f32.mxu0 %v566_v4  ;;  %v6610_v62 = vpack.c.bf16 %v1409_v55, %v1406_v54  ;;  %v7188_v4 = vpack.c.bf16 %v822_v61, %v819_v60  ;;  %v7192_v16 = vpack.c.bf16 %v876_v9, %v873_v8  ;;  %v1430_v40 = vld [vmem:[%s13510_s1 + $0x1778] sm:$0xff]  ;;  %v948_v53 = vld [vmem:[%s13510_s1 + $0x868] sm:$0xff]  ;;  %v1439_v55 = vld [vmem:[%s13510_s1 + $0x17c0] sm:$0xff] }
 0x16a   : > { %7169 = vmatpush3.bf16.msra.mxu1 %v7168_v2  ;;  %3695 = vmatprep.mubr.f32.mxu1 %v7842_v18  ;;  %v1412_v2 = vld [vmem:[%s13510_s1 + $0x16e8] sm:$0xff]  ;;  %v7194_v18 = vpack.c.bf16 %v930_v13, %v927_v12  ;;  %v894_v49 = vld [vmem:[%s13510_s1 + $0x6b8] sm:$0xff]  ;;  %v7206_v60 = vpack.c.bf16 %v948_v53, %v945_v52  ;;  %v1435_v61 = vld [vmem:[%s13510_s1 + $0x17a0] sm:$0xff] }
 0x16b   : > { %6593 = vmatpush1.bf16.msra.mxu0 %v6592_v5  ;;  %7171 = vmatprep.subr.bf16.mxu1 %v7170_v6  ;;  %v6612_v5 = vpack.c.bf16 %v1408_v63, %v1405_v59  ;;  %v7190_v6 = vpack.c.bf16 %v924_v1, %v921_v0  ;;  %v1436_v54 = vld [vmem:[%s13510_s1 + $0x17a8] sm:$0xff]  ;;  %v6628_v59 = vpack.c.bf16 %v1432_v51, %v1429_v47  ;;  %v1438_v1 = vld [vmem:[%s13510_s1 + $0x17b8] sm:$0xff]  ;;  %v903_v12 = vld [vmem:[%s13510_s1 + $0x700] sm:$0xff] }
 0x16c   : > { %6595 = vmatprep.subr.bf16.mxu0 %v6594_v10  ;;  %v6614_v10 = vpack.c.bf16 %v1415_v3, %v1412_v2  ;;  %v900_v63 = vld [vmem:[%s13510_s1 + $0x6e8] sm:$0xff]  ;;  %v6630_v0 = vpack.c.bf16 %v1439_v55, %v1436_v54  ;;  %v951_v2 = vld [vmem:[%s13510_s1 + $0x880] sm:$0xff]  ;;  %v954_v3 = vld [vmem:[%s13510_s1 + $0x898] sm:$0xff]  ;;  %v6632_v9 = vpack.c.bf16 %v1438_v1, %v1435_v61 }
 0x16d   : > { %3696 = vmatmul.mubr.f32.gmra.mrb[22].mxu1 %v7843_v30  ;;  %v7846_v30 = vld [vmem:[%s8579_s9 + $0x118] sm:$0xff]  ;;  %v7852_v8 = vld [vmem:[%s8579_s9 + $0x28] sm:$0xff]  ;;  %v963_v28 = vld [vmem:[%s13510_s1 + $0x8e0] sm:$0xff] }
 0x16e   : > { %7173 = vmatpush3.bf16.msra.mxu1 %v7172_v17  ;;  %3765 = vmatprep.mubr.f32.mxu1 %v7844_v32  ;;  %v6616_v17 = vpack.c.bf16 %v1414_v11, %v1411_v7  ;;  %v1441_v11 = vld [vmem:[%s13510_s1 + $0x17d0] sm:$0xff]  ;;  %v906_v13 = vld [vmem:[%s13510_s1 + $0x718] sm:$0xff]  ;;  %v1459_v47 = vld [vmem:[%s13510_s1 + $0x1860] sm:$0xff] }
 0x16f   : > { %6597 = vmatpush1.bf16.msra.mxu0 %v6596_v19  ;;  %7175 = vmatprep.subr.bf16.mxu1 %v7174_v20  ;;  %v1417_v19 = vld [vmem:[%s13510_s1 + $0x1710] sm:$0xff]  ;;  %v879_v20 = vld [vmem:[%s13510_s1 + $0x640] sm:$0xff]  ;;  %v1450_v27 = vld [vmem:[%s13510_s1 + $0x1818] sm:$0xff] }
 0x170   : > { %6599 = vmatprep.subr.bf16.mxu0 %v6598_v24  ;;  %v933_v24 = vld [vmem:[%s13510_s1 + $0x7f0] sm:$0xff]  ;;  %v7196_v29 = vpack.c.bf16 %v882_v21, %v879_v20  ;;  %v7212_v20 = vpack.c.bf16 %v906_v13, %v903_v12  ;;  %v6636_v21 = vpack.c.bf16 %v1444_v15, %v1441_v11  ;;  %v972_v51 = vld [vmem:[%s13510_s1 + $0x928] sm:$0xff]  ;;  %v1462_v54 = vld [vmem:[%s13510_s1 + $0x1878] sm:$0xff] }
 0x171   : > { %v7198_v32 = vpack.c.bf16 %v936_v25, %v933_v24  ;;  %v909_v24 = vld [vmem:[%s13510_s1 + $0x730] sm:$0xff]  ;;  %v912_v25 = vld [vmem:[%s13510_s1 + $0x748] sm:$0xff]  ;;  %v1023_v55 = vld [vmem:[%s13510_s1 + $0xac0] sm:$0xff]  ;;  %v6648_v61 = vpack.c.bf16 %v1462_v54, %v1459_v47 }
 0x172   : > { %7177 = vmatpush3.bf16.msra.mxu1 %v7176_v31  ;;  %v6620_v31 = vpack.c.bf16 %v1420_v23, %v1417_v19  ;;  %v1451_v19 = vld [vmem:[%s13510_s1 + $0x1820] sm:$0xff]  ;;  %v597_v52 = vld [vmem:[%s8579_s9 + $0x170] sm:$0xff]  ;;  %v978_v1 = vld [vmem:[%s13510_s1 + $0x958] sm:$0xff] }
 0x173   : > { %6601 = vmatpush1.bf16.msra.mxu0 %v6600_v33  ;;  %7179 = vmatprep.subr.bf16.mxu1 %v7178_v34  ;;  %v1423_v33 = vld [vmem:[%s13510_s1 + $0x1740] sm:$0xff]  ;;  %v885_v34 = vld [vmem:[%s13510_s1 + $0x670] sm:$0xff]  ;;  %v662_v12 = vld [vmem:[%s8579_s9 + $0x378] sm:$0xff] }
 0x174   : > { %6603 = vmatprep.subr.bf16.mxu0 %v6602_v38  ;;  %v939_v38 = vld [vmem:[%s13510_s1 + $0x820] sm:$0xff]  ;;  %v7200_v43 = vpack.c.bf16 %v888_v35, %v885_v34  ;;  %v996_v47 = vld [vmem:[%s13510_s1 + $0x9e8] sm:$0xff]  ;;  %v1493_v54 = vld [vmem:[%s13510_s1 + $0x1970] sm:$0xff] }
 0x175   : > { %v1447_v23 = vld [vmem:[%s13510_s1 + $0x1800] sm:$0xff] }
 0x176   : > { %7181 = vmatpush3.bf16.msra.mxu1 %v7180_v44  ;;  %v7848_v44 = vld [vmem:[%s8579_s9 + $0x218] sm:$0xff]  ;;  %v6640_v34 = vpack.c.bf16 %v1450_v27, %v1447_v23  ;;  %v1471_v15 = vld [vmem:[%s13510_s1 + $0x18c0] sm:$0xff] }
 0x177   : > { %6605 = vmatpush1.bf16.msra.mxu0 %v6604_v45  ;;  %7183 = vmatprep.subr.bf16.mxu1 %v7182_v46  ;;  %v6624_v45 = vpack.c.bf16 %v1426_v37, %v1423_v33  ;;  %v7202_v46 = vpack.c.bf16 %v942_v39, %v939_v38  ;;  %v7216_v33 = vpack.c.bf16 %v912_v25, %v909_v24  ;;  %v915_v37 = vld [vmem:[%s13510_s1 + $0x760] sm:$0xff]  ;;  %v918_v38 = vld [vmem:[%s13510_s1 + $0x778] sm:$0xff]  ;;  %v1481_v24 = vld [vmem:[%s13510_s1 + $0x1910] sm:$0xff] }
 0x178   : > { %6607 = vmatprep.subr.bf16.mxu0 %v6606_v50  ;;  %v6626_v50 = vpack.c.bf16 %v1433_v41, %v1430_v40  ;;  %v1456_v40 = vld [vmem:[%s13510_s1 + $0x1848] sm:$0xff]  ;;  %v1017_v41 = vld [vmem:[%s13510_s1 + $0xa90] sm:$0xff]  ;;  %v1478_v23 = vld [vmem:[%s13510_s1 + $0x18f8] sm:$0xff] }
 0x179   : > { %v661_v25 = vld [vmem:[%s8579_s9 + $0x370] sm:$0xff] }
 0x17a   : > { %7185 = vmatpush3.bf16.msra.mxu1 %v7184_v56  ;;  %v7849_v56 = vld [vmem:[%s8579_s9 + $0x210] sm:$0xff] }
 0x17b   : > { %6609 = vmatpush1.bf16.msra.mxu0 %v6608_v57  ;;  %7187 = vmatprep.subr.bf16.mxu1 %v7186_v58  ;;  %v7204_v57 = vpack.c.bf16 %v894_v49, %v891_v48  ;;  %v7850_v58 = vld [vmem:[%s8579_s9 + $0x318] sm:$0xff] }
 0x17c   : > { %6611 = vmatprep.subr.bf16.mxu0 %v6610_v62  ;;  %v897_v62 = vld [vmem:[%s13510_s1 + $0x6d0] sm:$0xff] }
 0x17d   : > { %v7208_v7 = vpack.c.bf16 %v900_v63, %v897_v62  ;;  %v1465_v63 = vld [vmem:[%s13510_s1 + $0x1890] sm:$0xff] }
 0x17e   : > { %7189 = vmatpush3.bf16.msra.mxu1 %v7188_v4  ;;  %v1442_v4 = vld [vmem:[%s13510_s1 + $0x17d8] sm:$0xff] }
 0x17f   : > { %6613 = vmatpush1.bf16.msra.mxu0 %v6612_v5  ;;  %7191 = vmatprep.subr.bf16.mxu1 %v7190_v6  ;;  %v1445_v5 = vld [vmem:[%s13510_s1 + $0x17f0] sm:$0xff] }
 0x180   : > { %6615 = vmatprep.subr.bf16.mxu0 %v6614_v10  ;;  %v7851_v6 = vld [vmem:[%s8579_s9 + $0x310] sm:$0xff]  ;;  %v7210_v10 = vpack.c.bf16 %v954_v3, %v951_v2  ;;  %v6634_v14 = vpack.c.bf16 %v1445_v5, %v1442_v4  ;;  %v1468_v3 = vld [vmem:[%s13510_s1 + $0x18a8] sm:$0xff] }
 0x181   : > { %3766 = vmatmul.mubr.f32.vlgmr.msra.gmra.mrb[24].mxu1 %v7845_v26  ;;  %v1029_v4 = vld [vmem:[%s13510_s1 + $0xaf0] sm:$0xff]  ;;  %v1032_v5 = vld [vmem:[%s13510_s1 + $0xb08] sm:$0xff]  ;;  %v6652_v13 = vpack.c.bf16 %v1468_v3, %v1465_v63  ;;  %v1499_v3 = vld [vmem:[%s13510_s1 + $0x19a0] sm:$0xff] }
 0x182   : > { %7193 = vmatpush3.bf16.msra.mxu1 %v7192_v16  ;;  %3770 = vmatprep.mubr.f32.mxu1 %v7846_v30  ;;  %v957_v16 = vld [vmem:[%s13510_s1 + $0x8b0] sm:$0xff]  ;;  %v1454_v30 = vld [vmem:[%s13510_s1 + $0x1838] sm:$0xff]  ;;  %v1492_v63 = vld [vmem:[%s13510_s1 + $0x1968] sm:$0xff] }
 0x183   : > { %6617 = vmatpush1.bf16.msra.mxu0 %v6616_v17  ;;  %7195 = vmatprep.subr.bf16.mxu1 %v7194_v18  ;;  %v960_v17 = vld [vmem:[%s13510_s1 + $0x8c8] sm:$0xff] }
 0x184   : > { %6619 = vmatprep.subr.bf16.mxu0 %v6618_v22  ;;  %v1448_v18 = vld [vmem:[%s13510_s1 + $0x1808] sm:$0xff]  ;;  %v7214_v22 = vpack.c.bf16 %v960_v17, %v957_v16  ;;  %v981_v16 = vld [vmem:[%s13510_s1 + $0x970] sm:$0xff] }
 0x185   : > { %3771 = vmatmul.mubr.f32.gmra.mrb[26].mxu1 %v7847_v42  ;;  %v6638_v26 = vpack.c.bf16 %v1451_v19, %v1448_v18  ;;  %v1020_v42 = vld [vmem:[%s13510_s1 + $0xaa8] sm:$0xff]  ;;  %v1474_v19 = vld [vmem:[%s13510_s1 + $0x18d8] sm:$0xff] }
 0x186   : > { %7197 = vmatpush3.bf16.msra.mxu1 %v7196_v29  ;;  %3775 = vmatprep.mubr.f32.mxu1 %v7848_v44  ;;  %v966_v29 = vld [vmem:[%s13510_s1 + $0x8f8] sm:$0xff]  ;;  %v1463_v44 = vld [vmem:[%s13510_s1 + $0x1880] sm:$0xff]  ;;  %v7222_v49 = vpack.c.bf16 %v1020_v42, %v1017_v41  ;;  %v984_v17 = vld [vmem:[%s13510_s1 + $0x988] sm:$0xff] }
 0x187   : > { %6621 = vmatpush1.bf16.msra.mxu0 %v6620_v31  ;;  %7199 = vmatprep.subr.bf16.mxu1 %v7198_v32  ;;  %v1457_v31 = vld [vmem:[%s13510_s1 + $0x1850] sm:$0xff]  ;;  %v7218_v35 = vpack.c.bf16 %v966_v29, %v963_v28  ;;  %v7232_v27 = vpack.c.bf16 %v984_v17, %v981_v16  ;;  %v568_v28 = vld [vmem:[%s8579_s9 + $0x88] sm:$0xff]  ;;  %v6656_v29 = vpack.c.bf16 %v1474_v19, %v1471_v15 }
 0x188   : > { %6623 = vmatprep.subr.bf16.mxu0 %v6622_v36  ;;  %v565_v32 = vld [vmem:[%s8579_s9 + $0x70] sm:$0xff]  ;;  %v6642_v39 = vpack.c.bf16 %v1457_v31, %v1454_v30  ;;  %v7858_v41 = vld [vmem:[%s8579_s9 + $0x328] sm:$0xff] }
 0x189   : > { %3776 = vmatmul.mubr.f32.gmra.mrb[28].mxu1 %v7849_v56  ;;  %v1453_v36 = vld [vmem:[%s13510_s1 + $0x1830] sm:$0xff]  ;;  %v1026_v56 = vld [vmem:[%s13510_s1 + $0xad8] sm:$0xff] }
 0x18a   : > { %7201 = vmatpush3.bf16.msra.mxu1 %v7200_v43  ;;  %3780 = vmatprep.mubr.f32.mxu1 %v7850_v58  ;;  %v1460_v43 = vld [vmem:[%s13510_s1 + $0x1868] sm:$0xff]  ;;  %v6644_v48 = vpack.c.bf16 %v1456_v40, %v1453_v36  ;;  %v1469_v58 = vld [vmem:[%s13510_s1 + $0x18b0] sm:$0xff]  ;;  %v7226_v62 = vpack.c.bf16 %v1026_v56, %v1023_v55  ;;  %v1487_v40 = vld [vmem:[%s13510_s1 + $0x1940] sm:$0xff] }
 0x18b   : > { %6625 = vmatpush1.bf16.msra.mxu0 %v6624_v45  ;;  %7203 = vmatprep.subr.bf16.mxu1 %v7202_v46  ;;  %v598_v45 = vld [vmem:[%s8579_s9 + $0x178] sm:$0xff]  ;;  %v7220_v46 = vpack.c.bf16 %v918_v38, %v915_v37  ;;  %v6646_v53 = vpack.c.bf16 %v1463_v44, %v1460_v43  ;;  %v1477_v31 = vld [vmem:[%s13510_s1 + $0x18f0] sm:$0xff]  ;;  %v1044_v37 = vld [vmem:[%s13510_s1 + $0xb68] sm:$0xff] }
 0x18c   : > { %6627 = vmatprep.subr.bf16.mxu0 %v6626_v50  ;;  %v969_v50 = vld [vmem:[%s13510_s1 + $0x910] sm:$0xff]  ;;  %v7857_v38 = vld [vmem:[%s8579_s9 + $0x220] sm:$0xff]  ;;  %v7860_v56 = vld [vmem:[%s8579_s9 + $0x38] sm:$0xff] }
 0x18d   : > { %3781 = vmatmul.mubr.f32.gmra.mrb[30].mxu1 %v7851_v6  ;;  %v7853_v6 = vld [vmem:[%s8579_s9 + $0x20] sm:$0xff]  ;;  %v1041_v36 = vld [vmem:[%s13510_s1 + $0xb50] sm:$0xff] }
 0x18e   : > { %7205 = vmatpush3.bf16.msra.mxu1 %v7204_v57  ;;  %3850 = vmatprep.mubr.f32.mxu1 %v7852_v8  ;;  %v1466_v57 = vld [vmem:[%s13510_s1 + $0x1898] sm:$0xff]  ;;  %v1475_v8 = vld [vmem:[%s13510_s1 + $0x18e0] sm:$0xff]  ;;  %v7238_v44 = vpack.c.bf16 %v1044_v37, %v1041_v36  ;;  %v1505_v15 = vld [vmem:[%s13510_s1 + $0x19d0] sm:$0xff] }
 0x18f   : > { %6629 = vmatpush1.bf16.msra.mxu0 %v6628_v59  ;;  %7207 = vmatprep.subr.bf16.mxu1 %v7206_v60  ;;  %v630_v59 = vld [vmem:[%s8579_s9 + $0x278] sm:$0xff]  ;;  %v7224_v60 = vpack.c.bf16 %v972_v51, %v969_v50  ;;  %v6650_v2 = vpack.c.bf16 %v1469_v58, %v1466_v57  ;;  %v1047_v50 = vld [vmem:[%s13510_s1 + $0xb80] sm:$0xff]  ;;  %v1501_v19 = vld [vmem:[%s13510_s1 + $0x19b0] sm:$0xff] }
 0x190   : > { %6631 = vmatprep.subr.bf16.mxu0 %v6630_v0  ;;  %v975_v0 = vld [vmem:[%s13510_s1 + $0x940] sm:$0xff]  ;;  %v1050_v51 = vld [vmem:[%s13510_s1 + $0xb98] sm:$0xff] }
 0x191   : > { %v7228_v11 = vpack.c.bf16 %v978_v1, %v975_v0  ;;  %v7242_v58 = vpack.c.bf16 %v1050_v51, %v1047_v50  ;;  %v1053_v0 = vld [vmem:[%s13510_s1 + $0xbb0] sm:$0xff]  ;;  %v1056_v1 = vld [vmem:[%s13510_s1 + $0xbc8] sm:$0xff]  ;;  %v1119_v36 = vld [vmem:[%s13510_s1 + $0xdc0] sm:$0xff] }
 0x192   : > { %7209 = vmatpush3.bf16.msra.mxu1 %v7208_v7  ;;  %v1472_v7 = vld [vmem:[%s13510_s1 + $0x18c8] sm:$0xff]  ;;  %v1122_v37 = vld [vmem:[%s13510_s1 + $0xdd8] sm:$0xff]  ;;  %v7861_v50 = vld [vmem:[%s8579_s9 + $0x30] sm:$0xff] }
 0x193   : > { %6633 = vmatpush1.bf16.msra.mxu0 %v6632_v9  ;;  %7211 = vmatprep.subr.bf16.mxu1 %v7210_v10  ;;  %v629_v9 = vld [vmem:[%s8579_s9 + $0x270] sm:$0xff]  ;;  %v7854_v10 = vld [vmem:[%s8579_s9 + $0x128] sm:$0xff]  ;;  %v6654_v18 = vpack.c.bf16 %v1475_v8, %v1472_v7  ;;  %v1495_v7 = vld [vmem:[%s13510_s1 + $0x1980] sm:$0xff] }
 0x194   : > { %6635 = vmatprep.subr.bf16.mxu0 %v6634_v14  ;;  %v7230_v14 = vpack.c.bf16 %v1032_v5, %v1029_v4  ;;  %v1005_v8 = vld [vmem:[%s13510_s1 + $0xa30] sm:$0xff]  ;;  %v1520_v51 = vld [vmem:[%s13510_s1 + $0x1a48] sm:$0xff] }
 0x196   : > { %7213 = vmatpush3.bf16.msra.mxu1 %v7212_v20  ;;  %v1035_v20 = vld [vmem:[%s13510_s1 + $0xb20] sm:$0xff] }
 0x197   : > { %6637 = vmatpush1.bf16.msra.mxu0 %v6636_v21  ;;  %7215 = vmatprep.subr.bf16.mxu1 %v7214_v22  ;;  %v1038_v21 = vld [vmem:[%s13510_s1 + $0xb38] sm:$0xff]  ;;  %v7855_v22 = vld [vmem:[%s8579_s9 + $0x120] sm:$0xff] }
 0x198   : > { %6639 = vmatprep.subr.bf16.mxu0 %v6638_v26  ;;  %v7856_v26 = vld [vmem:[%s8579_s9 + $0x228] sm:$0xff]  ;;  %v7234_v30 = vpack.c.bf16 %v1038_v21, %v1035_v20  ;;  %v1011_v20 = vld [vmem:[%s13510_s1 + $0xa60] sm:$0xff]  ;;  %v1014_v21 = vld [vmem:[%s13510_s1 + $0xa78] sm:$0xff] }
 0x19a   : > { %2880 = vmatmul.mubr.f32.vlgmr.msra.gmra.mrb[0].mxu0 %v565_v32  ;;  %7217 = vmatpush3.bf16.msra.mxu1 %v7216_v33  ;;  %v987_v32 = vld [vmem:[%s13510_s1 + $0x9a0] sm:$0xff]  ;;  %v990_v33 = vld [vmem:[%s13510_s1 + $0x9b8] sm:$0xff] }
 0x19b   : > { %6641 = vmatpush1.bf16.msra.mxu0 %v6640_v34  ;;  %7219 = vmatprep.subr.bf16.mxu1 %v7218_v35  ;;  %v6658_v34 = vpack.c.bf16 %v1481_v24, %v1478_v23  ;;  %v1480_v35 = vld [vmem:[%s13510_s1 + $0x1908] sm:$0xff]  ;;  %v7236_v42 = vpack.c.bf16 %v990_v33, %v987_v32  ;;  %v1113_v24 = vld [vmem:[%s13510_s1 + $0xd90] sm:$0xff] }
 0x19c   : > { %6643 = vmatprep.subr.bf16.mxu0 %v6642_v39  ;;  %2885 = vmatprep.mubr.f32.mxu0 %v598_v45  ;;  %v1484_v39 = vld [vmem:[%s13510_s1 + $0x1928] sm:$0xff]  ;;  %v6660_v43 = vpack.c.bf16 %v1480_v35, %v1477_v31  ;;  %v1483_v45 = vld [vmem:[%s13510_s1 + $0x1920] sm:$0xff]  ;;  %v1065_v32 = vld [vmem:[%s13510_s1 + $0xc10] sm:$0xff] }
 0x19d   : > { %v1504_v23 = vld [vmem:[%s13510_s1 + $0x19c8] sm:$0xff]  ;;  %v1507_v31 = vld [vmem:[%s13510_s1 + $0x19e0] sm:$0xff]  ;;  %v1510_v35 = vld [vmem:[%s13510_s1 + $0x19f8] sm:$0xff] }
 0x19e   : > { %7221 = vmatpush3.bf16.msra.mxu1 %v7220_v46  ;;  %2886 = vmatmul.mubr.f32.gmra.mrb[2].mxu0 %v597_v52  ;;  %v993_v46 = vld [vmem:[%s13510_s1 + $0x9d0] sm:$0xff]  ;;  %v7859_v52 = vld [vmem:[%s8579_s9 + $0x320] sm:$0xff]  ;;  %v1068_v33 = vld [vmem:[%s13510_s1 + $0xc28] sm:$0xff] }
 0x19f   : > { %6645 = vmatpush1.bf16.msra.mxu0 %v6644_v48  ;;  %7223 = vmatprep.subr.bf16.mxu1 %v7222_v49  ;;  %v6662_v48 = vpack.c.bf16 %v1487_v40, %v1484_v39  ;;  %v1486_v49 = vld [vmem:[%s13510_s1 + $0x1938] sm:$0xff]  ;;  %v7240_v55 = vpack.c.bf16 %v996_v47, %v993_v46  ;;  %v1517_v39 = vld [vmem:[%s13510_s1 + $0x1a30] sm:$0xff]  ;;  %v7256_v40 = vpack.c.bf16 %v1068_v33, %v1065_v32  ;;  %v1516_v47 = vld [vmem:[%s13510_s1 + $0x1a28] sm:$0xff] }
 0x1a0   : > { %6647 = vmatprep.subr.bf16.mxu0 %v6646_v53  ;;  %2891 = vmatprep.mubr.f32.mxu0 %v630_v59  ;;  %v1490_v53 = vld [vmem:[%s13510_s1 + $0x1958] sm:$0xff]  ;;  %v6664_v57 = vpack.c.bf16 %v1486_v49, %v1483_v45  ;;  %v1489_v59 = vld [vmem:[%s13510_s1 + $0x1950] sm:$0xff]  ;;  %v1128_v49 = vld [vmem:[%s13510_s1 + $0xe08] sm:$0xff] }
 0x1a1   : > { %3851 = vmatmul.mubr.f32.vlgmr.msra.gmra.mrb[32].mxu1 %v7853_v6  ;;  %v6668_v5 = vpack.c.bf16 %v1492_v63, %v1489_v59  ;;  %v7246_v6 = vpack.c.bf16 %v1056_v1, %v1053_v0  ;;  %v1074_v45 = vld [vmem:[%s13510_s1 + $0xc58] sm:$0xff]  ;;  %v1080_v59 = vld [vmem:[%s13510_s1 + $0xc88] sm:$0xff]  ;;  %v7863_v0 = vld [vmem:[%s8579_s9 + $0x130] sm:$0xff] }
 0x1a2   : > { %7225 = vmatpush3.bf16.msra.mxu1 %v7224_v60  ;;  %3855 = vmatprep.mubr.f32.mxu1 %v7854_v10  ;;  %v999_v60 = vld [vmem:[%s13510_s1 + $0xa00] sm:$0xff]  ;;  %v1134_v63 = vld [vmem:[%s13510_s1 + $0xe38] sm:$0xff]  ;;  %v7868_v32 = vld [vmem:[%s8579_s9 + $0x48] sm:$0xff] }
 0x1a3   : > { %6649 = vmatpush1.bf16.msra.mxu0 %v6648_v61  ;;  %7227 = vmatprep.subr.bf16.mxu1 %v7226_v62  ;;  %v1002_v61 = vld [vmem:[%s13510_s1 + $0xa18] sm:$0xff]  ;;  %v6666_v62 = vpack.c.bf16 %v1493_v54, %v1490_v53 }
 0x1a4   : > { %6651 = vmatprep.subr.bf16.mxu0 %v6650_v2  ;;  %2892 = vmatmul.mubr.f32.gmra.mrb[4].mxu0 %v629_v9  ;;  %v1496_v2 = vld [vmem:[%s13510_s1 + $0x1988] sm:$0xff]  ;;  %v7244_v4 = vpack.c.bf16 %v1002_v61, %v999_v60  ;;  %v7862_v53 = vld [vmem:[%s8579_s9 + $0x138] sm:$0xff] }
 0x1a5   : > { %3856 = vmatmul.mubr.f32.gmra.mrb[34].mxu1 %v7855_v22  ;;  %2897 = vmatprep.mubr.f32.mxu0 %v662_v12  ;;  %v1008_v9 = vld [vmem:[%s13510_s1 + $0xa48] sm:$0xff]  ;;  %v6670_v10 = vpack.c.bf16 %v1499_v3, %v1496_v2  ;;  %v1059_v12 = vld [vmem:[%s13510_s1 + $0xbe0] sm:$0xff]  ;;  %v1522_v61 = vld [vmem:[%s13510_s1 + $0x1a58] sm:$0xff] }
 0x1a6   : > { %7229 = vmatpush3.bf16.msra.mxu1 %v7228_v11  ;;  %3860 = vmatprep.mubr.f32.mxu1 %v7856_v26  ;;  %v1498_v11 = vld [vmem:[%s13510_s1 + $0x1998] sm:$0xff]  ;;  %v7248_v16 = vpack.c.bf16 %v1008_v9, %v1005_v8  ;;  %v1508_v26 = vld [vmem:[%s13510_s1 + $0x19e8] sm:$0xff]  ;;  %v1529_v2 = vld [vmem:[%s13510_s1 + $0x1a90] sm:$0xff] }
 0x1a7   : > { %6653 = vmatpush1.bf16.msra.mxu0 %v6652_v13  ;;  %7231 = vmatprep.subr.bf16.mxu1 %v7230_v14  ;;  %v1062_v13 = vld [vmem:[%s13510_s1 + $0xbf8] sm:$0xff]  ;;  %v6672_v17 = vpack.c.bf16 %v1498_v11, %v1495_v7  ;;  %v1525_v7 = vld [vmem:[%s13510_s1 + $0x1a70] sm:$0xff]  ;;  %v1083_v8 = vld [vmem:[%s13510_s1 + $0xca0] sm:$0xff] }
 0x1a8   : > { %6655 = vmatprep.subr.bf16.mxu0 %v6654_v18  ;;  %2898 = vmatmul.mubr.f32.gmra.mrb[6].mxu0 %v661_v25  ;;  %v1502_v14 = vld [vmem:[%s13510_s1 + $0x19b8] sm:$0xff]  ;;  %v7250_v18 = vpack.c.bf16 %v1062_v13, %v1059_v12  ;;  %v1116_v25 = vld [vmem:[%s13510_s1 + $0xda8] sm:$0xff]  ;;  %v1137_v12 = vld [vmem:[%s13510_s1 + $0xe50] sm:$0xff] }
 0x1a9   : > { %3861 = vmatmul.mubr.f32.gmra.mrb[36].mxu1 %v7857_v38  ;;  %2968 = vmatprep.mubr.f32.mxu0 %v568_v28  ;;  %v6674_v22 = vpack.c.bf16 %v1505_v15, %v1502_v14  ;;  %v7252_v28 = vpack.c.bf16 %v1014_v21, %v1011_v20  ;;  %v1514_v38 = vld [vmem:[%s13510_s1 + $0x1a18] sm:$0xff]  ;;  %v1528_v11 = vld [vmem:[%s13510_s1 + $0x1a88] sm:$0xff]  ;;  %v7865_v14 = vld [vmem:[%s8579_s9 + $0x230] sm:$0xff] }
 0x1aa   : > { %7233 = vmatpush3.bf16.msra.mxu1 %v7232_v27  ;;  %3865 = vmatprep.mubr.f32.mxu1 %v7858_v41  ;;  %v1511_v27 = vld [vmem:[%s13510_s1 + $0x1a00] sm:$0xff]  ;;  %v6680_v41 = vpack.c.bf16 %v1510_v35, %v1507_v31  ;;  %v6682_v46 = vpack.c.bf16 %v1517_v39, %v1514_v38  ;;  %v1526_v1 = vld [vmem:[%s13510_s1 + $0x1a78] sm:$0xff]  ;;  %v1140_v13 = vld [vmem:[%s13510_s1 + $0xe68] sm:$0xff] }
 0x1ab   : > { %6657 = vmatpush1.bf16.msra.mxu0 %v6656_v29  ;;  %7235 = vmatprep.subr.bf16.mxu1 %v7234_v30  ;;  %v6676_v29 = vpack.c.bf16 %v1504_v23, %v1501_v19  ;;  %v7254_v30 = vpack.c.bf16 %v1116_v25, %v1113_v24  ;;  %v7864_v3 = vld [vmem:[%s8579_s9 + $0x238] sm:$0xff]  ;;  %v1532_v15 = vld [vmem:[%s13510_s1 + $0x1aa8] sm:$0xff]  ;;  %v6692_v19 = vpack.c.bf16 %v1528_v11, %v1525_v7  ;;  %v1531_v21 = vld [vmem:[%s13510_s1 + $0x1aa0] sm:$0xff] }
 0x1ac   : > { %6659 = vmatprep.subr.bf16.mxu0 %v6658_v34  ;;  %v6678_v34 = vpack.c.bf16 %v1511_v27, %v1508_v26  ;;  %v1086_v9 = vld [vmem:[%s13510_s1 + $0xcb8] sm:$0xff]  ;;  %v7270_v20 = vpack.c.bf16 %v1140_v13, %v1137_v12  ;;  %v1092_v23 = vld [vmem:[%s13510_s1 + $0xce8] sm:$0xff]  ;;  %v1143_v26 = vld [vmem:[%s13510_s1 + $0xe80] sm:$0xff] }
 0x1ad   : > { %3866 = vmatmul.mubr.f32.gmra.mrb[38].mxu1 %v7859_v52  ;;  %v1523_v52 = vld [vmem:[%s13510_s1 + $0x1a60] sm:$0xff]  ;;  %v1534_v25 = vld [vmem:[%s13510_s1 + $0x1ab8] sm:$0xff]  ;;  %v1537_v35 = vld [vmem:[%s13510_s1 + $0x1ad0] sm:$0xff] }
 0x1ae   : > { %7237 = vmatpush3.bf16.msra.mxu1 %v7236_v42  ;;  %3935 = vmatprep.mubr.f32.mxu1 %v7860_v56  ;;  %v7258_v42 = vpack.c.bf16 %v1122_v37, %v1119_v36  ;;  %v6686_v60 = vpack.c.bf16 %v1523_v52, %v1520_v51  ;;  %v1146_v27 = vld [vmem:[%s13510_s1 + $0xe98] sm:$0xff]  ;;  %v6696_v33 = vpack.c.bf16 %v1534_v25, %v1531_v21  ;;  %v1095_v36 = vld [vmem:[%s13510_s1 + $0xd00] sm:$0xff]  ;;  %v1540_v39 = vld [vmem:[%s13510_s1 + $0x1ae8] sm:$0xff] }
 0x1af   : > { %6661 = vmatpush1.bf16.msra.mxu0 %v6660_v43  ;;  %7239 = vmatprep.subr.bf16.mxu1 %v7238_v44  ;;  %v1513_v43 = vld [vmem:[%s13510_s1 + $0x1a10] sm:$0xff]  ;;  %v1071_v44 = vld [vmem:[%s13510_s1 + $0xc40] sm:$0xff]  ;;  %v1098_v37 = vld [vmem:[%s13510_s1 + $0xd18] sm:$0xff] }
 0x1b0   : > { %6663 = vmatprep.subr.bf16.mxu0 %v6662_v48  ;;  %v1125_v48 = vld [vmem:[%s13510_s1 + $0xdf0] sm:$0xff]  ;;  %v7260_v54 = vpack.c.bf16 %v1074_v45, %v1071_v44  ;;  %v7276_v44 = vpack.c.bf16 %v1098_v37, %v1095_v36  ;;  %v6700_v45 = vpack.c.bf16 %v1540_v39, %v1537_v35  ;;  %v1546_v51 = vld [vmem:[%s13510_s1 + $0x1b18] sm:$0xff]  ;;  %v1155_v52 = vld [vmem:[%s13510_s1 + $0xee0] sm:$0xff] }
 0x1b1   : > { %v7262_v56 = vpack.c.bf16 %v1128_v49, %v1125_v48  ;;  %v1101_v48 = vld [vmem:[%s13510_s1 + $0xd30] sm:$0xff]  ;;  %v1104_v49 = vld [vmem:[%s13510_s1 + $0xd48] sm:$0xff]  ;;  %v1555_v7 = vld [vmem:[%s13510_s1 + $0x1b60] sm:$0xff] }
 0x1b2   : > { %7241 = vmatpush3.bf16.msra.mxu1 %v7240_v55  ;;  %v6684_v55 = vpack.c.bf16 %v1516_v47, %v1513_v43  ;;  %v1547_v43 = vld [vmem:[%s13510_s1 + $0x1b20] sm:$0xff]  ;;  %v1164_v11 = vld [vmem:[%s13510_s1 + $0xf28] sm:$0xff]  ;;  %v1170_v25 = vld [vmem:[%s13510_s1 + $0xf58] sm:$0xff] }
 0x1b3   : > { %6665 = vmatpush1.bf16.msra.mxu0 %v6664_v57  ;;  %7243 = vmatprep.subr.bf16.mxu1 %v7242_v58  ;;  %v1519_v57 = vld [vmem:[%s13510_s1 + $0x1a40] sm:$0xff]  ;;  %v1077_v58 = vld [vmem:[%s13510_s1 + $0xc70] sm:$0xff]  ;;  %v664_v36 = vld [vmem:[%s8579_s9 + $0x388] sm:$0xff] }
 0x1b4   : > { %6667 = vmatprep.subr.bf16.mxu0 %v6666_v62  ;;  %v1131_v62 = vld [vmem:[%s13510_s1 + $0xe20] sm:$0xff] }
 0x1b5   : > { %v1543_v47 = vld [vmem:[%s13510_s1 + $0x1b00] sm:$0xff] }
 0x1b6   : > { %7245 = vmatpush3.bf16.msra.mxu1 %v7244_v4  ;;  %v7264_v4 = vpack.c.bf16 %v1080_v59, %v1077_v58  ;;  %v6704_v58 = vpack.c.bf16 %v1546_v51, %v1543_v47  ;;  %v599_v12 = vld [vmem:[%s8579_s9 + $0x180] sm:$0xff]  ;;  %v1574_v47 = vld [vmem:[%s13510_s1 + $0x1bf8] sm:$0xff] }
 0x1b7   : > { %6669 = vmatpush1.bf16.msra.mxu0 %v6668_v5  ;;  %7247 = vmatprep.subr.bf16.mxu1 %v7246_v6  ;;  %v6688_v5 = vpack.c.bf16 %v1522_v61, %v1519_v57  ;;  %v7266_v6 = vpack.c.bf16 %v1134_v63, %v1131_v62  ;;  %v7280_v57 = vpack.c.bf16 %v1104_v49, %v1101_v48  ;;  %v1107_v61 = vld [vmem:[%s13510_s1 + $0xd60] sm:$0xff]  ;;  %v1110_v62 = vld [vmem:[%s13510_s1 + $0xd78] sm:$0xff]  ;;  %v1577_v48 = vld [vmem:[%s13510_s1 + $0x1c10] sm:$0xff] }
 0x1b8   : > { %6671 = vmatprep.subr.bf16.mxu0 %v6670_v10  ;;  %v6690_v10 = vpack.c.bf16 %v1529_v2, %v1526_v1  ;;  %v1209_v1 = vld [vmem:[%s13510_s1 + $0x1090] sm:$0xff]  ;;  %v1212_v2 = vld [vmem:[%s13510_s1 + $0x10a8] sm:$0xff]  ;;  %v1567_v39 = vld [vmem:[%s13510_s1 + $0x1bc0] sm:$0xff] }
 0x1b9   : > { %v663_v49 = vld [vmem:[%s8579_s9 + $0x380] sm:$0xff] }
 0x1ba   : > { %7249 = vmatpush3.bf16.msra.mxu1 %v7248_v16  ;;  %v1535_v16 = vld [vmem:[%s13510_s1 + $0x1ac0] sm:$0xff] }
 0x1bb   : > { %6673 = vmatpush1.bf16.msra.mxu0 %v6672_v17  ;;  %7251 = vmatprep.subr.bf16.mxu1 %v7250_v18  ;;  %v7866_v17 = vld [vmem:[%s8579_s9 + $0x338] sm:$0xff]  ;;  %v7268_v18 = vpack.c.bf16 %v1086_v9, %v1083_v8  ;;  %v6694_v24 = vpack.c.bf16 %v1535_v16, %v1532_v15  ;;  %v7286_v9 = vpack.c.bf16 %v1212_v2, %v1209_v1  ;;  %v1215_v15 = vld [vmem:[%s13510_s1 + $0x10c0] sm:$0xff]  ;;  %v7874_v1 = vld [vmem:[%s8579_s9 + $0x348] sm:$0xff] }
 0x1bc   : > { %6675 = vmatprep.subr.bf16.mxu0 %v6674_v22  ;;  %v1089_v22 = vld [vmem:[%s13510_s1 + $0xcd0] sm:$0xff]  ;;  %v1218_v16 = vld [vmem:[%s13510_s1 + $0x10d8] sm:$0xff] }
 0x1bd   : > { %v7272_v31 = vpack.c.bf16 %v1092_v23, %v1089_v22  ;;  %v7290_v22 = vpack.c.bf16 %v1218_v16, %v1215_v15  ;;  %v1561_v23 = vld [vmem:[%s13510_s1 + $0x1b90] sm:$0xff]  ;;  %v1586_v15 = vld [vmem:[%s13510_s1 + $0x1c58] sm:$0xff] }
 0x1be   : > { %7253 = vmatpush3.bf16.msra.mxu1 %v7252_v28  ;;  %v7867_v28 = vld [vmem:[%s8579_s9 + $0x330] sm:$0xff] }
 0x1bf   : > { %6677 = vmatpush1.bf16.msra.mxu0 %v6676_v29  ;;  %7255 = vmatprep.subr.bf16.mxu1 %v7254_v30  ;;  %v1538_v29 = vld [vmem:[%s13510_s1 + $0x1ad8] sm:$0xff]  ;;  %v1541_v30 = vld [vmem:[%s13510_s1 + $0x1af0] sm:$0xff] }
 0x1c0   : > { %6679 = vmatprep.subr.bf16.mxu0 %v6678_v34  ;;  %v7274_v34 = vpack.c.bf16 %v1146_v27, %v1143_v26  ;;  %v6698_v38 = vpack.c.bf16 %v1541_v30, %v1538_v29  ;;  %v1564_v27 = vld [vmem:[%s13510_s1 + $0x1ba8] sm:$0xff]  ;;  %v7869_v30 = vld [vmem:[%s8579_s9 + $0x40] sm:$0xff]  ;;  %v1589_v16 = vld [vmem:[%s13510_s1 + $0x1c70] sm:$0xff] }
 0x1c1   : > { %3936 = vmatmul.mubr.f32.vlgmr.msra.gmra.mrb[40].mxu1 %v7861_v50  ;;  %v1224_v29 = vld [vmem:[%s13510_s1 + $0x1108] sm:$0xff]  ;;  %v6716_v37 = vpack.c.bf16 %v1564_v27, %v1561_v23  ;;  %v1194_v23 = vld [vmem:[%s13510_s1 + $0x1018] sm:$0xff]  ;;  %v1245_v27 = vld [vmem:[%s13510_s1 + $0x11b0] sm:$0xff] }
 0x1c2   : > { %7257 = vmatpush3.bf16.msra.mxu1 %v7256_v40  ;;  %3940 = vmatprep.mubr.f32.mxu1 %v7862_v53  ;;  %v1149_v40 = vld [vmem:[%s13510_s1 + $0xeb0] sm:$0xff]  ;;  %v1158_v53 = vld [vmem:[%s13510_s1 + $0xef8] sm:$0xff] }
 0x1c3   : > { %6681 = vmatpush1.bf16.msra.mxu0 %v6680_v41  ;;  %7259 = vmatprep.subr.bf16.mxu1 %v7258_v42  ;;  %v1152_v41 = vld [vmem:[%s13510_s1 + $0xec8] sm:$0xff]  ;;  %v7282_v59 = vpack.c.bf16 %v1158_v53, %v1155_v52  ;;  %v570_v52 = vld [vmem:[%s8579_s9 + $0x98] sm:$0xff] }
 0x1c4   : > { %6683 = vmatprep.subr.bf16.mxu0 %v6682_v46  ;;  %v1544_v42 = vld [vmem:[%s13510_s1 + $0x1b08] sm:$0xff]  ;;  %v7278_v46 = vpack.c.bf16 %v1152_v41, %v1149_v40  ;;  %v1173_v40 = vld [vmem:[%s13510_s1 + $0xf70] sm:$0xff] }
 0x1c5   : > { %3941 = vmatmul.mubr.f32.gmra.mrb[42].mxu1 %v7863_v0  ;;  %v6702_v50 = vpack.c.bf16 %v1547_v43, %v1544_v42  ;;  %v1552_v0 = vld [vmem:[%s13510_s1 + $0x1b48] sm:$0xff]  ;;  %v1570_v43 = vld [vmem:[%s13510_s1 + $0x1bd8] sm:$0xff] }
 0x1c6   : > { %7261 = vmatpush3.bf16.msra.mxu1 %v7260_v54  ;;  %3945 = vmatprep.mubr.f32.mxu1 %v7864_v3  ;;  %v1550_v54 = vld [vmem:[%s13510_s1 + $0x1b38] sm:$0xff]  ;;  %v1556_v3 = vld [vmem:[%s13510_s1 + $0x1b68] sm:$0xff]  ;;  %v6720_v53 = vpack.c.bf16 %v1570_v43, %v1567_v39 }
 0x1c7   : > { %6685 = vmatpush1.bf16.msra.mxu0 %v6684_v55  ;;  %7263 = vmatprep.subr.bf16.mxu1 %v7262_v56  ;;  %v1553_v55 = vld [vmem:[%s13510_s1 + $0x1b50] sm:$0xff]  ;;  %v567_v56 = vld [vmem:[%s8579_s9 + $0x80] sm:$0xff]  ;;  %v1176_v41 = vld [vmem:[%s13510_s1 + $0xf88] sm:$0xff] }
 0x1c8   : > { %6687 = vmatprep.subr.bf16.mxu0 %v6686_v60  ;;  %v1549_v60 = vld [vmem:[%s13510_s1 + $0x1b30] sm:$0xff]  ;;  %v6706_v63 = vpack.c.bf16 %v1553_v55, %v1550_v54  ;;  %v7296_v51 = vpack.c.bf16 %v1176_v41, %v1173_v40  ;;  %v1594_v40 = vld [vmem:[%s13510_s1 + $0x1c98] sm:$0xff]  ;;  %v1251_v41 = vld [vmem:[%s13510_s1 + $0x11e0] sm:$0xff] }
 0x1c9   : > { %3946 = vmatmul.mubr.f32.gmra.mrb[44].mxu1 %v7865_v14  ;;  %v6708_v8 = vpack.c.bf16 %v1552_v0, %v1549_v60  ;;  %v1558_v14 = vld [vmem:[%s13510_s1 + $0x1b78] sm:$0xff]  ;;  %v1573_v55 = vld [vmem:[%s13510_s1 + $0x1bf0] sm:$0xff]  ;;  %v1583_v0 = vld [vmem:[%s13510_s1 + $0x1c40] sm:$0xff] }
 0x1ca   : > { %7265 = vmatpush3.bf16.msra.mxu1 %v7264_v4  ;;  %3950 = vmatprep.mubr.f32.mxu1 %v7866_v17  ;;  %v1559_v4 = vld [vmem:[%s13510_s1 + $0x1b80] sm:$0xff]  ;;  %v1562_v17 = vld [vmem:[%s13510_s1 + $0x1b98] sm:$0xff]  ;;  %v6712_v21 = vpack.c.bf16 %v1558_v14, %v1555_v7  ;;  %v1233_v60 = vld [vmem:[%s13510_s1 + $0x1150] sm:$0xff] }
 0x1cb   : > { %6689 = vmatpush1.bf16.msra.mxu0 %v6688_v5  ;;  %7267 = vmatprep.subr.bf16.mxu1 %v7266_v6  ;;  %v600_v5 = vld [vmem:[%s8579_s9 + $0x188] sm:$0xff]  ;;  %v7284_v6 = vpack.c.bf16 %v1110_v62, %v1107_v61  ;;  %v6710_v13 = vpack.c.bf16 %v1559_v4, %v1556_v3  ;;  %v7873_v62 = vld [vmem:[%s8579_s9 + $0x240] sm:$0xff] }
 0x1cc   : > { %6691 = vmatprep.subr.bf16.mxu0 %v6690_v10  ;;  %v1161_v10 = vld [vmem:[%s13510_s1 + $0xf10] sm:$0xff]  ;;  %v1236_v61 = vld [vmem:[%s13510_s1 + $0x1168] sm:$0xff]  ;;  %v7875_v14 = vld [vmem:[%s8579_s9 + $0x340] sm:$0xff] }
 0x1cd   : > { %3951 = vmatmul.mubr.f32.gmra.mrb[46].mxu1 %v7867_v28  ;;  %v1221_v28 = vld [vmem:[%s13510_s1 + $0x10f0] sm:$0xff]  ;;  %v7302_v4 = vpack.c.bf16 %v1236_v61, %v1233_v60  ;;  %v1188_v7 = vld [vmem:[%s13510_s1 + $0xfe8] sm:$0xff] }
 0x1ce   : > { %7269 = vmatpush3.bf16.msra.mxu1 %v7268_v18  ;;  %4020 = vmatprep.mubr.f32.mxu1 %v7868_v32  ;;  %v1565_v18 = vld [vmem:[%s13510_s1 + $0x1bb0] sm:$0xff]  ;;  %v1571_v32 = vld [vmem:[%s13510_s1 + $0x1be0] sm:$0xff] }
 0x1cf   : > { %6693 = vmatpush1.bf16.msra.mxu0 %v6692_v19  ;;  %7271 = vmatprep.subr.bf16.mxu1 %v7270_v20  ;;  %v632_v19 = vld [vmem:[%s8579_s9 + $0x288] sm:$0xff]  ;;  %v7288_v20 = vpack.c.bf16 %v1164_v11, %v1161_v10  ;;  %v6714_v26 = vpack.c.bf16 %v1565_v18, %v1562_v17  ;;  %v1582_v10 = vld [vmem:[%s13510_s1 + $0x1c38] sm:$0xff]  ;;  %v1239_v11 = vld [vmem:[%s13510_s1 + $0x1180] sm:$0xff] }
 0x1d0   : > { %6695 = vmatprep.subr.bf16.mxu0 %v6694_v24  ;;  %v1167_v24 = vld [vmem:[%s13510_s1 + $0xf40] sm:$0xff]  ;;  %v7876_v18 = vld [vmem:[%s8579_s9 + $0x58] sm:$0xff] }
 0x1d1   : > { %v7292_v35 = vpack.c.bf16 %v1170_v25, %v1167_v24  ;;  %v6730_v25 = vpack.c.bf16 %v1589_v16, %v1586_v15  ;;  %v1266_v15 = vld [vmem:[%s13510_s1 + $0x1258] sm:$0xff] }
 0x1d2   : > { %7273 = vmatpush3.bf16.msra.mxu1 %v7272_v31  ;;  %v1568_v31 = vld [vmem:[%s13510_s1 + $0x1bc8] sm:$0xff] }
 0x1d3   : > { %6697 = vmatpush1.bf16.msra.mxu0 %v6696_v33  ;;  %7275 = vmatprep.subr.bf16.mxu1 %v7274_v34  ;;  %v631_v33 = vld [vmem:[%s8579_s9 + $0x280] sm:$0xff]  ;;  %v7870_v34 = vld [vmem:[%s8579_s9 + $0x148] sm:$0xff]  ;;  %v6718_v42 = vpack.c.bf16 %v1571_v32, %v1568_v31 }
 0x1d4   : > { %6699 = vmatprep.subr.bf16.mxu0 %v6698_v38  ;;  %v7294_v38 = vpack.c.bf16 %v1224_v29, %v1221_v28  ;;  %v1248_v28 = vld [vmem:[%s13510_s1 + $0x11c8] sm:$0xff]  ;;  %v1595_v31 = vld [vmem:[%s13510_s1 + $0x1ca0] sm:$0xff] }
 0x1d6   : > { %7277 = vmatpush3.bf16.msra.mxu1 %v7276_v44  ;;  %v1227_v44 = vld [vmem:[%s13510_s1 + $0x1120] sm:$0xff] }
 0x1d7   : > { %6701 = vmatpush1.bf16.msra.mxu0 %v6700_v45  ;;  %7279 = vmatprep.subr.bf16.mxu1 %v7278_v46  ;;  %v1230_v45 = vld [vmem:[%s13510_s1 + $0x1138] sm:$0xff]  ;;  %v7871_v46 = vld [vmem:[%s8579_s9 + $0x140] sm:$0xff] }
 0x1d8   : > { %6703 = vmatprep.subr.bf16.mxu0 %v6702_v50  ;;  %v7872_v50 = vld [vmem:[%s8579_s9 + $0x248] sm:$0xff]  ;;  %v7298_v54 = vpack.c.bf16 %v1230_v45, %v1227_v44  ;;  %v1598_v44 = vld [vmem:[%s13510_s1 + $0x1cb8] sm:$0xff]  ;;  %v1601_v45 = vld [vmem:[%s13510_s1 + $0x1cd0] sm:$0xff] }
 0x1da   : > { %2969 = vmatmul.mubr.f32.vlgmr.msra.gmra.mrb[0].mxu0 %v567_v56  ;;  %7281 = vmatpush3.bf16.msra.mxu1 %v7280_v57  ;;  %v1179_v56 = vld [vmem:[%s13510_s1 + $0xfa0] sm:$0xff]  ;;  %v1182_v57 = vld [vmem:[%s13510_s1 + $0xfb8] sm:$0xff] }
 0x1db   : > { %6705 = vmatpush1.bf16.msra.mxu0 %v6704_v58  ;;  %7283 = vmatprep.subr.bf16.mxu1 %v7282_v59  ;;  %v6722_v58 = vpack.c.bf16 %v1577_v48, %v1574_v47  ;;  %v1576_v59 = vld [vmem:[%s13510_s1 + $0x1c08] sm:$0xff]  ;;  %v7300_v2 = vpack.c.bf16 %v1182_v57, %v1179_v56 }
 0x1dc   : > { %6707 = vmatprep.subr.bf16.mxu0 %v6706_v63  ;;  %2974 = vmatprep.mubr.f32.mxu0 %v600_v5  ;;  %v1580_v63 = vld [vmem:[%s13510_s1 + $0x1c28] sm:$0xff]  ;;  %v6724_v3 = vpack.c.bf16 %v1576_v59, %v1573_v55  ;;  %v1579_v5 = vld [vmem:[%s13510_s1 + $0x1c20] sm:$0xff]  ;;  %v1305_v55 = vld [vmem:[%s13510_s1 + $0x1390] sm:$0xff] }
 0x1dd   : > { %v1308_v56 = vld [vmem:[%s13510_s1 + $0x13a8] sm:$0xff]  ;;  %v1607_v59 = vld [vmem:[%s13510_s1 + $0x1d00] sm:$0xff] }
 0x1de   : > { %7285 = vmatpush3.bf16.msra.mxu1 %v7284_v6  ;;  %2975 = vmatmul.mubr.f32.gmra.mrb[2].mxu0 %v599_v12  ;;  %v1185_v6 = vld [vmem:[%s13510_s1 + $0xfd0] sm:$0xff]  ;;  %v1242_v12 = vld [vmem:[%s13510_s1 + $0x1198] sm:$0xff] }
 0x1df   : > { %6709 = vmatpush1.bf16.msra.mxu0 %v6708_v8  ;;  %7287 = vmatprep.subr.bf16.mxu1 %v7286_v9  ;;  %v6726_v9 = vpack.c.bf16 %v1583_v0, %v1580_v63  ;;  %v7304_v17 = vpack.c.bf16 %v1188_v7, %v1185_v6  ;;  %v1603_v63 = vld [vmem:[%s13510_s1 + $0x1ce0] sm:$0xff]  ;;  %v1257_v0 = vld [vmem:[%s13510_s1 + $0x1210] sm:$0xff]  ;;  %v1610_v6 = vld [vmem:[%s13510_s1 + $0x1d18] sm:$0xff] }
 0x1e0   : > { %6711 = vmatprep.subr.bf16.mxu0 %v6710_v13  ;;  %2980 = vmatprep.mubr.f32.mxu0 %v632_v19  ;;  %v6728_v19 = vpack.c.bf16 %v1582_v10, %v1579_v5  ;;  %v1314_v5 = vld [vmem:[%s13510_s1 + $0x13d8] sm:$0xff]  ;;  %v1613_v7 = vld [vmem:[%s13510_s1 + $0x1d30] sm:$0xff] }
 0x1e1   : > { %4021 = vmatmul.mubr.f32.vlgmr.msra.gmra.mrb[48].mxu1 %v7869_v30  ;;  %v1592_v30 = vld [vmem:[%s13510_s1 + $0x1c88] sm:$0xff]  ;;  %v6746_v16 = vpack.c.bf16 %v1613_v7, %v1610_v6  ;;  %v1637_v6 = vld [vmem:[%s13510_s1 + $0x1df0] sm:$0xff] }
 0x1e2   : > { %7289 = vmatpush3.bf16.msra.mxu1 %v7288_v20  ;;  %4025 = vmatprep.mubr.f32.mxu1 %v7870_v34  ;;  %v7306_v20 = vpack.c.bf16 %v1242_v12, %v1239_v11  ;;  %v7310_v34 = vpack.c.bf16 %v1248_v28, %v1245_v27  ;;  %v6734_v39 = vpack.c.bf16 %v1595_v31, %v1592_v30  ;;  %v1609_v12 = vld [vmem:[%s13510_s1 + $0x1d10] sm:$0xff]  ;;  %v1615_v28 = vld [vmem:[%s13510_s1 + $0x1d40] sm:$0xff]  ;;  %v1272_v31 = vld [vmem:[%s13510_s1 + $0x1288] sm:$0xff] }
 0x1e3   : > { %6713 = vmatpush1.bf16.msra.mxu0 %v6712_v21  ;;  %7291 = vmatprep.subr.bf16.mxu1 %v7290_v22  ;;  %v1585_v21 = vld [vmem:[%s13510_s1 + $0x1c50] sm:$0xff]  ;;  %v1191_v22 = vld [vmem:[%s13510_s1 + $0x1000] sm:$0xff] }
 0x1e4   : > { %6715 = vmatprep.subr.bf16.mxu0 %v6714_v26  ;;  %2981 = vmatmul.mubr.f32.gmra.mrb[4].mxu0 %v631_v33  ;;  %v1588_v26 = vld [vmem:[%s13510_s1 + $0x1c68] sm:$0xff]  ;;  %v7308_v32 = vpack.c.bf16 %v1194_v23, %v1191_v22  ;;  %v1619_v22 = vld [vmem:[%s13510_s1 + $0x1d60] sm:$0xff]  ;;  %v7878_v23 = vld [vmem:[%s8579_s9 + $0x158] sm:$0xff] }
 0x1e5   : > { %4026 = vmatmul.mubr.f32.gmra.mrb[50].mxu1 %v7871_v46  ;;  %2986 = vmatprep.mubr.f32.mxu0 %v664_v36  ;;  %v6732_v33 = vpack.c.bf16 %v1588_v26, %v1585_v21  ;;  %v1197_v36 = vld [vmem:[%s13510_s1 + $0x1030] sm:$0xff]  ;;  %v1616_v21 = vld [vmem:[%s13510_s1 + $0x1d48] sm:$0xff] }
 0x1e6   : > { %7293 = vmatpush3.bf16.msra.mxu1 %v7292_v35  ;;  %4030 = vmatprep.mubr.f32.mxu1 %v7872_v50  ;;  %v1591_v35 = vld [vmem:[%s13510_s1 + $0x1c80] sm:$0xff]  ;;  %v1269_v30 = vld [vmem:[%s13510_s1 + $0x1270] sm:$0xff] }
 0x1e7   : > { %6717 = vmatpush1.bf16.msra.mxu0 %v6716_v37  ;;  %7295 = vmatprep.subr.bf16.mxu1 %v7294_v38  ;;  %v1200_v37 = vld [vmem:[%s13510_s1 + $0x1048] sm:$0xff]  ;;  %v6736_v47 = vpack.c.bf16 %v1594_v40, %v1591_v35  ;;  %v1203_v50 = vld [vmem:[%s13510_s1 + $0x1060] sm:$0xff]  ;;  %v1326_v35 = vld [vmem:[%s13510_s1 + $0x1438] sm:$0xff] }
 0x1e8   : > { %6719 = vmatprep.subr.bf16.mxu0 %v6718_v42  ;;  %2987 = vmatmul.mubr.f32.gmra.mrb[6].mxu0 %v663_v49  ;;  %v1254_v42 = vld [vmem:[%s13510_s1 + $0x11f8] sm:$0xff]  ;;  %v7312_v46 = vpack.c.bf16 %v1200_v37, %v1197_v36  ;;  %v1597_v49 = vld [vmem:[%s13510_s1 + $0x1cb0] sm:$0xff] }
 0x1e9   : > { %4031 = vmatmul.mubr.f32.gmra.mrb[52].mxu1 %v7873_v62  ;;  %3057 = vmatprep.mubr.f32.mxu0 %v570_v52  ;;  %v7314_v48 = vpack.c.bf16 %v1254_v42, %v1251_v41  ;;  %v7318_v62 = vpack.c.bf16 %v1308_v56, %v1305_v55  ;;  %v7879_v36 = vld [vmem:[%s8579_s9 + $0x150] sm:$0xff]  ;;  %v1622_v37 = vld [vmem:[%s13510_s1 + $0x1d78] sm:$0xff]  ;;  %v7328_v41 = vpack.c.bf16 %v1272_v31, %v1269_v30  ;;  %v1631_v55 = vld [vmem:[%s13510_s1 + $0x1dc0] sm:$0xff] }
 0x1ea   : > { %7297 = vmatpush3.bf16.msra.mxu1 %v7296_v51  ;;  %4035 = vmatprep.mubr.f32.mxu1 %v7874_v1  ;;  %v1206_v51 = vld [vmem:[%s13510_s1 + $0x1078] sm:$0xff]  ;;  %v1260_v1 = vld [vmem:[%s13510_s1 + $0x1228] sm:$0xff] }
 0x1eb   : > { %6721 = vmatpush1.bf16.msra.mxu0 %v6720_v53  ;;  %7299 = vmatprep.subr.bf16.mxu1 %v7298_v54  ;;  %v6738_v53 = vpack.c.bf16 %v1601_v45, %v1598_v44  ;;  %v1600_v54 = vld [vmem:[%s13510_s1 + $0x1cc8] sm:$0xff]  ;;  %v7316_v60 = vpack.c.bf16 %v1206_v51, %v1203_v50  ;;  %v7880_v40 = vld [vmem:[%s8579_s9 + $0x258] sm:$0xff]  ;;  %v1621_v45 = vld [vmem:[%s13510_s1 + $0x1d70] sm:$0xff] }
 0x1ec   : > { %v10880_v8 = vpop.f32.mrb[0].mxu1  ;;  %6723 = vmatprep.subr.bf16.mxu0 %v6722_v58  ;;  %v1604_v58 = vld [vmem:[%s13510_s1 + $0x1ce8] sm:$0xff]  ;;  %v6740_v61 = vpack.c.bf16 %v1600_v54, %v1597_v49  ;;  %v1329_v50 = vld [vmem:[%s13510_s1 + $0x1450] sm:$0xff]  ;;  %v7882_v56 = vld [vmem:[%s8579_s9 + $0x358] sm:$0xff] }
 0x1ed   : > { %v10891_v13 = vpop.f32.mrb[1].mxu1  ;;  %4036 = vmatmul.mubr.f32.gmra.mrb[54].mxu1 %v7875_v14  ;;  %v1263_v14 = vld [vmem:[%s13510_s1 + $0x1240] sm:$0xff]  ;;  %v1624_v49 = vld [vmem:[%s13510_s1 + $0x1d88] sm:$0xff]  ;;  %v1642_v31 = vld [vmem:[%s13510_s1 + $0x1e18] sm:$0xff] }
 0x1ee   : > { %7301 = vmatpush3.bf16.msra.mxu1 %v7300_v2  ;;  %4105 = vmatprep.mubr.f32.mxu1 %v7876_v18  ;;  %v6742_v2 = vpack.c.bf16 %v1607_v59, %v1604_v58  ;;  %v1317_v18 = vld [vmem:[%s13510_s1 + $0x13f0] sm:$0xff]  ;;  %v1332_v51 = vld [vmem:[%s13510_s1 + $0x1468] sm:$0xff]  ;;  %v6756_v59 = vpack.c.bf16 %v1624_v49, %v1621_v45  ;;  %v1299_v45 = vld [vmem:[%s13510_s1 + $0x1360] sm:$0xff] }
 0x1ef   : > { %6725 = vmatpush1.bf16.msra.mxu0 %v6724_v3  ;;  %7303 = vmatprep.subr.bf16.mxu1 %v7302_v4  ;;  %v1606_v3 = vld [vmem:[%s13510_s1 + $0x1cf8] sm:$0xff]  ;;  %v1311_v4 = vld [vmem:[%s13510_s1 + $0x13c0] sm:$0xff]  ;;  %v1628_v54 = vld [vmem:[%s13510_s1 + $0x1da8] sm:$0xff] }
 0x1f0   : > { %v10910_v24 = vpop.f32.mrb[2].mxu1  ;;  %6727 = vmatprep.subr.bf16.mxu0 %v6726_v9  ;;  %v7320_v9 = vpack.c.bf16 %v1260_v1, %v1257_v0  ;;  %v6744_v10 = vpack.c.bf16 %v1606_v3, %v1603_v63  ;;  %v7322_v11 = vpack.c.bf16 %v1314_v5, %v1311_v4  ;;  %v1284_v63 = vld [vmem:[%s13510_s1 + $0x12e8] sm:$0xff]  ;;  %v6758_v0 = vpack.c.bf16 %v1631_v55, %v1628_v54  ;;  %v1630_v1 = vld [vmem:[%s13510_s1 + $0x1db8] sm:$0xff]  ;;  %v7883_v4 = vld [vmem:[%s8579_s9 + $0x350] sm:$0xff] }
 0x1f1   : > { %v10921_v29 = vpop.f32.mrb[3].mxu1  ;;  %v1338_v3 = vld [vmem:[%s13510_s1 + $0x1498] sm:$0xff]  ;;  %v1401_v49 = vld [vmem:[%s13510_s1 + $0x1690] sm:$0xff]  ;;  %v1655_v54 = vld [vmem:[%s13510_s1 + $0x1e80] sm:$0xff] }
 0x1f2   : > { %7305 = vmatpush3.bf16.msra.mxu1 %v7304_v17  ;;  %v1612_v17 = vld [vmem:[%s13510_s1 + $0x1d28] sm:$0xff]  ;;  %v1634_v5 = vld [vmem:[%s13510_s1 + $0x1dd8] sm:$0xff] }
 0x1f3   : > { %6729 = vmatpush1.bf16.msra.mxu0 %v6728_v19  ;;  %7307 = vmatprep.subr.bf16.mxu1 %v7306_v20  ;;  %v1320_v19 = vld [vmem:[%s13510_s1 + $0x1408] sm:$0xff]  ;;  %v7877_v20 = vld [vmem:[%s8579_s9 + $0x50] sm:$0xff]  ;;  %v6748_v26 = vpack.c.bf16 %v1612_v17, %v1609_v12 }
 0x1f4   : > { %v10938_v38 = vpop.f32.mrb[4].mxu1  ;;  %6731 = vmatprep.subr.bf16.mxu0 %v6730_v25  ;;  %v7324_v25 = vpack.c.bf16 %v1266_v15, %v1263_v14  ;;  %v7326_v27 = vpack.c.bf16 %v1320_v19, %v1317_v18  ;;  %v1633_v12 = vld [vmem:[%s13510_s1 + $0x1dd0] sm:$0xff]  ;;  %v1287_v14 = vld [vmem:[%s13510_s1 + $0x1300] sm:$0xff]  ;;  %v1290_v15 = vld [vmem:[%s13510_s1 + $0x1318] sm:$0xff] }
 0x1f5   : > { %v10949_v43 = vpop.f32.mrb[5].mxu1  ;;  %v1636_v17 = vld [vmem:[%s13510_s1 + $0x1de8] sm:$0xff]  ;;  %v1341_v18 = vld [vmem:[%s13510_s1 + $0x14b0] sm:$0xff] }
 0x1f6   : > { %7309 = vmatpush3.bf16.msra.mxu1 %v7308_v32  ;;  %v6750_v32 = vpack.c.bf16 %v1619_v22, %v1616_v21  ;;  %v1344_v19 = vld [vmem:[%s13510_s1 + $0x14c8] sm:$0xff]  ;;  %v1643_v21 = vld [vmem:[%s13510_s1 + $0x1e20] sm:$0xff]  ;;  %v7340_v22 = vpack.c.bf16 %v1290_v15, %v1287_v14  ;;  %v1657_v15 = vld [vmem:[%s13510_s1 + $0x1e90] sm:$0xff] }
 0x1f7   : > { %6733 = vmatpush1.bf16.msra.mxu0 %v6732_v33  ;;  %7311 = vmatprep.subr.bf16.mxu1 %v7310_v34  ;;  %v1618_v33 = vld [vmem:[%s13510_s1 + $0x1d58] sm:$0xff]  ;;  %v1323_v34 = vld [vmem:[%s13510_s1 + $0x1420] sm:$0xff] }
 0x1f8   : > { %v10966_v52 = vpop.f32.mrb[6].mxu1  ;;  %6735 = vmatprep.subr.bf16.mxu0 %v6734_v39  ;;  %v1625_v39 = vld [vmem:[%s13510_s1 + $0x1d90] sm:$0xff]  ;;  %v6752_v42 = vpack.c.bf16 %v1618_v33, %v1615_v28  ;;  %v7330_v44 = vpack.c.bf16 %v1326_v35, %v1323_v34  ;;  %v1296_v28 = vld [vmem:[%s13510_s1 + $0x1348] sm:$0xff]  ;;  %v1350_v33 = vld [vmem:[%s13510_s1 + $0x14f8] sm:$0xff] }
 0x1f9   : > { %v10977_v57 = vpop.f32.mrb[7].mxu1  ;;  %v1646_v35 = vld [vmem:[%s13510_s1 + $0x1e38] sm:$0xff] }
 0x1fa   : > { %7313 = vmatpush3.bf16.msra.mxu1 %v7312_v46  ;;  %v1275_v46 = vld [vmem:[%s13510_s1 + $0x12a0] sm:$0xff] }
 0x1fb   : > { %6737 = vmatpush1.bf16.msra.mxu0 %v6736_v47  ;;  %7315 = vmatprep.subr.bf16.mxu1 %v7314_v48  ;;  %v1278_v47 = vld [vmem:[%s13510_s1 + $0x12b8] sm:$0xff]  ;;  %v6754_v48 = vpack.c.bf16 %v1625_v39, %v1622_v37  ;;  %v569_v39 = vld [vmem:[%s8579_s9 + $0x90] sm:$0xff] }
 0x1fc   : > { %6739 = vmatprep.subr.bf16.mxu0 %v6738_v53  ;;  %v7881_v53 = vld [vmem:[%s8579_s9 + $0x250] sm:$0xff]  ;;  %v7332_v58 = vpack.c.bf16 %v1278_v47, %v1275_v46  ;;  %v1302_v46 = vld [vmem:[%s13510_s1 + $0x1378] sm:$0xff] }
 0x1fe   : > { %7317 = vmatpush3.bf16.msra.mxu1 %v7316_v60  ;;  %v7334_v60 = vpack.c.bf16 %v1332_v51, %v1329_v50  ;;  %v1404_v50 = vld [vmem:[%s13510_s1 + $0x16a8] sm:$0xff] }
 0x1ff   : > { %6741 = vmatpush1.bf16.msra.mxu0 %v6740_v61  ;;  %7319 = vmatprep.subr.bf16.mxu1 %v7318_v62  ;;  %v1627_v61 = vld [vmem:[%s13510_s1 + $0x1da0] sm:$0xff]  ;;  %v1281_v62 = vld [vmem:[%s13510_s1 + $0x12d0] sm:$0xff] }
 0x200   : > { %6743 = vmatprep.subr.bf16.mxu0 %v6742_v2  ;;  %v1335_v2 = vld [vmem:[%s13510_s1 + $0x1480] sm:$0xff]  ;;  %v7336_v7 = vpack.c.bf16 %v1284_v63, %v1281_v62  ;;  %v1353_v62 = vld [vmem:[%s13510_s1 + $0x1510] sm:$0xff]  ;;  %v1356_v63 = vld [vmem:[%s13510_s1 + $0x1528] sm:$0xff] }
 0x201   : > { %4106 = vmatmul.mubr.f32.vlgmr.msra.gmra.mrb[56].mxu1 %v7877_v20  ;;  %v1640_v20 = vld [vmem:[%s13510_s1 + $0x1e08] sm:$0xff] }
 0x202   : > { %7321 = vmatpush3.bf16.msra.mxu1 %v7320_v9  ;;  %4110 = vmatprep.mubr.f32.mxu1 %v7878_v23  ;;  %v7884_v9 = vld [vmem:[%s8579_s9 + $0x68] sm:$0xff]  ;;  %v6764_v23 = vpack.c.bf16 %v1636_v17, %v1633_v12  ;;  %v6766_v30 = vpack.c.bf16 %v1643_v21, %v1640_v20  ;;  %v1362_v17 = vld [vmem:[%s13510_s1 + $0x1558] sm:$0xff]  ;;  %v1413_v20 = vld [vmem:[%s13510_s1 + $0x16f0] sm:$0xff] }
 0x203   : > { %6745 = vmatpush1.bf16.msra.mxu0 %v6744_v10  ;;  %7323 = vmatprep.subr.bf16.mxu1 %v7322_v11  ;;  %v6760_v10 = vpack.c.bf16 %v1630_v1, %v1627_v61  ;;  %v7338_v11 = vpack.c.bf16 %v1338_v3, %v1335_v2  ;;  %v7350_v61 = vpack.c.bf16 %v1404_v50, %v1401_v49  ;;  %v1654_v2 = vld [vmem:[%s13510_s1 + $0x1e78] sm:$0xff]  ;;  %v1407_v3 = vld [vmem:[%s13510_s1 + $0x16c0] sm:$0xff]  ;;  %v1416_v21 = vld [vmem:[%s13510_s1 + $0x1708] sm:$0xff] }
 0x204   : > { %6747 = vmatprep.subr.bf16.mxu0 %v6746_v16  ;;  %v6762_v16 = vpack.c.bf16 %v1637_v6, %v1634_v5  ;;  %v1658_v6 = vld [vmem:[%s13510_s1 + $0x1e98] sm:$0xff]  ;;  %v11289_v49 = vld [vmem:[%s8579_s9 + $0x390] sm:$0xff]  ;;  %v7888_v50 = vld [vmem:[%s8579_s9 + $0x268] sm:$0xff] }
 0x205   : > { %4111 = vmatmul.mubr.f32.gmra.mrb[58].mxu1 %v7879_v36  ;;  %v1649_v36 = vld [vmem:[%s13510_s1 + $0x1e50] sm:$0xff] }
 0x206   : > { %7325 = vmatpush3.bf16.msra.mxu1 %v7324_v25  ;;  %4115 = vmatprep.mubr.f32.mxu1 %v7880_v40  ;;  %v7342_v25 = vpack.c.bf16 %v1344_v19, %v1341_v18  ;;  %v6770_v47 = vpack.c.bf16 %v1649_v36, %v1646_v35  ;;  %v1660_v19 = vld [vmem:[%s13510_s1 + $0x1ea8] sm:$0xff]  ;;  %v7358_v35 = vpack.c.bf16 %v1416_v21, %v1413_v20  ;;  %v1663_v36 = vld [vmem:[%s13510_s1 + $0x1ec0] sm:$0xff]  ;;  %v1682_v21 = vld [vmem:[%s13510_s1 + $0x1f58] sm:$0xff] }
 0x207   : > { %6749 = vmatpush1.bf16.msra.mxu0 %v6748_v26  ;;  %7327 = vmatprep.subr.bf16.mxu1 %v7326_v27  ;;  %v1639_v26 = vld [vmem:[%s13510_s1 + $0x1e00] sm:$0xff]  ;;  %v1293_v27 = vld [vmem:[%s13510_s1 + $0x1330] sm:$0xff] }
 0x208   : > { %6751 = vmatprep.subr.bf16.mxu0 %v6750_v32  ;;  %v1347_v32 = vld [vmem:[%s13510_s1 + $0x14e0] sm:$0xff]  ;;  %v7344_v40 = vpack.c.bf16 %v1296_v28, %v1293_v27  ;;  %v11255_v28 = vld [vmem:[%s8579_s9 + $0x290] sm:$0xff] }
 0x209   : > { %4116 = vmatmul.mubr.f32.gmra.mrb[60].mxu1 %v7881_v53  ;;  %v1652_v53 = vld [vmem:[%s13510_s1 + $0x1e68] sm:$0xff]  ;;  %v7891_v20 = vld [vmem:[%s8579_s9 + $0x360] sm:$0xff] }
 0x20a   : > { %7329 = vmatpush3.bf16.msra.mxu1 %v7328_v41  ;;  %4120 = vmatprep.mubr.f32.mxu1 %v7882_v56  ;;  %v6768_v41 = vpack.c.bf16 %v1642_v31, %v1639_v26  ;;  %v602_v56 = vld [vmem:[%s8579_s9 + $0x198] sm:$0xff]  ;;  %v6774_v1 = vpack.c.bf16 %v1655_v54, %v1652_v53  ;;  %v1667_v26 = vld [vmem:[%s13510_s1 + $0x1ee0] sm:$0xff]  ;;  %v11293_v54 = vld [vmem:[%s8579_s9 + $0xa8] sm:$0xff] }
 0x20b   : > { %6753 = vmatpush1.bf16.msra.mxu0 %v6752_v42  ;;  %7331 = vmatprep.subr.bf16.mxu1 %v7330_v44  ;;  %v7346_v42 = vpack.c.bf16 %v1350_v33, %v1347_v32  ;;  %v1645_v44 = vld [vmem:[%s13510_s1 + $0x1e30] sm:$0xff]  ;;  %v11259_v32 = vld [vmem:[%s8579_s9 + $0x398] sm:$0xff]  ;;  %v6780_v33 = vpack.c.bf16 %v1660_v19, %v1657_v15  ;;  %v1380_v15 = vld [vmem:[%s13510_s1 + $0x15e8] sm:$0xff] }
 0x20c   : > { %6755 = vmatprep.subr.bf16.mxu0 %v6754_v48  ;;  %v1648_v48 = vld [vmem:[%s13510_s1 + $0x1e48] sm:$0xff]  ;;  %v1434_v19 = vld [vmem:[%s13510_s1 + $0x1798] sm:$0xff] }
 0x20d   : > { %4121 = vmatmul.mubr.f32.gmra.mrb[62].mxu1 %v7883_v4  ;;  %v1410_v4 = vld [vmem:[%s13510_s1 + $0x16d8] sm:$0xff] }
 0x20e   : > { %7333 = vmatpush3.bf16.msra.mxu1 %v7332_v58  ;;  %4190 = vmatprep.mubr.f32.mxu1 %v7884_v9  ;;  %v7348_v58 = vpack.c.bf16 %v1302_v46, %v1299_v45  ;;  %v7354_v14 = vpack.c.bf16 %v1410_v4, %v1407_v3  ;;  %v1422_v45 = vld [vmem:[%s13510_s1 + $0x1738] sm:$0xff]  ;;  %v7887_v46 = vld [vmem:[%s8579_s9 + $0x160] sm:$0xff]  ;;  %v1676_v3 = vld [vmem:[%s13510_s1 + $0x1f28] sm:$0xff] }
 0x20f   : > { %6757 = vmatpush1.bf16.msra.mxu0 %v6756_v59  ;;  %7335 = vmatprep.subr.bf16.mxu1 %v7334_v60  ;;  %v1651_v59 = vld [vmem:[%s13510_s1 + $0x1e60] sm:$0xff]  ;;  %v6772_v60 = vpack.c.bf16 %v1648_v48, %v1645_v44  ;;  %v1673_v48 = vld [vmem:[%s13510_s1 + $0x1f10] sm:$0xff] }
 0x210   : > { %6759 = vmatprep.subr.bf16.mxu0 %v6758_v0  ;;  %v601_v0 = vld [vmem:[%s8579_s9 + $0x190] sm:$0xff]  ;;  %v6776_v12 = vpack.c.bf16 %v1654_v2, %v1651_v59  ;;  %v1419_v44 = vld [vmem:[%s13510_s1 + $0x1720] sm:$0xff] }
 0x211   : > { %v1669_v59 = vld [vmem:[%s13510_s1 + $0x1ef0] sm:$0xff]  ;;  %v7889_v2 = vld [vmem:[%s8579_s9 + $0x260] sm:$0xff] }
 0x212   : > { %7337 = vmatpush3.bf16.msra.mxu1 %v7336_v7  ;;  %v1661_v7 = vld [vmem:[%s13510_s1 + $0x1eb0] sm:$0xff]  ;;  %v1679_v4 = vld [vmem:[%s13510_s1 + $0x1f40] sm:$0xff] }
 0x213   : > { %6761 = vmatpush1.bf16.msra.mxu0 %v6760_v10  ;;  %7339 = vmatprep.subr.bf16.mxu1 %v7338_v11  ;;  %v634_v10 = vld [vmem:[%s8579_s9 + $0x298] sm:$0xff]  ;;  %v7352_v11 = vpack.c.bf16 %v1356_v63, %v1353_v62  ;;  %v6778_v18 = vpack.c.bf16 %v1661_v7, %v1658_v6  ;;  %v1672_v63 = vld [vmem:[%s13510_s1 + $0x1f08] sm:$0xff] }
 0x214   : > { %6763 = vmatprep.subr.bf16.mxu0 %v6762_v16  ;;  %v11155_v34 = vpop.f32.mrb[8].mxu1  ;;  %v1359_v16 = vld [vmem:[%s13510_s1 + $0x1540] sm:$0xff]  ;;  %v7890_v6 = vld [vmem:[%s8579_s9 + $0x368] sm:$0xff] }
 0x215   : > { %v11163_v37 = vpop.f32.mrb[9].mxu1  ;;  %v7356_v31 = vpack.c.bf16 %v1362_v17, %v1359_v16  ;;  %v6790_v16 = vpack.c.bf16 %v1679_v4, %v1676_v3  ;;  %v1678_v17 = vld [vmem:[%s13510_s1 + $0x1f38] sm:$0xff] }
 0x216   : > { %7341 = vmatpush3.bf16.msra.mxu1 %v7340_v22 }
 0x217   : > { %6765 = vmatpush1.bf16.msra.mxu0 %v6764_v23  ;;  %7343 = vmatprep.subr.bf16.mxu1 %v7342_v25  ;;  %v7885_v23 = vld [vmem:[%s8579_s9 + $0x60] sm:$0xff]  ;;  %v1664_v25 = vld [vmem:[%s13510_s1 + $0x1ec8] sm:$0xff] }
 0x218   : > { %6767 = vmatprep.subr.bf16.mxu0 %v6766_v30  ;;  %v11184_v51 = vpop.f32.mrb[10].mxu1  ;;  %v7886_v30 = vld [vmem:[%s8579_s9 + $0x168] sm:$0xff] }
 0x219   : > { %v11192_v55 = vpop.f32.mrb[11].mxu1 }
 0x21a   : > { %3058 = vmatmul.mubr.f32.vlgmr.msra.gmra.mrb[0].mxu0 %v569_v39  ;;  %7345 = vmatpush3.bf16.msra.mxu1 %v7344_v40  ;;  %v1365_v39 = vld [vmem:[%s13510_s1 + $0x1570] sm:$0xff]  ;;  %v1368_v40 = vld [vmem:[%s13510_s1 + $0x1588] sm:$0xff] }
 0x21b   : > { %6769 = vmatpush1.bf16.msra.mxu0 %v6768_v41  ;;  %7347 = vmatprep.subr.bf16.mxu1 %v7346_v42  ;;  %v6782_v41 = vpack.c.bf16 %v1667_v26, %v1664_v25  ;;  %v1666_v42 = vld [vmem:[%s13510_s1 + $0x1ed8] sm:$0xff]  ;;  %v7360_v53 = vpack.c.bf16 %v1368_v40, %v1365_v39  ;;  %v1684_v40 = vld [vmem:[%s13510_s1 + $0x1f68] sm:$0xff] }
 0x21c   : > { %6771 = vmatprep.subr.bf16.mxu0 %v6770_v47  ;;  %v11214_v5 = vpop.f32.mrb[12].mxu1  ;;  %3063 = vmatprep.mubr.f32.mxu0 %v602_v56  ;;  %v1670_v47 = vld [vmem:[%s13510_s1 + $0x1ef8] sm:$0xff]  ;;  %v6784_v56 = vpack.c.bf16 %v1666_v42, %v1663_v36  ;;  %v1440_v42 = vld [vmem:[%s13510_s1 + $0x17c8] sm:$0xff] }
 0x21d   : > { %v11222_v9 = vpop.f32.mrb[13].mxu1  ;;  %v6786_v62 = vpack.c.bf16 %v1673_v48, %v1670_v47  ;;  %v7892_v26 = vld [vmem:[%s8579_s9 + $0x78] sm:$0xff] }
 0x21e   : > { %7349 = vmatpush3.bf16.msra.mxu1 %v7348_v58  ;;  %3064 = vmatmul.mubr.f32.gmra.mrb[2].mxu0 %v601_v0  ;;  %v7362_v58 = vpack.c.bf16 %v1422_v45, %v1419_v44  ;;  %v1425_v0 = vld [vmem:[%s13510_s1 + $0x1750] sm:$0xff]  ;;  %v1386_v36 = vld [vmem:[%s13510_s1 + $0x1618] sm:$0xff]  ;;  %v1688_v44 = vld [vmem:[%s13510_s1 + $0x1f88] sm:$0xff] }
 0x21f   : > { %6773 = vmatpush1.bf16.msra.mxu0 %v6772_v60  ;;  %7351 = vmatprep.subr.bf16.mxu1 %v7350_v61  ;;  %v1371_v60 = vld [vmem:[%s13510_s1 + $0x15a0] sm:$0xff]  ;;  %v1374_v61 = vld [vmem:[%s13510_s1 + $0x15b8] sm:$0xff] }
 0x220   : > { %6775 = vmatprep.subr.bf16.mxu0 %v6774_v1  ;;  %v11243_v22 = vpop.f32.mrb[14].mxu1  ;;  %3069 = vmatprep.mubr.f32.mxu0 %v634_v10  ;;  %v1428_v1 = vld [vmem:[%s13510_s1 + $0x1768] sm:$0xff]  ;;  %v7364_v7 = vpack.c.bf16 %v1374_v61, %v1371_v60  ;;  %v6788_v10 = vpack.c.bf16 %v1672_v63, %v1669_v59  ;;  %v1691_v45 = vld [vmem:[%s13510_s1 + $0x1fa0] sm:$0xff]  ;;  %v1690_v59 = vld [vmem:[%s13510_s1 + $0x1f98] sm:$0xff] }
 0x221   : > { %4191 = vmatmul.mubr.f32.vlgmr.msra.gmra.mrb[64].mxu1 %v7885_v23  ;;  %v11252_v27 = vpop.f32.mrb[15].mxu1  ;;  %v1685_v23 = vld [vmem:[%s13510_s1 + $0x1f70] sm:$0xff]  ;;  %v1443_v60 = vld [vmem:[%s13510_s1 + $0x17e0] sm:$0xff]  ;;  %v1446_v61 = vld [vmem:[%s13510_s1 + $0x17f8] sm:$0xff] }
 0x222   : > { %7353 = vmatpush3.bf16.msra.mxu1 %v7352_v11  ;;  %4195 = vmatprep.mubr.f32.mxu1 %v7886_v30  ;;  %v7366_v11 = vpack.c.bf16 %v1428_v1, %v1425_v0  ;;  %v6794_v39 = vpack.c.bf16 %v1685_v23, %v1682_v21  ;;  %v1694_v63 = vld [vmem:[%s13510_s1 + $0x1fb8] sm:$0xff]  ;;  %v1697_v0 = vld [vmem:[%s13510_s1 + $0x1fd0] sm:$0xff] }
 0x223   : > { %6777 = vmatpush1.bf16.msra.mxu0 %v6776_v12  ;;  %7355 = vmatprep.subr.bf16.mxu1 %v7354_v14  ;;  %v1675_v12 = vld [vmem:[%s13510_s1 + $0x1f20] sm:$0xff]  ;;  %v1377_v14 = vld [vmem:[%s13510_s1 + $0x15d0] sm:$0xff] }
 0x224   : > { %6779 = vmatprep.subr.bf16.mxu0 %v6778_v18  ;;  %3070 = vmatmul.mubr.f32.gmra.mrb[4].mxu0 %v11255_v28  ;;  %v1431_v18 = vld [vmem:[%s13510_s1 + $0x1780] sm:$0xff]  ;;  %v7368_v25 = vpack.c.bf16 %v1380_v15, %v1377_v14  ;;  %v6792_v30 = vpack.c.bf16 %v1678_v17, %v1675_v12  ;;  %v6802_v12 = vpack.c.bf16 %v1697_v0, %v1694_v63  ;;  %v1696_v14 = vld [vmem:[%s13510_s1 + $0x1fc8] sm:$0xff]  ;;  %v1497_v15 = vld [vmem:[%s13510_s1 + $0x1990] sm:$0xff] }
 0x225   : > { %4196 = vmatmul.mubr.f32.gmra.mrb[66].mxu1 %v7887_v46  ;;  %3075 = vmatprep.mubr.f32.mxu0 %v11259_v32  ;;  %v7893_v0 = vld [vmem:[%s8579_s9 + $0x70] sm:$0xff] }
 0x226   : > { %7357 = vmatpush3.bf16.msra.mxu1 %v7356_v31  ;;  %4200 = vmatprep.mubr.f32.mxu1 %v7888_v50  ;;  %v7370_v31 = vpack.c.bf16 %v1434_v19, %v1431_v18  ;;  %v1687_v50 = vld [vmem:[%s13510_s1 + $0x1f80] sm:$0xff]  ;;  %v1700_v18 = vld [vmem:[%s13510_s1 + $0x1fe8] sm:$0xff] }
 0x227   : > { %6781 = vmatpush1.bf16.msra.mxu0 %v6780_v33  ;;  %7359 = vmatprep.subr.bf16.mxu1 %v7358_v35  ;;  %v1681_v33 = vld [vmem:[%s13510_s1 + $0x1f50] sm:$0xff]  ;;  %v1383_v35 = vld [vmem:[%s13510_s1 + $0x1600] sm:$0xff]  ;;  %v6800_v4 = vpack.c.bf16 %v1690_v59, %v1687_v50 }
 0x228   : > { %6783 = vmatprep.subr.bf16.mxu0 %v6782_v41  ;;  %3076 = vmatmul.mubr.f32.gmra.mrb[6].mxu0 %v11289_v49  ;;  %v1437_v41 = vld [vmem:[%s13510_s1 + $0x17b0] sm:$0xff]  ;;  %v7372_v46 = vpack.c.bf16 %v1386_v36, %v1383_v35  ;;  %v6796_v47 = vpack.c.bf16 %v1684_v40, %v1681_v33  ;;  %v1703_v19 = vld [vmem:[%s13510_s1 + $0x2000] sm:$0xff]  ;;  %v1452_v33 = vld [vmem:[%s13510_s1 + $0x1828] sm:$0xff] }
 0x229   : > { %4201 = vmatmul.mubr.f32.gmra.mrb[68].mxu1 %v7889_v2  ;;  %3146 = vmatprep.mubr.f32.mxu0 %v11293_v54  ;;  %v7374_v48 = vpack.c.bf16 %v1440_v42, %v1437_v41  ;;  %v6806_v35 = vpack.c.bf16 %v1703_v19, %v1700_v18  ;;  %v1702_v36 = vld [vmem:[%s13510_s1 + $0x1ff8] sm:$0xff]  ;;  %v1515_v19 = vld [vmem:[%s13510_s1 + $0x1a20] sm:$0xff] }
 0x22a   : > { %7361 = vmatpush3.bf16.msra.mxu1 %v7360_v53  ;;  %4205 = vmatprep.mubr.f32.mxu1 %v7890_v6  ;;  %v1389_v53 = vld [vmem:[%s13510_s1 + $0x1630] sm:$0xff]  ;;  %v7378_v6 = vpack.c.bf16 %v1446_v61, %v1443_v60  ;;  %v1506_v40 = vld [vmem:[%s13510_s1 + $0x19d8] sm:$0xff]  ;;  %v1708_v60 = vld [vmem:[%s13510_s1 + $0x2028] sm:$0xff] }
 0x22b   : > { %6785 = vmatpush1.bf16.msra.mxu0 %v6784_v56  ;;  %7363 = vmatprep.subr.bf16.mxu1 %v7362_v58  ;;  %v1392_v56 = vld [vmem:[%s13510_s1 + $0x1648] sm:$0xff]  ;;  %v6798_v58 = vpack.c.bf16 %v1691_v45, %v1688_v44  ;;  %v1706_v42 = vld [vmem:[%s13510_s1 + $0x2018] sm:$0xff]  ;;  %v1709_v44 = vld [vmem:[%s13510_s1 + $0x2030] sm:$0xff] }
 0x22c   : > { %6787 = vmatprep.subr.bf16.mxu0 %v6786_v62  ;;  %v7376_v2 = vpack.c.bf16 %v1392_v56, %v1389_v53  ;;  %v1705_v53 = vld [vmem:[%s13510_s1 + $0x2010] sm:$0xff]  ;;  %v1455_v56 = vld [vmem:[%s13510_s1 + $0x1840] sm:$0xff]  ;;  %v6810_v59 = vpack.c.bf16 %v1709_v44, %v1706_v42  ;;  %v1714_v18 = vld [vmem:[%s13510_s1 + $0x2058] sm:$0xff] }
 0x22d   : > { %4206 = vmatmul.mubr.f32.gmra.mrb[70].mxu1 %v7891_v20  ;;  %v1509_v61 = vld [vmem:[%s13510_s1 + $0x19f0] sm:$0xff]  ;;  %v1720_v42 = vld [vmem:[%s13510_s1 + $0x2088] sm:$0xff] }
 0x22e   : > { %7365 = vmatpush3.bf16.msra.mxu1 %v7364_v7  ;;  %4275 = vmatprep.mubr.f32.mxu1 %v7892_v26  ;;  %v1693_v7 = vld [vmem:[%s13510_s1 + $0x1fb0] sm:$0xff] }
 0x22f   : > { %6789 = vmatpush1.bf16.msra.mxu0 %v6788_v10  ;;  %7367 = vmatprep.subr.bf16.mxu1 %v7366_v11  ;;  %v1395_v10 = vld [vmem:[%s13510_s1 + $0x1660] sm:$0xff]  ;;  %v1398_v11 = vld [vmem:[%s13510_s1 + $0x1678] sm:$0xff]  ;;  %v1521_v44 = vld [vmem:[%s13510_s1 + $0x1a50] sm:$0xff] }
 0x230   : > { %6791 = vmatprep.subr.bf16.mxu0 %v6790_v16  ;;  %v1500_v16 = vld [vmem:[%s13510_s1 + $0x19a8] sm:$0xff]  ;;  %v7380_v21 = vpack.c.bf16 %v1398_v11, %v1395_v10  ;;  %v6812_v11 = vpack.c.bf16 %v1708_v60, %v1705_v53  ;;  %v7898_v53 = vld [vmem:[%s8579_s9 + $0x378] sm:$0xff]  ;;  %v1723_v60 = vld [vmem:[%s13510_s1 + $0x20a0] sm:$0xff] }
 0x231   : > { %v7382_v26 = vpack.c.bf16 %v1500_v16, %v1497_v15  ;;  %v1461_v15 = vld [vmem:[%s13510_s1 + $0x1870] sm:$0xff]  ;;  %v1464_v16 = vld [vmem:[%s13510_s1 + $0x1888] sm:$0xff] }
 0x232   : > { %7369 = vmatpush3.bf16.msra.mxu1 %v7368_v25  ;;  %v6804_v25 = vpack.c.bf16 %v1696_v14, %v1693_v7  ;;  %v1711_v14 = vld [vmem:[%s13510_s1 + $0x2040] sm:$0xff] }
 0x233   : > { %6793 = vmatpush1.bf16.msra.mxu0 %v6792_v30  ;;  %7371 = vmatprep.subr.bf16.mxu1 %v7370_v31  ;;  %v1699_v30 = vld [vmem:[%s13510_s1 + $0x1fe0] sm:$0xff]  ;;  %v1449_v31 = vld [vmem:[%s13510_s1 + $0x1810] sm:$0xff] }
 0x234   : > { %6795 = vmatprep.subr.bf16.mxu0 %v6794_v39  ;;  %v5410_v62 = vpop.f32.mrb[16].mxu1  ;;  %v1503_v39 = vld [vmem:[%s13510_s1 + $0x19c0] sm:$0xff] }
 0x235   : > { %v5411_v1 = vpop.f32.mrb[17].mxu1  ;;  %v7386_v50 = vpack.c.bf16 %v1506_v40, %v1503_v39  ;;  %v1467_v39 = vld [vmem:[%s13510_s1 + $0x18a0] sm:$0xff]  ;;  %v1470_v40 = vld [vmem:[%s13510_s1 + $0x18b8] sm:$0xff] }
 0x236   : > { %7373 = vmatpush3.bf16.msra.mxu1 %v7372_v46  ;;  %v11397_v3 = vadd.f32 %v5411_v1, %v5410_v62  ;;  %v7384_v46 = vpack.c.bf16 %v1452_v33, %v1449_v31  ;;  %v1512_v62 = vld [vmem:[%s13510_s1 + $0x1a08] sm:$0xff]  ;;  %v7392_v31 = vpack.c.bf16 %v1464_v16, %v1461_v15  ;;  %v6816_v33 = vpack.c.bf16 %v1714_v18, %v1711_v14  ;;  %v1729_v16 = vld [vmem:[%s13510_s1 + $0x20d0] sm:$0xff]  ;;  %v1482_v18 = vld [vmem:[%s13510_s1 + $0x1918] sm:$0xff] }
 0x237   : > { %6797 = vmatpush1.bf16.msra.mxu0 %v6796_v47  ;;  %7375 = vmatprep.subr.bf16.mxu1 %v7374_v48  ;;  %v6808_v48 = vpack.c.bf16 %v1702_v36, %v1699_v30  ;;  %v1712_v1 = vld [vmem:[%s13510_s1 + $0x2048] sm:$0xff]  ;;  %v7896_v30 = vld [vmem:[%s8579_s9 + $0x278] sm:$0xff]  ;;  %v1717_v36 = vld [vmem:[%s13510_s1 + $0x2070] sm:$0xff] }
 0x238   : > { %6799 = vmatprep.subr.bf16.mxu0 %v6798_v58  ;;  %v5413_v17 = vpop.f32.mrb[18].mxu1  ;;  %v1458_v58 = vld [vmem:[%s13510_s1 + $0x1858] sm:$0xff] }
 0x239   : > { %v5414_v20 = vpop.f32.mrb[19].mxu1  ;;  %v7388_v7 = vpack.c.bf16 %v1458_v58, %v1455_v56  ;;  %v7396_v56 = vpack.c.bf16 %v1470_v40, %v1467_v39  ;;  %v6820_v58 = vpack.c.bf16 %v1720_v42, %v1717_v36  ;;  %v1735_v36 = vld [vmem:[%s13510_s1 + $0x2100] sm:$0xff]  ;;  %v1485_v39 = vld [vmem:[%s13510_s1 + $0x1930] sm:$0xff]  ;;  %v1488_v40 = vld [vmem:[%s13510_s1 + $0x1948] sm:$0xff] }
 0x23a   : > { %7377 = vmatpush3.bf16.msra.mxu1 %v7376_v2  ;;  %v11423_v23 = vadd.f32 %v5414_v20, %v5413_v17  ;;  %v1715_v2 = vld [vmem:[%s13510_s1 + $0x2060] sm:$0xff]  ;;  %v1518_v20 = vld [vmem:[%s13510_s1 + $0x1a38] sm:$0xff] }
 0x23b   : > { %6801 = vmatpush1.bf16.msra.mxu0 %v6800_v4  ;;  %7379 = vmatprep.subr.bf16.mxu1 %v7378_v6  ;;  %v7894_v6 = vld [vmem:[%s8579_s9 + $0x178] sm:$0xff]  ;;  %v6814_v17 = vpack.c.bf16 %v1715_v2, %v1712_v1  ;;  %v1527_v1 = vld [vmem:[%s13510_s1 + $0x1a80] sm:$0xff] }
 0x23c   : > { %6803 = vmatprep.subr.bf16.mxu0 %v6802_v12  ;;  %v5416_v41 = vpop.f32.mrb[20].mxu1  ;;  %v7390_v12 = vpack.c.bf16 %v1512_v62, %v1509_v61  ;;  %v1473_v61 = vld [vmem:[%s13510_s1 + $0x18d0] sm:$0xff]  ;;  %v1476_v62 = vld [vmem:[%s13510_s1 + $0x18e8] sm:$0xff]  ;;  %v1530_v2 = vld [vmem:[%s13510_s1 + $0x1a98] sm:$0xff] }
 0x23d   : > { %v5417_v45 = vpop.f32.mrb[21].mxu1  ;;  %v7402_v15 = vpack.c.bf16 %v1530_v2, %v1527_v1 }
 0x23e   : > { %7381 = vmatpush3.bf16.msra.mxu1 %v7380_v21  ;;  %v11449_v47 = vadd.f32 %v5417_v45, %v5416_v41  ;;  %v7895_v21 = vld [vmem:[%s8579_s9 + $0x170] sm:$0xff]  ;;  %v1524_v45 = vld [vmem:[%s13510_s1 + $0x1a68] sm:$0xff] }
 0x23f   : > { %6805 = vmatpush1.bf16.msra.mxu0 %v6804_v25  ;;  %7383 = vmatprep.subr.bf16.mxu1 %v7382_v26  ;;  %v1718_v25 = vld [vmem:[%s13510_s1 + $0x2078] sm:$0xff]  ;;  %v1721_v26 = vld [vmem:[%s13510_s1 + $0x2090] sm:$0xff] }
 0x240   : > { %6807 = vmatprep.subr.bf16.mxu0 %v6806_v35  ;;  %v5419_v63 = vpop.f32.mrb[22].mxu1  ;;  %v7394_v35 = vpack.c.bf16 %v1518_v20, %v1515_v19  ;;  %v6818_v41 = vpack.c.bf16 %v1721_v26, %v1718_v25  ;;  %v1732_v20 = vld [vmem:[%s13510_s1 + $0x20e8] sm:$0xff] }
 0x241   : > { %4276 = vmatmul.mubr.f32.vlgmr.msra.gmra.mrb[72].mxu1 %v7893_v0  ;;  %v5420_v4 = vpop.f32.mrb[23].mxu1  ;;  %v1726_v0 = vld [vmem:[%s13510_s1 + $0x20b8] sm:$0xff]  ;;  %v1536_v25 = vld [vmem:[%s13510_s1 + $0x1ac8] sm:$0xff] }
 0x242   : > { %7385 = vmatpush3.bf16.msra.mxu1 %v7384_v46  ;;  %4280 = vmatprep.mubr.f32.mxu1 %v7894_v6  ;;  %v11477_v10 = vadd.f32 %v5420_v4, %v5419_v63  ;;  %v7897_v46 = vld [vmem:[%s8579_s9 + $0x270] sm:$0xff]  ;;  %v1730_v6 = vld [vmem:[%s13510_s1 + $0x20d8] sm:$0xff]  ;;  %v6824_v14 = vpack.c.bf16 %v1726_v0, %v1723_v60  ;;  %v1736_v26 = vld [vmem:[%s13510_s1 + $0x2108] sm:$0xff] }
 0x243   : > { %6809 = vmatpush1.bf16.msra.mxu0 %v6808_v48  ;;  %7387 = vmatprep.subr.bf16.mxu1 %v7386_v50  ;;  %v1724_v48 = vld [vmem:[%s13510_s1 + $0x20a8] sm:$0xff]  ;;  %v1727_v50 = vld [vmem:[%s13510_s1 + $0x20c0] sm:$0xff]  ;;  %v7899_v4 = vld [vmem:[%s8579_s9 + $0x370] sm:$0xff] }
 0x244   : > { %6811 = vmatprep.subr.bf16.mxu0 %v6810_v59  ;;  %v7398_v59 = vpack.c.bf16 %v1524_v45, %v1521_v44  ;;  %v6822_v63 = vpack.c.bf16 %v1727_v50, %v1724_v48  ;;  %v1738_v44 = vld [vmem:[%s13510_s1 + $0x2118] sm:$0xff]  ;;  %v1539_v45 = vld [vmem:[%s13510_s1 + $0x1ae0] sm:$0xff] }
 0x245   : > { %4281 = vmatmul.mubr.f32.gmra.mrb[74].mxu1 %v7895_v21  ;;  %v1533_v21 = vld [vmem:[%s13510_s1 + $0x1ab0] sm:$0xff]  ;;  %v1742_v50 = vld [vmem:[%s13510_s1 + $0x2138] sm:$0xff]  ;;  %v6832_v60 = vpack.c.bf16 %v1738_v44, %v1735_v36  ;;  %v1599_v36 = vld [vmem:[%s13510_s1 + $0x1cc0] sm:$0xff] }
 0x246   : > { %7389 = vmatpush3.bf16.msra.mxu1 %v7388_v7  ;;  %4285 = vmatprep.mubr.f32.mxu1 %v7896_v30  ;;  %v1733_v7 = vld [vmem:[%s13510_s1 + $0x20f0] sm:$0xff]  ;;  %v1739_v30 = vld [vmem:[%s13510_s1 + $0x2120] sm:$0xff]  ;;  %v1494_v0 = vld [vmem:[%s13510_s1 + $0x1978] sm:$0xff] }
 0x247   : > { %6813 = vmatpush1.bf16.msra.mxu0 %v6812_v11  ;;  %7391 = vmatprep.subr.bf16.mxu1 %v7390_v12  ;;  %v7400_v11 = vpack.c.bf16 %v1476_v62, %v1473_v61  ;;  %v7900_v12 = vld [vmem:[%s8579_s9 + $0x88] sm:$0xff]  ;;  %v6826_v19 = vpack.c.bf16 %v1733_v7, %v1730_v6  ;;  %v6830_v42 = vpack.c.bf16 %v1739_v30, %v1736_v26  ;;  %v1741_v62 = vld [vmem:[%s13510_s1 + $0x2130] sm:$0xff]  ;;  %v11649_v26 = vld [vmem:[%s8579_s9 + $0x1a0] sm:$0xff] }
 0x248   : > { %6815 = vmatprep.subr.bf16.mxu0 %v6814_v17  ;;  %v1479_v17 = vld [vmem:[%s13510_s1 + $0x1900] sm:$0xff]  ;;  %v1593_v7 = vld [vmem:[%s13510_s1 + $0x1c90] sm:$0xff] }
 0x249   : > { %4286 = vmatmul.mubr.f32.gmra.mrb[76].mxu1 %v7897_v46  ;;  %v1542_v46 = vld [vmem:[%s13510_s1 + $0x1af8] sm:$0xff] }
 0x24a   : > { %7393 = vmatpush3.bf16.msra.mxu1 %v7392_v31  ;;  %4290 = vmatprep.mubr.f32.mxu1 %v7898_v53  ;;  %v7404_v31 = vpack.c.bf16 %v1482_v18, %v1479_v17  ;;  %v1745_v53 = vld [vmem:[%s13510_s1 + $0x2150] sm:$0xff]  ;;  %v7410_v61 = vpack.c.bf16 %v1542_v46, %v1539_v45  ;;  %v1747_v17 = vld [vmem:[%s13510_s1 + $0x2160] sm:$0xff] }
 0x24b   : > { %6817 = vmatpush1.bf16.msra.mxu0 %v6816_v33  ;;  %7395 = vmatprep.subr.bf16.mxu1 %v7394_v35  ;;  %v6828_v33 = vpack.c.bf16 %v1732_v20, %v1729_v16  ;;  %v7406_v35 = vpack.c.bf16 %v1536_v25, %v1533_v21  ;;  %v6834_v2 = vpack.c.bf16 %v1745_v53, %v1742_v50  ;;  %v1545_v21 = vld [vmem:[%s13510_s1 + $0x1b10] sm:$0xff]  ;;  %v1548_v25 = vld [vmem:[%s13510_s1 + $0x1b28] sm:$0xff]  ;;  %v1551_v53 = vld [vmem:[%s13510_s1 + $0x1b40] sm:$0xff] }
 0x24c   : > { %6819 = vmatprep.subr.bf16.mxu0 %v6818_v41  ;;  %v7416_v44 = vpack.c.bf16 %v1548_v25, %v1545_v21  ;;  %v1753_v50 = vld [vmem:[%s13510_s1 + $0x2190] sm:$0xff]  ;;  %v1762_v25 = vld [vmem:[%s13510_s1 + $0x21d8] sm:$0xff] }
 0x24d   : > { %4291 = vmatmul.mubr.f32.gmra.mrb[78].mxu1 %v7899_v4  ;;  %v1744_v4 = vld [vmem:[%s13510_s1 + $0x2148] sm:$0xff] }
 0x24e   : > { %7397 = vmatpush3.bf16.msra.mxu1 %v7396_v56  ;;  %4360 = vmatprep.mubr.f32.mxu1 %v7900_v12  ;;  %v1751_v12 = vld [vmem:[%s13510_s1 + $0x2180] sm:$0xff] }
 0x24f   : > { %6821 = vmatpush1.bf16.msra.mxu0 %v6820_v58  ;;  %7399 = vmatprep.subr.bf16.mxu1 %v7398_v59  ;;  %v11606_v58 = vld [vmem:[%s8579_s9 + $0xa0] sm:$0xff]  ;;  %v7408_v59 = vpack.c.bf16 %v1488_v40, %v1485_v39  ;;  %v1602_v39 = vld [vmem:[%s13510_s1 + $0x1cd8] sm:$0xff] }
 0x250   : > { %6823 = vmatprep.subr.bf16.mxu0 %v6822_v63  ;;  %v1491_v63 = vld [vmem:[%s13510_s1 + $0x1960] sm:$0xff]  ;;  %v1754_v40 = vld [vmem:[%s13510_s1 + $0x2198] sm:$0xff] }
 0x251   : > { %v7412_v16 = vpack.c.bf16 %v1494_v0, %v1491_v63  ;;  %v1605_v63 = vld [vmem:[%s13510_s1 + $0x1cf0] sm:$0xff]  ;;  %v1608_v0 = vld [vmem:[%s13510_s1 + $0x1d08] sm:$0xff] }
 0x252   : > { %7401 = vmatpush3.bf16.msra.mxu1 %v7400_v11  ;;  %v1596_v11 = vld [vmem:[%s13510_s1 + $0x1ca8] sm:$0xff] }
 0x253   : > { %6825 = vmatpush1.bf16.msra.mxu0 %v6824_v14  ;;  %7403 = vmatprep.subr.bf16.mxu1 %v7402_v15  ;;  %v11636_v15 = vld [vmem:[%s8579_s9 + $0x1a8] sm:$0xff]  ;;  %v7414_v20 = vpack.c.bf16 %v1596_v11, %v1593_v7  ;;  %v11704_v7 = vld [vmem:[%s8579_s9 + $0x2a0] sm:$0xff] }
 0x254   : > { %v5454_v41 = vpop.f32.mrb[24].mxu1  ;;  %6827 = vmatprep.subr.bf16.mxu0 %v6826_v19  ;;  %v6836_v19 = vpack.c.bf16 %v1744_v4, %v1741_v62  ;;  %v1760_v4 = vld [vmem:[%s13510_s1 + $0x21c8] sm:$0xff] }
 0x255   : > { %v5455_v48 = vpop.f32.mrb[25].mxu1  ;;  %v7902_v11 = vld [vmem:[%s8579_s9 + $0x188] sm:$0xff] }
 0x256   : > { %v5456_v56 = vadd.f32 %v5455_v48, %v5454_v41  ;;  %7405 = vmatpush3.bf16.msra.mxu1 %v7404_v31  ;;  %v1750_v31 = vld [vmem:[%s13510_s1 + $0x2178] sm:$0xff]  ;;  %v7418_v48 = vpack.c.bf16 %v1602_v39, %v1599_v36  ;;  %v7903_v36 = vld [vmem:[%s8579_s9 + $0x180] sm:$0xff] }
 0x257   : > { %6829 = vmatpush1.bf16.msra.mxu0 %v6828_v33  ;;  %7407 = vmatprep.subr.bf16.mxu1 %v7406_v35  ;;  %v6840_v46 = vpack.c.bf16 %v1750_v31, %v1747_v17  ;;  %v7422_v17 = vpack.c.bf16 %v1608_v0, %v1605_v63  ;;  %v1611_v31 = vld [vmem:[%s13510_s1 + $0x1d20] sm:$0xff]  ;;  %v1766_v39 = vld [vmem:[%s13510_s1 + $0x21f8] sm:$0xff]  ;;  %v1772_v0 = vld [vmem:[%s13510_s1 + $0x2228] sm:$0xff] }
 0x258   : > { %v11618_v1 = vadd.f32 %v5456_v56, %v11397_v3  ;;  %6831 = vmatprep.subr.bf16.mxu0 %v6830_v42  ;;  %v5457_v6 = vpop.f32.mrb[26].mxu1  ;;  %v1748_v3 = vld [vmem:[%s13510_s1 + $0x2168] sm:$0xff]  ;;  %v1554_v56 = vld [vmem:[%s13510_s1 + $0x1b58] sm:$0xff]  ;;  %v7905_v63 = vld [vmem:[%s8579_s9 + $0x280] sm:$0xff] }
 0x259   : > { %v5458_v14 = vpop.f32.mrb[27].mxu1  ;;  %v6838_v30 = vpack.c.bf16 %v1751_v12, %v1748_v3  ;;  %v11671_v42 = vld [vmem:[%s8579_s9 + $0x2a8] sm:$0xff]  ;;  %v7420_v3 = vpack.c.bf16 %v1554_v56, %v1551_v53  ;;  %v1566_v53 = vld [vmem:[%s13510_s1 + $0x1bb8] sm:$0xff] }
 0x25a   : > { %3147 = vmatmul.mubr.f32.vlgmr.msra.gmra.mrb[0].mxu0 %v11606_v58  ;;  %7409 = vmatpush3.bf16.msra.mxu1 %v7408_v59  ;;  %v5459_v18 = vadd.f32 %v5458_v14, %v5457_v6  ;;  %v11708_v14 = vld [vmem:[%s8579_s9 + $0x3a8] sm:$0xff] }
 0x25b   : > { %6833 = vmatpush1.bf16.msra.mxu0 %v6832_v60  ;;  %7411 = vmatprep.subr.bf16.mxu1 %v7410_v61  ;;  %v1756_v60 = vld [vmem:[%s13510_s1 + $0x21a8] sm:$0xff] }
 0x25c   : > { %6835 = vmatprep.subr.bf16.mxu0 %v6834_v2  ;;  %v11655_v33 = vadd.f32 %v5459_v18, %v11423_v23  ;;  %v5460_v35 = vpop.f32.mrb[28].mxu1  ;;  %3152 = vmatprep.mubr.f32.mxu0 %v11636_v15  ;;  %v1757_v23 = vld [vmem:[%s13510_s1 + $0x21b0] sm:$0xff]  ;;  %v7901_v2 = vld [vmem:[%s8579_s9 + $0x80] sm:$0xff] }
 0x25d   : > { %v5461_v41 = vpop.f32.mrb[29].mxu1  ;;  %v6842_v59 = vpack.c.bf16 %v1757_v23, %v1754_v40  ;;  %v1759_v18 = vld [vmem:[%s13510_s1 + $0x21c0] sm:$0xff]  ;;  %v7904_v23 = vld [vmem:[%s8579_s9 + $0x288] sm:$0xff] }
 0x25e   : > { %7413 = vmatpush3.bf16.msra.mxu1 %v7412_v16  ;;  %v5462_v45 = vadd.f32 %v5461_v41, %v5460_v35  ;;  %3153 = vmatmul.mubr.f32.gmra.mrb[2].mxu0 %v11649_v26  ;;  %v6844_v16 = vpack.c.bf16 %v1756_v60, %v1753_v50  ;;  %v1614_v35 = vld [vmem:[%s13510_s1 + $0x1d38] sm:$0xff]  ;;  %v11741_v40 = vld [vmem:[%s8579_s9 + $0x3a0] sm:$0xff]  ;;  %v1617_v60 = vld [vmem:[%s13510_s1 + $0x1d50] sm:$0xff] }
 0x25f   : > { %6837 = vmatpush1.bf16.msra.mxu0 %v6836_v19  ;;  %7415 = vmatprep.subr.bf16.mxu1 %v7414_v20  ;;  %v1557_v19 = vld [vmem:[%s13510_s1 + $0x1b70] sm:$0xff]  ;;  %v1560_v20 = vld [vmem:[%s13510_s1 + $0x1b88] sm:$0xff]  ;;  %v1563_v50 = vld [vmem:[%s13510_s1 + $0x1ba0] sm:$0xff] }
 0x260   : > { %6839 = vmatprep.subr.bf16.mxu0 %v6838_v30  ;;  %v11687_v61 = vadd.f32 %v5462_v45, %v11449_v47  ;;  %v5463_v62 = vpop.f32.mrb[30].mxu1  ;;  %3158 = vmatprep.mubr.f32.mxu0 %v11671_v42  ;;  %v1763_v47 = vld [vmem:[%s13510_s1 + $0x21e0] sm:$0xff]  ;;  %v7424_v41 = vpack.c.bf16 %v1560_v20, %v1557_v19  ;;  %v6848_v45 = vpack.c.bf16 %v1762_v25, %v1759_v18  ;;  %v1774_v18 = vld [vmem:[%s13510_s1 + $0x2238] sm:$0xff] }
 0x261   : > { %4361 = vmatmul.mubr.f32.vlgmr.msra.gmra.mrb[80].mxu1 %v7901_v2  ;;  %v5464_v6 = vpop.f32.mrb[31].mxu1  ;;  %v6846_v21 = vpack.c.bf16 %v1763_v47, %v1760_v4  ;;  %v1775_v2 = vld [vmem:[%s13510_s1 + $0x2240] sm:$0xff]  ;;  %v7906_v4 = vld [vmem:[%s8579_s9 + $0x388] sm:$0xff]  ;;  %v7428_v47 = vpack.c.bf16 %v1566_v53, %v1563_v50  ;;  %v1626_v20 = vld [vmem:[%s13510_s1 + $0x1d98] sm:$0xff] }
 0x262   : > { %7417 = vmatpush3.bf16.msra.mxu1 %v7416_v44  ;;  %4365 = vmatprep.mubr.f32.mxu1 %v7902_v11  ;;  %v5465_v12 = vadd.f32 %v5464_v6, %v5463_v62  ;;  %v11745_v44 = vld [vmem:[%s8579_s9 + $0xb8] sm:$0xff]  ;;  %v1620_v62 = vld [vmem:[%s13510_s1 + $0x1d68] sm:$0xff]  ;;  %v1623_v19 = vld [vmem:[%s13510_s1 + $0x1d80] sm:$0xff] }
 0x263   : > { %6841 = vmatpush1.bf16.msra.mxu0 %v6840_v46  ;;  %7419 = vmatprep.subr.bf16.mxu1 %v7418_v48  ;;  %v7426_v46 = vpack.c.bf16 %v1614_v35, %v1611_v31  ;;  %v1765_v48 = vld [vmem:[%s13510_s1 + $0x21f0] sm:$0xff]  ;;  %v7430_v11 = vpack.c.bf16 %v1620_v62, %v1617_v60  ;;  %v1778_v25 = vld [vmem:[%s13510_s1 + $0x2258] sm:$0xff]  ;;  %v1632_v53 = vld [vmem:[%s13510_s1 + $0x1dc8] sm:$0xff] }
 0x264   : > { %6843 = vmatprep.subr.bf16.mxu0 %v6842_v59  ;;  %v11723_v30 = vadd.f32 %v5465_v12, %v11477_v10  ;;  %3159 = vmatmul.mubr.f32.gmra.mrb[4].mxu0 %v11704_v7  ;;  %v1769_v10 = vld [vmem:[%s13510_s1 + $0x2210] sm:$0xff]  ;;  %v1768_v59 = vld [vmem:[%s13510_s1 + $0x2208] sm:$0xff] }
 0x265   : > { %4366 = vmatmul.mubr.f32.gmra.mrb[82].mxu1 %v7903_v36  ;;  %3164 = vmatprep.mubr.f32.mxu0 %v11708_v14  ;;  %v6850_v56 = vpack.c.bf16 %v1769_v10, %v1766_v39  ;;  %v6852_v6 = vpack.c.bf16 %v1768_v59, %v1765_v48  ;;  %v1569_v12 = vld [vmem:[%s13510_s1 + $0x1bd0] sm:$0xff]  ;;  %v7908_v36 = vld [vmem:[%s8579_s9 + $0x98] sm:$0xff]  ;;  %v7434_v10 = vpack.c.bf16 %v1626_v20, %v1623_v19  ;;  %v1780_v48 = vld [vmem:[%s13510_s1 + $0x2268] sm:$0xff] }
 0x266   : > { %7421 = vmatpush3.bf16.msra.mxu1 %v7420_v3  ;;  %4370 = vmatprep.mubr.f32.mxu1 %v7904_v23  ;;  %v1771_v3 = vld [vmem:[%s13510_s1 + $0x2220] sm:$0xff]  ;;  %v1781_v31 = vld [vmem:[%s13510_s1 + $0x2270] sm:$0xff] }
 0x267   : > { %6845 = vmatpush1.bf16.msra.mxu0 %v6844_v16  ;;  %7423 = vmatprep.subr.bf16.mxu1 %v7422_v17  ;;  %v1572_v16 = vld [vmem:[%s13510_s1 + $0x1be8] sm:$0xff]  ;;  %v6854_v17 = vpack.c.bf16 %v1775_v2, %v1772_v0  ;;  %v6856_v39 = vpack.c.bf16 %v1774_v18, %v1771_v3  ;;  %v1777_v23 = vld [vmem:[%s13510_s1 + $0x2250] sm:$0xff]  ;;  %v1787_v59 = vld [vmem:[%s13510_s1 + $0x22a0] sm:$0xff] }
 0x268   : > { %6847 = vmatprep.subr.bf16.mxu0 %v6846_v21  ;;  %3165 = vmatmul.mubr.f32.gmra.mrb[6].mxu0 %v11741_v40  ;;  %v7907_v21 = vld [vmem:[%s8579_s9 + $0x380] sm:$0xff]  ;;  %v7432_v35 = vpack.c.bf16 %v1572_v16, %v1569_v12  ;;  %v1629_v50 = vld [vmem:[%s13510_s1 + $0x1db0] sm:$0xff]  ;;  %v6860_v62 = vpack.c.bf16 %v1780_v48, %v1777_v23  ;;  %v1638_v12 = vld [vmem:[%s13510_s1 + $0x1df8] sm:$0xff] }
 0x269   : > { %4371 = vmatmul.mubr.f32.gmra.mrb[84].mxu1 %v7905_v63  ;;  %3235 = vmatprep.mubr.f32.mxu0 %v11745_v44  ;;  %v7438_v63 = vpack.c.bf16 %v1632_v53, %v1629_v50  ;;  %v1783_v0 = vld [vmem:[%s13510_s1 + $0x2280] sm:$0xff]  ;;  %v1581_v2 = vld [vmem:[%s13510_s1 + $0x1c30] sm:$0xff] }
 0x26a   : > { %7425 = vmatpush3.bf16.msra.mxu1 %v7424_v41  ;;  %4375 = vmatprep.mubr.f32.mxu1 %v7906_v4  ;;  %v1575_v41 = vld [vmem:[%s13510_s1 + $0x1c00] sm:$0xff]  ;;  %v1584_v4 = vld [vmem:[%s13510_s1 + $0x1c48] sm:$0xff]  ;;  %v1793_v18 = vld [vmem:[%s13510_s1 + $0x22d0] sm:$0xff] }
 0x26b   : > { %6849 = vmatpush1.bf16.msra.mxu0 %v6848_v45  ;;  %7427 = vmatprep.subr.bf16.mxu1 %v7426_v46  ;;  %v1578_v45 = vld [vmem:[%s13510_s1 + $0x1c18] sm:$0xff]  ;;  %v6858_v46 = vpack.c.bf16 %v1781_v31, %v1778_v25  ;;  %v1635_v3 = vld [vmem:[%s13510_s1 + $0x1de0] sm:$0xff]  ;;  %v7440_v20 = vpack.c.bf16 %v1584_v4, %v1581_v2  ;;  %v1789_v31 = vld [vmem:[%s13510_s1 + $0x22b0] sm:$0xff] }
 0x26c   : > { %6851 = vmatprep.subr.bf16.mxu0 %v6850_v56  ;;  %v1784_v56 = vld [vmem:[%s13510_s1 + $0x2288] sm:$0xff]  ;;  %v7436_v60 = vpack.c.bf16 %v1578_v45, %v1575_v41  ;;  %v7442_v25 = vpack.c.bf16 %v1638_v12, %v1635_v3  ;;  %v1689_v45 = vld [vmem:[%s13510_s1 + $0x1f90] sm:$0xff]  ;;  %v1799_v50 = vld [vmem:[%s13510_s1 + $0x2300] sm:$0xff] }
 0x26d   : > { %4376 = vmatmul.mubr.f32.gmra.mrb[86].mxu1 %v7907_v21  ;;  %v1792_v41 = vld [vmem:[%s13510_s1 + $0x22c8] sm:$0xff]  ;;  %v1698_v3 = vld [vmem:[%s13510_s1 + $0x1fd8] sm:$0xff] }
 0x26e   : > { %7429 = vmatpush3.bf16.msra.mxu1 %v7428_v47  ;;  %4445 = vmatprep.mubr.f32.mxu1 %v7908_v36  ;;  %v1590_v36 = vld [vmem:[%s13510_s1 + $0x1c78] sm:$0xff] }
 0x26f   : > { %6853 = vmatpush1.bf16.msra.mxu0 %v6852_v6  ;;  %7431 = vmatprep.subr.bf16.mxu1 %v7430_v11  ;;  %v6862_v6 = vpack.c.bf16 %v1787_v59, %v1784_v56  ;;  %v1786_v11 = vld [vmem:[%s13510_s1 + $0x2298] sm:$0xff]  ;;  %v6868_v59 = vpack.c.bf16 %v1792_v41, %v1789_v31  ;;  %v1701_v41 = vld [vmem:[%s13510_s1 + $0x1ff0] sm:$0xff] }
 0x270   : > { %6855 = vmatprep.subr.bf16.mxu0 %v6854_v17  ;;  %v1790_v17 = vld [vmem:[%s13510_s1 + $0x22b8] sm:$0xff]  ;;  %v6864_v21 = vpack.c.bf16 %v1786_v11, %v1783_v0  ;;  %v1644_v0 = vld [vmem:[%s13510_s1 + $0x1e28] sm:$0xff]  ;;  %v1695_v11 = vld [vmem:[%s13510_s1 + $0x1fc0] sm:$0xff] }
 0x271   : > { %v6866_v23 = vpack.c.bf16 %v1793_v18, %v1790_v17  ;;  %v1650_v31 = vld [vmem:[%s13510_s1 + $0x1e58] sm:$0xff] }
 0x272   : > { %7433 = vmatpush3.bf16.msra.mxu1 %v7432_v35  ;;  %v1587_v35 = vld [vmem:[%s13510_s1 + $0x1c60] sm:$0xff] }
 0x273   : > { %6857 = vmatpush1.bf16.msra.mxu0 %v6856_v39  ;;  %7435 = vmatprep.subr.bf16.mxu1 %v7434_v10  ;;  %v7444_v56 = vpack.c.bf16 %v1590_v36, %v1587_v35 }
 0x274   : > { %v5498_v47 = vpop.f32.mrb[32].mxu1  ;;  %6859 = vmatprep.subr.bf16.mxu0 %v6858_v46  ;;  %v1692_v46 = vld [vmem:[%s13510_s1 + $0x1fa8] sm:$0xff] }
 0x275   : > { %v5499_v16 = vpop.f32.mrb[33].mxu1 }
 0x276   : > { %v5500_v19 = vadd.f32 %v5499_v16, %v5498_v47  ;;  %7437 = vmatpush3.bf16.msra.mxu1 %v7436_v60  ;;  %v7446_v60 = vpack.c.bf16 %v1692_v46, %v1689_v45  ;;  %v1805_v16 = vld [vmem:[%s13510_s1 + $0x2330] sm:$0xff]  ;;  %v1704_v45 = vld [vmem:[%s13510_s1 + $0x2008] sm:$0xff] }
 0x277   : > { %6861 = vmatpush1.bf16.msra.mxu0 %v6860_v62  ;;  %7439 = vmatprep.subr.bf16.mxu1 %v7438_v63  ;;  %v1795_v62 = vld [vmem:[%s13510_s1 + $0x22e0] sm:$0xff]  ;;  %v1641_v63 = vld [vmem:[%s13510_s1 + $0x1e10] sm:$0xff] }
 0x278   : > { %v11859_v39 = vadd.f32 %v5500_v19, %v11618_v1  ;;  %v5501_v10 = vpop.f32.mrb[34].mxu1  ;;  %6863 = vmatprep.subr.bf16.mxu0 %v6862_v6  ;;  %v1796_v1 = vld [vmem:[%s13510_s1 + $0x22e8] sm:$0xff]  ;;  %v1798_v6 = vld [vmem:[%s13510_s1 + $0x22f8] sm:$0xff]  ;;  %v7448_v18 = vpack.c.bf16 %v1644_v0, %v1641_v63  ;;  %v1653_v63 = vld [vmem:[%s13510_s1 + $0x1e70] sm:$0xff] }
 0x279   : > { %v5502_v48 = vpop.f32.mrb[35].mxu1  ;;  %v6870_v47 = vpack.c.bf16 %v1799_v50, %v1796_v1  ;;  %v6872_v19 = vpack.c.bf16 %v1798_v6, %v1795_v62  ;;  %v1811_v1 = vld [vmem:[%s13510_s1 + $0x2360] sm:$0xff]  ;;  %v1656_v0 = vld [vmem:[%s13510_s1 + $0x1e88] sm:$0xff]  ;;  %v1810_v6 = vld [vmem:[%s13510_s1 + $0x2358] sm:$0xff] }
 0x27a   : > { %v5503_v53 = vadd.f32 %v5502_v48, %v5501_v10  ;;  %7441 = vmatpush3.bf16.msra.mxu1 %v7440_v20  ;;  %v7450_v20 = vpack.c.bf16 %v1698_v3, %v1695_v11  ;;  %v7909_v48 = vld [vmem:[%s8579_s9 + $0x90] sm:$0xff]  ;;  %v1807_v62 = vld [vmem:[%s13510_s1 + $0x2340] sm:$0xff]  ;;  %v1710_v3 = vld [vmem:[%s13510_s1 + $0x2038] sm:$0xff] }
 0x27b   : > { %6865 = vmatpush1.bf16.msra.mxu0 %v6864_v21  ;;  %7443 = vmatprep.subr.bf16.mxu1 %v7442_v25  ;;  %v1801_v21 = vld [vmem:[%s13510_s1 + $0x2310] sm:$0xff]  ;;  %v1647_v25 = vld [vmem:[%s13510_s1 + $0x1e40] sm:$0xff] }
 0x27c   : > { %v11886_v2 = vadd.f32 %v5503_v53, %v11655_v33  ;;  %v5504_v4 = vpop.f32.mrb[36].mxu1  ;;  %6867 = vmatprep.subr.bf16.mxu0 %v6866_v23  ;;  %v1802_v33 = vld [vmem:[%s13510_s1 + $0x2318] sm:$0xff]  ;;  %v1804_v23 = vld [vmem:[%s13510_s1 + $0x2328] sm:$0xff]  ;;  %v1707_v11 = vld [vmem:[%s13510_s1 + $0x2020] sm:$0xff] }
 0x27d   : > { %v5505_v12 = vpop.f32.mrb[37].mxu1  ;;  %v6874_v10 = vpack.c.bf16 %v1805_v16, %v1802_v33  ;;  %v7910_v53 = vld [vmem:[%s8579_s9 + $0x198] sm:$0xff]  ;;  %v1817_v33 = vld [vmem:[%s13510_s1 + $0x2390] sm:$0xff] }
 0x27e   : > { %v5506_v17 = vadd.f32 %v5505_v12, %v5504_v4  ;;  %7445 = vmatpush3.bf16.msra.mxu1 %v7444_v56  ;;  %v7452_v56 = vpack.c.bf16 %v1650_v31, %v1647_v25  ;;  %v7911_v12 = vld [vmem:[%s8579_s9 + $0x190] sm:$0xff]  ;;  %v7912_v16 = vld [vmem:[%s8579_s9 + $0x298] sm:$0xff] }
 0x27f   : > { %6869 = vmatpush1.bf16.msra.mxu0 %v6868_v59  ;;  %7447 = vmatprep.subr.bf16.mxu1 %v7446_v60  ;;  %v6876_v59 = vpack.c.bf16 %v1804_v23, %v1801_v21  ;;  %v7454_v60 = vpack.c.bf16 %v1704_v45, %v1701_v41  ;;  %v1659_v21 = vld [vmem:[%s13510_s1 + $0x1ea0] sm:$0xff]  ;;  %v1662_v25 = vld [vmem:[%s13510_s1 + $0x1eb8] sm:$0xff]  ;;  %v1716_v23 = vld [vmem:[%s13510_s1 + $0x2068] sm:$0xff] }
 0x280   : > { %v11913_v35 = vadd.f32 %v5506_v17, %v11687_v61  ;;  %v5507_v36 = vpop.f32.mrb[38].mxu1  ;;  %6871 = vmatprep.subr.bf16.mxu0 %v6870_v47  ;;  %v1808_v61 = vld [vmem:[%s13510_s1 + $0x2348] sm:$0xff]  ;;  %v7456_v17 = vpack.c.bf16 %v1656_v0, %v1653_v63  ;;  %v1823_v45 = vld [vmem:[%s13510_s1 + $0x23c0] sm:$0xff] }
 0x281   : > { %v5508_v46 = vpop.f32.mrb[39].mxu1  ;;  %4446 = vmatmul.mubr.f32.vlgmr.msra.gmra.mrb[88].mxu1 %v7909_v48  ;;  %v6878_v47 = vpack.c.bf16 %v1811_v1, %v1808_v61  ;;  %v1820_v41 = vld [vmem:[%s13510_s1 + $0x23a8] sm:$0xff]  ;;  %v1665_v1 = vld [vmem:[%s13510_s1 + $0x1ed0] sm:$0xff] }
 0x282   : > { %v5509_v50 = vadd.f32 %v5508_v46, %v5507_v36  ;;  %7449 = vmatpush3.bf16.msra.mxu1 %v7448_v18  ;;  %4450 = vmatprep.mubr.f32.mxu1 %v7910_v53  ;;  %v6880_v18 = vpack.c.bf16 %v1810_v6, %v1807_v62  ;;  %v1816_v36 = vld [vmem:[%s13510_s1 + $0x2388] sm:$0xff]  ;;  %v7460_v46 = vpack.c.bf16 %v1662_v25, %v1659_v21  ;;  %v1829_v62 = vld [vmem:[%s13510_s1 + $0x23f0] sm:$0xff]  ;;  %v1671_v6 = vld [vmem:[%s13510_s1 + $0x1f00] sm:$0xff] }
 0x283   : > { %6873 = vmatpush1.bf16.msra.mxu0 %v6872_v19  ;;  %7451 = vmatprep.subr.bf16.mxu1 %v7450_v20  ;;  %v7458_v19 = vpack.c.bf16 %v1710_v3, %v1707_v11  ;;  %v1813_v20 = vld [vmem:[%s13510_s1 + $0x2370] sm:$0xff]  ;;  %v6886_v53 = vpack.c.bf16 %v1823_v45, %v1820_v41  ;;  %v1674_v11 = vld [vmem:[%s13510_s1 + $0x1f18] sm:$0xff]  ;;  %v1680_v25 = vld [vmem:[%s13510_s1 + $0x1f48] sm:$0xff] }
 0x284   : > { %v11942_v4 = vadd.f32 %v5509_v50, %v11723_v30  ;;  %6875 = vmatprep.subr.bf16.mxu0 %v6874_v10  ;;  %v1814_v30 = vld [vmem:[%s13510_s1 + $0x2378] sm:$0xff]  ;;  %v1713_v10 = vld [vmem:[%s13510_s1 + $0x2050] sm:$0xff]  ;;  %v6884_v48 = vpack.c.bf16 %v1816_v36, %v1813_v20  ;;  %v1668_v50 = vld [vmem:[%s13510_s1 + $0x1ee8] sm:$0xff] }
 0x285   : > { %4451 = vmatmul.mubr.f32.gmra.mrb[90].mxu1 %v7911_v12  ;;  %v6882_v31 = vpack.c.bf16 %v1817_v33, %v1814_v30  ;;  %v7462_v61 = vpack.c.bf16 %v1716_v23, %v1713_v10  ;;  %v7464_v63 = vpack.c.bf16 %v1668_v50, %v1665_v1  ;;  %v1725_v12 = vld [vmem:[%s13510_s1 + $0x20b0] sm:$0xff]  ;;  %v1728_v30 = vld [vmem:[%s13510_s1 + $0x20c8] sm:$0xff]  ;;  %v1831_v20 = vld [vmem:[%s13510_s1 + $0x2400] sm:$0xff] }
 0x286   : > { %7453 = vmatpush3.bf16.msra.mxu1 %v7452_v56  ;;  %4455 = vmatprep.mubr.f32.mxu1 %v7912_v16  ;;  %v1719_v56 = vld [vmem:[%s13510_s1 + $0x2080] sm:$0xff]  ;;  %v1832_v33 = vld [vmem:[%s13510_s1 + $0x2408] sm:$0xff]  ;;  %v1677_v21 = vld [vmem:[%s13510_s1 + $0x1f30] sm:$0xff] }
 0x287   : > { %6877 = vmatpush1.bf16.msra.mxu0 %v6876_v59  ;;  %7455 = vmatprep.subr.bf16.mxu1 %v7454_v60  ;;  %v1722_v59 = vld [vmem:[%s13510_s1 + $0x2098] sm:$0xff]  ;;  %v1835_v16 = vld [vmem:[%s13510_s1 + $0x2420] sm:$0xff]  ;;  %v7472_v1 = vpack.c.bf16 %v1680_v25, %v1677_v21 }
 0x288   : > { %6879 = vmatprep.subr.bf16.mxu0 %v6878_v47  ;;  %v1826_v60 = vld [vmem:[%s13510_s1 + $0x23d8] sm:$0xff]  ;;  %v7466_v47 = vpack.c.bf16 %v1722_v59, %v1719_v56  ;;  %v6894_v36 = vpack.c.bf16 %v1835_v16, %v1832_v33  ;;  %v1731_v23 = vld [vmem:[%s13510_s1 + $0x20e0] sm:$0xff]  ;;  %v1737_v16 = vld [vmem:[%s13510_s1 + $0x2110] sm:$0xff] }
 0x289   : > { %4456 = vmatmul.mubr.f32.gmra.mrb[92].mxu1 %v11255_v28  ;;  %v1819_v28 = vld [vmem:[%s13510_s1 + $0x23a0] sm:$0xff]  ;;  %v6890_v3 = vpack.c.bf16 %v1829_v62, %v1826_v60  ;;  %v1834_v10 = vld [vmem:[%s13510_s1 + $0x2418] sm:$0xff] }
 0x28a   : > { %7457 = vmatpush3.bf16.msra.mxu1 %v7456_v17  ;;  %4460 = vmatprep.mubr.f32.mxu1 %v11259_v32  ;;  %v1822_v32 = vld [vmem:[%s13510_s1 + $0x23b8] sm:$0xff]  ;;  %v7468_v17 = vpack.c.bf16 %v1674_v11, %v1671_v6  ;;  %v6896_v50 = vpack.c.bf16 %v1834_v10, %v1831_v20  ;;  %v1683_v56 = vld [vmem:[%s13510_s1 + $0x1f60] sm:$0xff] }
 0x28b   : > { %6881 = vmatpush1.bf16.msra.mxu0 %v6880_v18  ;;  %7459 = vmatprep.subr.bf16.mxu1 %v7458_v19  ;;  %v6888_v0 = vpack.c.bf16 %v1822_v32, %v1819_v28  ;;  %v7470_v19 = vpack.c.bf16 %v1728_v30, %v1725_v12  ;;  %v1734_v41 = vld [vmem:[%s13510_s1 + $0x20f8] sm:$0xff]  ;;  %v12062_v28 = vld [vmem:[%s8579_s9 + $0xb0] sm:$0xff]  ;;  %v1847_v11 = vld [vmem:[%s13510_s1 + $0x2480] sm:$0xff] }
 0x28c   : > { %6883 = vmatprep.subr.bf16.mxu0 %v6882_v31  ;;  %v1837_v32 = vld [vmem:[%s13510_s1 + $0x2430] sm:$0xff]  ;;  %v1686_v59 = vld [vmem:[%s13510_s1 + $0x1f78] sm:$0xff]  ;;  %v1843_v12 = vld [vmem:[%s13510_s1 + $0x2460] sm:$0xff] }
 0x28d   : > { %4461 = vmatmul.mubr.f32.gmra.mrb[94].mxu1 %v11289_v49  ;;  %v1825_v49 = vld [vmem:[%s13510_s1 + $0x23d0] sm:$0xff]  ;;  %v1846_v25 = vld [vmem:[%s13510_s1 + $0x2478] sm:$0xff] }
 0x28e   : > { %7461 = vmatpush3.bf16.msra.mxu1 %v7460_v46  ;;  %4530 = vmatprep.mubr.f32.mxu1 %v11293_v54  ;;  %v1828_v54 = vld [vmem:[%s13510_s1 + $0x23e8] sm:$0xff]  ;;  %v1838_v46 = vld [vmem:[%s13510_s1 + $0x2438] sm:$0xff] }
 0x28f   : > { %6885 = vmatpush1.bf16.msra.mxu0 %v6884_v48  ;;  %7463 = vmatprep.subr.bf16.mxu1 %v7462_v61  ;;  %v6892_v18 = vpack.c.bf16 %v1828_v54, %v1825_v49  ;;  %v1841_v48 = vld [vmem:[%s13510_s1 + $0x2450] sm:$0xff]  ;;  %v1788_v49 = vld [vmem:[%s13510_s1 + $0x22a8] sm:$0xff]  ;;  %v7476_v54 = vpack.c.bf16 %v1686_v59, %v1683_v56  ;;  %v1850_v10 = vld [vmem:[%s13510_s1 + $0x2498] sm:$0xff] }
 0x290   : > { %6887 = vmatprep.subr.bf16.mxu0 %v6886_v53  ;;  %v7474_v53 = vpack.c.bf16 %v1734_v41, %v1731_v23  ;;  %v1853_v23 = vld [vmem:[%s13510_s1 + $0x24b0] sm:$0xff] }
 0x291   : > { %v12124_v41 = vld [vmem:[%s8579_s9 + $0x1b0] sm:$0xff] }
 0x292   : > { %7465 = vmatpush3.bf16.msra.mxu1 %v7464_v63  ;;  %v6898_v63 = vpack.c.bf16 %v1841_v48, %v1838_v46  ;;  %v1849_v48 = vld [vmem:[%s13510_s1 + $0x2490] sm:$0xff] }
 0x293   : > { %6889 = vmatpush1.bf16.msra.mxu0 %v6888_v0  ;;  %7467 = vmatprep.subr.bf16.mxu1 %v7466_v47  ;;  %v1840_v0 = vld [vmem:[%s13510_s1 + $0x2448] sm:$0xff]  ;;  %v1785_v47 = vld [vmem:[%s13510_s1 + $0x2290] sm:$0xff] }
 0x294   : > { %v5542_v31 = vpop.f32.mrb[40].mxu1  ;;  %6891 = vmatprep.subr.bf16.mxu0 %v6890_v3  ;;  %v6900_v30 = vpack.c.bf16 %v1840_v0, %v1837_v32  ;;  %v7478_v33 = vpack.c.bf16 %v1788_v49, %v1785_v47  ;;  %v12137_v32 = vld [vmem:[%s8579_s9 + $0x2b8] sm:$0xff]  ;;  %v1797_v0 = vld [vmem:[%s13510_s1 + $0x22f0] sm:$0xff]  ;;  %v1800_v47 = vld [vmem:[%s13510_s1 + $0x2308] sm:$0xff] }
 0x295   : > { %v5543_v45 = vpop.f32.mrb[41].mxu1 }
 0x296   : > { %v5544_v61 = vadd.f32 %v5543_v45, %v5542_v31  ;;  %7469 = vmatpush3.bf16.msra.mxu1 %v7468_v17  ;;  %v1740_v17 = vld [vmem:[%s13510_s1 + $0x2128] sm:$0xff]  ;;  %v1791_v31 = vld [vmem:[%s13510_s1 + $0x22c0] sm:$0xff] }
 0x297   : > { %6893 = vmatpush1.bf16.msra.mxu0 %v6892_v18  ;;  %7471 = vmatprep.subr.bf16.mxu1 %v7470_v19  ;;  %v12102_v18 = vld [vmem:[%s8579_s9 + $0x1b8] sm:$0xff]  ;;  %v7480_v46 = vpack.c.bf16 %v1740_v17, %v1737_v16 }
 0x298   : > { %v12074_v60 = vadd.f32 %v5544_v61, %v11859_v39  ;;  %v5545_v62 = vpop.f32.mrb[42].mxu1  ;;  %6895 = vmatprep.subr.bf16.mxu0 %v6894_v36  ;;  %v1844_v39 = vld [vmem:[%s13510_s1 + $0x2468] sm:$0xff]  ;;  %v1794_v36 = vld [vmem:[%s13510_s1 + $0x22d8] sm:$0xff]  ;;  %v6904_v61 = vpack.c.bf16 %v1846_v25, %v1843_v12  ;;  %v7486_v12 = vpack.c.bf16 %v1800_v47, %v1797_v0  ;;  %v1761_v47 = vld [vmem:[%s13510_s1 + $0x21d0] sm:$0xff] }
 0x299   : > { %v5546_v6 = vpop.f32.mrb[43].mxu1  ;;  %v6902_v21 = vpack.c.bf16 %v1847_v11, %v1844_v39  ;;  %v12185_v25 = vld [vmem:[%s8579_s9 + $0x3b8] sm:$0xff] }
 0x29a   : > { %v5547_v3 = vadd.f32 %v5546_v6, %v5545_v62  ;;  %3236 = vmatmul.mubr.f32.vlgmr.msra.gmra.mrb[0].mxu0 %v12062_v28  ;;  %7473 = vmatpush3.bf16.msra.mxu1 %v7472_v1  ;;  %v7482_v1 = vpack.c.bf16 %v1794_v36, %v1791_v31  ;;  %v6906_v62 = vpack.c.bf16 %v1853_v23, %v1850_v10  ;;  %v1859_v6 = vld [vmem:[%s13510_s1 + $0x24e0] sm:$0xff]  ;;  %v1865_v31 = vld [vmem:[%s13510_s1 + $0x2510] sm:$0xff]  ;;  %v12201_v10 = vld [vmem:[%s8579_s9 + $0xc8] sm:$0xff] }
 0x29b   : > { %6897 = vmatpush1.bf16.msra.mxu0 %v6896_v50  ;;  %7475 = vmatprep.subr.bf16.mxu1 %v7474_v53  ;;  %v1743_v50 = vld [vmem:[%s13510_s1 + $0x2140] sm:$0xff]  ;;  %v1746_v53 = vld [vmem:[%s13510_s1 + $0x2158] sm:$0xff] }
 0x29c   : > { %v12105_v19 = vadd.f32 %v5547_v3, %v11886_v2  ;;  %v5548_v20 = vpop.f32.mrb[44].mxu1  ;;  %6899 = vmatprep.subr.bf16.mxu0 %v6898_v63  ;;  %3241 = vmatprep.mubr.f32.mxu0 %v12102_v18  ;;  %v1852_v63 = vld [vmem:[%s13510_s1 + $0x24a8] sm:$0xff]  ;;  %v7484_v11 = vpack.c.bf16 %v1746_v53, %v1743_v50  ;;  %v1855_v3 = vld [vmem:[%s13510_s1 + $0x24c0] sm:$0xff] }
 0x29d   : > { %v5549_v2 = vpop.f32.mrb[45].mxu1  ;;  %v1812_v50 = vld [vmem:[%s13510_s1 + $0x2368] sm:$0xff] }
 0x29e   : > { %v5550_v45 = vadd.f32 %v5549_v2, %v5548_v20  ;;  %7477 = vmatpush3.bf16.msra.mxu1 %v7476_v54  ;;  %3242 = vmatmul.mubr.f32.gmra.mrb[2].mxu0 %v12124_v41  ;;  %v6908_v54 = vpack.c.bf16 %v1852_v63, %v1849_v48  ;;  %v1803_v20 = vld [vmem:[%s13510_s1 + $0x2320] sm:$0xff]  ;;  %v1861_v2 = vld [vmem:[%s13510_s1 + $0x24f0] sm:$0xff]  ;;  %v1868_v53 = vld [vmem:[%s13510_s1 + $0x2528] sm:$0xff] }
 0x29f   : > { %6901 = vmatpush1.bf16.msra.mxu0 %v6900_v30  ;;  %7479 = vmatprep.subr.bf16.mxu1 %v7478_v33  ;;  %v1749_v30 = vld [vmem:[%s13510_s1 + $0x2170] sm:$0xff] }
 0x2a0   : > { %v12140_v56 = vadd.f32 %v5550_v45, %v11913_v35  ;;  %v5551_v59 = vpop.f32.mrb[46].mxu1  ;;  %6903 = vmatprep.subr.bf16.mxu0 %v6902_v21  ;;  %3247 = vmatprep.mubr.f32.mxu0 %v12137_v32  ;;  %v1856_v35 = vld [vmem:[%s13510_s1 + $0x24c8] sm:$0xff]  ;;  %v12173_v33 = vld [vmem:[%s8579_s9 + $0x2b0] sm:$0xff]  ;;  %v1806_v21 = vld [vmem:[%s13510_s1 + $0x2338] sm:$0xff] }
 0x2a1   : > { %v5552_v49 = vpop.f32.mrb[47].mxu1  ;;  %4531 = vmatmul.mubr.f32.vlgmr.msra.gmra.mrb[96].mxu1 %v11606_v58  ;;  %v1858_v58 = vld [vmem:[%s13510_s1 + $0x24d8] sm:$0xff]  ;;  %v6910_v17 = vpack.c.bf16 %v1859_v6, %v1856_v35  ;;  %v7490_v23 = vpack.c.bf16 %v1806_v21, %v1803_v20  ;;  %v1755_v45 = vld [vmem:[%s13510_s1 + $0x21a0] sm:$0xff]  ;;  %v1821_v20 = vld [vmem:[%s13510_s1 + $0x23b0] sm:$0xff] }
 0x2a2   : > { %v5553_v39 = vadd.f32 %v5552_v49, %v5551_v59  ;;  %7481 = vmatpush3.bf16.msra.mxu1 %v7480_v46  ;;  %4535 = vmatprep.mubr.f32.mxu1 %v11636_v15  ;;  %v1752_v15 = vld [vmem:[%s13510_s1 + $0x2188] sm:$0xff]  ;;  %v1758_v46 = vld [vmem:[%s13510_s1 + $0x21b8] sm:$0xff]  ;;  %v1871_v59 = vld [vmem:[%s13510_s1 + $0x2540] sm:$0xff] }
 0x2a3   : > { %6905 = vmatpush1.bf16.msra.mxu0 %v6904_v61  ;;  %7483 = vmatprep.subr.bf16.mxu1 %v7482_v1  ;;  %v7488_v36 = vpack.c.bf16 %v1752_v15, %v1749_v30  ;;  %v1864_v61 = vld [vmem:[%s13510_s1 + $0x2508] sm:$0xff]  ;;  %v1809_v1 = vld [vmem:[%s13510_s1 + $0x2350] sm:$0xff]  ;;  %v6918_v35 = vpack.c.bf16 %v1871_v59, %v1868_v53  ;;  %v1815_v6 = vld [vmem:[%s13510_s1 + $0x2380] sm:$0xff] }
 0x2a4   : > { %v12176_v16 = vadd.f32 %v5553_v39, %v11942_v4  ;;  %6907 = vmatprep.subr.bf16.mxu0 %v6906_v62  ;;  %3248 = vmatmul.mubr.f32.gmra.mrb[4].mxu0 %v12173_v33  ;;  %v1862_v4 = vld [vmem:[%s13510_s1 + $0x24f8] sm:$0xff]  ;;  %v7492_v62 = vpack.c.bf16 %v1758_v46, %v1755_v45  ;;  %v6916_v63 = vpack.c.bf16 %v1864_v61, %v1861_v2  ;;  %v1764_v49 = vld [vmem:[%s13510_s1 + $0x21e8] sm:$0xff]  ;;  %v1767_v30 = vld [vmem:[%s13510_s1 + $0x2200] sm:$0xff] }
 0x2a5   : > { %4536 = vmatmul.mubr.f32.gmra.mrb[98].mxu1 %v11649_v26  ;;  %3253 = vmatprep.mubr.f32.mxu0 %v12185_v25  ;;  %v6912_v26 = vpack.c.bf16 %v1858_v58, %v1855_v3  ;;  %v6914_v48 = vpack.c.bf16 %v1865_v31, %v1862_v4  ;;  %v7494_v0 = vpack.c.bf16 %v1812_v50, %v1809_v1  ;;  %v1818_v39 = vld [vmem:[%s13510_s1 + $0x2398] sm:$0xff]  ;;  %v1877_v3 = vld [vmem:[%s13510_s1 + $0x2570] sm:$0xff]  ;;  %v1824_v21 = vld [vmem:[%s13510_s1 + $0x23c8] sm:$0xff] }
 0x2a6   : > { %7485 = vmatpush3.bf16.msra.mxu1 %v7484_v11  ;;  %4540 = vmatprep.mubr.f32.mxu1 %v11671_v42  ;;  %v12210_v42 = vld [vmem:[%s8579_s9 + $0x3b0] sm:$0xff]  ;;  %v1874_v11 = vld [vmem:[%s13510_s1 + $0x2558] sm:$0xff]  ;;  %v7496_v58 = vpack.c.bf16 %v1764_v49, %v1761_v47  ;;  %v1880_v4 = vld [vmem:[%s13510_s1 + $0x2588] sm:$0xff] }
 0x2a7   : > { %6909 = vmatpush1.bf16.msra.mxu0 %v6908_v54  ;;  %7487 = vmatprep.subr.bf16.mxu1 %v7486_v12  ;;  %v7498_v12 = vpack.c.bf16 %v1818_v39, %v1815_v6  ;;  %v1770_v15 = vld [vmem:[%s13510_s1 + $0x2218] sm:$0xff]  ;;  %v1883_v31 = vld [vmem:[%s13510_s1 + $0x25a0] sm:$0xff]  ;;  %v1773_v45 = vld [vmem:[%s13510_s1 + $0x2230] sm:$0xff] }
 0x2a8   : > { %6911 = vmatprep.subr.bf16.mxu0 %v6910_v17  ;;  %3254 = vmatmul.mubr.f32.gmra.mrb[6].mxu0 %v12210_v42  ;;  %v6922_v17 = vpack.c.bf16 %v1877_v3, %v1874_v11  ;;  %v1776_v46 = vld [vmem:[%s13510_s1 + $0x2248] sm:$0xff]  ;;  %v6926_v61 = vpack.c.bf16 %v1883_v31, %v1880_v4  ;;  %v1882_v1 = vld [vmem:[%s13510_s1 + $0x2598] sm:$0xff]  ;;  %v1827_v50 = vld [vmem:[%s13510_s1 + $0x23e0] sm:$0xff] }
 0x2a9   : > { %4541 = vmatmul.mubr.f32.gmra.mrb[100].mxu1 %v11704_v7  ;;  %3324 = vmatprep.mubr.f32.mxu0 %v12201_v10  ;;  %v1867_v7 = vld [vmem:[%s13510_s1 + $0x2520] sm:$0xff]  ;;  %v1830_v53 = vld [vmem:[%s13510_s1 + $0x23f8] sm:$0xff]  ;;  %v1833_v4 = vld [vmem:[%s13510_s1 + $0x2410] sm:$0xff] }
 0x2aa   : > { %7489 = vmatpush3.bf16.msra.mxu1 %v7488_v36  ;;  %4545 = vmatprep.mubr.f32.mxu1 %v11708_v14  ;;  %v1870_v14 = vld [vmem:[%s13510_s1 + $0x2538] sm:$0xff]  ;;  %v7500_v36 = vpack.c.bf16 %v1770_v15, %v1767_v30  ;;  %v7506_v49 = vpack.c.bf16 %v1830_v53, %v1827_v50  ;;  %v1895_v30 = vld [vmem:[%s13510_s1 + $0x2600] sm:$0xff]  ;;  %v1836_v31 = vld [vmem:[%s13510_s1 + $0x2428] sm:$0xff] }
 0x2ab   : > { %6913 = vmatpush1.bf16.msra.mxu0 %v6912_v26  ;;  %7491 = vmatprep.subr.bf16.mxu1 %v7490_v23  ;;  %v6920_v54 = vpack.c.bf16 %v1870_v14, %v1867_v7  ;;  %v7502_v26 = vpack.c.bf16 %v1824_v21, %v1821_v20  ;;  %v1879_v23 = vld [vmem:[%s13510_s1 + $0x2580] sm:$0xff]  ;;  %v7504_v7 = vpack.c.bf16 %v1776_v46, %v1773_v45  ;;  %v1782_v6 = vld [vmem:[%s13510_s1 + $0x2278] sm:$0xff] }
 0x2ac   : > { %6915 = vmatprep.subr.bf16.mxu0 %v6914_v48  ;;  %v6928_v47 = vpack.c.bf16 %v1882_v1, %v1879_v23  ;;  %v1779_v14 = vld [vmem:[%s13510_s1 + $0x2260] sm:$0xff]  ;;  %v1894_v23 = vld [vmem:[%s13510_s1 + $0x25f8] sm:$0xff]  ;;  %v7512_v50 = vpack.c.bf16 %v1836_v31, %v1833_v4 }
 0x2ad   : > { %4546 = vmatmul.mubr.f32.gmra.mrb[102].mxu1 %v11741_v40  ;;  %v1873_v40 = vld [vmem:[%s13510_s1 + $0x2550] sm:$0xff]  ;;  %v1891_v21 = vld [vmem:[%s13510_s1 + $0x25e0] sm:$0xff]  ;;  %v1890_v46 = vld [vmem:[%s13510_s1 + $0x25d8] sm:$0xff] }
 0x2ae   : > { %7493 = vmatpush3.bf16.msra.mxu1 %v7492_v62  ;;  %4615 = vmatprep.mubr.f32.mxu1 %v11745_v44  ;;  %v1876_v44 = vld [vmem:[%s13510_s1 + $0x2568] sm:$0xff]  ;;  %v1886_v62 = vld [vmem:[%s13510_s1 + $0x25b8] sm:$0xff]  ;;  %v1887_v45 = vld [vmem:[%s13510_s1 + $0x25c0] sm:$0xff]  ;;  %v6936_v53 = vpack.c.bf16 %v1894_v23, %v1891_v21 }
 0x2af   : > { %6917 = vmatpush1.bf16.msra.mxu0 %v6916_v63  ;;  %7495 = vmatprep.subr.bf16.mxu1 %v7494_v0  ;;  %v6924_v2 = vpack.c.bf16 %v1876_v44, %v1873_v40  ;;  %v1889_v63 = vld [vmem:[%s13510_s1 + $0x25d0] sm:$0xff]  ;;  %v1854_v23 = vld [vmem:[%s13510_s1 + $0x24b8] sm:$0xff] }
 0x2b0   : > { %6919 = vmatprep.subr.bf16.mxu0 %v6918_v35  ;;  %v1885_v35 = vld [vmem:[%s13510_s1 + $0x25b0] sm:$0xff]  ;;  %v6930_v3 = vpack.c.bf16 %v1889_v63, %v1886_v62  ;;  %v1839_v63 = vld [vmem:[%s13510_s1 + $0x2440] sm:$0xff] }
 0x2b1   : > { %v1897_v62 = vld [vmem:[%s13510_s1 + $0x2610] sm:$0xff] }
 0x2b2   : > { %7497 = vmatpush3.bf16.msra.mxu1 %v7496_v58  ;;  %v1888_v58 = vld [vmem:[%s13510_s1 + $0x25c8] sm:$0xff]  ;;  %v1913_v21 = vld [vmem:[%s13510_s1 + $0x2690] sm:$0xff] }
 0x2b3   : > { %6921 = vmatpush1.bf16.msra.mxu0 %v6920_v54  ;;  %7499 = vmatprep.subr.bf16.mxu1 %v7498_v12  ;;  %v1881_v54 = vld [vmem:[%s13510_s1 + $0x2590] sm:$0xff]  ;;  %v1884_v12 = vld [vmem:[%s13510_s1 + $0x25a8] sm:$0xff]  ;;  %v6932_v44 = vpack.c.bf16 %v1888_v58, %v1885_v35 }
 0x2b4   : > { %v5586_v48 = vpop.f32.mrb[48].mxu1  ;;  %6923 = vmatprep.subr.bf16.mxu0 %v6922_v17  ;;  %v7508_v17 = vpack.c.bf16 %v1782_v6, %v1779_v14  ;;  %v7510_v20 = vpack.c.bf16 %v1884_v12, %v1881_v54  ;;  %v1900_v35 = vld [vmem:[%s13510_s1 + $0x2628] sm:$0xff]  ;;  %v1893_v14 = vld [vmem:[%s13510_s1 + $0x25f0] sm:$0xff] }
 0x2b5   : > { %v5587_v59 = vpop.f32.mrb[49].mxu1  ;;  %v1896_v6 = vld [vmem:[%s13510_s1 + $0x2608] sm:$0xff]  ;;  %v6940_v12 = vpack.c.bf16 %v1900_v35, %v1897_v62  ;;  %v1925_v35 = vld [vmem:[%s13510_s1 + $0x26f0] sm:$0xff] }
 0x2b6   : > { %v5588_v0 = vadd.f32 %v5587_v59, %v5586_v48  ;;  %7501 = vmatpush3.bf16.msra.mxu1 %v7500_v36  ;;  %v7514_v59 = vpack.c.bf16 %v1890_v46, %v1887_v45  ;;  %v1905_v46 = vld [vmem:[%s13510_s1 + $0x2650] sm:$0xff]  ;;  %v1860_v62 = vld [vmem:[%s13510_s1 + $0x24e8] sm:$0xff] }
 0x2b7   : > { %6925 = vmatpush1.bf16.msra.mxu0 %v6924_v2  ;;  %7503 = vmatprep.subr.bf16.mxu1 %v7502_v26 }
 0x2b8   : > { %v12315_v39 = vadd.f32 %v5588_v0, %v12074_v60  ;;  %v5589_v11 = vpop.f32.mrb[50].mxu1  ;;  %6927 = vmatprep.subr.bf16.mxu0 %v6926_v61  ;;  %v1892_v60 = vld [vmem:[%s13510_s1 + $0x25e8] sm:$0xff]  ;;  %v1901_v61 = vld [vmem:[%s13510_s1 + $0x2630] sm:$0xff]  ;;  %v1842_v0 = vld [vmem:[%s13510_s1 + $0x2458] sm:$0xff] }
 0x2b9   : > { %v5590_v40 = vpop.f32.mrb[51].mxu1  ;;  %v6934_v26 = vpack.c.bf16 %v1895_v30, %v1892_v60  ;;  %v7516_v54 = vpack.c.bf16 %v1842_v0, %v1839_v63  ;;  %v1845_v60 = vld [vmem:[%s13510_s1 + $0x2470] sm:$0xff]  ;;  %v1848_v30 = vld [vmem:[%s13510_s1 + $0x2488] sm:$0xff]  ;;  %v1911_v0 = vld [vmem:[%s13510_s1 + $0x2680] sm:$0xff] }
 0x2ba   : > { %v5591_v15 = vadd.f32 %v5590_v40, %v5589_v11  ;;  %7505 = vmatpush3.bf16.msra.mxu1 %v7504_v7  ;;  %v7518_v40 = vpack.c.bf16 %v1896_v6, %v1893_v14  ;;  %v7520_v4 = vpack.c.bf16 %v1848_v30, %v1845_v60 }
 0x2bb   : > { %6929 = vmatpush1.bf16.msra.mxu0 %v6928_v47  ;;  %7507 = vmatprep.subr.bf16.mxu1 %v7506_v49 }
 0x2bc   : > { %v12342_v36 = vadd.f32 %v5591_v15, %v12105_v19  ;;  %v5592_v2 = vpop.f32.mrb[52].mxu1  ;;  %6931 = vmatprep.subr.bf16.mxu0 %v6930_v3  ;;  %v1898_v19 = vld [vmem:[%s13510_s1 + $0x2618] sm:$0xff]  ;;  %v1907_v3 = vld [vmem:[%s13510_s1 + $0x2660] sm:$0xff] }
 0x2bd   : > { %v5593_v48 = vpop.f32.mrb[53].mxu1  ;;  %v6938_v49 = vpack.c.bf16 %v1901_v61, %v1898_v19  ;;  %v1916_v19 = vld [vmem:[%s13510_s1 + $0x26a8] sm:$0xff]  ;;  %v1919_v61 = vld [vmem:[%s13510_s1 + $0x26c0] sm:$0xff] }
 0x2be   : > { %v5594_v1 = vadd.f32 %v5593_v48, %v5592_v2  ;;  %7509 = vmatpush3.bf16.msra.mxu1 %v7508_v17  ;;  %v1906_v17 = vld [vmem:[%s13510_s1 + $0x2658] sm:$0xff]  ;;  %v1908_v48 = vld [vmem:[%s13510_s1 + $0x2668] sm:$0xff]  ;;  %v6950_v63 = vpack.c.bf16 %v1919_v61, %v1916_v19  ;;  %v1933_v61 = vld [vmem:[%s13510_s1 + $0x2730] sm:$0xff] }
 0x2bf   : > { %6933 = vmatpush1.bf16.msra.mxu0 %v6932_v44  ;;  %7511 = vmatprep.subr.bf16.mxu1 %v7510_v20  ;;  %v1899_v44 = vld [vmem:[%s13510_s1 + $0x2620] sm:$0xff]  ;;  %v1902_v20 = vld [vmem:[%s13510_s1 + $0x2638] sm:$0xff] }
 0x2c0   : > { %v12369_v7 = vadd.f32 %v5594_v1, %v12140_v56  ;;  %v5595_v47 = vpop.f32.mrb[54].mxu1  ;;  %6935 = vmatprep.subr.bf16.mxu0 %v6934_v26  ;;  %v1904_v56 = vld [vmem:[%s13510_s1 + $0x2648] sm:$0xff]  ;;  %v7522_v2 = vpack.c.bf16 %v1902_v20, %v1899_v44  ;;  %v1851_v26 = vld [vmem:[%s13510_s1 + $0x24a0] sm:$0xff]  ;;  %v1869_v44 = vld [vmem:[%s13510_s1 + $0x2530] sm:$0xff] }
 0x2c1   : > { %v5596_v11 = vpop.f32.mrb[55].mxu1  ;;  %4616 = vmatmul.mubr.f32.vlgmr.msra.gmra.mrb[104].mxu1 %v12062_v28  ;;  %v1903_v28 = vld [vmem:[%s13510_s1 + $0x2640] sm:$0xff]  ;;  %v7524_v1 = vpack.c.bf16 %v1854_v23, %v1851_v26  ;;  %v1872_v20 = vld [vmem:[%s13510_s1 + $0x2548] sm:$0xff]  ;;  %v1934_v26 = vld [vmem:[%s13510_s1 + $0x2738] sm:$0xff] }
 0x2c2   : > { %v5597_v58 = vadd.f32 %v5596_v11, %v5595_v47  ;;  %7513 = vmatpush3.bf16.msra.mxu1 %v7512_v50  ;;  %4620 = vmatprep.mubr.f32.mxu1 %v12102_v18  ;;  %v6942_v18 = vpack.c.bf16 %v1907_v3, %v1904_v56  ;;  %v6944_v31 = vpack.c.bf16 %v1906_v17, %v1903_v28  ;;  %v1914_v47 = vld [vmem:[%s13510_s1 + $0x2698] sm:$0xff]  ;;  %v1863_v56 = vld [vmem:[%s13510_s1 + $0x2500] sm:$0xff]  ;;  %v1937_v23 = vld [vmem:[%s13510_s1 + $0x2750] sm:$0xff] }
 0x2c3   : > { %6937 = vmatpush1.bf16.msra.mxu0 %v6936_v53  ;;  %7515 = vmatprep.subr.bf16.mxu1 %v7514_v59  ;;  %v7526_v53 = vpack.c.bf16 %v1908_v48, %v1905_v46  ;;  %v1857_v59 = vld [vmem:[%s13510_s1 + $0x24d0] sm:$0xff]  ;;  %v7530_v11 = vpack.c.bf16 %v1914_v47, %v1911_v0  ;;  %v1866_v3 = vld [vmem:[%s13510_s1 + $0x2518] sm:$0xff]  ;;  %v1931_v28 = vld [vmem:[%s13510_s1 + $0x2720] sm:$0xff]  ;;  %v7536_v46 = vpack.c.bf16 %v1872_v20, %v1869_v44 }
 0x2c4   : > { %v12398_v15 = vadd.f32 %v5597_v58, %v12176_v16  ;;  %6939 = vmatprep.subr.bf16.mxu0 %v6938_v49  ;;  %v1910_v16 = vld [vmem:[%s13510_s1 + $0x2678] sm:$0xff]  ;;  %v7528_v14 = vpack.c.bf16 %v1860_v62, %v1857_v59  ;;  %v7532_v60 = vpack.c.bf16 %v1866_v3, %v1863_v56  ;;  %v1927_v17 = vld [vmem:[%s13510_s1 + $0x2700] sm:$0xff]  ;;  %v6962_v59 = vpack.c.bf16 %v1937_v23, %v1934_v26  ;;  %v1936_v62 = vld [vmem:[%s13510_s1 + $0x2748] sm:$0xff] }
 0x2c5   : > { %4621 = vmatmul.mubr.f32.gmra.mrb[106].mxu1 %v12124_v41  ;;  %v1909_v41 = vld [vmem:[%s13510_s1 + $0x2670] sm:$0xff]  ;;  %v6946_v45 = vpack.c.bf16 %v1913_v21, %v1910_v16  ;;  %v1922_v49 = vld [vmem:[%s13510_s1 + $0x26d8] sm:$0xff]  ;;  %v1943_v47 = vld [vmem:[%s13510_s1 + $0x2780] sm:$0xff] }
 0x2c6   : > { %7517 = vmatpush3.bf16.msra.mxu1 %v7516_v54  ;;  %4625 = vmatprep.mubr.f32.mxu1 %v12137_v32  ;;  %v1912_v32 = vld [vmem:[%s13510_s1 + $0x2688] sm:$0xff]  ;;  %v6954_v58 = vpack.c.bf16 %v1925_v35, %v1922_v49  ;;  %v1917_v54 = vld [vmem:[%s13510_s1 + $0x26b0] sm:$0xff] }
 0x2c7   : > { %6941 = vmatpush1.bf16.msra.mxu0 %v6940_v12  ;;  %7519 = vmatprep.subr.bf16.mxu1 %v7518_v40  ;;  %v6948_v50 = vpack.c.bf16 %v1912_v32, %v1909_v41  ;;  %v1920_v12 = vld [vmem:[%s13510_s1 + $0x26c8] sm:$0xff]  ;;  %v12518_v32 = vld [vmem:[%s8579_s9 + $0xc0] sm:$0xff]  ;;  %v1945_v20 = vld [vmem:[%s13510_s1 + $0x2790] sm:$0xff] }
 0x2c8   : > { %6943 = vmatprep.subr.bf16.mxu0 %v6942_v18  ;;  %v1928_v40 = vld [vmem:[%s13510_s1 + $0x2708] sm:$0xff]  ;;  %v7534_v18 = vpack.c.bf16 %v1920_v12, %v1917_v54  ;;  %v1942_v12 = vld [vmem:[%s13510_s1 + $0x2778] sm:$0xff] }
 0x2c9   : > { %4626 = vmatmul.mubr.f32.gmra.mrb[108].mxu1 %v12173_v33  ;;  %v1915_v33 = vld [vmem:[%s13510_s1 + $0x26a0] sm:$0xff]  ;;  %v6958_v21 = vpack.c.bf16 %v1931_v28, %v1928_v40  ;;  %v1932_v56 = vld [vmem:[%s13510_s1 + $0x2728] sm:$0xff]  ;;  %v1986_v28 = vld [vmem:[%s13510_s1 + $0x28d8] sm:$0xff] }
 0x2ca   : > { %7521 = vmatpush3.bf16.msra.mxu1 %v7520_v4  ;;  %4630 = vmatprep.mubr.f32.mxu1 %v12185_v25  ;;  %v1918_v25 = vld [vmem:[%s13510_s1 + $0x26b8] sm:$0xff]  ;;  %v608_v3 = vld [vmem:[%s8579_s9 + $0x1c8] sm:$0xff]  ;;  %v1983_v40 = vld [vmem:[%s13510_s1 + $0x28c0] sm:$0xff] }
 0x2cb   : > { %6945 = vmatpush1.bf16.msra.mxu0 %v6944_v31  ;;  %7523 = vmatprep.subr.bf16.mxu1 %v7522_v2  ;;  %v6952_v6 = vpack.c.bf16 %v1918_v25, %v1915_v33  ;;  %v1930_v4 = vld [vmem:[%s13510_s1 + $0x2718] sm:$0xff]  ;;  %v1923_v31 = vld [vmem:[%s13510_s1 + $0x26e0] sm:$0xff]  ;;  %v1980_v25 = vld [vmem:[%s13510_s1 + $0x28a8] sm:$0xff] }
 0x2cc   : > { %6947 = vmatprep.subr.bf16.mxu0 %v6946_v45  ;;  %v1926_v2 = vld [vmem:[%s13510_s1 + $0x26f8] sm:$0xff]  ;;  %v6960_v48 = vpack.c.bf16 %v1930_v4, %v1927_v17  ;;  %v1935_v4 = vld [vmem:[%s13510_s1 + $0x2740] sm:$0xff] }
 0x2cd   : > { %4631 = vmatmul.mubr.f32.gmra.mrb[110].mxu1 %v12210_v42  ;;  %v1921_v42 = vld [vmem:[%s13510_s1 + $0x26d0] sm:$0xff]  ;;  %v7538_v19 = vpack.c.bf16 %v1926_v2, %v1923_v31  ;;  %v1938_v31 = vld [vmem:[%s13510_s1 + $0x2758] sm:$0xff]  ;;  %v640_v2 = vld [vmem:[%s8579_s9 + $0x2c8] sm:$0xff] }
 0x2ce   : > { %7525 = vmatpush3.bf16.msra.mxu1 %v7524_v1  ;;  %4700 = vmatprep.mubr.f32.mxu1 %v12201_v10  ;;  %v1924_v10 = vld [vmem:[%s13510_s1 + $0x26e8] sm:$0xff]  ;;  %v1875_v1 = vld [vmem:[%s13510_s1 + $0x2560] sm:$0xff] }
 0x2cf   : > { %6949 = vmatpush1.bf16.msra.mxu0 %v6948_v50  ;;  %7527 = vmatprep.subr.bf16.mxu1 %v7526_v53  ;;  %v6956_v30 = vpack.c.bf16 %v1924_v10, %v1921_v42  ;;  %v1878_v50 = vld [vmem:[%s13510_s1 + $0x2578] sm:$0xff]  ;;  %v1929_v42 = vld [vmem:[%s13510_s1 + $0x2710] sm:$0xff] }
 0x2d0   : > { %6951 = vmatprep.subr.bf16.mxu0 %v6950_v63  ;;  %v1977_v63 = vld [vmem:[%s13510_s1 + $0x2890] sm:$0xff]  ;;  %v7540_v35 = vpack.c.bf16 %v1878_v50, %v1875_v1  ;;  %v7544_v44 = vpack.c.bf16 %v1932_v56, %v1929_v42  ;;  %v7548_v50 = vpack.c.bf16 %v1938_v31, %v1935_v4  ;;  %v671_v42 = vld [vmem:[%s8579_s9 + $0x3c0] sm:$0xff]  ;;  %v1956_v31 = vld [vmem:[%s13510_s1 + $0x27e8] sm:$0xff] }
 0x2d1   : > { %v1957_v56 = vld [vmem:[%s13510_s1 + $0x27f0] sm:$0xff] }
 0x2d2   : > { %7529 = vmatpush3.bf16.msra.mxu1 %v7528_v14  ;;  %v1939_v14 = vld [vmem:[%s13510_s1 + $0x2760] sm:$0xff]  ;;  %v1953_v4 = vld [vmem:[%s13510_s1 + $0x27d0] sm:$0xff] }
 0x2d3   : > { %6953 = vmatpush1.bf16.msra.mxu0 %v6952_v6  ;;  %7531 = vmatprep.subr.bf16.mxu1 %v7530_v11  ;;  %v6964_v6 = vpack.c.bf16 %v1936_v62, %v1933_v61  ;;  %v7542_v11 = vpack.c.bf16 %v1980_v25, %v1977_v63  ;;  %v1955_v61 = vld [vmem:[%s13510_s1 + $0x27e0] sm:$0xff]  ;;  %v1954_v63 = vld [vmem:[%s13510_s1 + $0x27d8] sm:$0xff]  ;;  %v1941_v25 = vld [vmem:[%s13510_s1 + $0x2770] sm:$0xff] }
 0x2d4   : > { %v5630_v16 = vpop.f32.mrb[56].mxu1  ;;  %6955 = vmatprep.subr.bf16.mxu0 %v6954_v58 }
 0x2d5   : > { %v5631_v41 = vpop.f32.mrb[57].mxu1 }
 0x2d6   : > { %v5632_v45 = vadd.f32 %v5631_v41, %v5630_v16  ;;  %7533 = vmatpush3.bf16.msra.mxu1 %v7532_v60  ;;  %v6968_v16 = vpack.c.bf16 %v1942_v12, %v1939_v14  ;;  %v1998_v14 = vld [vmem:[%s13510_s1 + $0x2938] sm:$0xff]  ;;  %v1947_v12 = vld [vmem:[%s13510_s1 + $0x27a0] sm:$0xff] }
 0x2d7   : > { %6957 = vmatpush1.bf16.msra.mxu0 %v6956_v30  ;;  %7535 = vmatprep.subr.bf16.mxu1 %v7534_v18  ;;  %v1949_v30 = vld [vmem:[%s13510_s1 + $0x27b0] sm:$0xff]  ;;  %v607_v18 = vld [vmem:[%s8579_s9 + $0x1c0] sm:$0xff] }
 0x2d8   : > { %v12530_v53 = vadd.f32 %v5632_v45, %v12315_v39  ;;  %v5633_v33 = vpop.f32.mrb[58].mxu1  ;;  %6959 = vmatprep.subr.bf16.mxu0 %v6958_v21  ;;  %v1940_v39 = vld [vmem:[%s13510_s1 + $0x2768] sm:$0xff]  ;;  %v7546_v21 = vpack.c.bf16 %v1986_v28, %v1983_v40  ;;  %v1950_v40 = vld [vmem:[%s13510_s1 + $0x27b8] sm:$0xff] }
 0x2d9   : > { %v5634_v0 = vpop.f32.mrb[59].mxu1  ;;  %v6966_v54 = vpack.c.bf16 %v1943_v47, %v1940_v39  ;;  %v1948_v45 = vld [vmem:[%s13510_s1 + $0x27a8] sm:$0xff] }
 0x2da   : > { %v5635_v49 = vadd.f32 %v5634_v0, %v5633_v33  ;;  %3325 = vmatmul.mubr.f32.vlgmr.msra.gmra.mrb[0].mxu0 %v12518_v32  ;;  %7537 = vmatpush3.bf16.msra.mxu1 %v7536_v46  ;;  %v1989_v46 = vld [vmem:[%s13510_s1 + $0x28f0] sm:$0xff]  ;;  %v639_v33 = vld [vmem:[%s8579_s9 + $0x2c0] sm:$0xff]  ;;  %v1944_v0 = vld [vmem:[%s13510_s1 + $0x2788] sm:$0xff] }
 0x2db   : > { %6961 = vmatpush1.bf16.msra.mxu0 %v6960_v48  ;;  %7539 = vmatprep.subr.bf16.mxu1 %v7538_v19  ;;  %v1992_v48 = vld [vmem:[%s13510_s1 + $0x2908] sm:$0xff] }
 0x2dc   : > { %v12559_v58 = vadd.f32 %v5635_v49, %v12342_v36  ;;  %v5636_v10 = vpop.f32.mrb[60].mxu1  ;;  %6963 = vmatprep.subr.bf16.mxu0 %v6962_v59  ;;  %3330 = vmatprep.mubr.f32.mxu0 %v608_v3  ;;  %v1946_v36 = vld [vmem:[%s13510_s1 + $0x2798] sm:$0xff]  ;;  %v1951_v59 = vld [vmem:[%s13510_s1 + $0x27c0] sm:$0xff]  ;;  %v7550_v62 = vpack.c.bf16 %v1992_v48, %v1989_v46  ;;  %v672_v49 = vld [vmem:[%s8579_s9 + $0x3c8] sm:$0xff] }
 0x2dd   : > { %v5637_v60 = vpop.f32.mrb[61].mxu1  ;;  %v6970_v23 = vpack.c.bf16 %v1949_v30, %v1946_v36  ;;  %v2004_v36 = vld [vmem:[%s13510_s1 + $0x2968] sm:$0xff]  ;;  %v578_v30 = vld [vmem:[%s8579_s9 + $0xd8] sm:$0xff]  ;;  %v1973_v48 = vld [vmem:[%s13510_s1 + $0x2870] sm:$0xff] }
 0x2de   : > { %v5638_v17 = vadd.f32 %v5637_v60, %v5636_v10  ;;  %7541 = vmatpush3.bf16.msra.mxu1 %v7540_v35  ;;  %3331 = vmatmul.mubr.f32.gmra.mrb[2].mxu0 %v607_v18  ;;  %v1995_v35 = vld [vmem:[%s13510_s1 + $0x2920] sm:$0xff]  ;;  %v2001_v60 = vld [vmem:[%s13510_s1 + $0x2950] sm:$0xff]  ;;  %v1970_v46 = vld [vmem:[%s13510_s1 + $0x2858] sm:$0xff] }
 0x2df   : > { %6965 = vmatpush1.bf16.msra.mxu0 %v6964_v6  ;;  %7543 = vmatprep.subr.bf16.mxu1 %v7542_v11  ;;  %v1958_v6 = vld [vmem:[%s13510_s1 + $0x27f8] sm:$0xff]  ;;  %v7552_v11 = vpack.c.bf16 %v1944_v0, %v1941_v25  ;;  %v7554_v10 = vpack.c.bf16 %v1998_v14, %v1995_v35  ;;  %v1976_v25 = vld [vmem:[%s13510_s1 + $0x2888] sm:$0xff]  ;;  %v1979_v0 = vld [vmem:[%s13510_s1 + $0x28a0] sm:$0xff] }
 0x2e0   : > { %v12588_v41 = vadd.f32 %v5638_v17, %v12369_v7  ;;  %v5639_v26 = vpop.f32.mrb[62].mxu1  ;;  %6967 = vmatprep.subr.bf16.mxu0 %v6966_v54  ;;  %3336 = vmatprep.mubr.f32.mxu0 %v640_v2  ;;  %v1952_v7 = vld [vmem:[%s13510_s1 + $0x27c8] sm:$0xff]  ;;  %v1967_v17 = vld [vmem:[%s13510_s1 + $0x2840] sm:$0xff] }
 0x2e1   : > { %v5640_v19 = vpop.f32.mrb[63].mxu1  ;;  %4701 = vmatmul.mubr.f32.vlgmr.msra.gmra.mrb[112].mxu1 %v12518_v32  ;;  %v6972_v32 = vpack.c.bf16 %v1948_v45, %v1945_v20  ;;  %v6974_v47 = vpack.c.bf16 %v1955_v61, %v1952_v7  ;;  %v1960_v54 = vld [vmem:[%s13510_s1 + $0x2808] sm:$0xff]  ;;  %v2010_v45 = vld [vmem:[%s13510_s1 + $0x2998] sm:$0xff]  ;;  %v1975_v14 = vld [vmem:[%s13510_s1 + $0x2880] sm:$0xff] }
 0x2e2   : > { %v5641_v1 = vadd.f32 %v5640_v19, %v5639_v26  ;;  %7545 = vmatpush3.bf16.msra.mxu1 %v7544_v44  ;;  %4705 = vmatprep.mubr.f32.mxu1 %v608_v3  ;;  %v6976_v3 = vpack.c.bf16 %v1954_v63, %v1951_v59  ;;  %v7556_v44 = vpack.c.bf16 %v1950_v40, %v1947_v12  ;;  %v1966_v26 = vld [vmem:[%s13510_s1 + $0x2838] sm:$0xff]  ;;  %v2016_v63 = vld [vmem:[%s13510_s1 + $0x29c8] sm:$0xff]  ;;  %v1985_v40 = vld [vmem:[%s13510_s1 + $0x28d0] sm:$0xff] }
 0x2e3   : > { %6969 = vmatpush1.bf16.msra.mxu0 %v6968_v16  ;;  %7547 = vmatprep.subr.bf16.mxu1 %v7546_v21  ;;  %v6980_v20 = vpack.c.bf16 %v1960_v54, %v1957_v56  ;;  %v7558_v16 = vpack.c.bf16 %v2004_v36, %v2001_v60  ;;  %v1963_v21 = vld [vmem:[%s13510_s1 + $0x2820] sm:$0xff]  ;;  %v7560_v19 = vpack.c.bf16 %v1956_v31, %v1953_v4  ;;  %v1978_v56 = vld [vmem:[%s13510_s1 + $0x2898] sm:$0xff]  ;;  %v1984_v4 = vld [vmem:[%s13510_s1 + $0x28c8] sm:$0xff] }
 0x2e4   : > { %v12620_v39 = vadd.f32 %v5641_v1, %v12398_v15  ;;  %6971 = vmatprep.subr.bf16.mxu0 %v6970_v23  ;;  %3337 = vmatmul.mubr.f32.gmra.mrb[4].mxu0 %v639_v33  ;;  %v1961_v15 = vld [vmem:[%s13510_s1 + $0x2810] sm:$0xff]  ;;  %v2007_v23 = vld [vmem:[%s13510_s1 + $0x2980] sm:$0xff]  ;;  %v6984_v7 = vpack.c.bf16 %v1966_v26, %v1963_v21  ;;  %v6986_v59 = vpack.c.bf16 %v1973_v48, %v1970_v46  ;;  %v1982_v12 = vld [vmem:[%s13510_s1 + $0x28b8] sm:$0xff] }
 0x2e5   : > { %4706 = vmatmul.mubr.f32.gmra.mrb[114].mxu1 %v607_v18  ;;  %3342 = vmatprep.mubr.f32.mxu0 %v672_v49  ;;  %v6978_v28 = vpack.c.bf16 %v1961_v15, %v1958_v6  ;;  %v1964_v18 = vld [vmem:[%s13510_s1 + $0x2828] sm:$0xff]  ;;  %v7562_v61 = vpack.c.bf16 %v2010_v45, %v2007_v23  ;;  %v1969_v1 = vld [vmem:[%s13510_s1 + $0x2850] sm:$0xff]  ;;  %v6992_v36 = vpack.c.bf16 %v1978_v56, %v1975_v14  ;;  %v1991_v23 = vld [vmem:[%s13510_s1 + $0x2900] sm:$0xff] }
 0x2e6   : > { %7549 = vmatpush3.bf16.msra.mxu1 %v7548_v50  ;;  %4710 = vmatprep.mubr.f32.mxu1 %v640_v2  ;;  %v6982_v2 = vpack.c.bf16 %v1967_v17, %v1964_v18  ;;  %v1959_v50 = vld [vmem:[%s13510_s1 + $0x2800] sm:$0xff]  ;;  %v1965_v6 = vld [vmem:[%s13510_s1 + $0x2830] sm:$0xff]  ;;  %v1968_v15 = vld [vmem:[%s13510_s1 + $0x2848] sm:$0xff]  ;;  %v6994_v21 = vpack.c.bf16 %v1985_v40, %v1982_v12 }
 0x2e7   : > { %6973 = vmatpush1.bf16.msra.mxu0 %v6972_v32  ;;  %7551 = vmatprep.subr.bf16.mxu1 %v7550_v62  ;;  %v1972_v32 = vld [vmem:[%s13510_s1 + $0x2868] sm:$0xff]  ;;  %v2013_v62 = vld [vmem:[%s13510_s1 + $0x29b0] sm:$0xff]  ;;  %v7568_v60 = vpack.c.bf16 %v1968_v15, %v1965_v6  ;;  %v1971_v17 = vld [vmem:[%s13510_s1 + $0x2860] sm:$0xff] }
 0x2e8   : > { %6975 = vmatprep.subr.bf16.mxu0 %v6974_v47  ;;  %3343 = vmatmul.mubr.f32.gmra.mrb[6].mxu0 %v671_v42  ;;  %v7566_v35 = vpack.c.bf16 %v2016_v63, %v2013_v62  ;;  %v1981_v18 = vld [vmem:[%s13510_s1 + $0x28b0] sm:$0xff]  ;;  %v2079_v62 = vld [vmem:[%s13510_s1 + $0x2bc0] sm:$0xff]  ;;  %v2082_v63 = vld [vmem:[%s13510_s1 + $0x2bd8] sm:$0xff] }
 0x2e9   : > { %4711 = vmatmul.mubr.f32.gmra.mrb[116].mxu1 %v639_v33  ;;  %3413 = vmatprep.mubr.f32.mxu0 %v578_v30  ;;  %v1962_v33 = vld [vmem:[%s13510_s1 + $0x2818] sm:$0xff]  ;;  %v2073_v31 = vld [vmem:[%s13510_s1 + $0x2b90] sm:$0xff]  ;;  %v6996_v48 = vpack.c.bf16 %v1984_v4, %v1981_v18  ;;  %v7578_v15 = vpack.c.bf16 %v2082_v63, %v2079_v62  ;;  %v1996_v12 = vld [vmem:[%s13510_s1 + $0x2928] sm:$0xff] }
 0x2ea   : > { %7553 = vmatpush3.bf16.msra.mxu1 %v7552_v11  ;;  %4715 = vmatprep.mubr.f32.mxu1 %v672_v49  ;;  %v7564_v47 = vpack.c.bf16 %v1962_v33, %v1959_v50  ;;  %v6988_v49 = vpack.c.bf16 %v1972_v32, %v1969_v1  ;;  %v2028_v1 = vld [vmem:[%s13510_s1 + $0x2a28] sm:$0xff]  ;;  %v1990_v32 = vld [vmem:[%s13510_s1 + $0x28f8] sm:$0xff]  ;;  %v2085_v40 = vld [vmem:[%s13510_s1 + $0x2bf0] sm:$0xff] }
 0x2eb   : > { %6977 = vmatpush1.bf16.msra.mxu0 %v6976_v3  ;;  %7555 = vmatprep.subr.bf16.mxu1 %v7554_v10  ;;  %v2019_v3 = vld [vmem:[%s13510_s1 + $0x29e0] sm:$0xff]  ;;  %v2022_v10 = vld [vmem:[%s13510_s1 + $0x29f8] sm:$0xff]  ;;  %v12823_v18 = vld [vmem:[%s8579_s9 + $0x1d0] sm:$0xff] }
 0x2ec   : > { %6979 = vmatprep.subr.bf16.mxu0 %v6978_v28  ;;  %v12791_v14 = vld [vmem:[%s8579_s9 + $0x1d8] sm:$0xff]  ;;  %v1999_v4 = vld [vmem:[%s13510_s1 + $0x2940] sm:$0xff] }
 0x2ed   : > { %4716 = vmatmul.mubr.f32.gmra.mrb[118].mxu1 %v671_v42  ;;  %v6990_v42 = vpack.c.bf16 %v1979_v0, %v1976_v25  ;;  %v1997_v0 = vld [vmem:[%s13510_s1 + $0x2930] sm:$0xff]  ;;  %v2034_v56 = vld [vmem:[%s13510_s1 + $0x2a58] sm:$0xff] }
 0x2ee   : > { %7557 = vmatpush3.bf16.msra.mxu1 %v7556_v44  ;;  %4785 = vmatprep.mubr.f32.mxu1 %v578_v30  ;;  %v7570_v30 = vpack.c.bf16 %v2022_v10, %v2019_v3  ;;  %v1974_v44 = vld [vmem:[%s13510_s1 + $0x2878] sm:$0xff] }
 0x2ef   : > { %6981 = vmatpush1.bf16.msra.mxu0 %v6980_v20  ;;  %7559 = vmatprep.subr.bf16.mxu1 %v7558_v16  ;;  %v7572_v46 = vpack.c.bf16 %v1974_v44, %v1971_v17  ;;  %v12826_v44 = vld [vmem:[%s8579_s9 + $0x2d8] sm:$0xff] }
 0x2f0   : > { %6983 = vmatprep.subr.bf16.mxu0 %v6982_v2  ;;  %v2076_v2 = vld [vmem:[%s13510_s1 + $0x2ba8] sm:$0xff]  ;;  %v2046_v62 = vld [vmem:[%s13510_s1 + $0x2ab8] sm:$0xff] }
 0x2f2   : > { %7561 = vmatpush3.bf16.msra.mxu1 %v7560_v19  ;;  %v7574_v19 = vpack.c.bf16 %v2076_v2, %v2073_v31  ;;  %v2037_v31 = vld [vmem:[%s13510_s1 + $0x2a70] sm:$0xff]  ;;  %v2040_v2 = vld [vmem:[%s13510_s1 + $0x2a88] sm:$0xff] }
 0x2f3   : > { %6985 = vmatpush1.bf16.msra.mxu0 %v6984_v7  ;;  %7563 = vmatprep.subr.bf16.mxu1 %v7562_v61  ;;  %v1987_v7 = vld [vmem:[%s13510_s1 + $0x28e0] sm:$0xff]  ;;  %v2025_v61 = vld [vmem:[%s13510_s1 + $0x2a10] sm:$0xff] }
 0x2f4   : > { %v5674_v11 = vpop.f32.mrb[64].mxu1  ;;  %6987 = vmatprep.subr.bf16.mxu0 %v6986_v59  ;;  %v7000_v6 = vpack.c.bf16 %v1990_v32, %v1987_v7  ;;  %v7584_v7 = vpack.c.bf16 %v2040_v2, %v2037_v31  ;;  %v2043_v32 = vld [vmem:[%s13510_s1 + $0x2aa0] sm:$0xff]  ;;  %v2058_v2 = vld [vmem:[%s13510_s1 + $0x2b18] sm:$0xff] }
 0x2f5   : > { %v5675_v54 = vpop.f32.mrb[65].mxu1  ;;  %v2055_v31 = vld [vmem:[%s13510_s1 + $0x2b00] sm:$0xff] }
 0x2f6   : > { %v5676_v28 = vadd.f32 %v5675_v54, %v5674_v11  ;;  %7565 = vmatpush3.bf16.msra.mxu1 %v7564_v47  ;;  %v1993_v11 = vld [vmem:[%s13510_s1 + $0x2910] sm:$0xff] }
 0x2f7   : > { %6989 = vmatpush1.bf16.msra.mxu0 %v6988_v49  ;;  %7567 = vmatprep.subr.bf16.mxu1 %v7566_v35  ;;  %v12788_v49 = vld [vmem:[%s8579_s9 + $0xd0] sm:$0xff]  ;;  %v7576_v35 = vpack.c.bf16 %v2028_v1, %v2025_v61  ;;  %v12861_v61 = vld [vmem:[%s8579_s9 + $0x3d8] sm:$0xff] }
 0x2f8   : > { %v12743_v20 = vadd.f32 %v5676_v28, %v12530_v53  ;;  %v5677_v16 = vpop.f32.mrb[66].mxu1  ;;  %6991 = vmatprep.subr.bf16.mxu0 %v6990_v42  ;;  %v1988_v53 = vld [vmem:[%s13510_s1 + $0x28e8] sm:$0xff]  ;;  %v2031_v42 = vld [vmem:[%s13510_s1 + $0x2a40] sm:$0xff] }
 0x2f9   : > { %v5678_v26 = vpop.f32.mrb[67].mxu1  ;;  %v6998_v59 = vpack.c.bf16 %v1991_v23, %v1988_v53  ;;  %v2088_v28 = vld [vmem:[%s13510_s1 + $0x2c08] sm:$0xff]  ;;  %v7580_v17 = vpack.c.bf16 %v2034_v56, %v2031_v42  ;;  %v2002_v23 = vld [vmem:[%s13510_s1 + $0x2958] sm:$0xff] }
 0x2fa   : > { %v5679_v45 = vadd.f32 %v5678_v26, %v5677_v16  ;;  %7569 = vmatpush3.bf16.msra.mxu1 %v7568_v60  ;;  %v7004_v16 = vpack.c.bf16 %v1996_v12, %v1993_v11  ;;  %v7008_v1 = vpack.c.bf16 %v2002_v23, %v1999_v4  ;;  %v2011_v11 = vld [vmem:[%s13510_s1 + $0x29a0] sm:$0xff]  ;;  %v12902_v12 = vld [vmem:[%s8579_s9 + $0xe8] sm:$0xff]  ;;  %v2017_v4 = vld [vmem:[%s13510_s1 + $0x29d0] sm:$0xff] }
 0x2fb   : > { %6993 = vmatpush1.bf16.msra.mxu0 %v6992_v36  ;;  %7571 = vmatprep.subr.bf16.mxu1 %v7570_v30  ;;  %v2003_v36 = vld [vmem:[%s13510_s1 + $0x2960] sm:$0xff]  ;;  %v2020_v23 = vld [vmem:[%s13510_s1 + $0x29e8] sm:$0xff] }
 0x2fc   : > { %v12770_v50 = vadd.f32 %v5679_v45, %v12559_v58  ;;  %v5680_v33 = vpop.f32.mrb[68].mxu1  ;;  %6995 = vmatprep.subr.bf16.mxu0 %v6994_v21  ;;  %v1994_v58 = vld [vmem:[%s13510_s1 + $0x2918] sm:$0xff]  ;;  %v7582_v21 = vpack.c.bf16 %v2088_v28, %v2085_v40  ;;  %v2091_v45 = vld [vmem:[%s13510_s1 + $0x2c20] sm:$0xff] }
 0x2fd   : > { %v5681_v25 = vpop.f32.mrb[69].mxu1  ;;  %v7002_v54 = vpack.c.bf16 %v1997_v0, %v1994_v58  ;;  %v2097_v58 = vld [vmem:[%s13510_s1 + $0x2c50] sm:$0xff]  ;;  %v2100_v0 = vld [vmem:[%s13510_s1 + $0x2c68] sm:$0xff]  ;;  %v2014_v28 = vld [vmem:[%s13510_s1 + $0x29b8] sm:$0xff] }
 0x2fe   : > { %v5682_v47 = vadd.f32 %v5681_v25, %v5680_v33  ;;  %7573 = vmatpush3.bf16.msra.mxu1 %v7572_v46  ;;  %v2094_v46 = vld [vmem:[%s13510_s1 + $0x2c38] sm:$0xff]  ;;  %v2008_v25 = vld [vmem:[%s13510_s1 + $0x2988] sm:$0xff]  ;;  %v7590_v56 = vpack.c.bf16 %v2100_v0, %v2097_v58  ;;  %v2115_v0 = vld [vmem:[%s13510_s1 + $0x2ce0] sm:$0xff] }
 0x2ff   : > { %6997 = vmatpush1.bf16.msra.mxu0 %v6996_v48  ;;  %7575 = vmatprep.subr.bf16.mxu1 %v7574_v19  ;;  %v2009_v48 = vld [vmem:[%s13510_s1 + $0x2990] sm:$0xff]  ;;  %v7586_v33 = vpack.c.bf16 %v2094_v46, %v2091_v45  ;;  %v2112_v46 = vld [vmem:[%s13510_s1 + $0x2cc8] sm:$0xff]  ;;  %v2026_v58 = vld [vmem:[%s13510_s1 + $0x2a18] sm:$0xff] }
 0x300   : > { %v12803_v3 = vadd.f32 %v5682_v47, %v12588_v41  ;;  %v5683_v10 = vpop.f32.mrb[70].mxu1  ;;  %6999 = vmatprep.subr.bf16.mxu0 %v6998_v59  ;;  %v2000_v41 = vld [vmem:[%s13510_s1 + $0x2948] sm:$0xff]  ;;  %v12858_v19 = vld [vmem:[%s8579_s9 + $0x2d0] sm:$0xff] }
 0x301   : > { %v5684_v60 = vpop.f32.mrb[71].mxu1  ;;  %4786 = vmatmul.mubr.f32.vlgmr.msra.gmra.mrb[120].mxu1 %v12788_v49  ;;  %v7006_v53 = vpack.c.bf16 %v2003_v36, %v2000_v41  ;;  %v2005_v59 = vld [vmem:[%s13510_s1 + $0x2970] sm:$0xff]  ;;  %v2012_v47 = vld [vmem:[%s13510_s1 + $0x29a8] sm:$0xff]  ;;  %v2106_v41 = vld [vmem:[%s13510_s1 + $0x2c98] sm:$0xff] }
 0x302   : > { %v5685_v30 = vadd.f32 %v5684_v60, %v5683_v10  ;;  %7577 = vmatpush3.bf16.msra.mxu1 %v7576_v35  ;;  %4790 = vmatprep.mubr.f32.mxu1 %v12791_v14  ;;  %v2015_v35 = vld [vmem:[%s13510_s1 + $0x29c0] sm:$0xff]  ;;  %v7012_v42 = vpack.c.bf16 %v2008_v25, %v2005_v59  ;;  %v2049_v10 = vld [vmem:[%s13510_s1 + $0x2ad0] sm:$0xff]  ;;  %v2018_v36 = vld [vmem:[%s13510_s1 + $0x29d8] sm:$0xff] }
 0x303   : > { %7001 = vmatpush1.bf16.msra.mxu0 %v7000_v6  ;;  %7579 = vmatprep.subr.bf16.mxu1 %v7578_v15  ;;  %v12890_v6 = vld [vmem:[%s8579_s9 + $0x3d0] sm:$0xff]  ;;  %v7588_v15 = vpack.c.bf16 %v2046_v62, %v2043_v32  ;;  %v7014_v40 = vpack.c.bf16 %v2015_v35, %v2012_v47  ;;  %v2103_v60 = vld [vmem:[%s13510_s1 + $0x2c80] sm:$0xff]  ;;  %v2064_v62 = vld [vmem:[%s13510_s1 + $0x2b48] sm:$0xff] }
 0x304   : > { %v12838_v26 = vadd.f32 %v5685_v30, %v12620_v39  ;;  %7003 = vmatprep.subr.bf16.mxu0 %v7002_v54  ;;  %v2006_v39 = vld [vmem:[%s13510_s1 + $0x2978] sm:$0xff]  ;;  %v2052_v54 = vld [vmem:[%s13510_s1 + $0x2ae8] sm:$0xff]  ;;  %v2021_v30 = vld [vmem:[%s13510_s1 + $0x29f0] sm:$0xff] }
 0x305   : > { %4791 = vmatmul.mubr.f32.gmra.mrb[122].mxu1 %v12823_v18  ;;  %v7010_v63 = vpack.c.bf16 %v2009_v48, %v2006_v39  ;;  %v2109_v45 = vld [vmem:[%s13510_s1 + $0x2cb0] sm:$0xff]  ;;  %v2024_v39 = vld [vmem:[%s13510_s1 + $0x2a08] sm:$0xff]  ;;  %v2027_v48 = vld [vmem:[%s13510_s1 + $0x2a20] sm:$0xff] }
 0x306   : > { %7581 = vmatpush3.bf16.msra.mxu1 %v7580_v17  ;;  %4795 = vmatprep.mubr.f32.mxu1 %v12826_v44  ;;  %v7592_v17 = vpack.c.bf16 %v2052_v54, %v2049_v10  ;;  %v2023_v59 = vld [vmem:[%s13510_s1 + $0x2a00] sm:$0xff]  ;;  %v2061_v32 = vld [vmem:[%s13510_s1 + $0x2b30] sm:$0xff]  ;;  %v7022_v25 = vpack.c.bf16 %v2027_v48, %v2024_v39  ;;  %v2118_v47 = vld [vmem:[%s13510_s1 + $0x2cf8] sm:$0xff] }
 0x307   : > { %7005 = vmatpush1.bf16.msra.mxu0 %v7004_v16  ;;  %7583 = vmatprep.subr.bf16.mxu1 %v7582_v21  ;;  %v7016_v16 = vpack.c.bf16 %v2014_v28, %v2011_v11  ;;  %v7594_v21 = vpack.c.bf16 %v2106_v41, %v2103_v60  ;;  %v2033_v11 = vld [vmem:[%s13510_s1 + $0x2a50] sm:$0xff]  ;;  %v7024_v10 = vpack.c.bf16 %v2026_v58, %v2023_v59  ;;  %v2070_v28 = vld [vmem:[%s13510_s1 + $0x2b78] sm:$0xff]  ;;  %v2035_v39 = vld [vmem:[%s13510_s1 + $0x2a60] sm:$0xff] }
 0x308   : > { %7007 = vmatprep.subr.bf16.mxu0 %v7006_v53  ;;  %v7018_v53 = vpack.c.bf16 %v2021_v30, %v2018_v36  ;;  %v7602_v54 = vpack.c.bf16 %v2118_v47, %v2115_v0  ;;  %v2029_v30 = vld [vmem:[%s13510_s1 + $0x2a30] sm:$0xff]  ;;  %v2038_v48 = vld [vmem:[%s13510_s1 + $0x2a78] sm:$0xff]  ;;  %v13014_v59 = vld [vmem:[%s8579_s9 + $0xe0] sm:$0xff] }
 0x309   : > { %4796 = vmatmul.mubr.f32.gmra.mrb[124].mxu1 %v12858_v19  ;;  %v2130_v58 = vld [vmem:[%s13510_s1 + $0x2d58] sm:$0xff] }
 0x30a   : > { %7585 = vmatpush3.bf16.msra.mxu1 %v7584_v7  ;;  %4800 = vmatprep.mubr.f32.mxu1 %v12861_v61  ;;  %v7596_v7 = vpack.c.bf16 %v2058_v2, %v2055_v31 }
 0x30b   : > { %7009 = vmatpush1.bf16.msra.mxu0 %v7008_v1  ;;  %7587 = vmatprep.subr.bf16.mxu1 %v7586_v33  ;;  %v7020_v1 = vpack.c.bf16 %v2020_v23, %v2017_v4  ;;  %v7598_v33 = vpack.c.bf16 %v2112_v46, %v2109_v45  ;;  %v2124_v23 = vld [vmem:[%s13510_s1 + $0x2d28] sm:$0xff] }
 0x30c   : > { %7011 = vmatprep.subr.bf16.mxu0 %v7010_v63 }
 0x30d   : > { %4801 = vmatmul.mubr.f32.gmra.mrb[126].mxu1 %v12890_v6 }
 0x30e   : > { %7589 = vmatpush3.bf16.msra.mxu1 %v7588_v15  ;;  %4870 = vmatprep.mubr.f32.mxu1 %v12902_v12  ;;  %v2030_v15 = vld [vmem:[%s13510_s1 + $0x2a38] sm:$0xff] }
 0x30f   : > { %7013 = vmatpush1.bf16.msra.mxu0 %v7012_v42  ;;  %7591 = vmatprep.subr.bf16.mxu1 %v7590_v56  ;;  %v7600_v56 = vpack.c.bf16 %v2064_v62, %v2061_v32  ;;  %v7026_v36 = vpack.c.bf16 %v2033_v11, %v2030_v15  ;;  %v7945_v62 = vmov 0.0|0.0   ;;  %v2044_v15 = vld [vmem:[%s13510_s1 + $0x2aa8] sm:$0xff] }
 0x310   : > { %7015 = vmatprep.subr.bf16.mxu0 %v7014_v40  ;;  %v2067_v40 = vld [vmem:[%s13510_s1 + $0x2b60] sm:$0xff] }
 0x311   : > { %v7604_v31 = vpack.c.bf16 %v2070_v28, %v2067_v40  ;;  %v13050_v40 = vld [vmem:[%s8579_s9 + $0x2e8] sm:$0xff]  ;;  %v2133_v28 = vld [vmem:[%s13510_s1 + $0x2d70] sm:$0xff] }
 0x312   : > { %7593 = vmatpush3.bf16.msra.mxu1 %v7592_v17  ;;  %v2032_v17 = vld [vmem:[%s13510_s1 + $0x2a48] sm:$0xff] }
 0x313   : > { %7017 = vmatpush1.bf16.msra.mxu0 %v7016_v16  ;;  %7595 = vmatprep.subr.bf16.mxu1 %v7594_v21  ;;  %v2036_v21 = vld [vmem:[%s13510_s1 + $0x2a68] sm:$0xff]  ;;  %v7028_v2 = vpack.c.bf16 %v2032_v17, %v2029_v30  ;;  %v2047_v17 = vld [vmem:[%s13510_s1 + $0x2ac0] sm:$0xff] }
 0x314   : > { %v5718_v63 = vpop.f32.mrb[72].mxu1  ;;  %7019 = vmatprep.subr.bf16.mxu0 %v7018_v53  ;;  %v2121_v53 = vld [vmem:[%s13510_s1 + $0x2d10] sm:$0xff] }
 0x315   : > { %v5719_v35 = vpop.f32.mrb[73].mxu1  ;;  %v7607_v32 = vpack.c.bf16 %v2124_v23, %v2121_v53  ;;  %v2053_v23 = vld [vmem:[%s13510_s1 + $0x2af0] sm:$0xff] }
 0x316   : > { %v5720_v42 = vadd.f32 %v5719_v35, %v5718_v63  ;;  %7597 = vmatpush3.bf16.msra.mxu1 %v7596_v7  ;;  %v13019_v63 = vld [vmem:[%s8579_s9 + $0x1e8] sm:$0xff]  ;;  %v2041_v35 = vld [vmem:[%s13510_s1 + $0x2a90] sm:$0xff] }
 0x317   : > { %7021 = vmatpush1.bf16.msra.mxu0 %v7020_v1  ;;  %7599 = vmatprep.subr.bf16.mxu1 %v7598_v33  ;;  %v2045_v1 = vld [vmem:[%s13510_s1 + $0x2ab0] sm:$0xff] }
 0x318   : > { %v12976_v60 = vadd.f32 %v5720_v42, %v12743_v20  ;;  %v5721_v41 = vpop.f32.mrb[74].mxu1  ;;  %7023 = vmatprep.subr.bf16.mxu0 %v7022_v25  ;;  %v2039_v20 = vld [vmem:[%s13510_s1 + $0x2a80] sm:$0xff] }
 0x319   : > { %v5722_v16 = vpop.f32.mrb[75].mxu1  ;;  %v2127_v25 = vld [vmem:[%s13510_s1 + $0x2d40] sm:$0xff] }
 0x31a   : > { %v5723_v4 = vadd.f32 %v5722_v16, %v5721_v41  ;;  %3414 = vmatmul.mubr.f32.vlgmr.msra.gmra.mrb[0].mxu0 %v12788_v49  ;;  %7601 = vmatpush3.bf16.msra.mxu1 %v7600_v56  ;;  %v7030_v49 = vpack.c.bf16 %v2039_v20, %v2036_v21  ;;  %v2051_v42 = vld [vmem:[%s13510_s1 + $0x2ae0] sm:$0xff]  ;;  %v2136_v41 = vld [vmem:[%s13510_s1 + $0x2d88] sm:$0xff]  ;;  %v2050_v16 = vld [vmem:[%s13510_s1 + $0x2ad8] sm:$0xff] }
 0x31b   : > { %7025 = vmatpush1.bf16.msra.mxu0 %v7024_v10  ;;  %7603 = vmatprep.subr.bf16.mxu1 %v7602_v54  ;;  %v13046_v10 = vld [vmem:[%s8579_s9 + $0x1e0] sm:$0xff]  ;;  %v7610_v54 = vpack.c.bf16 %v2130_v58, %v2127_v25  ;;  %v2057_v21 = vld [vmem:[%s13510_s1 + $0x2b10] sm:$0xff] }
 0x31c   : > { %v12998_v45 = vadd.f32 %v5723_v4, %v12770_v50  ;;  %v5724_v46 = vpop.f32.mrb[76].mxu1  ;;  %7027 = vmatprep.subr.bf16.mxu0 %v7026_v36  ;;  %3419 = vmatprep.mubr.f32.mxu0 %v12791_v14  ;;  %v2042_v50 = vld [vmem:[%s13510_s1 + $0x2a98] sm:$0xff]  ;;  %v7032_v14 = vpack.c.bf16 %v2038_v48, %v2035_v39  ;;  %v13078_v20 = vld [vmem:[%s8579_s9 + $0x2e0] sm:$0xff]  ;;  %v7613_v4 = vpack.c.bf16 %v2136_v41, %v2133_v28  ;;  %v2069_v25 = vld [vmem:[%s13510_s1 + $0x2b70] sm:$0xff] }
 0x31d   : > { %v5725_v7 = vpop.f32.mrb[77].mxu1  ;;  %v7034_v47 = vpack.c.bf16 %v2045_v1, %v2042_v50  ;;  %v2063_v39 = vld [vmem:[%s13510_s1 + $0x2b40] sm:$0xff]  ;;  %v2145_v50 = vld [vmem:[%s13510_s1 + $0x2dd0] sm:$0xff]  ;;  %v2148_v1 = vld [vmem:[%s13510_s1 + $0x2de8] sm:$0xff] }
 0x31e   : > { %v5726_v33 = vadd.f32 %v5725_v7, %v5724_v46  ;;  %7605 = vmatpush3.bf16.msra.mxu1 %v7604_v31  ;;  %3420 = vmatmul.mubr.f32.gmra.mrb[2].mxu0 %v12823_v18  ;;  %v13082_v31 = vld [vmem:[%s8579_s9 + $0x3e8] sm:$0xff]  ;;  %v13107_v48 = vld [vmem:[%s8579_s9 + $0x3e0] sm:$0xff]  ;;  %v7619_v58 = vpack.c.bf16 %v2148_v1, %v2145_v50  ;;  %v2157_v41 = vld [vmem:[%s13510_s1 + $0x2e30] sm:$0xff] }
 0x31f   : > { %7029 = vmatpush1.bf16.msra.mxu0 %v7028_v2  ;;  %7606 = vmatprep.subr.bf16.mxu1 %v7945_v62  ;;  %v2139_v2 = vld [vmem:[%s13510_s1 + $0x2da0] sm:$0xff]  ;;  %v2056_v46 = vld [vmem:[%s13510_s1 + $0x2b08] sm:$0xff]  ;;  %v2077_v50 = vld [vmem:[%s13510_s1 + $0x2bb0] sm:$0xff] }
 0x320   : > { %v13028_v0 = vadd.f32 %v5726_v33, %v12803_v3  ;;  %v5727_v18 = vpop.f32.mrb[78].mxu1  ;;  %7031 = vmatprep.subr.bf16.mxu0 %v7030_v49  ;;  %3425 = vmatprep.mubr.f32.mxu0 %v12826_v44  ;;  %v2048_v3 = vld [vmem:[%s13510_s1 + $0x2ac8] sm:$0xff]  ;;  %v7036_v44 = vpack.c.bf16 %v2044_v15, %v2041_v35  ;;  %v2059_v33 = vld [vmem:[%s13510_s1 + $0x2b20] sm:$0xff]  ;;  %v2154_v15 = vld [vmem:[%s13510_s1 + $0x2e18] sm:$0xff] }
 0x321   : > { %v5728_v11 = vpop.f32.mrb[79].mxu1  ;;  %4871 = vmatmul.mubr.f32.vlgmr.msra.gmra.mrb[128].mxu1 %v13014_v59  ;;  %v7038_v30 = vpack.c.bf16 %v2051_v42, %v2048_v3  ;;  %v2060_v49 = vld [vmem:[%s13510_s1 + $0x2b28] sm:$0xff]  ;;  %v2151_v35 = vld [vmem:[%s13510_s1 + $0x2e00] sm:$0xff]  ;;  %v2065_v3 = vld [vmem:[%s13510_s1 + $0x2b50] sm:$0xff] }
 0x322   : > { %v5729_v56 = vadd.f32 %v5728_v11, %v5727_v18  ;;  %7608 = vmatpush1.bf16.msra.mxu1 %v7607_v32  ;;  %4875 = vmatprep.mubr.f32.mxu1 %v13019_v63  ;;  %v2062_v32 = vld [vmem:[%s13510_s1 + $0x2b38] sm:$0xff]  ;;  %v2068_v42 = vld [vmem:[%s13510_s1 + $0x2b68] sm:$0xff] }
 0x323   : > { %7033 = vmatpush1.bf16.msra.mxu0 %v7032_v14  ;;  %7609 = vmatprep.subr.bf16.mxu1 %v7945_v62  ;;  %v2066_v14 = vld [vmem:[%s13510_s1 + $0x2b58] sm:$0xff]  ;;  %v7052_v28 = vpack.c.bf16 %v2068_v42, %v2065_v3  ;;  %v2080_v1 = vld [vmem:[%s13510_s1 + $0x2bc8] sm:$0xff] }
 0x324   : > { %v13059_v36 = vadd.f32 %v5729_v56, %v12838_v26  ;;  %7035 = vmatprep.subr.bf16.mxu0 %v7034_v47  ;;  %3426 = vmatmul.mubr.f32.gmra.mrb[4].mxu0 %v12858_v19  ;;  %v2054_v26 = vld [vmem:[%s13510_s1 + $0x2af8] sm:$0xff]  ;;  %v7040_v19 = vpack.c.bf16 %v2050_v16, %v2047_v17  ;;  %v7048_v47 = vpack.c.bf16 %v2062_v32, %v2059_v33  ;;  %v2072_v56 = vld [vmem:[%s13510_s1 + $0x2b88] sm:$0xff] }
 0x325   : > { %4876 = vmatmul.mubr.f32.gmra.mrb[130].mxu1 %v13046_v10  ;;  %3431 = vmatprep.mubr.f32.mxu0 %v12861_v61  ;;  %v2142_v61 = vld [vmem:[%s13510_s1 + $0x2db8] sm:$0xff]  ;;  %v7042_v53 = vpack.c.bf16 %v2057_v21, %v2054_v26  ;;  %v7050_v11 = vpack.c.bf16 %v2069_v25, %v2066_v14  ;;  %v2071_v26 = vld [vmem:[%s13510_s1 + $0x2b80] sm:$0xff]  ;;  %v2084_v33 = vld [vmem:[%s13510_s1 + $0x2be8] sm:$0xff]  ;;  %v7060_v25 = vpack.c.bf16 %v2080_v1, %v2077_v50 }
 0x326   : > { %7611 = vmatpush1.bf16.msra.mxu1 %v7610_v54  ;;  %4880 = vmatprep.mubr.f32.mxu1 %v13050_v40  ;;  %v7616_v7 = vpack.c.bf16 %v2142_v61, %v2139_v2  ;;  %v7913_v18 = vld [vmem:[%s8579_s9 + $0xf8] sm:$0xff]  ;;  %v2075_v54 = vld [vmem:[%s13510_s1 + $0x2ba0] sm:$0xff]  ;;  %v2081_v2 = vld [vmem:[%s13510_s1 + $0x2bd0] sm:$0xff] }
 0x327   : > { %7037 = vmatpush1.bf16.msra.mxu0 %v7036_v44  ;;  %7612 = vmatprep.subr.bf16.mxu1 %v7945_v62  ;;  %v7622_v44 = vpack.c.bf16 %v2154_v15, %v2151_v35  ;;  %v7054_v16 = vpack.c.bf16 %v2075_v54, %v2072_v56  ;;  %v2074_v21 = vld [vmem:[%s13510_s1 + $0x2b98] sm:$0xff] }
 0x328   : > { %7039 = vmatprep.subr.bf16.mxu0 %v7038_v30  ;;  %3432 = vmatmul.mubr.f32.gmra.mrb[6].mxu0 %v12890_v6  ;;  %v7044_v6 = vpack.c.bf16 %v2056_v46, %v2053_v23  ;;  %v2160_v30 = vld [vmem:[%s13510_s1 + $0x2e48] sm:$0xff]  ;;  %v7056_v23 = vpack.c.bf16 %v2074_v21, %v2071_v26  ;;  %v2163_v46 = vld [vmem:[%s13510_s1 + $0x2e60] sm:$0xff]  ;;  %v2086_v3 = vld [vmem:[%s13510_s1 + $0x2bf8] sm:$0xff] }
 0x329   : > { %4881 = vmatmul.mubr.f32.gmra.mrb[132].mxu1 %v13078_v20  ;;  %3502 = vmatprep.mubr.f32.mxu0 %v12902_v12  ;;  %v7046_v12 = vpack.c.bf16 %v2063_v39, %v2060_v49  ;;  %v2166_v49 = vld [vmem:[%s13510_s1 + $0x2e78] sm:$0xff]  ;;  %v2089_v21 = vld [vmem:[%s13510_s1 + $0x2c10] sm:$0xff] }
 0x32a   : > { %7614 = vmatpush1.bf16.msra.mxu1 %v7613_v4  ;;  %4885 = vmatprep.mubr.f32.mxu1 %v13082_v31  ;;  %v7628_v14 = vpack.c.bf16 %v2166_v49, %v2163_v46  ;;  %v2090_v56 = vld [vmem:[%s13510_s1 + $0x2c18] sm:$0xff] }
 0x32b   : > { %7041 = vmatpush1.bf16.msra.mxu0 %v7040_v19  ;;  %7615 = vmatprep.subr.bf16.mxu1 %v7945_v62  ;;  %v2078_v19 = vld [vmem:[%s13510_s1 + $0x2bb8] sm:$0xff] }
 0x32c   : > { %7043 = vmatprep.subr.bf16.mxu0 %v7042_v53  ;;  %v7625_v53 = vpack.c.bf16 %v2160_v30, %v2157_v41  ;;  %v2175_v41 = vld [vmem:[%s13510_s1 + $0x2ec0] sm:$0xff]  ;;  %v2178_v30 = vld [vmem:[%s13510_s1 + $0x2ed8] sm:$0xff] }
 0x32d   : > { %4886 = vmatmul.mubr.f32.gmra.mrb[134].mxu1 %v13107_v48  ;;  %v2102_v50 = vld [vmem:[%s13510_s1 + $0x2c78] sm:$0xff] }
 0x32e   : > { %7617 = vmatpush1.bf16.msra.mxu1 %v7616_v7  ;;  %5366 = vmatprep.mubr.msk.f32.mxu1 %vm2179_vm0, %v7913_v18  ;;  %v2172_v18 = vld [vmem:[%s13510_s1 + $0x2ea8] sm:$0xff] }
 0x32f   : > { %7045 = vmatpush1.bf16.msra.mxu0 %v7044_v6  ;;  %7618 = vmatprep.subr.bf16.mxu1 %v7945_v62  ;;  %v7058_v6 = vpack.c.bf16 %v2081_v2, %v2078_v19  ;;  %v2096_v2 = vld [vmem:[%s13510_s1 + $0x2c48] sm:$0xff] }
 0x330   : > { %7047 = vmatprep.subr.bf16.mxu0 %v7046_v12 }
 0x332   : > { %7620 = vmatpush1.bf16.msra.mxu1 %v7619_v58  ;;  %v2169_v58 = vld [vmem:[%s13510_s1 + $0x2e90] sm:$0xff] }
 0x333   : > { %7049 = vmatpush1.bf16.msra.mxu0 %v7048_v47  ;;  %7621 = vmatprep.subr.bf16.mxu1 %v7945_v62 }
 0x334   : > { %v5762_v17 = vpop.f32.mrb[80].mxu1  ;;  %7051 = vmatprep.subr.bf16.mxu0 %v7050_v11  ;;  %v2083_v11 = vld [vmem:[%s13510_s1 + $0x2be0] sm:$0xff] }
 0x335   : > { %v5763_v4 = vpop.f32.mrb[81].mxu1 }
 0x336   : > { %v5764_v61 = vadd.f32 %v5763_v4, %v5762_v17  ;;  %7623 = vmatpush1.bf16.msra.mxu1 %v7622_v44  ;;  %v7631_v44 = vpack.c.bf16 %v2172_v18, %v2169_v58  ;;  %v2092_v4 = vld [vmem:[%s13510_s1 + $0x2c28] sm:$0xff]  ;;  %v7915_v58 = vld [vmem:[%s8579_s9 + $0x1f8] sm:$0xff] }
 0x337   : > { %7053 = vmatpush1.bf16.msra.mxu0 %v7052_v28  ;;  %7624 = vmatprep.subr.bf16.mxu1 %v7945_v62  ;;  %v7064_v28 = vpack.c.bf16 %v2086_v3, %v2083_v11  ;;  %v2110_v11 = vld [vmem:[%s13510_s1 + $0x2cb8] sm:$0xff]  ;;  %v7916_v3 = vld [vmem:[%s8579_s9 + $0x1f0] sm:$0xff] }
 0x338   : > { %v13177_v39 = vadd.f32 %v5764_v61, %v12976_v60  ;;  %v5765_v7 = vpop.f32.mrb[82].mxu1  ;;  %7055 = vmatprep.subr.bf16.mxu0 %v7054_v16  ;;  %v2087_v60 = vld [vmem:[%s13510_s1 + $0x2c00] sm:$0xff] }
 0x339   : > { %v5766_v12 = vpop.f32.mrb[83].mxu1  ;;  %v7062_v15 = vpack.c.bf16 %v2087_v60, %v2084_v33  ;;  %v2101_v33 = vld [vmem:[%s13510_s1 + $0x2c70] sm:$0xff]  ;;  %v2104_v60 = vld [vmem:[%s13510_s1 + $0x2c88] sm:$0xff] }
 0x33a   : > { %v5767_v32 = vadd.f32 %v5766_v12, %v5765_v7  ;;  %7626 = vmatpush1.bf16.msra.mxu1 %v7625_v53  ;;  %v7634_v53 = vpack.c.bf16 %v2178_v30, %v2175_v41  ;;  %v2095_v7 = vld [vmem:[%s13510_s1 + $0x2c40] sm:$0xff]  ;;  %v7076_v18 = vpack.c.bf16 %v2104_v60, %v2101_v33  ;;  %v2116_v41 = vld [vmem:[%s13510_s1 + $0x2ce8] sm:$0xff]  ;;  %v7918_v30 = vld [vmem:[%s8579_s9 + $0x2f0] sm:$0xff] }
 0x33b   : > { %7057 = vmatpush1.bf16.msra.mxu0 %v7056_v23  ;;  %7627 = vmatprep.subr.bf16.mxu1 %v7945_v62  ;;  %v7068_v23 = vpack.c.bf16 %v2092_v4, %v2089_v21 }
 0x33c   : > { %v13199_v47 = vadd.f32 %v5767_v32, %v12998_v45  ;;  %v5768_v35 = vpop.f32.mrb[84].mxu1  ;;  %7059 = vmatprep.subr.bf16.mxu0 %v7058_v6  ;;  %v2093_v45 = vld [vmem:[%s13510_s1 + $0x2c30] sm:$0xff]  ;;  %v2098_v6 = vld [vmem:[%s13510_s1 + $0x2c58] sm:$0xff] }
 0x33d   : > { %v5769_v42 = vpop.f32.mrb[85].mxu1  ;;  %v7066_v26 = vpack.c.bf16 %v2093_v45, %v2090_v56  ;;  %v7072_v1 = vpack.c.bf16 %v2098_v6, %v2095_v7  ;;  %v7914_v32 = vld [vmem:[%s8579_s9 + $0xf0] sm:$0xff]  ;;  %v7917_v45 = vld [vmem:[%s8579_s9 + $0x2f8] sm:$0xff] }
 0x33e   : > { %v5770_v54 = vadd.f32 %v5769_v42, %v5768_v35  ;;  %7629 = vmatpush1.bf16.msra.mxu1 %v7628_v14  ;;  %v2108_v14 = vld [vmem:[%s13510_s1 + $0x2ca8] sm:$0xff]  ;;  %v2114_v42 = vld [vmem:[%s13510_s1 + $0x2cd8] sm:$0xff]  ;;  %v2117_v56 = vld [vmem:[%s13510_s1 + $0x2cf0] sm:$0xff] }
 0x33f   : > { %7061 = vmatpush1.bf16.msra.mxu0 %v7060_v25  ;;  %7630 = vmatprep.subr.bf16.mxu1 %v7945_v62  ;;  %v2111_v25 = vld [vmem:[%s13510_s1 + $0x2cc0] sm:$0xff] }
 0x340   : > { %v13221_v17 = vadd.f32 %v5770_v54, %v13028_v0  ;;  %v5771_v16 = vpop.f32.mrb[86].mxu1  ;;  %7063 = vmatprep.subr.bf16.mxu0 %v7062_v15  ;;  %v2099_v0 = vld [vmem:[%s13510_s1 + $0x2c60] sm:$0xff]  ;;  %v7078_v35 = vpack.c.bf16 %v2111_v25, %v2108_v14 }
 0x341   : > { %v5772_v19 = vpop.f32.mrb[87].mxu1  ;;  %v7070_v49 = vpack.c.bf16 %v2099_v0, %v2096_v2  ;;  %v2107_v15 = vld [vmem:[%s13510_s1 + $0x2ca0] sm:$0xff] }
 0x342   : > { %v5773_v61 = vadd.f32 %v5772_v19, %v5771_v16  ;;  %7632 = vmatpush1.bf16.msra.mxu1 %v7631_v44  ;;  %v7080_v54 = vpack.c.bf16 %v2110_v11, %v2107_v15  ;;  %v7082_v44 = vpack.c.bf16 %v2117_v56, %v2114_v42  ;;  %v7919_v16 = vld [vmem:[%s8579_s9 + $0x3f8] sm:$0xff]  ;;  %v7920_v19 = vld [vmem:[%s8579_s9 + $0x3f0] sm:$0xff] }
 0x343   : > { %7065 = vmatpush1.bf16.msra.mxu0 %v7064_v28  ;;  %7633 = vmatprep.subr.bf16.mxu1 %v7945_v62  ;;  %v2113_v28 = vld [vmem:[%s13510_s1 + $0x2cd0] sm:$0xff] }
 0x344   : > { %v13237_v46 = vadd.f32 %v5773_v61, %v13059_v36  ;;  %7067 = vmatprep.subr.bf16.mxu0 %v7066_v26  ;;  %v2105_v36 = vld [vmem:[%s13510_s1 + $0x2c90] sm:$0xff]  ;;  %v7084_v26 = vpack.c.bf16 %v2116_v41, %v2113_v28 }
 0x345   : > { %v7074_v12 = vpack.c.bf16 %v2105_v36, %v2102_v50 }
 0x346   : > { %7635 = vmatpush1.bf16.msra.mxu1 %v7634_v53 }
 0x347   : > { %7069 = vmatpush1.bf16.msra.mxu0 %v7068_v23 }
 0x348   : > { %7071 = vmatprep.subr.bf16.mxu0 %v7070_v49 }
 0x349   : > { %4956 = vmatmul.mubr.f32.vlgmr.msra.gmra.mrb[136].mxu1 %v7914_v32 }
 0x34a   : > { %5367 = vmatprep.mubr.msk.f32.mxu1 %vm2179_vm0, %v7915_v58 }
 0x34b   : > { %7073 = vmatpush1.bf16.msra.mxu0 %v7072_v1 }
 0x34c   : > { %7075 = vmatprep.subr.bf16.mxu0 %v7074_v12 }
 0x34d   : > { %4961 = vmatmul.mubr.f32.gmra.mrb[138].mxu1 %v7916_v3 }
 0x34e   : > { %5368 = vmatprep.mubr.msk.f32.mxu1 %vm2179_vm0, %v7917_v45 }
 0x34f   : > { %7077 = vmatpush1.bf16.msra.mxu0 %v7076_v18 }
 0x350   : > { %7079 = vmatprep.subr.bf16.mxu0 %v7078_v35 }
 0x351   : > { %4966 = vmatmul.mubr.f32.gmra.mrb[140].mxu1 %v7918_v30 }
 0x352   : > { %5369 = vmatprep.mubr.msk.f32.mxu1 %vm2179_vm0, %v7919_v16 }
 0x353   : > { %7081 = vmatpush1.bf16.msra.mxu0 %v7080_v54 }
 0x354   : > { %v5806_v21 = vpop.f32.mrb[88].mxu1  ;;  %7083 = vmatprep.subr.bf16.mxu0 %v7082_v44 }
 0x355   : > { %v5807_v4 = vpop.f32.mrb[89].mxu1  ;;  %4971 = vmatmul.mubr.f32.gmra.mrb[142].mxu1 %v7920_v19  ;;  %v5041_v19 = vld [vmem:[%s13512_s3 + $0x108] sm:$0xff] }
 0x356   : > { %v5808_v2 = vadd.f32 %v5807_v4, %v5806_v21  ;;  %v5040_v4 = vld [vmem:[%s13512_s3 + $0x100] sm:$0xff] }
 0x357   : > { %7085 = vmatpush1.bf16.msra.mxu0 %v7084_v26 }
 0x358   : > { %v4448_v0 = vadd.f32 %v5808_v2, %v13177_v39  ;;  %v5809_v61 = vpop.f32.mrb[90].mxu1  ;;  %7668 = vmatprep.subr.bf16.mxu0 %v7945_v62  ;;  %v7669_v2 = vpack.c.bf16 %v5041_v19, %v5040_v4  ;;  %v5016_v4 = vld [vmem:[%s13512_s3 + $0x40] sm:$0xff]  ;;  %v5017_v19 = vld [vmem:[%s13512_s3 + $0x48] sm:$0xff] }
 0x359   : > { %v5810_v53 = vpop.f32.mrb[91].mxu1 }
 0x35a   : > { %3503 = vmatmul.mubr.f32.vlgmr.msra.gmra.mrb[0].mxu0 %v13014_v59  ;;  %v5811_v23 = vadd.f32 %v5810_v53, %v5809_v61  ;;  %v5024_v61 = vld [vmem:[%s13512_s3 + $0x80] sm:$0xff]  ;;  %v5025_v53 = vld [vmem:[%s13512_s3 + $0x88] sm:$0xff] }
 0x35b   : > { %3508 = vmatprep.mubr.f32.mxu0 %v13019_v63  ;;  %7670 = vmatpush3.bf16.msra.mxu0 %v7669_v2  ;;  %v7654_v2 = vpack.c.bf16 %v5017_v19, %v5016_v4 }
 0x35c   : > { %v4453_v49 = vadd.f32 %v5811_v23, %v13199_v47  ;;  %v5812_v7 = vpop.f32.mrb[92].mxu1  ;;  %v7636_v23 = vpack.c.bf16 %v5025_v53, %v5024_v61  ;;  %7671 = vmatprep.subr.bf16.mxu0 %v7945_v62 }
 0x35d   : > { %v5813_v6 = vpop.f32.mrb[93].mxu1 }
 0x35e   : > { %3509 = vmatmul.mubr.f32.gmra.mrb[2].mxu0 %v13046_v10  ;;  %v5814_v50 = vadd.f32 %v5813_v6, %v5812_v7  ;;  %v5009_v7 = vld [vmem:[%s13512_s3 + $0x8] sm:$0xff]  ;;  %v5042_v6 = vld [vmem:[%s13512_s3 + $0x110] sm:$0xff]  ;;  %7637 = vmatprep.subr.bf16.mxu1 %v7636_v23 }
 0x35f   : > { %3514 = vmatprep.mubr.f32.mxu0 %v13050_v40 }
 0x360   : > { %v4458_v39 = vadd.f32 %v5814_v50, %v13221_v17  ;;  %v5815_v36 = vpop.f32.mrb[94].mxu1 }
 0x361   : > { %v5816_v1 = vpop.f32.mrb[95].mxu1 }
 0x362   : > { %3515 = vmatmul.mubr.f32.gmra.mrb[4].mxu0 %v13078_v20  ;;  %v5817_v12 = vadd.f32 %v5816_v1, %v5815_v36  ;;  %v5026_v1 = vld [vmem:[%s13512_s3 + $0x90] sm:$0xff] }
 0x363   : > { %3520 = vmatprep.mubr.f32.mxu0 %v13082_v31 }
 0x364   : > { %v4463_v59 = vadd.f32 %v5817_v12, %v13237_v46  ;;  %v5027_v12 = vld [vmem:[%s13512_s3 + $0x98] sm:$0xff] }
 0x366   : > { %3521 = vmatmul.mubr.f32.gmra.mrb[6].mxu0 %v13107_v48 }
 0x374   : > { %v5850_v63 = vpop.f32.mrb[96].mxu1 }
 0x375   : > { %v5851_v47 = vpop.f32.mrb[97].mxu1 }
 0x376   : > { %v5852_v33 = vadd.f32 %v5851_v47, %v5850_v63  ;;  %v5010_v63 = vld [vmem:[%s13512_s3 + $0x10] sm:$0xff]  ;;  %v5011_v47 = vld [vmem:[%s13512_s3 + $0x18] sm:$0xff] }
 0x378   : > { %v4533_v10 = vadd.f32 %v5852_v33, %v4448_v0  ;;  %v5853_v60 = vpop.f32.mrb[98].mxu1  ;;  %v5044_v33 = vld [vmem:[%s13512_s3 + $0x120] sm:$0xff] }
 0x379   : > { %v5854_v32 = vpop.f32.mrb[99].mxu1 }
 0x37a   : > { %v5855_v40 = vadd.f32 %v5854_v32, %v5853_v60  ;;  %v5045_v60 = vld [vmem:[%s13512_s3 + $0x128] sm:$0xff] }
 0x37b   : > { %v7675_v32 = vpack.c.bf16 %v5045_v60, %v5044_v33  ;;  %v5020_v60 = vld [vmem:[%s13512_s3 + $0x60] sm:$0xff] }
 0x37c   : > { %v4538_v14 = vadd.f32 %v5855_v40, %v4453_v49  ;;  %v5856_v17 = vpop.f32.mrb[100].mxu1  ;;  %v5008_v49 = vld [vmem:[%s13512_s3] sm:$0xff] }
 0x37d   : > { %v5857_v25 = vpop.f32.mrb[101].mxu1  ;;  %v7638_v50 = vpack.c.bf16 %v5009_v7, %v5008_v49  ;;  %v5028_v40 = vld [vmem:[%s13512_s3 + $0xa0] sm:$0xff]  ;;  %v5034_v49 = vld [vmem:[%s13512_s3 + $0xd0] sm:$0xff]  ;;  %v5035_v7 = vld [vmem:[%s13512_s3 + $0xd8] sm:$0xff] }
 0x37e   : > { %v5858_v58 = vadd.f32 %v5857_v25, %v5856_v17  ;;  %v5012_v25 = vld [vmem:[%s13512_s3 + $0x20] sm:$0xff] }
 0x37f   : > { %7639 = vmatpush3.bf16.msra.mxu1 %v7638_v50  ;;  %v7656_v50 = vpack.c.bf16 %v5035_v7, %v5034_v49 }
 0x380   : > { %v4543_v18 = vadd.f32 %v5858_v58, %v4458_v39  ;;  %v5859_v20 = vpop.f32.mrb[102].mxu1  ;;  %v5043_v39 = vld [vmem:[%s13512_s3 + $0x118] sm:$0xff]  ;;  %v5013_v58 = vld [vmem:[%s13512_s3 + $0x28] sm:$0xff] }
 0x381   : > { %v5860_v35 = vpop.f32.mrb[103].mxu1  ;;  %v7672_v36 = vpack.c.bf16 %v5043_v39, %v5042_v6  ;;  %v5018_v39 = vld [vmem:[%s13512_s3 + $0x50] sm:$0xff] }
 0x382   : > { %v5861_v15 = vadd.f32 %v5860_v35, %v5859_v20  ;;  %v7646_v20 = vpack.c.bf16 %v5013_v58, %v5012_v25  ;;  %v5047_v35 = vld [vmem:[%s13512_s3 + $0x138] sm:$0xff]  ;;  %v5038_v25 = vld [vmem:[%s13512_s3 + $0xf0] sm:$0xff] }
 0x383   : > { %7673 = vmatpush3.bf16.msra.mxu0 %v7672_v36  ;;  %v5039_v58 = vld [vmem:[%s13512_s3 + $0xf8] sm:$0xff] }
 0x384   : > { %v4548_v31 = vadd.f32 %v5861_v15, %v4463_v59  ;;  %v7640_v59 = vpack.c.bf16 %v5027_v12, %v5026_v1  ;;  %7674 = vmatprep.subr.bf16.mxu0 %v7945_v62 }
 0x386   : > { %7641 = vmatprep.subr.bf16.mxu1 %v7640_v59 }
 0x387   : > { %7676 = vmatpush3.bf16.msra.mxu0 %v7675_v32 }
 0x388   : > { %7677 = vmatprep.subr.bf16.mxu0 %v7945_v62 }
 0x394   : > { %v5894_v11 = vpop.f32.mrb[104].mxu1 }
 0x395   : > { %v5895_v46 = vpop.f32.mrb[105].mxu1 }
 0x396   : > { %v5896_v3 = vadd.f32 %v5895_v46, %v5894_v11  ;;  %v5031_v11 = vld [vmem:[%s13512_s3 + $0xb8] sm:$0xff] }
 0x398   : > { %v13303_v48 = vadd.f32 %v5896_v3, %v4533_v10  ;;  %v5897_v42 = vpop.f32.mrb[106].mxu1  ;;  %v7642_v10 = vpack.c.bf16 %v5011_v47, %v5010_v63  ;;  %v5014_v3 = vld [vmem:[%s13512_s3 + $0x30] sm:$0xff]  ;;  %v5036_v63 = vld [vmem:[%s13512_s3 + $0xe0] sm:$0xff]  ;;  %v5037_v47 = vld [vmem:[%s13512_s3 + $0xe8] sm:$0xff] }
 0x399   : > { %v5898_v56 = vpop.f32.mrb[107].mxu1 }
 0x39a   : > { %v5899_v45 = vadd.f32 %v5898_v56, %v5897_v42  ;;  %7643 = vmatpush3.bf16.msra.mxu1 %v7642_v10  ;;  %v5015_v42 = vld [vmem:[%s13512_s3 + $0x38] sm:$0xff]  ;;  %v7947_v56 = vmov 0.0   ;;  %v7660_v10 = vpack.c.bf16 %v5037_v47, %v5036_v63 }
 0x39b   : > { %6106 = vmatprep.mubr.msk.f32.mxu0 %vm7946_vm1, %v7947_v56 }
 0x39c   : > { %v13305_v54 = vadd.f32 %v5899_v45, %v4538_v14  ;;  %v5900_v44 = vpop.f32.mrb[108].mxu1  ;;  %v5029_v14 = vld [vmem:[%s13512_s3 + $0xa8] sm:$0xff]  ;;  %v7650_v45 = vpack.c.bf16 %v5015_v42, %v5014_v3 }
 0x39d   : > { %v5901_v28 = vpop.f32.mrb[109].mxu1  ;;  %v7644_v17 = vpack.c.bf16 %v5029_v14, %v5028_v40 }
 0x39e   : > { %v5902_v41 = vadd.f32 %v5901_v28, %v5900_v44 }
 0x39f   : > { %7645 = vmatprep.subr.bf16.mxu1 %v7644_v17 }
 0x3a0   : > { %v13307_v30 = vadd.f32 %v5902_v41, %v4543_v18  ;;  %v5903_v16 = vpop.f32.mrb[110].mxu1  ;;  %v5046_v18 = vld [vmem:[%s13512_s3 + $0x130] sm:$0xff]  ;;  %7647 = vmatpush3.bf16.msra.mxu1 %v7646_v20  ;;  %v5032_v41 = vld [vmem:[%s13512_s3 + $0xc0] sm:$0xff]  ;;  %v7664_v20 = vpack.c.bf16 %v5039_v58, %v5038_v25 }
 0x3a1   : > { %v5904_v26 = vpop.f32.mrb[111].mxu1  ;;  %v7678_v15 = vpack.c.bf16 %v5047_v35, %v5046_v18  ;;  %v5022_v35 = vld [vmem:[%s13512_s3 + $0x70] sm:$0xff] }
 0x3a2   : > { %v5905_v21 = vadd.f32 %v5904_v26, %v5903_v16  ;;  %v5033_v16 = vld [vmem:[%s13512_s3 + $0xc8] sm:$0xff] }
 0x3a3   : > { %7679 = vmatpush3.bf16.msra.mxu0 %v7678_v15 }
 0x3a4   : > { %v13315_v0 = vadd.f32 %v5905_v21, %v4548_v31  ;;  %v5030_v31 = vld [vmem:[%s13512_s3 + $0xb0] sm:$0xff]  ;;  %v7652_v21 = vpack.c.bf16 %v5033_v16, %v5032_v41 }
 0x3a5   : > { %v7648_v46 = vpack.c.bf16 %v5031_v11, %v5030_v31 }
 0x3a7   : > { %7649 = vmatprep.subr.bf16.mxu1 %v7648_v46 }
 0x3a8   : > { %7651 = vmatpush3.bf16.msra.mxu1 %v7650_v45 }
 0x3a9   : > { %7653 = vmatprep.subr.bf16.mxu1 %v7652_v21 }
 0x3ac   : > { %7655 = vmatpush3.bf16.msra.mxu1 %v7654_v2 }
 0x3ad   : > { %7657 = vmatprep.subr.bf16.mxu1 %v7656_v50 }
 0x3b4   : > { %v5938_v44 = vpop.f32.mrb[112].mxu1 }
 0x3b5   : > { %v5939_v28 = vpop.f32.mrb[113].mxu1 }
 0x3b6   : > { %v5940_v26 = vadd.f32 %v5939_v28, %v5938_v44 }
 0x3b8   : > { %v4703_v61 = vadd.f32 %v5940_v26, %v13303_v48  ;;  %v5941_v53 = vpop.f32.mrb[114].mxu1  ;;  %v5019_v48 = vld [vmem:[%s13512_s3 + $0x58] sm:$0xff] }
 0x3b9   : > { %v5942_v23 = vpop.f32.mrb[115].mxu1  ;;  %v7658_v36 = vpack.c.bf16 %v5019_v48, %v5018_v39 }
 0x3ba   : > { %v5943_v6 = vadd.f32 %v5942_v23, %v5941_v53 }
 0x3bb   : > { %7659 = vmatpush3.bf16.msra.mxu1 %v7658_v36 }
 0x3bc   : > { %v4708_v1 = vadd.f32 %v5943_v6, %v13305_v54  ;;  %v5944_v12 = vpop.f32.mrb[116].mxu1  ;;  %v5021_v54 = vld [vmem:[%s13512_s3 + $0x68] sm:$0xff]  ;;  %7661 = vmatprep.subr.bf16.mxu1 %v7660_v10 }
 0x3bd   : > { %v5945_v59 = vpop.f32.mrb[117].mxu1  ;;  %v7662_v32 = vpack.c.bf16 %v5021_v54, %v5020_v60 }
 0x3be   : > { %v5946_v33 = vadd.f32 %v5945_v59, %v5944_v12 }
 0x3bf   : > { %7663 = vmatpush3.bf16.msra.mxu1 %v7662_v32 }
 0x3c0   : > { %v4713_v40 = vadd.f32 %v5946_v33, %v13307_v30  ;;  %v5947_v14 = vpop.f32.mrb[118].mxu1  ;;  %v5023_v30 = vld [vmem:[%s13512_s3 + $0x78] sm:$0xff]  ;;  %7665 = vmatprep.subr.bf16.mxu1 %v7664_v20 }
 0x3c1   : > { %v5948_v17 = vpop.f32.mrb[119].mxu1  ;;  %v7666_v15 = vpack.c.bf16 %v5023_v30, %v5022_v35 }
 0x3c2   : > { %v5949_v18 = vadd.f32 %v5948_v17, %v5947_v14 }
 0x3c3   : > { %7667 = vmatpush3.bf16.msra.mxu1 %v7666_v15 }
 0x3c4   : > { %v4718_v31 = vadd.f32 %v5949_v18, %v13315_v0  ;;  %7680 = vmatprep.subr.bf16.mxu1 %v7945_v62 }
 0x3d4   : > { %v5982_v11 = vpop.f32.mrb[120].mxu1 }
 0x3d5   : > { %v5983_v46 = vpop.f32.mrb[121].mxu1 }
 0x3d6   : > { %v5984_v3 = vadd.f32 %v5983_v46, %v5982_v11  ;;  %v4985_v11 = vld [vmem:[%s13511_s2] sm:$0x7] }
 0x3d8   : > { %v4788_v42 = vadd.f32 %v5984_v3, %v4703_v61  ;;  %v5985_v45 = vpop.f32.mrb[122].mxu1 }
 0x3d9   : > { %v5986_v44 = vpop.f32.mrb[123].mxu1 }
 0x3da   : > { %v5987_v28 = vadd.f32 %v5986_v44, %v5985_v45 }
 0x3dc   : > { %v4793_v41 = vadd.f32 %v5987_v28, %v4708_v1  ;;  %v5988_v16 = vpop.f32.mrb[124].mxu1 }
 0x3dd   : > { %v5989_v26 = vpop.f32.mrb[125].mxu1 }
 0x3de   : > { %v5990_v21 = vadd.f32 %v5989_v26, %v5988_v16 }
 0x3e0   : > { %v4798_v4 = vadd.f32 %v5990_v21, %v4713_v40  ;;  %v5991_v19 = vpop.f32.mrb[126].mxu1  ;;  %v4987_v40 = vlaneseq }
 0x3e1   : > { %v5992_v2 = vpop.f32.mrb[127].mxu1 }
 0x3e2   : > { %v5993_v53 = vadd.f32 %v5992_v2, %v5991_v19  ;;  %v4988_v18 = vshrl.u32 %v4987_v40, 7 }
 0x3e4   : > { %v4803_v0 = vadd.f32 %v5993_v53, %v4718_v31  ;;  %v4997_v15 = vsub.s32 2, %v4988_v18 }
 0x3e6   : > { %v4998_v45 = vrot.slane %v4985_v11, %v4997_v15 }
 0x3f4   : > { %v6026_v23 = vpop.f32.mrb[128].mxu1 }
 0x3f5   : > { %v6027_v49 = vpop.f32.mrb[129].mxu1 }
 0x3f6   : > { %v6028_v7 = vadd.f32 %v6027_v49, %v6026_v23 }
 0x3f8   : > { %v6029_v6 = vpop.f32.mrb[130].mxu1  ;;  %v4873_v50 = vadd.f32 %v6028_v7, %v4788_v42 }
 0x3f9   : > { %v6030_v39 = vpop.f32.mrb[131].mxu1 }
 0x3fa   : > { %v6031_v48 = vadd.f32 %v6030_v39, %v6029_v6 }
 0x3fc   : > { %v6032_v61 = vpop.f32.mrb[132].mxu1  ;;  %v4878_v36 = vadd.f32 %v6031_v48, %v4793_v41 }
 0x3fd   : > { %v6033_v12 = vpop.f32.mrb[133].mxu1 }
 0x3fe   : > { %v6034_v59 = vadd.f32 %v6033_v12, %v6032_v61 }
 0x400   : > { %v6035_v1 = vpop.f32.mrb[134].mxu1  ;;  %v4883_v63 = vadd.f32 %v6034_v59, %v4798_v4 }
 0x401   : > { %v6036_v47 = vpop.f32.mrb[135].mxu1 }
 0x402   : > { %v6037_v33 = vadd.f32 %v6036_v47, %v6035_v1 }
 0x404   : > { %v4888_v10 = vadd.f32 %v6037_v33, %v4803_v0 }
 0x41c   : > { %v4957_v60 = vpop.f32.mrb[136].mxu1 }
 0x41d   : > { %v4958_v54 = vadd.f32 %v4957_v60, %v4873_v50  ;;  %v4959_v32 = vpop.f32.mrb[137].mxu1 }
 0x41e   : > { %v5202_v32 = vld [vmem:[%s13514_s5 + $0x18] sm:$0xff] }
 0x420   : > { %v4962_v14 = vpop.f32.mrb[138].mxu1 }
 0x421   : > { %v4963_v17 = vadd.f32 %v4962_v14, %v4878_v36  ;;  %v4964_v25 = vpop.f32.mrb[139].mxu1  ;;  %v4989_v36 = vsub.s32 0, %v4988_v18  ;;  %v5203_v14 = vld [vmem:[%s13514_s5 + $0x20] sm:$0xff] }
 0x423   : > { %v4978_v58 = vmax.f32 %v4958_v54, %v4963_v17  ;;  %v5204_v17 = vld [vmem:[%s13514_s5 + $0x28] sm:$0xff] }
 0x424   : > { %v4967_v20 = vpop.f32.mrb[140].mxu1  ;;  %v7687_v25 = vpack.c.bf16 %v5204_v17, %v5203_v14 }
 0x425   : > { %v4968_v35 = vadd.f32 %v4967_v20, %v4883_v63  ;;  %v4969_v30 = vpop.f32.mrb[141].mxu1  ;;  %v4990_v63 = vrot.slane %v4985_v11, %v4989_v36 }
 0x428   : > { %v4972_v31 = vpop.f32.mrb[142].mxu1 }
 0x429   : > { %v4973_v46 = vadd.f32 %v4972_v31, %v4888_v10  ;;  %v4974_v3 = vpop.f32.mrb[143].mxu1 }
 0x42b   : > { %v4981_v42 = vmax.f32 %v4968_v35, %v4973_v46  ;;  %v5370_v35 = vld [vmem:[%s13513_s4] ss:$0 sm:$0xff] }
 0x42d   : > { %v4984_v44 = vmax.f32 %v4978_v58, %v4981_v42  ;;  %v3504_v28 = vpop.f32.mrb[0].mxu0  ;;  %v5205_v58 = vld [vmem:[%s13514_s5 + $0x30] sm:$0x3] }
 0x42e   : > { %v7689_v41 = vadd.f32 %v3504_v28, %v10880_v8  ;;  %v3506_v16 = vpop.f32.mrb[1].mxu0 }
 0x42f   : > { %v5004_v26 = vadd.f32 %v4998_v45, %v4984_v44  ;;  %v7691_v21 = vadd.f32 %v3506_v16, %v10891_v13 }
 0x430   : > { %v7690_v4 = vadd.f32 %v7689_v41, %v11155_v34 }
 0x431   : > { %v5007_v19 = vmax.f32 %v5004_v26, 0.0  ;;  %v7692_v2 = vadd.f32 %v7691_v21, %v11163_v37  ;;  %v3510_v53 = vpop.f32.mrb[2].mxu0 }
 0x432   : > { %v7693_v0 = vadd.f32 %v3510_v53, %v10910_v24  ;;  %v3512_v23 = vpop.f32.mrb[3].mxu0 }
 0x433   : > { %v7695_v49 = vadd.f32 %v3512_v23, %v10921_v29  ;;  %6107 = vmatmul.mubr.msk.f32.vlgmr.msra.gmra.mrb[8].mxu0 %vm5055_vm2, %v5007_v19 }
 0x434   : > { %v7694_v7 = vadd.f32 %v7693_v0, %v11184_v51 }
 0x435   : > { %v7696_v8 = vadd.f32 %v7695_v49, %v11192_v55  ;;  %v3516_v6 = vpop.f32.mrb[4].mxu0  ;;  %v4993_v55 = vsub.s32 1, %v4988_v18 }
 0x436   : > { %v4976_v50 = vmax.f32 %v7690_v4, %v7694_v7  ;;  %v7697_v13 = vadd.f32 %v3516_v6, %v10938_v38  ;;  %v3518_v34 = vpop.f32.mrb[5].mxu0 }
 0x437   : > { %v4977_v39 = vmax.f32 %v7692_v2, %v7696_v8  ;;  %v7699_v48 = vadd.f32 %v3518_v34, %v10949_v43  ;;  %v4994_v43 = vrot.slane %v4985_v11, %v4993_v55 }
 0x438   : > { %v7698_v37 = vadd.f32 %v7697_v13, %v11214_v5 }
 0x439   : > { %v7700_v24 = vadd.f32 %v7699_v48, %v11222_v9  ;;  %v3522_v61 = vpop.f32.mrb[6].mxu0 }
 0x43a   : > { %v7701_v29 = vadd.f32 %v3522_v61, %v10966_v52  ;;  %v3524_v12 = vpop.f32.mrb[7].mxu0  ;;  %v5199_v52 = vld [vmem:[%s13514_s5] sm:$0xff] }
 0x43b   : > { %v7703_v51 = vadd.f32 %v3524_v12, %v10977_v57  ;;  %v5200_v57 = vld [vmem:[%s13514_s5 + $0x8] sm:$0xff] }
 0x43c   : > { %v7702_v59 = vadd.f32 %v7701_v29, %v11243_v22  ;;  %v5201_v22 = vld [vmem:[%s13514_s5 + $0x10] sm:$0xff] }
 0x43d   : > { %v7704_v38 = vadd.f32 %v7703_v51, %v11252_v27  ;;  %v7681_v27 = vpack.c.bf16 %v5200_v57, %v5199_v52  ;;  %v7684_v40 = vpack.c.bf16 %v5202_v32, %v5201_v22 }
 0x43e   : > { %v4979_v1 = vmax.f32 %v7698_v37, %v7702_v59 }
 0x43f   : > { %v4980_v47 = vmax.f32 %v7700_v24, %v7704_v38 }
 0x440   : > { %v4982_v33 = vmax.f32 %v4976_v50, %v4979_v1 }
 0x441   : > { %v4983_v5 = vmax.f32 %v4977_v39, %v4980_v47 }
 0x442   : > { %v5002_v10 = vadd.f32 %v4990_v63, %v4982_v33 }
 0x443   : > { %v5003_v9 = vadd.f32 %v4994_v43, %v4983_v5 }
 0x444   : > { %v5005_v54 = vmax.f32 %v5002_v10, 0.0 }
 0x445   : > { %v5006_v60 = vmax.f32 %v5003_v9, 0.0 }
 0x447   : > { %5123 = vmatprep.mubr.f32.mxu1 %v5006_v60 }
 0x448   : > { %5124 = vmatmul.mubr.f32.vlgmr.msra.gmra.mrb[144].mxu1 %v5005_v54 }
 0x449   : > { %6123 = vmatprep.mubr.msk.f32.mxu1 %vm7946_vm1, %v7947_v56  ;;  %7682 = vmatpush3.bf16.msra.mxu1 %v7681_v27 }
 0x44a   : > { %7683 = vmatprep.subr.bf16.mxu1 %v7945_v62 }
 0x44d   : > { %7685 = vmatpush3.bf16.msra.mxu1 %v7684_v40 }
 0x44e   : > { %7686 = vmatprep.subr.bf16.mxu1 %v7945_v62 }
 0x451   : > { %7688 = vmatpush3.bf16.msra.mxu1 %v7687_v25 }
 0x452   : > { %6121 = vmatprep.subr.mxu1 %v7947_v56  ;;  %v5372_v56 = vld [vmem:[%s13515_s6] ss:$0 sm:$0xff] }
 0x455   : > { %6122 = vmatpush3.msk.msra.mxu1 %vm5217_vm3, %v5205_v58 }
 0x506   : > { %v5195_v62 = vpop.f32.mrb[8].mxu0 }
 0x507   : > { %v6108_v18 = vpop.f32.mrb[9].mxu0 }
 0x51b   : > { %v6070_v20 = vpop.f32.mrb[144].mxu1 }
 0x51c   : > { %v6071_v30 = vpop.f32.mrb[145].mxu1 }
 0x51d   : > { %v6072_v15 = vadd.f32 %v6071_v30, %v6070_v20 }
 0x51f   : > { %v5126_v31 = vadd.f32 %v6072_v15, %v5370_v35 }
 0x521   : > { %v5196_v11 = vadd.f32 %v5195_v62, %v5126_v31 }
 0x523   : > { %6124 = vmatmul.mubr.msk.f32.vlgmr.msra.gmra.mrb[146].mxu1 %vm5213_vm4, %v5196_v11 }
 0x5f6   : > { %v5287_v46 = vpop.f32.mrb[146].mxu1 }
 0x5f7   : > { %v5288_v3 = vadd.f32 %v5372_v56, %v5287_v46  ;;  %v6125_v42 = vpop.f32.mrb[147].mxu1 }
 0x5f9   : > { %5292 = vst.msk [vmem:[%s550_s20] sm:$0xff] %vm5291_vm5, %v5288_v3 }
 0x5fa PF: > { %p14_p9 = scmp.ge.s32.totalorder %s8005_s28, 4   ;;  %s13517_s24 = smov %s7939_s25 }
 0x5fb   : > { %s13518_s25 = smov %s8014_s8  ;;  %s13519_s26 = smov %s8005_s28 }
 0x5fc   :  { %16 = sbr.rel (!%p14_p9) target bundleno = 2 (0x2), region = 106 }

</bundles_post_ra>
